<compile_context>
chip_gen: v6e
topology: v6e:2x2x1
jax: 0.10.0
libtpu: 0.0.40
codegen_flags: <defaults>
</compile_context>

<pallas_src>
import functools
import math

import numpy as np
import jax
import jax.numpy as jnp
from jax.experimental import pallas as pl
from jax.experimental.pallas import tpu as pltpu


# ---------------------------------------------------------------------------
# Model configuration (small, consistent with the module's forward contract)
# ---------------------------------------------------------------------------
IMG_SIZE = 32
IN_CHANS = 3
PATCH_SIZE = 4
EMBED_DIM = 32
NUM_HEADS = (2, 4)
WINDOW_SIZE = 4
MLP_RATIO = 4
N_OUTPUTS = 5
HEAD_PAD = 128                       # lane-dense padded head width

GRID0 = IMG_SIZE // PATCH_SIZE       # 8x8 patch grid after patch embed
TOKENS_S0 = GRID0 * GRID0            # 64 tokens / image, stage 0
DIM_S0 = EMBED_DIM                   # 32
GRID1 = GRID0 // 2                   # 4x4 grid after patch merging
TOKENS_S1 = GRID1 * GRID1            # 16 tokens / image, stage 1
DIM_S1 = 2 * EMBED_DIM               # 64
NUM_FEATURES = TOKENS_S1 * DIM_S1    # 1024 = flattened backbone features
PATCH_FEATS = PATCH_SIZE * PATCH_SIZE * IN_CHANS   # 48

# TODO(synk): shifted-window (SW-MSA) masking is omitted because this
# miniature uses depths=(1,1) (regular W-MSA blocks only); dropout/droppath
# are identity at inference and are not emitted.


# ---------------------------------------------------------------------------
# Static token-layout tables (numpy, built once at import).
#
# Token order per image:  t = q*16 + w*4 + g  with
#   q in {0..3}: position inside the 2x2 patch-merging group (timm x0..x3),
#   w in {0..3}: which 4x4 attention window (row-major over the 2x2 windows),
#   g in {0..3}: which 2x2 merge group inside the window (row-major).
# This single ordering makes (a) window membership a pure function of w
# (baked into the additive attention constant), and (b) patch merging the
# lane-concat of four *contiguous* 16-row blocks — no in-kernel gather.
# ---------------------------------------------------------------------------
def _build_token_layout():
    perm = np.zeros(TOKENS_S0, np.int32)     # my token t -> row-major patch idx
    win = np.zeros(TOKENS_S0, np.int32)      # window id of token t
    wli = np.zeros(TOKENS_S0, np.int32)      # intra-window row of token t
    wlj = np.zeros(TOKENS_S0, np.int32)      # intra-window col of token t
    dq = ((0, 0), (1, 0), (0, 1), (1, 1))    # timm x0, x1, x2, x3 offsets
    for q in range(4):
        for w in range(4):
            wi, wj = divmod(w, 2)
            for g in range(4):
                gi, gj = divmod(g, 2)
                di, dj = dq[q]
                li, lj = gi * 2 + di, gj * 2 + dj
                i, j = wi * WINDOW_SIZE + li, wj * WINDOW_SIZE + lj
                t = q * 16 + w * 4 + g
                perm[t] = i * GRID0 + j
                win[t] = w
                wli[t], wlj[t] = li, lj
    return perm, win, wli, wlj


def _build_stage1_layout():
    # stage-1 token m = w*4 + g sits at merged-grid coords (2*wi+gi, 2*wj+gj)
    ii = np.zeros(TOKENS_S1, np.int32)
    jj = np.zeros(TOKENS_S1, np.int32)
    for w in range(4):
        wi, wj = divmod(w, 2)
        for g in range(4):
            gi, gj = divmod(g, 2)
            m = w * 4 + g
            ii[m], jj[m] = wi * 2 + gi, wj * 2 + gj
    return ii, jj


TOKEN_PERM, WIN_ID, WLI, WLJ = _build_token_layout()
S1_I, S1_J = _build_stage1_layout()
S1_SPATIAL = S1_I * GRID1 + S1_J              # stage-1 token -> row-major idx
TOKEN_PERM_J = jnp.asarray(TOKEN_PERM)


def _build_attn_add0(table):
    """Per-image (heads, 64, 64): rel-pos bias for same-window pairs, -1e9
    across windows.  Flat in batch size (applied via broadcast over B)."""
    rel = ((WLI[:, None] - WLI[None, :] + WINDOW_SIZE - 1) * (2 * WINDOW_SIZE - 1)
           + (WLJ[:, None] - WLJ[None, :] + WINDOW_SIZE - 1))
    bias = np.transpose(np.asarray(table, np.float32)[rel], (2, 0, 1))
    same = WIN_ID[:, None] == WIN_ID[None, :]
    add = np.where(same[None], bias, -1e9).astype(np.float32)
    return jnp.asarray(add)


def _build_attn_add1(table):
    """Per-image (heads, 16, 16): stage-1 has one window per image, so only
    the relative-position bias is needed (batch isolation comes from the
    batched einsum, not a mask)."""
    rel = ((S1_I[:, None] - S1_I[None, :] + WINDOW_SIZE - 1) * (2 * WINDOW_SIZE - 1)
           + (S1_J[:, None] - S1_J[None, :] + WINDOW_SIZE - 1))
    bias = np.transpose(np.asarray(table, np.float32)[rel], (2, 0, 1))
    return jnp.asarray(bias.astype(np.float32))


# ---------------------------------------------------------------------------
# In-kernel helpers (pure jnp, traced inside the kernel body)
# ---------------------------------------------------------------------------
def _ln(x, g, b, eps=1e-5):
    mu = jnp.mean(x, axis=-1, keepdims=True)
    xc = x - mu
    var = jnp.mean(xc * xc, axis=-1, keepdims=True)
    return xc * jax.lax.rsqrt(var + eps) * g + b


_GELU_C = math.sqrt(2.0 / math.pi)


def _gelu(x):
    # TODO(synk): nn.GELU default is exact erf; tanh approximation (~1e-3 abs
    # max diff) is used for robust Mosaic lowering.
    return 0.5 * x * (1.0 + jnp.tanh(_GELU_C * (x + 0.044715 * x * x * x)))


def _bf16(x):
    return x.astype(jnp.bfloat16)


def _swin_block(x, batch, tokens, dim, heads,
                add, l1g, l1b, qkvw, qkvb, pjw, pjb,
                l2g, l2b, f1w, f1b, f2w, f2b):
    """Pre-norm Swin block on batch-folded tokens x: (B*T, C) float32.

    Attention is computed per head with a batched-over-images einsum
    (single batch dim, as in the flash-attention reference); the additive
    constant `add` is (heads, T, T) = rel-pos bias + cross-window mask.
    Head concat is folded into the output projection (sum over per-head
    row-blocks of proj_w).  Attention scale is pre-folded into qkv_w.
    """
    hd = dim // heads

    # ---- LayerNorm1 fused into QKV projection (M = B*T rows) ----
    xn = _bf16(_ln(x, l1g, l1b))
    qkv = jnp.dot(xn, qkvw, preferred_element_type=jnp.float32) + qkvb

    # TODO(synk): heads could be batched via a 2-batch-dim dot_general; a tiny
    # static unroll (2/4 heads) is kept for conservative Mosaic lowering.
    proj = None
    for h in range(heads):
        qh = _bf16(qkv[:, h * hd:(h + 1) * hd]).reshape(batch, tokens, hd)
        kh = _bf16(qkv[:, dim + h * hd:dim + (h + 1) * hd]).reshape(batch, tokens, hd)
        vh = _bf16(qkv[:, 2 * dim + h * hd:2 * dim + (h + 1) * hd]).reshape(batch, tokens, hd)
        s = jnp.einsum("bnd,bmd->bnm", qh, kh,
                       preferred_element_type=jnp.float32)
        s = s + add[h]                            # bias + window mask (f32)
        s = s - jnp.max(s, axis=-1, keepdims=True)
        p = jnp.exp(s)
        p = p * pl.reciprocal(jnp.sum(p, axis=-1, keepdims=True), approx=True)
        oh = jnp.einsum("bnm,bmd->bnd", _bf16(p), vh,
                        preferred_element_type=jnp.float32)
        contrib = jnp.dot(_bf16(oh.reshape(batch * tokens, hd)),
                          pjw[h * hd:(h + 1) * hd, :],
                          preferred_element_type=jnp.float32)
        proj = contrib if proj is None else proj + contrib
    x = x + proj + pjb

    # ---- LayerNorm2 + MLP (fc1 + GELU + fc2) + residual ----
    xn2 = _bf16(_ln(x, l2g, l2b))
    h1 = jnp.dot(xn2, f1w, preferred_element_type=jnp.float32) + f1b
    h1 = _bf16(_gelu(h1))
    h2 = jnp.dot(h1, f2w, preferred_element_type=jnp.float32) + f2b
    return x + h2


# ---------------------------------------------------------------------------
# The single fused kernel: patch-embed -> stage-0 -> merge -> stage-1 ->
# final LN -> flatten -> fc head.  grid=(1,), everything VMEM-resident.
# ---------------------------------------------------------------------------
def _fused_kernel(x_ref,
                  pe_w, pe_b, pe_g, pe_bt,
                  a0_add, a0_l1g, a0_l1b, a0_qkvw, a0_qkvb, a0_pjw, a0_pjb,
                  a0_l2g, a0_l2b, a0_f1w, a0_f1b, a0_f2w, a0_f2b,
                  mg_g, mg_b, mg_w,
                  a1_add, a1_l1g, a1_l1b, a1_qkvw, a1_qkvb, a1_pjw, a1_pjb,
                  a1_l2g, a1_l2b, a1_f1w, a1_f1b, a1_f2w, a1_f2b,
                  fn_g, fn_b, fc_w, fc_b,
                  o_ref):
    batch = x_ref.shape[0] // TOKENS_S0

    # ---- patch embedding: im2col'd patches @ W + b, then LayerNorm ----
    y = jnp.dot(_bf16(x_ref[...]), pe_w[...],
                preferred_element_type=jnp.float32) + pe_b[...]
    x = _ln(y, pe_g[...], pe_bt[...])                       # (B*64, 32)

    # ---- stage 0: W-MSA block (2 heads) ----
    x = _swin_block(x, batch, TOKENS_S0, DIM_S0, NUM_HEADS[0],
                    a0_add[...], a0_l1g[...], a0_l1b[...], a0_qkvw[...],
                    a0_qkvb[...], a0_pjw[...], a0_pjb[...], a0_l2g[...],
                    a0_l2b[...], a0_f1w[...], a0_f1b[...], a0_f2w[...],
                    a0_f2b[...])

    # ---- patch merging: the token layout makes the x0|x1|x2|x3 quadrants
    #      four contiguous 16-row blocks -> pure lane concat to 4C=128 wide,
    #      then LN(4C) and bias-free reduction 4C -> 2C (timm convention) ----
    x3 = x.reshape(batch, TOKENS_S0, DIM_S0)
    xc = jnp.concatenate([x3[:, q * 16:(q + 1) * 16, :] for q in range(4)],
                         axis=-1)                           # (B, 16, 128)
    xc = xc.reshape(batch * TOKENS_S1, 4 * DIM_S0)
    xm = _bf16(_ln(xc, mg_g[...], mg_b[...]))
    x = jnp.dot(xm, mg_w[...], preferred_element_type=jnp.float32)  # (B*16, 64)

    # ---- stage 1: W-MSA block (4 heads, one window per image) ----
    x = _swin_block(x, batch, TOKENS_S1, DIM_S1, NUM_HEADS[1],
                    a1_add[...], a1_l1g[...], a1_l1b[...], a1_qkvw[...],
                    a1_qkvb[...], a1_pjw[...], a1_pjb[...], a1_l2g[...],
                    a1_l2b[...], a1_f1w[...], a1_f1b[...], a1_f2w[...],
                    a1_f2b[...])

    # ---- final backbone LayerNorm ----
    x = _ln(x, fn_g[...], fn_b[...])                        # (B*16, 64)

    # ---- flatten(start_dim=1) as a lane concat + fused lane-dense fc head ----
    xf = x.reshape(batch, TOKENS_S1, DIM_S1)
    feats = jnp.concatenate([xf[:, m, :] for m in range(TOKENS_S1)],
                            axis=-1)                        # (B, 1024)
    logits = jnp.dot(_bf16(feats), fc_w[...],
                     preferred_element_type=jnp.float32) + fc_b[...]
    o_ref[...] = logits.astype(o_ref.dtype)                 # (B, 128) lane-dense


# ---------------------------------------------------------------------------
# pallas_call wrapper
# ---------------------------------------------------------------------------
def _const_idx(nd, *_):
    return (0,) * nd


def _block_args(s):
    return [s["add"], s["ln1_g"], s["ln1_b"], s["qkv_w"], s["qkv_b"],
            s["proj_w"], s["proj_b"], s["ln2_g"], s["ln2_b"],
            s["fc1_w"], s["fc1_b"], s["fc2_w"], s["fc2_b"]]


def _fused_forward(params, x_tokens):
    batch = x_tokens.shape[0] // TOKENS_S0
    args = ([x_tokens,
             params["pe"]["w"], params["pe"]["b"],
             params["pe"]["g"], params["pe"]["beta"]]
            + _block_args(params["s0"])
            + [params["merge"]["ln_g"], params["merge"]["ln_b"],
               params["merge"]["w"]]
            + _block_args(params["s1"])
            + [params["norm"]["g"], params["norm"]["b"],
               params["fc"]["w"], params["fc"]["b"]])

    in_specs = [pl.BlockSpec(tuple(a.shape),
                             functools.partial(_const_idx, a.ndim))
                for a in args]

    return pl.pallas_call(
        _fused_kernel,
        out_shape=jax.ShapeDtypeStruct((batch, HEAD_PAD), jnp.float32),
        grid=(1,),
        in_specs=in_specs,
        out_specs=pl.BlockSpec((batch, HEAD_PAD),
                               functools.partial(_const_idx, 2)),
        compiler_params=pltpu.CompilerParams(
            dimension_semantics=("arbitrary",)),
    )(*args)


def model_forward(params, x_nchw):
    b = x_nchw.shape[0]
    # The only XLA glue left: im2col the 4x4/stride-4 patch-embed conv on the
    # raw input and reorder patch rows into the kernel's token order.
    x = jnp.transpose(x_nchw, (0, 2, 3, 1)).astype(jnp.float32)      # NHWC
    x = x.reshape(b, GRID0, PATCH_SIZE, GRID0, PATCH_SIZE, IN_CHANS)
    x = jnp.transpose(x, (0, 1, 3, 2, 4, 5)).reshape(b, TOKENS_S0, PATCH_FEATS)
    x = x[:, TOKEN_PERM_J, :].reshape(b * TOKENS_S0, PATCH_FEATS)
    logits = _fused_forward(params, x)
    return logits[:, :N_OUTPUTS]


# ---------------------------------------------------------------------------
# Deterministic synthetic parameters, prepared for the kernel:
#  * bf16 matmul weights, f32 row-vector biases / LN params,
#  * baked per-image (heads, T, T) attention constants,
#  * attention scale folded into the Q columns of qkv_w,
#  * fc weight rows permuted into the kernel token order and lane-padded.
# ---------------------------------------------------------------------------
def init_params(key):
    keys = iter(jax.random.split(key, 32))
    bf = jnp.bfloat16

    def nrm(shape):
        return jax.random.normal(next(keys), shape, jnp.float32) * 0.02

    def zeros(shape):
        return jnp.zeros(shape, jnp.float32)

    def ones(shape):
        return jnp.ones(shape, jnp.float32)

    def block_params(dim, heads, add_builder):
        hd = dim // heads
        table = nrm(((2 * WINDOW_SIZE - 1) ** 2, heads))
        qkv_w = nrm((dim, 3 * dim))
        # fold 1/sqrt(hd) into Q columns -> no per-head TxT scale multiply
        qkv_w = qkv_w.at[:, :dim].multiply(1.0 / math.sqrt(hd))
        return {
            "add": add_builder(table),
            "ln1_g": ones((1, dim)), "ln1_b": zeros((1, dim)),
            "qkv_w": qkv_w.astype(bf), "qkv_b": zeros((1, 3 * dim)),
            "proj_w": nrm((dim, dim)).astype(bf), "proj_b": zeros((1, dim)),
            "ln2_g": ones((1, dim)), "ln2_b": zeros((1, dim)),
            "fc1_w": nrm((dim, MLP_RATIO * dim)).astype(bf),
            "fc1_b": zeros((1, MLP_RATIO * dim)),
            "fc2_w": nrm((MLP_RATIO * dim, dim)).astype(bf),
            "fc2_b": zeros((1, dim)),
        }

    s0 = block_params(DIM_S0, NUM_HEADS[0], _build_attn_add0)
    s1 = block_params(DIM_S1, NUM_HEADS[1], _build_attn_add1)

    merge = {"ln_g": ones((1, 4 * DIM_S0)), "ln_b": zeros((1, 4 * DIM_S0)),
             "w": nrm((4 * DIM_S0, DIM_S1)).astype(bf)}       # bias-free (timm)

    # fc head generated in spatial row-major (H, W, C) flatten order, then its
    # rows permuted into the kernel's stage-1 token order; padded 5 -> 128.
    fc_w_spatial = nrm((NUM_FEATURES, N_OUTPUTS))
    row_perm = (S1_SPATIAL[:, None].astype(np.int64) * DIM_S1
                + np.arange(DIM_S1)[None, :]).reshape(-1).astype(np.int32)
    fc_w = fc_w_spatial[jnp.asarray(row_perm)]
    fc_w = jnp.zeros((NUM_FEATURES, HEAD_PAD),
                     jnp.float32).at[:, :N_OUTPUTS].set(fc_w)

    return {
        "pe": {"w": nrm((PATCH_FEATS, EMBED_DIM)).astype(bf),
               "b": zeros((1, EMBED_DIM)),
               "g": ones((1, EMBED_DIM)), "beta": zeros((1, EMBED_DIM))},
        "s0": s0,
        "merge": merge,
        "s1": s1,
        "norm": {"g": ones((1, DIM_S1)), "b": zeros((1, DIM_S1))},
        "fc": {"w": fc_w.astype(bf), "b": zeros((1, HEAD_PAD))},
    }


# ---------------------------------------------------------------------------
if __name__ == "__main__":
    root = jax.random.PRNGKey(0)
    pkey, xkey = jax.random.split(root)
    params = init_params(pkey)
    x = jax.random.normal(xkey, (2, IN_CHANS, IMG_SIZE, IMG_SIZE), jnp.float32)

    out = jax.jit(model_forward)(params, x)
    out = jax.block_until_ready(out)
    assert out.shape == (2, N_OUTPUTS), out.shape
    assert bool(jnp.all(jnp.isfinite(out)))
    print("KERNEL_OK")
</pallas_src>

<mosaic_0001>
module attributes {stable_mosaic.version = 11 : i64} {
  func.func @_fused_kernel(%arg0: i32, %arg1: memref<128x48xf32, #tpu.memory_space<vmem>>, %arg2: memref<48x32xbf16, #tpu.memory_space<vmem>>, %arg3: memref<1x32xf32, #tpu.memory_space<vmem>>, %arg4: memref<1x32xf32, #tpu.memory_space<vmem>>, %arg5: memref<1x32xf32, #tpu.memory_space<vmem>>, %arg6: memref<2x64x64xf32, #tpu.memory_space<vmem>>, %arg7: memref<1x32xf32, #tpu.memory_space<vmem>>, %arg8: memref<1x32xf32, #tpu.memory_space<vmem>>, %arg9: memref<32x96xbf16, #tpu.memory_space<vmem>>, %arg10: memref<1x96xf32, #tpu.memory_space<vmem>>, %arg11: memref<32x32xbf16, #tpu.memory_space<vmem>>, %arg12: memref<1x32xf32, #tpu.memory_space<vmem>>, %arg13: memref<1x32xf32, #tpu.memory_space<vmem>>, %arg14: memref<1x32xf32, #tpu.memory_space<vmem>>, %arg15: memref<32x128xbf16, #tpu.memory_space<vmem>>, %arg16: memref<1x128xf32, #tpu.memory_space<vmem>>, %arg17: memref<128x32xbf16, #tpu.memory_space<vmem>>, %arg18: memref<1x32xf32, #tpu.memory_space<vmem>>, %arg19: memref<1x128xf32, #tpu.memory_space<vmem>>, %arg20: memref<1x128xf32, #tpu.memory_space<vmem>>, %arg21: memref<128x64xbf16, #tpu.memory_space<vmem>>, %arg22: memref<4x16x16xf32, #tpu.memory_space<vmem>>, %arg23: memref<1x64xf32, #tpu.memory_space<vmem>>, %arg24: memref<1x64xf32, #tpu.memory_space<vmem>>, %arg25: memref<64x192xbf16, #tpu.memory_space<vmem>>, %arg26: memref<1x192xf32, #tpu.memory_space<vmem>>, %arg27: memref<64x64xbf16, #tpu.memory_space<vmem>>, %arg28: memref<1x64xf32, #tpu.memory_space<vmem>>, %arg29: memref<1x64xf32, #tpu.memory_space<vmem>>, %arg30: memref<1x64xf32, #tpu.memory_space<vmem>>, %arg31: memref<64x256xbf16, #tpu.memory_space<vmem>>, %arg32: memref<1x256xf32, #tpu.memory_space<vmem>>, %arg33: memref<256x64xbf16, #tpu.memory_space<vmem>>, %arg34: memref<1x64xf32, #tpu.memory_space<vmem>>, %arg35: memref<1x64xf32, #tpu.memory_space<vmem>>, %arg36: memref<1x64xf32, #tpu.memory_space<vmem>>, %arg37: memref<1024x128xbf16, #tpu.memory_space<vmem>>, %arg38: memref<1x128xf32, #tpu.memory_space<vmem>>, %arg39: memref<2x128xf32, #tpu.memory_space<vmem>>) attributes {dimension_semantics = [#tpu.dimension_semantics<arbitrary>], iteration_bounds = array<i64: 1>, scalar_prefetch = 0 : i64, scratch_operands = 0 : i64, tpu.core_type = #tpu.core_type<tc>, window_params = [{pipeline_mode = #tpu.pipeline_mode<synchronous>, transform_indices = @transform_0, window_bounds = array<i64: 128, 48>}, {pipeline_mode = #tpu.pipeline_mode<synchronous>, transform_indices = @transform_1, window_bounds = array<i64: 48, 32>}, {pipeline_mode = #tpu.pipeline_mode<synchronous>, transform_indices = @transform_2, window_bounds = array<i64: 1, 32>}, {pipeline_mode = #tpu.pipeline_mode<synchronous>, transform_indices = @transform_3, window_bounds = array<i64: 1, 32>}, {pipeline_mode = #tpu.pipeline_mode<synchronous>, transform_indices = @transform_4, window_bounds = array<i64: 1, 32>}, {pipeline_mode = #tpu.pipeline_mode<synchronous>, transform_indices = @transform_5, window_bounds = array<i64: 2, 64, 64>}, {pipeline_mode = #tpu.pipeline_mode<synchronous>, transform_indices = @transform_6, window_bounds = array<i64: 1, 32>}, {pipeline_mode = #tpu.pipeline_mode<synchronous>, transform_indices = @transform_7, window_bounds = array<i64: 1, 32>}, {pipeline_mode = #tpu.pipeline_mode<synchronous>, transform_indices = @transform_8, window_bounds = array<i64: 32, 96>}, {pipeline_mode = #tpu.pipeline_mode<synchronous>, transform_indices = @transform_9, window_bounds = array<i64: 1, 96>}, {pipeline_mode = #tpu.pipeline_mode<synchronous>, transform_indices = @transform_10, window_bounds = array<i64: 32, 32>}, {pipeline_mode = #tpu.pipeline_mode<synchronous>, transform_indices = @transform_11, window_bounds = array<i64: 1, 32>}, {pipeline_mode = #tpu.pipeline_mode<synchronous>, transform_indices = @transform_12, window_bounds = array<i64: 1, 32>}, {pipeline_mode = #tpu.pipeline_mode<synchronous>, transform_indices = @transform_13, window_bounds = array<i64: 1, 32>}, {pipeline_mode = #tpu.pipeline_mode<synchronous>, transform_indices = @transform_14, window_bounds = array<i64: 32, 128>}, {pipeline_mode = #tpu.pipeline_mode<synchronous>, transform_indices = @transform_15, window_bounds = array<i64: 1, 128>}, {pipeline_mode = #tpu.pipeline_mode<synchronous>, transform_indices = @transform_16, window_bounds = array<i64: 128, 32>}, {pipeline_mode = #tpu.pipeline_mode<synchronous>, transform_indices = @transform_17, window_bounds = array<i64: 1, 32>}, {pipeline_mode = #tpu.pipeline_mode<synchronous>, transform_indices = @transform_18, window_bounds = array<i64: 1, 128>}, {pipeline_mode = #tpu.pipeline_mode<synchronous>, transform_indices = @transform_19, window_bounds = array<i64: 1, 128>}, {pipeline_mode = #tpu.pipeline_mode<synchronous>, transform_indices = @transform_20, window_bounds = array<i64: 128, 64>}, {pipeline_mode = #tpu.pipeline_mode<synchronous>, transform_indices = @transform_21, window_bounds = array<i64: 4, 16, 16>}, {pipeline_mode = #tpu.pipeline_mode<synchronous>, transform_indices = @transform_22, window_bounds = array<i64: 1, 64>}, {pipeline_mode = #tpu.pipeline_mode<synchronous>, transform_indices = @transform_23, window_bounds = array<i64: 1, 64>}, {pipeline_mode = #tpu.pipeline_mode<synchronous>, transform_indices = @transform_24, window_bounds = array<i64: 64, 192>}, {pipeline_mode = #tpu.pipeline_mode<synchronous>, transform_indices = @transform_25, window_bounds = array<i64: 1, 192>}, {pipeline_mode = #tpu.pipeline_mode<synchronous>, transform_indices = @transform_26, window_bounds = array<i64: 64, 64>}, {pipeline_mode = #tpu.pipeline_mode<synchronous>, transform_indices = @transform_27, window_bounds = array<i64: 1, 64>}, {pipeline_mode = #tpu.pipeline_mode<synchronous>, transform_indices = @transform_28, window_bounds = array<i64: 1, 64>}, {pipeline_mode = #tpu.pipeline_mode<synchronous>, transform_indices = @transform_29, window_bounds = array<i64: 1, 64>}, {pipeline_mode = #tpu.pipeline_mode<synchronous>, transform_indices = @transform_30, window_bounds = array<i64: 64, 256>}, {pipeline_mode = #tpu.pipeline_mode<synchronous>, transform_indices = @transform_31, window_bounds = array<i64: 1, 256>}, {pipeline_mode = #tpu.pipeline_mode<synchronous>, transform_indices = @transform_32, window_bounds = array<i64: 256, 64>}, {pipeline_mode = #tpu.pipeline_mode<synchronous>, transform_indices = @transform_33, window_bounds = array<i64: 1, 64>}, {pipeline_mode = #tpu.pipeline_mode<synchronous>, transform_indices = @transform_34, window_bounds = array<i64: 1, 64>}, {pipeline_mode = #tpu.pipeline_mode<synchronous>, transform_indices = @transform_35, window_bounds = array<i64: 1, 64>}, {pipeline_mode = #tpu.pipeline_mode<synchronous>, transform_indices = @transform_36, window_bounds = array<i64: 1024, 128>}, {pipeline_mode = #tpu.pipeline_mode<synchronous>, transform_indices = @transform_37, window_bounds = array<i64: 1, 128>}, {pipeline_mode = #tpu.pipeline_mode<synchronous>, transform_indices = @transform_38, window_bounds = array<i64: 2, 128>}]} {
    %c0 = arith.constant 0 : index
    %c0_0 = arith.constant 0 : index
    %0 = vector.load %arg1[%c0, %c0_0] : memref<128x48xf32, #tpu.memory_space<vmem>>, vector<128x48xf32>
    %1 = arith.truncf %0 : vector<128x48xf32> to vector<128x48xbf16>
    %c0_1 = arith.constant 0 : index
    %c0_2 = arith.constant 0 : index
    %2 = vector.load %arg2[%c0_1, %c0_2] : memref<48x32xbf16, #tpu.memory_space<vmem>>, vector<48x32xbf16>
    %cst = arith.constant dense<0.000000e+00> : vector<128x32xf32>
    %3 = tpu.matmul %1, %2, %cst {dimension_numbers = #tpu.dot_dimension_numbers<[1], [0], [0], [1], [0, 0, 1, 1], [], []>} : vector<128x48xbf16>, vector<48x32xbf16>, vector<128x32xf32> -> vector<128x32xf32>
    %c0_3 = arith.constant 0 : index
    %c0_4 = arith.constant 0 : index
    %4 = vector.load %arg3[%c0_3, %c0_4] : memref<1x32xf32, #tpu.memory_space<vmem>>, vector<1x32xf32>
    %5 = vector.broadcast %4 : vector<1x32xf32> to vector<128x32xf32>
    %6 = arith.addf %3, %5 : vector<128x32xf32>
    %c0_5 = arith.constant 0 : index
    %c0_6 = arith.constant 0 : index
    %7 = vector.load %arg4[%c0_5, %c0_6] : memref<1x32xf32, #tpu.memory_space<vmem>>, vector<1x32xf32>
    %c0_7 = arith.constant 0 : index
    %c0_8 = arith.constant 0 : index
    %8 = vector.load %arg5[%c0_7, %c0_8] : memref<1x32xf32, #tpu.memory_space<vmem>>, vector<1x32xf32>
    %cst_9 = arith.constant dense<0.000000e+00> : vector<128xf32>
    %9 = vector.multi_reduction <add>, %6, %cst_9 [1] : vector<128x32xf32> to vector<128xf32>
    %10 = vector.shape_cast %9 : vector<128xf32> to vector<128x1xf32>
    %cst_10 = arith.constant 3.200000e+01 : f32
    %11 = vector.broadcast %cst_10 : f32 to vector<128x1xf32>
    %12 = arith.divf %10, %11 : vector<128x1xf32>
    %13 = vector.broadcast %12 : vector<128x1xf32> to vector<128x32xf32>
    %14 = arith.subf %6, %13 : vector<128x32xf32>
    %15 = arith.mulf %14, %14 : vector<128x32xf32>
    %cst_11 = arith.constant dense<0.000000e+00> : vector<128xf32>
    %16 = vector.multi_reduction <add>, %15, %cst_11 [1] : vector<128x32xf32> to vector<128xf32>
    %17 = vector.shape_cast %16 : vector<128xf32> to vector<128x1xf32>
    %cst_12 = arith.constant 3.200000e+01 : f32
    %18 = vector.broadcast %cst_12 : f32 to vector<128x1xf32>
    %19 = arith.divf %17, %18 : vector<128x1xf32>
    %cst_13 = arith.constant 9.99999974E-6 : f32
    %20 = vector.broadcast %cst_13 : f32 to vector<128x1xf32>
    %21 = arith.addf %19, %20 : vector<128x1xf32>
    %22 = math.rsqrt %21 : vector<128x1xf32>
    %23 = vector.broadcast %22 : vector<128x1xf32> to vector<128x32xf32>
    %24 = arith.mulf %14, %23 : vector<128x32xf32>
    %25 = vector.broadcast %7 : vector<1x32xf32> to vector<128x32xf32>
    %26 = arith.mulf %24, %25 : vector<128x32xf32>
    %27 = vector.broadcast %8 : vector<1x32xf32> to vector<128x32xf32>
    %28 = arith.addf %26, %27 : vector<128x32xf32>
    %c0_14 = arith.constant 0 : index
    %c0_15 = arith.constant 0 : index
    %c0_16 = arith.constant 0 : index
    %29 = vector.load %arg6[%c0_14, %c0_15, %c0_16] : memref<2x64x64xf32, #tpu.memory_space<vmem>>, vector<2x64x64xf32>
    %c0_17 = arith.constant 0 : index
    %c0_18 = arith.constant 0 : index
    %30 = vector.load %arg7[%c0_17, %c0_18] : memref<1x32xf32, #tpu.memory_space<vmem>>, vector<1x32xf32>
    %c0_19 = arith.constant 0 : index
    %c0_20 = arith.constant 0 : index
    %31 = vector.load %arg8[%c0_19, %c0_20] : memref<1x32xf32, #tpu.memory_space<vmem>>, vector<1x32xf32>
    %c0_21 = arith.constant 0 : index
    %c0_22 = arith.constant 0 : index
    %32 = vector.load %arg9[%c0_21, %c0_22] : memref<32x96xbf16, #tpu.memory_space<vmem>>, vector<32x96xbf16>
    %c0_23 = arith.constant 0 : index
    %c0_24 = arith.constant 0 : index
    %33 = vector.load %arg10[%c0_23, %c0_24] : memref<1x96xf32, #tpu.memory_space<vmem>>, vector<1x96xf32>
    %c0_25 = arith.constant 0 : index
    %c0_26 = arith.constant 0 : index
    %34 = vector.load %arg11[%c0_25, %c0_26] : memref<32x32xbf16, #tpu.memory_space<vmem>>, vector<32x32xbf16>
    %c0_27 = arith.constant 0 : index
    %c0_28 = arith.constant 0 : index
    %35 = vector.load %arg12[%c0_27, %c0_28] : memref<1x32xf32, #tpu.memory_space<vmem>>, vector<1x32xf32>
    %c0_29 = arith.constant 0 : index
    %c0_30 = arith.constant 0 : index
    %36 = vector.load %arg13[%c0_29, %c0_30] : memref<1x32xf32, #tpu.memory_space<vmem>>, vector<1x32xf32>
    %c0_31 = arith.constant 0 : index
    %c0_32 = arith.constant 0 : index
    %37 = vector.load %arg14[%c0_31, %c0_32] : memref<1x32xf32, #tpu.memory_space<vmem>>, vector<1x32xf32>
    %c0_33 = arith.constant 0 : index
    %c0_34 = arith.constant 0 : index
    %38 = vector.load %arg15[%c0_33, %c0_34] : memref<32x128xbf16, #tpu.memory_space<vmem>>, vector<32x128xbf16>
    %c0_35 = arith.constant 0 : index
    %c0_36 = arith.constant 0 : index
    %39 = vector.load %arg16[%c0_35, %c0_36] : memref<1x128xf32, #tpu.memory_space<vmem>>, vector<1x128xf32>
    %c0_37 = arith.constant 0 : index
    %c0_38 = arith.constant 0 : index
    %40 = vector.load %arg17[%c0_37, %c0_38] : memref<128x32xbf16, #tpu.memory_space<vmem>>, vector<128x32xbf16>
    %c0_39 = arith.constant 0 : index
    %c0_40 = arith.constant 0 : index
    %41 = vector.load %arg18[%c0_39, %c0_40] : memref<1x32xf32, #tpu.memory_space<vmem>>, vector<1x32xf32>
    %cst_41 = arith.constant dense<0.000000e+00> : vector<128xf32>
    %42 = vector.multi_reduction <add>, %28, %cst_41 [1] : vector<128x32xf32> to vector<128xf32>
    %43 = vector.shape_cast %42 : vector<128xf32> to vector<128x1xf32>
    %cst_42 = arith.constant 3.200000e+01 : f32
    %44 = vector.broadcast %cst_42 : f32 to vector<128x1xf32>
    %45 = arith.divf %43, %44 : vector<128x1xf32>
    %46 = vector.broadcast %45 : vector<128x1xf32> to vector<128x32xf32>
    %47 = arith.subf %28, %46 : vector<128x32xf32>
    %48 = arith.mulf %47, %47 : vector<128x32xf32>
    %cst_43 = arith.constant dense<0.000000e+00> : vector<128xf32>
    %49 = vector.multi_reduction <add>, %48, %cst_43 [1] : vector<128x32xf32> to vector<128xf32>
    %50 = vector.shape_cast %49 : vector<128xf32> to vector<128x1xf32>
    %cst_44 = arith.constant 3.200000e+01 : f32
    %51 = vector.broadcast %cst_44 : f32 to vector<128x1xf32>
    %52 = arith.divf %50, %51 : vector<128x1xf32>
    %cst_45 = arith.constant 9.99999974E-6 : f32
    %53 = vector.broadcast %cst_45 : f32 to vector<128x1xf32>
    %54 = arith.addf %52, %53 : vector<128x1xf32>
    %55 = math.rsqrt %54 : vector<128x1xf32>
    %56 = vector.broadcast %55 : vector<128x1xf32> to vector<128x32xf32>
    %57 = arith.mulf %47, %56 : vector<128x32xf32>
    %58 = vector.broadcast %30 : vector<1x32xf32> to vector<128x32xf32>
    %59 = arith.mulf %57, %58 : vector<128x32xf32>
    %60 = vector.broadcast %31 : vector<1x32xf32> to vector<128x32xf32>
    %61 = arith.addf %59, %60 : vector<128x32xf32>
    %62 = arith.truncf %61 : vector<128x32xf32> to vector<128x32xbf16>
    %cst_46 = arith.constant dense<0.000000e+00> : vector<128x96xf32>
    %63 = tpu.matmul %62, %32, %cst_46 {dimension_numbers = #tpu.dot_dimension_numbers<[1], [0], [0], [1], [0, 0, 1, 1], [], []>} : vector<128x32xbf16>, vector<32x96xbf16>, vector<128x96xf32> -> vector<128x96xf32>
    %64 = vector.broadcast %33 : vector<1x96xf32> to vector<128x96xf32>
    %65 = arith.addf %63, %64 : vector<128x96xf32>
    %66 = vector.extract_strided_slice %65 {offsets = [0, 0], sizes = [128, 16], strides = [1, 1]} : vector<128x96xf32> to vector<128x16xf32>
    %67 = arith.truncf %66 : vector<128x16xf32> to vector<128x16xbf16>
    %68 = vector.shape_cast %67 : vector<128x16xbf16> to vector<2x64x16xbf16>
    %69 = vector.extract_strided_slice %65 {offsets = [0, 32], sizes = [128, 16], strides = [1, 1]} : vector<128x96xf32> to vector<128x16xf32>
    %70 = arith.truncf %69 : vector<128x16xf32> to vector<128x16xbf16>
    %71 = vector.shape_cast %70 : vector<128x16xbf16> to vector<2x64x16xbf16>
    %72 = vector.extract_strided_slice %65 {offsets = [0, 64], sizes = [128, 16], strides = [1, 1]} : vector<128x96xf32> to vector<128x16xf32>
    %73 = arith.truncf %72 : vector<128x16xf32> to vector<128x16xbf16>
    %74 = vector.shape_cast %73 : vector<128x16xbf16> to vector<2x64x16xbf16>
    "tpu.trace_start"() <{level = 10 : i32, message = "bnd,bmd->bnm"}> : () -> ()
    %cst_47 = arith.constant dense<0.000000e+00> : vector<2x64x64xf32>
    %75 = tpu.matmul %68, %71, %cst_47 {dimension_numbers = #tpu.dot_dimension_numbers<[2], [2], [1], [1], [0, 0, 0, 1, 1, 1], [0], [0]>} : vector<2x64x16xbf16>, vector<2x64x16xbf16>, vector<2x64x64xf32> -> vector<2x64x64xf32>
    "tpu.trace_stop"() : () -> ()
    %76 = vector.extract_strided_slice %29 {offsets = [0, 0, 0], sizes = [1, 64, 64], strides = [1, 1, 1]} : vector<2x64x64xf32> to vector<1x64x64xf32>
    %77 = vector.shape_cast %76 : vector<1x64x64xf32> to vector<64x64xf32>
    %78 = vector.shape_cast %77 : vector<64x64xf32> to vector<1x64x64xf32>
    %79 = vector.broadcast %78 : vector<1x64x64xf32> to vector<2x64x64xf32>
    %80 = arith.addf %75, %79 : vector<2x64x64xf32>
    %cst_48 = arith.constant dense<0xFF800000> : vector<2x64xf32>
    %81 = vector.multi_reduction <maximumf>, %80, %cst_48 [2] : vector<2x64x64xf32> to vector<2x64xf32>
    %82 = vector.shape_cast %81 : vector<2x64xf32> to vector<2x64x1xf32>
    %83 = vector.broadcast %82 : vector<2x64x1xf32> to vector<2x64x64xf32>
    %84 = arith.subf %80, %83 : vector<2x64x64xf32>
    %85 = math.exp %84 : vector<2x64x64xf32>
    %cst_49 = arith.constant dense<0.000000e+00> : vector<2x64xf32>
    %86 = vector.multi_reduction <add>, %85, %cst_49 [2] : vector<2x64x64xf32> to vector<2x64xf32>
    %87 = vector.shape_cast %86 : vector<2x64xf32> to vector<2x64x1xf32>
    %88 = tpu.reciprocal %87 {approx = true} : vector<2x64x1xf32> -> vector<2x64x1xf32>
    %89 = vector.broadcast %88 : vector<2x64x1xf32> to vector<2x64x64xf32>
    %90 = arith.mulf %85, %89 : vector<2x64x64xf32>
    %91 = arith.truncf %90 : vector<2x64x64xf32> to vector<2x64x64xbf16>
    "tpu.trace_start"() <{level = 10 : i32, message = "bnm,bmd->bnd"}> : () -> ()
    %cst_50 = arith.constant dense<0.000000e+00> : vector<2x64x16xf32>
    %92 = tpu.matmul %91, %74, %cst_50 {dimension_numbers = #tpu.dot_dimension_numbers<[2], [1], [1], [2], [0, 0, 0, 1, 1, 2], [0], [0]>} : vector<2x64x64xbf16>, vector<2x64x16xbf16>, vector<2x64x16xf32> -> vector<2x64x16xf32>
    "tpu.trace_stop"() : () -> ()
    %93 = vector.shape_cast %92 : vector<2x64x16xf32> to vector<128x16xf32>
    %94 = arith.truncf %93 : vector<128x16xf32> to vector<128x16xbf16>
    %95 = vector.extract_strided_slice %34 {offsets = [0, 0], sizes = [16, 32], strides = [1, 1]} : vector<32x32xbf16> to vector<16x32xbf16>
    %cst_51 = arith.constant dense<0.000000e+00> : vector<128x32xf32>
    %96 = tpu.matmul %94, %95, %cst_51 {dimension_numbers = #tpu.dot_dimension_numbers<[1], [0], [0], [1], [0, 0, 1, 1], [], []>} : vector<128x16xbf16>, vector<16x32xbf16>, vector<128x32xf32> -> vector<128x32xf32>
    %97 = vector.extract_strided_slice %65 {offsets = [0, 16], sizes = [128, 16], strides = [1, 1]} : vector<128x96xf32> to vector<128x16xf32>
    %98 = arith.truncf %97 : vector<128x16xf32> to vector<128x16xbf16>
    %99 = vector.shape_cast %98 : vector<128x16xbf16> to vector<2x64x16xbf16>
    %100 = vector.extract_strided_slice %65 {offsets = [0, 48], sizes = [128, 16], strides = [1, 1]} : vector<128x96xf32> to vector<128x16xf32>
    %101 = arith.truncf %100 : vector<128x16xf32> to vector<128x16xbf16>
    %102 = vector.shape_cast %101 : vector<128x16xbf16> to vector<2x64x16xbf16>
    %103 = vector.extract_strided_slice %65 {offsets = [0, 80], sizes = [128, 16], strides = [1, 1]} : vector<128x96xf32> to vector<128x16xf32>
    %104 = arith.truncf %103 : vector<128x16xf32> to vector<128x16xbf16>
    %105 = vector.shape_cast %104 : vector<128x16xbf16> to vector<2x64x16xbf16>
    "tpu.trace_start"() <{level = 10 : i32, message = "bnd,bmd->bnm"}> : () -> ()
    %cst_52 = arith.constant dense<0.000000e+00> : vector<2x64x64xf32>
    %106 = tpu.matmul %99, %102, %cst_52 {dimension_numbers = #tpu.dot_dimension_numbers<[2], [2], [1], [1], [0, 0, 0, 1, 1, 1], [0], [0]>} : vector<2x64x16xbf16>, vector<2x64x16xbf16>, vector<2x64x64xf32> -> vector<2x64x64xf32>
    "tpu.trace_stop"() : () -> ()
    %107 = vector.extract_strided_slice %29 {offsets = [1, 0, 0], sizes = [1, 64, 64], strides = [1, 1, 1]} : vector<2x64x64xf32> to vector<1x64x64xf32>
    %108 = vector.shape_cast %107 : vector<1x64x64xf32> to vector<64x64xf32>
    %109 = vector.shape_cast %108 : vector<64x64xf32> to vector<1x64x64xf32>
    %110 = vector.broadcast %109 : vector<1x64x64xf32> to vector<2x64x64xf32>
    %111 = arith.addf %106, %110 : vector<2x64x64xf32>
    %cst_53 = arith.constant dense<0xFF800000> : vector<2x64xf32>
    %112 = vector.multi_reduction <maximumf>, %111, %cst_53 [2] : vector<2x64x64xf32> to vector<2x64xf32>
    %113 = vector.shape_cast %112 : vector<2x64xf32> to vector<2x64x1xf32>
    %114 = vector.broadcast %113 : vector<2x64x1xf32> to vector<2x64x64xf32>
    %115 = arith.subf %111, %114 : vector<2x64x64xf32>
    %116 = math.exp %115 : vector<2x64x64xf32>
    %cst_54 = arith.constant dense<0.000000e+00> : vector<2x64xf32>
    %117 = vector.multi_reduction <add>, %116, %cst_54 [2] : vector<2x64x64xf32> to vector<2x64xf32>
    %118 = vector.shape_cast %117 : vector<2x64xf32> to vector<2x64x1xf32>
    %119 = tpu.reciprocal %118 {approx = true} : vector<2x64x1xf32> -> vector<2x64x1xf32>
    %120 = vector.broadcast %119 : vector<2x64x1xf32> to vector<2x64x64xf32>
    %121 = arith.mulf %116, %120 : vector<2x64x64xf32>
    %122 = arith.truncf %121 : vector<2x64x64xf32> to vector<2x64x64xbf16>
    "tpu.trace_start"() <{level = 10 : i32, message = "bnm,bmd->bnd"}> : () -> ()
    %cst_55 = arith.constant dense<0.000000e+00> : vector<2x64x16xf32>
    %123 = tpu.matmul %122, %105, %cst_55 {dimension_numbers = #tpu.dot_dimension_numbers<[2], [1], [1], [2], [0, 0, 0, 1, 1, 2], [0], [0]>} : vector<2x64x64xbf16>, vector<2x64x16xbf16>, vector<2x64x16xf32> -> vector<2x64x16xf32>
    "tpu.trace_stop"() : () -> ()
    %124 = vector.shape_cast %123 : vector<2x64x16xf32> to vector<128x16xf32>
    %125 = arith.truncf %124 : vector<128x16xf32> to vector<128x16xbf16>
    %126 = vector.extract_strided_slice %34 {offsets = [16, 0], sizes = [16, 32], strides = [1, 1]} : vector<32x32xbf16> to vector<16x32xbf16>
    %cst_56 = arith.constant dense<0.000000e+00> : vector<128x32xf32>
    %127 = tpu.matmul %125, %126, %cst_56 {dimension_numbers = #tpu.dot_dimension_numbers<[1], [0], [0], [1], [0, 0, 1, 1], [], []>} : vector<128x16xbf16>, vector<16x32xbf16>, vector<128x32xf32> -> vector<128x32xf32>
    %128 = arith.addf %96, %127 : vector<128x32xf32>
    %129 = arith.addf %28, %128 : vector<128x32xf32>
    %130 = vector.broadcast %35 : vector<1x32xf32> to vector<128x32xf32>
    %131 = arith.addf %129, %130 : vector<128x32xf32>
    %cst_57 = arith.constant dense<0.000000e+00> : vector<128xf32>
    %132 = vector.multi_reduction <add>, %131, %cst_57 [1] : vector<128x32xf32> to vector<128xf32>
    %133 = vector.shape_cast %132 : vector<128xf32> to vector<128x1xf32>
    %cst_58 = arith.constant 3.200000e+01 : f32
    %134 = vector.broadcast %cst_58 : f32 to vector<128x1xf32>
    %135 = arith.divf %133, %134 : vector<128x1xf32>
    %136 = vector.broadcast %135 : vector<128x1xf32> to vector<128x32xf32>
    %137 = arith.subf %131, %136 : vector<128x32xf32>
    %138 = arith.mulf %137, %137 : vector<128x32xf32>
    %cst_59 = arith.constant dense<0.000000e+00> : vector<128xf32>
    %139 = vector.multi_reduction <add>, %138, %cst_59 [1] : vector<128x32xf32> to vector<128xf32>
    %140 = vector.shape_cast %139 : vector<128xf32> to vector<128x1xf32>
    %cst_60 = arith.constant 3.200000e+01 : f32
    %141 = vector.broadcast %cst_60 : f32 to vector<128x1xf32>
    %142 = arith.divf %140, %141 : vector<128x1xf32>
    %cst_61 = arith.constant 9.99999974E-6 : f32
    %143 = vector.broadcast %cst_61 : f32 to vector<128x1xf32>
    %144 = arith.addf %142, %143 : vector<128x1xf32>
    %145 = math.rsqrt %144 : vector<128x1xf32>
    %146 = vector.broadcast %145 : vector<128x1xf32> to vector<128x32xf32>
    %147 = arith.mulf %137, %146 : vector<128x32xf32>
    %148 = vector.broadcast %36 : vector<1x32xf32> to vector<128x32xf32>
    %149 = arith.mulf %147, %148 : vector<128x32xf32>
    %150 = vector.broadcast %37 : vector<1x32xf32> to vector<128x32xf32>
    %151 = arith.addf %149, %150 : vector<128x32xf32>
    %152 = arith.truncf %151 : vector<128x32xf32> to vector<128x32xbf16>
    %cst_62 = arith.constant dense<0.000000e+00> : vector<128x128xf32>
    %153 = tpu.matmul %152, %38, %cst_62 {dimension_numbers = #tpu.dot_dimension_numbers<[1], [0], [0], [1], [0, 0, 1, 1], [], []>} : vector<128x32xbf16>, vector<32x128xbf16>, vector<128x128xf32> -> vector<128x128xf32>
    %154 = vector.broadcast %39 : vector<1x128xf32> to vector<128x128xf32>
    %155 = arith.addf %153, %154 : vector<128x128xf32>
    %cst_63 = arith.constant 5.000000e-01 : f32
    %156 = vector.broadcast %cst_63 : f32 to vector<128x128xf32>
    %157 = arith.mulf %156, %155 : vector<128x128xf32>
    %cst_64 = arith.constant 4.471500e-02 : f32
    %158 = vector.broadcast %cst_64 : f32 to vector<128x128xf32>
    %159 = arith.mulf %158, %155 : vector<128x128xf32>
    %160 = arith.mulf %159, %155 : vector<128x128xf32>
    %161 = arith.mulf %160, %155 : vector<128x128xf32>
    %162 = arith.addf %155, %161 : vector<128x128xf32>
    %cst_65 = arith.constant 0.797884583 : f32
    %163 = vector.broadcast %cst_65 : f32 to vector<128x128xf32>
    %164 = arith.mulf %163, %162 : vector<128x128xf32>
    %165 = math.tanh %164 : vector<128x128xf32>
    %cst_66 = arith.constant 1.000000e+00 : f32
    %166 = vector.broadcast %cst_66 : f32 to vector<128x128xf32>
    %167 = arith.addf %166, %165 : vector<128x128xf32>
    %168 = arith.mulf %157, %167 : vector<128x128xf32>
    %169 = arith.truncf %168 : vector<128x128xf32> to vector<128x128xbf16>
    %cst_67 = arith.constant dense<0.000000e+00> : vector<128x32xf32>
    %170 = tpu.matmul %169, %40, %cst_67 {dimension_numbers = #tpu.dot_dimension_numbers<[1], [0], [0], [1], [0, 0, 1, 1], [], []>} : vector<128x128xbf16>, vector<128x32xbf16>, vector<128x32xf32> -> vector<128x32xf32>
    %171 = vector.broadcast %41 : vector<1x32xf32> to vector<128x32xf32>
    %172 = arith.addf %170, %171 : vector<128x32xf32>
    %173 = arith.addf %131, %172 : vector<128x32xf32>
    %174 = vector.shape_cast %173 : vector<128x32xf32> to vector<2x64x32xf32>
    %175 = vector.extract_strided_slice %174 {offsets = [0, 0, 0], sizes = [2, 16, 32], strides = [1, 1, 1]} : vector<2x64x32xf32> to vector<2x16x32xf32>
    %176 = vector.extract_strided_slice %174 {offsets = [0, 16, 0], sizes = [2, 16, 32], strides = [1, 1, 1]} : vector<2x64x32xf32> to vector<2x16x32xf32>
    %177 = vector.extract_strided_slice %174 {offsets = [0, 32, 0], sizes = [2, 16, 32], strides = [1, 1, 1]} : vector<2x64x32xf32> to vector<2x16x32xf32>
    %178 = vector.extract_strided_slice %174 {offsets = [0, 48, 0], sizes = [2, 16, 32], strides = [1, 1, 1]} : vector<2x64x32xf32> to vector<2x16x32xf32>
    %179 = tpu.concatenate %175, %176, %177, %178 in 2 : vector<2x16x32xf32>, vector<2x16x32xf32>, vector<2x16x32xf32>, vector<2x16x32xf32> -> vector<2x16x128xf32>
    %180 = vector.shape_cast %179 : vector<2x16x128xf32> to vector<32x128xf32>
    %c0_68 = arith.constant 0 : index
    %c0_69 = arith.constant 0 : index
    %181 = vector.load %arg19[%c0_68, %c0_69] : memref<1x128xf32, #tpu.memory_space<vmem>>, vector<1x128xf32>
    %c0_70 = arith.constant 0 : index
    %c0_71 = arith.constant 0 : index
    %182 = vector.load %arg20[%c0_70, %c0_71] : memref<1x128xf32, #tpu.memory_space<vmem>>, vector<1x128xf32>
    %cst_72 = arith.constant dense<0.000000e+00> : vector<32xf32>
    %183 = vector.multi_reduction <add>, %180, %cst_72 [1] : vector<32x128xf32> to vector<32xf32>
    %184 = vector.shape_cast %183 : vector<32xf32> to vector<32x1xf32>
    %cst_73 = arith.constant 1.280000e+02 : f32
    %185 = vector.broadcast %cst_73 : f32 to vector<32x1xf32>
    %186 = arith.divf %184, %185 : vector<32x1xf32>
    %187 = vector.broadcast %186 : vector<32x1xf32> to vector<32x128xf32>
    %188 = arith.subf %180, %187 : vector<32x128xf32>
    %189 = arith.mulf %188, %188 : vector<32x128xf32>
    %cst_74 = arith.constant dense<0.000000e+00> : vector<32xf32>
    %190 = vector.multi_reduction <add>, %189, %cst_74 [1] : vector<32x128xf32> to vector<32xf32>
    %191 = vector.shape_cast %190 : vector<32xf32> to vector<32x1xf32>
    %cst_75 = arith.constant 1.280000e+02 : f32
    %192 = vector.broadcast %cst_75 : f32 to vector<32x1xf32>
    %193 = arith.divf %191, %192 : vector<32x1xf32>
    %cst_76 = arith.constant 9.99999974E-6 : f32
    %194 = vector.broadcast %cst_76 : f32 to vector<32x1xf32>
    %195 = arith.addf %193, %194 : vector<32x1xf32>
    %196 = math.rsqrt %195 : vector<32x1xf32>
    %197 = vector.broadcast %196 : vector<32x1xf32> to vector<32x128xf32>
    %198 = arith.mulf %188, %197 : vector<32x128xf32>
    %199 = vector.broadcast %181 : vector<1x128xf32> to vector<32x128xf32>
    %200 = arith.mulf %198, %199 : vector<32x128xf32>
    %201 = vector.broadcast %182 : vector<1x128xf32> to vector<32x128xf32>
    %202 = arith.addf %200, %201 : vector<32x128xf32>
    %203 = arith.truncf %202 : vector<32x128xf32> to vector<32x128xbf16>
    %c0_77 = arith.constant 0 : index
    %c0_78 = arith.constant 0 : index
    %204 = vector.load %arg21[%c0_77, %c0_78] : memref<128x64xbf16, #tpu.memory_space<vmem>>, vector<128x64xbf16>
    %cst_79 = arith.constant dense<0.000000e+00> : vector<32x64xf32>
    %205 = tpu.matmul %203, %204, %cst_79 {dimension_numbers = #tpu.dot_dimension_numbers<[1], [0], [0], [1], [0, 0, 1, 1], [], []>} : vector<32x128xbf16>, vector<128x64xbf16>, vector<32x64xf32> -> vector<32x64xf32>
    %c0_80 = arith.constant 0 : index
    %c0_81 = arith.constant 0 : index
    %c0_82 = arith.constant 0 : index
    %206 = vector.load %arg22[%c0_80, %c0_81, %c0_82] : memref<4x16x16xf32, #tpu.memory_space<vmem>>, vector<4x16x16xf32>
    %c0_83 = arith.constant 0 : index
    %c0_84 = arith.constant 0 : index
    %207 = vector.load %arg23[%c0_83, %c0_84] : memref<1x64xf32, #tpu.memory_space<vmem>>, vector<1x64xf32>
    %c0_85 = arith.constant 0 : index
    %c0_86 = arith.constant 0 : index
    %208 = vector.load %arg24[%c0_85, %c0_86] : memref<1x64xf32, #tpu.memory_space<vmem>>, vector<1x64xf32>
    %c0_87 = arith.constant 0 : index
    %c0_88 = arith.constant 0 : index
    %209 = vector.load %arg25[%c0_87, %c0_88] : memref<64x192xbf16, #tpu.memory_space<vmem>>, vector<64x192xbf16>
    %c0_89 = arith.constant 0 : index
    %c0_90 = arith.constant 0 : index
    %210 = vector.load %arg26[%c0_89, %c0_90] : memref<1x192xf32, #tpu.memory_space<vmem>>, vector<1x192xf32>
    %c0_91 = arith.constant 0 : index
    %c0_92 = arith.constant 0 : index
    %211 = vector.load %arg27[%c0_91, %c0_92] : memref<64x64xbf16, #tpu.memory_space<vmem>>, vector<64x64xbf16>
    %c0_93 = arith.constant 0 : index
    %c0_94 = arith.constant 0 : index
    %212 = vector.load %arg28[%c0_93, %c0_94] : memref<1x64xf32, #tpu.memory_space<vmem>>, vector<1x64xf32>
    %c0_95 = arith.constant 0 : index
    %c0_96 = arith.constant 0 : index
    %213 = vector.load %arg29[%c0_95, %c0_96] : memref<1x64xf32, #tpu.memory_space<vmem>>, vector<1x64xf32>
    %c0_97 = arith.constant 0 : index
    %c0_98 = arith.constant 0 : index
    %214 = vector.load %arg30[%c0_97, %c0_98] : memref<1x64xf32, #tpu.memory_space<vmem>>, vector<1x64xf32>
    %c0_99 = arith.constant 0 : index
    %c0_100 = arith.constant 0 : index
    %215 = vector.load %arg31[%c0_99, %c0_100] : memref<64x256xbf16, #tpu.memory_space<vmem>>, vector<64x256xbf16>
    %c0_101 = arith.constant 0 : index
    %c0_102 = arith.constant 0 : index
    %216 = vector.load %arg32[%c0_101, %c0_102] : memref<1x256xf32, #tpu.memory_space<vmem>>, vector<1x256xf32>
    %c0_103 = arith.constant 0 : index
    %c0_104 = arith.constant 0 : index
    %217 = vector.load %arg33[%c0_103, %c0_104] : memref<256x64xbf16, #tpu.memory_space<vmem>>, vector<256x64xbf16>
    %c0_105 = arith.constant 0 : index
    %c0_106 = arith.constant 0 : index
    %218 = vector.load %arg34[%c0_105, %c0_106] : memref<1x64xf32, #tpu.memory_space<vmem>>, vector<1x64xf32>
    %cst_107 = arith.constant dense<0.000000e+00> : vector<32xf32>
    %219 = vector.multi_reduction <add>, %205, %cst_107 [1] : vector<32x64xf32> to vector<32xf32>
    %220 = vector.shape_cast %219 : vector<32xf32> to vector<32x1xf32>
    %cst_108 = arith.constant 6.400000e+01 : f32
    %221 = vector.broadcast %cst_108 : f32 to vector<32x1xf32>
    %222 = arith.divf %220, %221 : vector<32x1xf32>
    %223 = vector.broadcast %222 : vector<32x1xf32> to vector<32x64xf32>
    %224 = arith.subf %205, %223 : vector<32x64xf32>
    %225 = arith.mulf %224, %224 : vector<32x64xf32>
    %cst_109 = arith.constant dense<0.000000e+00> : vector<32xf32>
    %226 = vector.multi_reduction <add>, %225, %cst_109 [1] : vector<32x64xf32> to vector<32xf32>
    %227 = vector.shape_cast %226 : vector<32xf32> to vector<32x1xf32>
    %cst_110 = arith.constant 6.400000e+01 : f32
    %228 = vector.broadcast %cst_110 : f32 to vector<32x1xf32>
    %229 = arith.divf %227, %228 : vector<32x1xf32>
    %cst_111 = arith.constant 9.99999974E-6 : f32
    %230 = vector.broadcast %cst_111 : f32 to vector<32x1xf32>
    %231 = arith.addf %229, %230 : vector<32x1xf32>
    %232 = math.rsqrt %231 : vector<32x1xf32>
    %233 = vector.broadcast %232 : vector<32x1xf32> to vector<32x64xf32>
    %234 = arith.mulf %224, %233 : vector<32x64xf32>
    %235 = vector.broadcast %207 : vector<1x64xf32> to vector<32x64xf32>
    %236 = arith.mulf %234, %235 : vector<32x64xf32>
    %237 = vector.broadcast %208 : vector<1x64xf32> to vector<32x64xf32>
    %238 = arith.addf %236, %237 : vector<32x64xf32>
    %239 = arith.truncf %238 : vector<32x64xf32> to vector<32x64xbf16>
    %cst_112 = arith.constant dense<0.000000e+00> : vector<32x192xf32>
    %240 = tpu.matmul %239, %209, %cst_112 {dimension_numbers = #tpu.dot_dimension_numbers<[1], [0], [0], [1], [0, 0, 1, 1], [], []>} : vector<32x64xbf16>, vector<64x192xbf16>, vector<32x192xf32> -> vector<32x192xf32>
    %241 = vector.broadcast %210 : vector<1x192xf32> to vector<32x192xf32>
    %242 = arith.addf %240, %241 : vector<32x192xf32>
    %243 = vector.extract_strided_slice %242 {offsets = [0, 0], sizes = [32, 16], strides = [1, 1]} : vector<32x192xf32> to vector<32x16xf32>
    %244 = arith.truncf %243 : vector<32x16xf32> to vector<32x16xbf16>
    %245 = vector.shape_cast %244 : vector<32x16xbf16> to vector<2x16x16xbf16>
    %246 = vector.extract_strided_slice %242 {offsets = [0, 64], sizes = [32, 16], strides = [1, 1]} : vector<32x192xf32> to vector<32x16xf32>
    %247 = arith.truncf %246 : vector<32x16xf32> to vector<32x16xbf16>
    %248 = vector.shape_cast %247 : vector<32x16xbf16> to vector<2x16x16xbf16>
    %249 = vector.extract_strided_slice %242 {offsets = [0, 128], sizes = [32, 16], strides = [1, 1]} : vector<32x192xf32> to vector<32x16xf32>
    %250 = arith.truncf %249 : vector<32x16xf32> to vector<32x16xbf16>
    %251 = vector.shape_cast %250 : vector<32x16xbf16> to vector<2x16x16xbf16>
    "tpu.trace_start"() <{level = 10 : i32, message = "bnd,bmd->bnm"}> : () -> ()
    %cst_113 = arith.constant dense<0.000000e+00> : vector<2x16x16xf32>
    %252 = tpu.matmul %245, %248, %cst_113 {dimension_numbers = #tpu.dot_dimension_numbers<[2], [2], [1], [1], [0, 0, 0, 1, 1, 1], [0], [0]>} : vector<2x16x16xbf16>, vector<2x16x16xbf16>, vector<2x16x16xf32> -> vector<2x16x16xf32>
    "tpu.trace_stop"() : () -> ()
    %253 = vector.extract_strided_slice %206 {offsets = [0, 0, 0], sizes = [1, 16, 16], strides = [1, 1, 1]} : vector<4x16x16xf32> to vector<1x16x16xf32>
    %254 = vector.shape_cast %253 : vector<1x16x16xf32> to vector<16x16xf32>
    %255 = vector.shape_cast %254 : vector<16x16xf32> to vector<1x16x16xf32>
    %256 = vector.broadcast %255 : vector<1x16x16xf32> to vector<2x16x16xf32>
    %257 = arith.addf %252, %256 : vector<2x16x16xf32>
    %cst_114 = arith.constant dense<0xFF800000> : vector<2x16xf32>
    %258 = vector.multi_reduction <maximumf>, %257, %cst_114 [2] : vector<2x16x16xf32> to vector<2x16xf32>
    %259 = vector.shape_cast %258 : vector<2x16xf32> to vector<2x16x1xf32>
    %260 = vector.broadcast %259 : vector<2x16x1xf32> to vector<2x16x16xf32>
    %261 = arith.subf %257, %260 : vector<2x16x16xf32>
    %262 = math.exp %261 : vector<2x16x16xf32>
    %cst_115 = arith.constant dense<0.000000e+00> : vector<2x16xf32>
    %263 = vector.multi_reduction <add>, %262, %cst_115 [2] : vector<2x16x16xf32> to vector<2x16xf32>
    %264 = vector.shape_cast %263 : vector<2x16xf32> to vector<2x16x1xf32>
    %265 = tpu.reciprocal %264 {approx = true} : vector<2x16x1xf32> -> vector<2x16x1xf32>
    %266 = vector.broadcast %265 : vector<2x16x1xf32> to vector<2x16x16xf32>
    %267 = arith.mulf %262, %266 : vector<2x16x16xf32>
    %268 = arith.truncf %267 : vector<2x16x16xf32> to vector<2x16x16xbf16>
    "tpu.trace_start"() <{level = 10 : i32, message = "bnm,bmd->bnd"}> : () -> ()
    %cst_116 = arith.constant dense<0.000000e+00> : vector<2x16x16xf32>
    %269 = tpu.matmul %268, %251, %cst_116 {dimension_numbers = #tpu.dot_dimension_numbers<[2], [1], [1], [2], [0, 0, 0, 1, 1, 2], [0], [0]>} : vector<2x16x16xbf16>, vector<2x16x16xbf16>, vector<2x16x16xf32> -> vector<2x16x16xf32>
    "tpu.trace_stop"() : () -> ()
    %270 = vector.shape_cast %269 : vector<2x16x16xf32> to vector<32x16xf32>
    %271 = arith.truncf %270 : vector<32x16xf32> to vector<32x16xbf16>
    %272 = vector.extract_strided_slice %211 {offsets = [0, 0], sizes = [16, 64], strides = [1, 1]} : vector<64x64xbf16> to vector<16x64xbf16>
    %cst_117 = arith.constant dense<0.000000e+00> : vector<32x64xf32>
    %273 = tpu.matmul %271, %272, %cst_117 {dimension_numbers = #tpu.dot_dimension_numbers<[1], [0], [0], [1], [0, 0, 1, 1], [], []>} : vector<32x16xbf16>, vector<16x64xbf16>, vector<32x64xf32> -> vector<32x64xf32>
    %274 = vector.extract_strided_slice %242 {offsets = [0, 16], sizes = [32, 16], strides = [1, 1]} : vector<32x192xf32> to vector<32x16xf32>
    %275 = arith.truncf %274 : vector<32x16xf32> to vector<32x16xbf16>
    %276 = vector.shape_cast %275 : vector<32x16xbf16> to vector<2x16x16xbf16>
    %277 = vector.extract_strided_slice %242 {offsets = [0, 80], sizes = [32, 16], strides = [1, 1]} : vector<32x192xf32> to vector<32x16xf32>
    %278 = arith.truncf %277 : vector<32x16xf32> to vector<32x16xbf16>
    %279 = vector.shape_cast %278 : vector<32x16xbf16> to vector<2x16x16xbf16>
    %280 = vector.extract_strided_slice %242 {offsets = [0, 144], sizes = [32, 16], strides = [1, 1]} : vector<32x192xf32> to vector<32x16xf32>
    %281 = arith.truncf %280 : vector<32x16xf32> to vector<32x16xbf16>
    %282 = vector.shape_cast %281 : vector<32x16xbf16> to vector<2x16x16xbf16>
    "tpu.trace_start"() <{level = 10 : i32, message = "bnd,bmd->bnm"}> : () -> ()
    %cst_118 = arith.constant dense<0.000000e+00> : vector<2x16x16xf32>
    %283 = tpu.matmul %276, %279, %cst_118 {dimension_numbers = #tpu.dot_dimension_numbers<[2], [2], [1], [1], [0, 0, 0, 1, 1, 1], [0], [0]>} : vector<2x16x16xbf16>, vector<2x16x16xbf16>, vector<2x16x16xf32> -> vector<2x16x16xf32>
    "tpu.trace_stop"() : () -> ()
    %284 = vector.extract_strided_slice %206 {offsets = [1, 0, 0], sizes = [1, 16, 16], strides = [1, 1, 1]} : vector<4x16x16xf32> to vector<1x16x16xf32>
    %285 = vector.shape_cast %284 : vector<1x16x16xf32> to vector<16x16xf32>
    %286 = vector.shape_cast %285 : vector<16x16xf32> to vector<1x16x16xf32>
    %287 = vector.broadcast %286 : vector<1x16x16xf32> to vector<2x16x16xf32>
    %288 = arith.addf %283, %287 : vector<2x16x16xf32>
    %cst_119 = arith.constant dense<0xFF800000> : vector<2x16xf32>
    %289 = vector.multi_reduction <maximumf>, %288, %cst_119 [2] : vector<2x16x16xf32> to vector<2x16xf32>
    %290 = vector.shape_cast %289 : vector<2x16xf32> to vector<2x16x1xf32>
    %291 = vector.broadcast %290 : vector<2x16x1xf32> to vector<2x16x16xf32>
    %292 = arith.subf %288, %291 : vector<2x16x16xf32>
    %293 = math.exp %292 : vector<2x16x16xf32>
    %cst_120 = arith.constant dense<0.000000e+00> : vector<2x16xf32>
    %294 = vector.multi_reduction <add>, %293, %cst_120 [2] : vector<2x16x16xf32> to vector<2x16xf32>
    %295 = vector.shape_cast %294 : vector<2x16xf32> to vector<2x16x1xf32>
    %296 = tpu.reciprocal %295 {approx = true} : vector<2x16x1xf32> -> vector<2x16x1xf32>
    %297 = vector.broadcast %296 : vector<2x16x1xf32> to vector<2x16x16xf32>
    %298 = arith.mulf %293, %297 : vector<2x16x16xf32>
    %299 = arith.truncf %298 : vector<2x16x16xf32> to vector<2x16x16xbf16>
    "tpu.trace_start"() <{level = 10 : i32, message = "bnm,bmd->bnd"}> : () -> ()
    %cst_121 = arith.constant dense<0.000000e+00> : vector<2x16x16xf32>
    %300 = tpu.matmul %299, %282, %cst_121 {dimension_numbers = #tpu.dot_dimension_numbers<[2], [1], [1], [2], [0, 0, 0, 1, 1, 2], [0], [0]>} : vector<2x16x16xbf16>, vector<2x16x16xbf16>, vector<2x16x16xf32> -> vector<2x16x16xf32>
    "tpu.trace_stop"() : () -> ()
    %301 = vector.shape_cast %300 : vector<2x16x16xf32> to vector<32x16xf32>
    %302 = arith.truncf %301 : vector<32x16xf32> to vector<32x16xbf16>
    %303 = vector.extract_strided_slice %211 {offsets = [16, 0], sizes = [16, 64], strides = [1, 1]} : vector<64x64xbf16> to vector<16x64xbf16>
    %cst_122 = arith.constant dense<0.000000e+00> : vector<32x64xf32>
    %304 = tpu.matmul %302, %303, %cst_122 {dimension_numbers = #tpu.dot_dimension_numbers<[1], [0], [0], [1], [0, 0, 1, 1], [], []>} : vector<32x16xbf16>, vector<16x64xbf16>, vector<32x64xf32> -> vector<32x64xf32>
    %305 = arith.addf %273, %304 : vector<32x64xf32>
    %306 = vector.extract_strided_slice %242 {offsets = [0, 32], sizes = [32, 16], strides = [1, 1]} : vector<32x192xf32> to vector<32x16xf32>
    %307 = arith.truncf %306 : vector<32x16xf32> to vector<32x16xbf16>
    %308 = vector.shape_cast %307 : vector<32x16xbf16> to vector<2x16x16xbf16>
    %309 = vector.extract_strided_slice %242 {offsets = [0, 96], sizes = [32, 16], strides = [1, 1]} : vector<32x192xf32> to vector<32x16xf32>
    %310 = arith.truncf %309 : vector<32x16xf32> to vector<32x16xbf16>
    %311 = vector.shape_cast %310 : vector<32x16xbf16> to vector<2x16x16xbf16>
    %312 = vector.extract_strided_slice %242 {offsets = [0, 160], sizes = [32, 16], strides = [1, 1]} : vector<32x192xf32> to vector<32x16xf32>
    %313 = arith.truncf %312 : vector<32x16xf32> to vector<32x16xbf16>
    %314 = vector.shape_cast %313 : vector<32x16xbf16> to vector<2x16x16xbf16>
    "tpu.trace_start"() <{level = 10 : i32, message = "bnd,bmd->bnm"}> : () -> ()
    %cst_123 = arith.constant dense<0.000000e+00> : vector<2x16x16xf32>
    %315 = tpu.matmul %308, %311, %cst_123 {dimension_numbers = #tpu.dot_dimension_numbers<[2], [2], [1], [1], [0, 0, 0, 1, 1, 1], [0], [0]>} : vector<2x16x16xbf16>, vector<2x16x16xbf16>, vector<2x16x16xf32> -> vector<2x16x16xf32>
    "tpu.trace_stop"() : () -> ()
    %316 = vector.extract_strided_slice %206 {offsets = [2, 0, 0], sizes = [1, 16, 16], strides = [1, 1, 1]} : vector<4x16x16xf32> to vector<1x16x16xf32>
    %317 = vector.shape_cast %316 : vector<1x16x16xf32> to vector<16x16xf32>
    %318 = vector.shape_cast %317 : vector<16x16xf32> to vector<1x16x16xf32>
    %319 = vector.broadcast %318 : vector<1x16x16xf32> to vector<2x16x16xf32>
    %320 = arith.addf %315, %319 : vector<2x16x16xf32>
    %cst_124 = arith.constant dense<0xFF800000> : vector<2x16xf32>
    %321 = vector.multi_reduction <maximumf>, %320, %cst_124 [2] : vector<2x16x16xf32> to vector<2x16xf32>
    %322 = vector.shape_cast %321 : vector<2x16xf32> to vector<2x16x1xf32>
    %323 = vector.broadcast %322 : vector<2x16x1xf32> to vector<2x16x16xf32>
    %324 = arith.subf %320, %323 : vector<2x16x16xf32>
    %325 = math.exp %324 : vector<2x16x16xf32>
    %cst_125 = arith.constant dense<0.000000e+00> : vector<2x16xf32>
    %326 = vector.multi_reduction <add>, %325, %cst_125 [2] : vector<2x16x16xf32> to vector<2x16xf32>
    %327 = vector.shape_cast %326 : vector<2x16xf32> to vector<2x16x1xf32>
    %328 = tpu.reciprocal %327 {approx = true} : vector<2x16x1xf32> -> vector<2x16x1xf32>
    %329 = vector.broadcast %328 : vector<2x16x1xf32> to vector<2x16x16xf32>
    %330 = arith.mulf %325, %329 : vector<2x16x16xf32>
    %331 = arith.truncf %330 : vector<2x16x16xf32> to vector<2x16x16xbf16>
    "tpu.trace_start"() <{level = 10 : i32, message = "bnm,bmd->bnd"}> : () -> ()
    %cst_126 = arith.constant dense<0.000000e+00> : vector<2x16x16xf32>
    %332 = tpu.matmul %331, %314, %cst_126 {dimension_numbers = #tpu.dot_dimension_numbers<[2], [1], [1], [2], [0, 0, 0, 1, 1, 2], [0], [0]>} : vector<2x16x16xbf16>, vector<2x16x16xbf16>, vector<2x16x16xf32> -> vector<2x16x16xf32>
    "tpu.trace_stop"() : () -> ()
    %333 = vector.shape_cast %332 : vector<2x16x16xf32> to vector<32x16xf32>
    %334 = arith.truncf %333 : vector<32x16xf32> to vector<32x16xbf16>
    %335 = vector.extract_strided_slice %211 {offsets = [32, 0], sizes = [16, 64], strides = [1, 1]} : vector<64x64xbf16> to vector<16x64xbf16>
    %cst_127 = arith.constant dense<0.000000e+00> : vector<32x64xf32>
    %336 = tpu.matmul %334, %335, %cst_127 {dimension_numbers = #tpu.dot_dimension_numbers<[1], [0], [0], [1], [0, 0, 1, 1], [], []>} : vector<32x16xbf16>, vector<16x64xbf16>, vector<32x64xf32> -> vector<32x64xf32>
    %337 = arith.addf %305, %336 : vector<32x64xf32>
    %338 = vector.extract_strided_slice %242 {offsets = [0, 48], sizes = [32, 16], strides = [1, 1]} : vector<32x192xf32> to vector<32x16xf32>
    %339 = arith.truncf %338 : vector<32x16xf32> to vector<32x16xbf16>
    %340 = vector.shape_cast %339 : vector<32x16xbf16> to vector<2x16x16xbf16>
    %341 = vector.extract_strided_slice %242 {offsets = [0, 112], sizes = [32, 16], strides = [1, 1]} : vector<32x192xf32> to vector<32x16xf32>
    %342 = arith.truncf %341 : vector<32x16xf32> to vector<32x16xbf16>
    %343 = vector.shape_cast %342 : vector<32x16xbf16> to vector<2x16x16xbf16>
    %344 = vector.extract_strided_slice %242 {offsets = [0, 176], sizes = [32, 16], strides = [1, 1]} : vector<32x192xf32> to vector<32x16xf32>
    %345 = arith.truncf %344 : vector<32x16xf32> to vector<32x16xbf16>
    %346 = vector.shape_cast %345 : vector<32x16xbf16> to vector<2x16x16xbf16>
    "tpu.trace_start"() <{level = 10 : i32, message = "bnd,bmd->bnm"}> : () -> ()
    %cst_128 = arith.constant dense<0.000000e+00> : vector<2x16x16xf32>
    %347 = tpu.matmul %340, %343, %cst_128 {dimension_numbers = #tpu.dot_dimension_numbers<[2], [2], [1], [1], [0, 0, 0, 1, 1, 1], [0], [0]>} : vector<2x16x16xbf16>, vector<2x16x16xbf16>, vector<2x16x16xf32> -> vector<2x16x16xf32>
    "tpu.trace_stop"() : () -> ()
    %348 = vector.extract_strided_slice %206 {offsets = [3, 0, 0], sizes = [1, 16, 16], strides = [1, 1, 1]} : vector<4x16x16xf32> to vector<1x16x16xf32>
    %349 = vector.shape_cast %348 : vector<1x16x16xf32> to vector<16x16xf32>
    %350 = vector.shape_cast %349 : vector<16x16xf32> to vector<1x16x16xf32>
    %351 = vector.broadcast %350 : vector<1x16x16xf32> to vector<2x16x16xf32>
    %352 = arith.addf %347, %351 : vector<2x16x16xf32>
    %cst_129 = arith.constant dense<0xFF800000> : vector<2x16xf32>
    %353 = vector.multi_reduction <maximumf>, %352, %cst_129 [2] : vector<2x16x16xf32> to vector<2x16xf32>
    %354 = vector.shape_cast %353 : vector<2x16xf32> to vector<2x16x1xf32>
    %355 = vector.broadcast %354 : vector<2x16x1xf32> to vector<2x16x16xf32>
    %356 = arith.subf %352, %355 : vector<2x16x16xf32>
    %357 = math.exp %356 : vector<2x16x16xf32>
    %cst_130 = arith.constant dense<0.000000e+00> : vector<2x16xf32>
    %358 = vector.multi_reduction <add>, %357, %cst_130 [2] : vector<2x16x16xf32> to vector<2x16xf32>
    %359 = vector.shape_cast %358 : vector<2x16xf32> to vector<2x16x1xf32>
    %360 = tpu.reciprocal %359 {approx = true} : vector<2x16x1xf32> -> vector<2x16x1xf32>
    %361 = vector.broadcast %360 : vector<2x16x1xf32> to vector<2x16x16xf32>
    %362 = arith.mulf %357, %361 : vector<2x16x16xf32>
    %363 = arith.truncf %362 : vector<2x16x16xf32> to vector<2x16x16xbf16>
    "tpu.trace_start"() <{level = 10 : i32, message = "bnm,bmd->bnd"}> : () -> ()
    %cst_131 = arith.constant dense<0.000000e+00> : vector<2x16x16xf32>
    %364 = tpu.matmul %363, %346, %cst_131 {dimension_numbers = #tpu.dot_dimension_numbers<[2], [1], [1], [2], [0, 0, 0, 1, 1, 2], [0], [0]>} : vector<2x16x16xbf16>, vector<2x16x16xbf16>, vector<2x16x16xf32> -> vector<2x16x16xf32>
    "tpu.trace_stop"() : () -> ()
    %365 = vector.shape_cast %364 : vector<2x16x16xf32> to vector<32x16xf32>
    %366 = arith.truncf %365 : vector<32x16xf32> to vector<32x16xbf16>
    %367 = vector.extract_strided_slice %211 {offsets = [48, 0], sizes = [16, 64], strides = [1, 1]} : vector<64x64xbf16> to vector<16x64xbf16>
    %cst_132 = arith.constant dense<0.000000e+00> : vector<32x64xf32>
    %368 = tpu.matmul %366, %367, %cst_132 {dimension_numbers = #tpu.dot_dimension_numbers<[1], [0], [0], [1], [0, 0, 1, 1], [], []>} : vector<32x16xbf16>, vector<16x64xbf16>, vector<32x64xf32> -> vector<32x64xf32>
    %369 = arith.addf %337, %368 : vector<32x64xf32>
    %370 = arith.addf %205, %369 : vector<32x64xf32>
    %371 = vector.broadcast %212 : vector<1x64xf32> to vector<32x64xf32>
    %372 = arith.addf %370, %371 : vector<32x64xf32>
    %cst_133 = arith.constant dense<0.000000e+00> : vector<32xf32>
    %373 = vector.multi_reduction <add>, %372, %cst_133 [1] : vector<32x64xf32> to vector<32xf32>
    %374 = vector.shape_cast %373 : vector<32xf32> to vector<32x1xf32>
    %cst_134 = arith.constant 6.400000e+01 : f32
    %375 = vector.broadcast %cst_134 : f32 to vector<32x1xf32>
    %376 = arith.divf %374, %375 : vector<32x1xf32>
    %377 = vector.broadcast %376 : vector<32x1xf32> to vector<32x64xf32>
    %378 = arith.subf %372, %377 : vector<32x64xf32>
    %379 = arith.mulf %378, %378 : vector<32x64xf32>
    %cst_135 = arith.constant dense<0.000000e+00> : vector<32xf32>
    %380 = vector.multi_reduction <add>, %379, %cst_135 [1] : vector<32x64xf32> to vector<32xf32>
    %381 = vector.shape_cast %380 : vector<32xf32> to vector<32x1xf32>
    %cst_136 = arith.constant 6.400000e+01 : f32
    %382 = vector.broadcast %cst_136 : f32 to vector<32x1xf32>
    %383 = arith.divf %381, %382 : vector<32x1xf32>
    %cst_137 = arith.constant 9.99999974E-6 : f32
    %384 = vector.broadcast %cst_137 : f32 to vector<32x1xf32>
    %385 = arith.addf %383, %384 : vector<32x1xf32>
    %386 = math.rsqrt %385 : vector<32x1xf32>
    %387 = vector.broadcast %386 : vector<32x1xf32> to vector<32x64xf32>
    %388 = arith.mulf %378, %387 : vector<32x64xf32>
    %389 = vector.broadcast %213 : vector<1x64xf32> to vector<32x64xf32>
    %390 = arith.mulf %388, %389 : vector<32x64xf32>
    %391 = vector.broadcast %214 : vector<1x64xf32> to vector<32x64xf32>
    %392 = arith.addf %390, %391 : vector<32x64xf32>
    %393 = arith.truncf %392 : vector<32x64xf32> to vector<32x64xbf16>
    %cst_138 = arith.constant dense<0.000000e+00> : vector<32x256xf32>
    %394 = tpu.matmul %393, %215, %cst_138 {dimension_numbers = #tpu.dot_dimension_numbers<[1], [0], [0], [1], [0, 0, 1, 1], [], []>} : vector<32x64xbf16>, vector<64x256xbf16>, vector<32x256xf32> -> vector<32x256xf32>
    %395 = vector.broadcast %216 : vector<1x256xf32> to vector<32x256xf32>
    %396 = arith.addf %394, %395 : vector<32x256xf32>
    %cst_139 = arith.constant 5.000000e-01 : f32
    %397 = vector.broadcast %cst_139 : f32 to vector<32x256xf32>
    %398 = arith.mulf %397, %396 : vector<32x256xf32>
    %cst_140 = arith.constant 4.471500e-02 : f32
    %399 = vector.broadcast %cst_140 : f32 to vector<32x256xf32>
    %400 = arith.mulf %399, %396 : vector<32x256xf32>
    %401 = arith.mulf %400, %396 : vector<32x256xf32>
    %402 = arith.mulf %401, %396 : vector<32x256xf32>
    %403 = arith.addf %396, %402 : vector<32x256xf32>
    %cst_141 = arith.constant 0.797884583 : f32
    %404 = vector.broadcast %cst_141 : f32 to vector<32x256xf32>
    %405 = arith.mulf %404, %403 : vector<32x256xf32>
    %406 = math.tanh %405 : vector<32x256xf32>
    %cst_142 = arith.constant 1.000000e+00 : f32
    %407 = vector.broadcast %cst_142 : f32 to vector<32x256xf32>
    %408 = arith.addf %407, %406 : vector<32x256xf32>
    %409 = arith.mulf %398, %408 : vector<32x256xf32>
    %410 = arith.truncf %409 : vector<32x256xf32> to vector<32x256xbf16>
    %cst_143 = arith.constant dense<0.000000e+00> : vector<32x64xf32>
    %411 = tpu.matmul %410, %217, %cst_143 {dimension_numbers = #tpu.dot_dimension_numbers<[1], [0], [0], [1], [0, 0, 1, 1], [], []>} : vector<32x256xbf16>, vector<256x64xbf16>, vector<32x64xf32> -> vector<32x64xf32>
    %412 = vector.broadcast %218 : vector<1x64xf32> to vector<32x64xf32>
    %413 = arith.addf %411, %412 : vector<32x64xf32>
    %414 = arith.addf %372, %413 : vector<32x64xf32>
    %c0_144 = arith.constant 0 : index
    %c0_145 = arith.constant 0 : index
    %415 = vector.load %arg35[%c0_144, %c0_145] : memref<1x64xf32, #tpu.memory_space<vmem>>, vector<1x64xf32>
    %c0_146 = arith.constant 0 : index
    %c0_147 = arith.constant 0 : index
    %416 = vector.load %arg36[%c0_146, %c0_147] : memref<1x64xf32, #tpu.memory_space<vmem>>, vector<1x64xf32>
    %cst_148 = arith.constant dense<0.000000e+00> : vector<32xf32>
    %417 = vector.multi_reduction <add>, %414, %cst_148 [1] : vector<32x64xf32> to vector<32xf32>
    %418 = vector.shape_cast %417 : vector<32xf32> to vector<32x1xf32>
    %cst_149 = arith.constant 6.400000e+01 : f32
    %419 = vector.broadcast %cst_149 : f32 to vector<32x1xf32>
    %420 = arith.divf %418, %419 : vector<32x1xf32>
    %421 = vector.broadcast %420 : vector<32x1xf32> to vector<32x64xf32>
    %422 = arith.subf %414, %421 : vector<32x64xf32>
    %423 = arith.mulf %422, %422 : vector<32x64xf32>
    %cst_150 = arith.constant dense<0.000000e+00> : vector<32xf32>
    %424 = vector.multi_reduction <add>, %423, %cst_150 [1] : vector<32x64xf32> to vector<32xf32>
    %425 = vector.shape_cast %424 : vector<32xf32> to vector<32x1xf32>
    %cst_151 = arith.constant 6.400000e+01 : f32
    %426 = vector.broadcast %cst_151 : f32 to vector<32x1xf32>
    %427 = arith.divf %425, %426 : vector<32x1xf32>
    %cst_152 = arith.constant 9.99999974E-6 : f32
    %428 = vector.broadcast %cst_152 : f32 to vector<32x1xf32>
    %429 = arith.addf %427, %428 : vector<32x1xf32>
    %430 = math.rsqrt %429 : vector<32x1xf32>
    %431 = vector.broadcast %430 : vector<32x1xf32> to vector<32x64xf32>
    %432 = arith.mulf %422, %431 : vector<32x64xf32>
    %433 = vector.broadcast %415 : vector<1x64xf32> to vector<32x64xf32>
    %434 = arith.mulf %432, %433 : vector<32x64xf32>
    %435 = vector.broadcast %416 : vector<1x64xf32> to vector<32x64xf32>
    %436 = arith.addf %434, %435 : vector<32x64xf32>
    %437 = vector.shape_cast %436 : vector<32x64xf32> to vector<2x16x64xf32>
    %438 = vector.extract_strided_slice %437 {offsets = [0, 0, 0], sizes = [2, 1, 64], strides = [1, 1, 1]} : vector<2x16x64xf32> to vector<2x1x64xf32>
    %439 = vector.shape_cast %438 : vector<2x1x64xf32> to vector<2x64xf32>
    %440 = vector.extract_strided_slice %437 {offsets = [0, 1, 0], sizes = [2, 1, 64], strides = [1, 1, 1]} : vector<2x16x64xf32> to vector<2x1x64xf32>
    %441 = vector.shape_cast %440 : vector<2x1x64xf32> to vector<2x64xf32>
    %442 = vector.extract_strided_slice %437 {offsets = [0, 2, 0], sizes = [2, 1, 64], strides = [1, 1, 1]} : vector<2x16x64xf32> to vector<2x1x64xf32>
    %443 = vector.shape_cast %442 : vector<2x1x64xf32> to vector<2x64xf32>
    %444 = vector.extract_strided_slice %437 {offsets = [0, 3, 0], sizes = [2, 1, 64], strides = [1, 1, 1]} : vector<2x16x64xf32> to vector<2x1x64xf32>
    %445 = vector.shape_cast %444 : vector<2x1x64xf32> to vector<2x64xf32>
    %446 = vector.extract_strided_slice %437 {offsets = [0, 4, 0], sizes = [2, 1, 64], strides = [1, 1, 1]} : vector<2x16x64xf32> to vector<2x1x64xf32>
    %447 = vector.shape_cast %446 : vector<2x1x64xf32> to vector<2x64xf32>
    %448 = vector.extract_strided_slice %437 {offsets = [0, 5, 0], sizes = [2, 1, 64], strides = [1, 1, 1]} : vector<2x16x64xf32> to vector<2x1x64xf32>
    %449 = vector.shape_cast %448 : vector<2x1x64xf32> to vector<2x64xf32>
    %450 = vector.extract_strided_slice %437 {offsets = [0, 6, 0], sizes = [2, 1, 64], strides = [1, 1, 1]} : vector<2x16x64xf32> to vector<2x1x64xf32>
    %451 = vector.shape_cast %450 : vector<2x1x64xf32> to vector<2x64xf32>
    %452 = vector.extract_strided_slice %437 {offsets = [0, 7, 0], sizes = [2, 1, 64], strides = [1, 1, 1]} : vector<2x16x64xf32> to vector<2x1x64xf32>
    %453 = vector.shape_cast %452 : vector<2x1x64xf32> to vector<2x64xf32>
    %454 = vector.extract_strided_slice %437 {offsets = [0, 8, 0], sizes = [2, 1, 64], strides = [1, 1, 1]} : vector<2x16x64xf32> to vector<2x1x64xf32>
    %455 = vector.shape_cast %454 : vector<2x1x64xf32> to vector<2x64xf32>
    %456 = vector.extract_strided_slice %437 {offsets = [0, 9, 0], sizes = [2, 1, 64], strides = [1, 1, 1]} : vector<2x16x64xf32> to vector<2x1x64xf32>
    %457 = vector.shape_cast %456 : vector<2x1x64xf32> to vector<2x64xf32>
    %458 = vector.extract_strided_slice %437 {offsets = [0, 10, 0], sizes = [2, 1, 64], strides = [1, 1, 1]} : vector<2x16x64xf32> to vector<2x1x64xf32>
    %459 = vector.shape_cast %458 : vector<2x1x64xf32> to vector<2x64xf32>
    %460 = vector.extract_strided_slice %437 {offsets = [0, 11, 0], sizes = [2, 1, 64], strides = [1, 1, 1]} : vector<2x16x64xf32> to vector<2x1x64xf32>
    %461 = vector.shape_cast %460 : vector<2x1x64xf32> to vector<2x64xf32>
    %462 = vector.extract_strided_slice %437 {offsets = [0, 12, 0], sizes = [2, 1, 64], strides = [1, 1, 1]} : vector<2x16x64xf32> to vector<2x1x64xf32>
    %463 = vector.shape_cast %462 : vector<2x1x64xf32> to vector<2x64xf32>
    %464 = vector.extract_strided_slice %437 {offsets = [0, 13, 0], sizes = [2, 1, 64], strides = [1, 1, 1]} : vector<2x16x64xf32> to vector<2x1x64xf32>
    %465 = vector.shape_cast %464 : vector<2x1x64xf32> to vector<2x64xf32>
    %466 = vector.extract_strided_slice %437 {offsets = [0, 14, 0], sizes = [2, 1, 64], strides = [1, 1, 1]} : vector<2x16x64xf32> to vector<2x1x64xf32>
    %467 = vector.shape_cast %466 : vector<2x1x64xf32> to vector<2x64xf32>
    %468 = vector.extract_strided_slice %437 {offsets = [0, 15, 0], sizes = [2, 1, 64], strides = [1, 1, 1]} : vector<2x16x64xf32> to vector<2x1x64xf32>
    %469 = vector.shape_cast %468 : vector<2x1x64xf32> to vector<2x64xf32>
    %470 = tpu.concatenate %439, %441, %443, %445, %447, %449, %451, %453, %455, %457, %459, %461, %463, %465, %467, %469 in 1 : vector<2x64xf32>, vector<2x64xf32>, vector<2x64xf32>, vector<2x64xf32>, vector<2x64xf32>, vector<2x64xf32>, vector<2x64xf32>, vector<2x64xf32>, vector<2x64xf32>, vector<2x64xf32>, vector<2x64xf32>, vector<2x64xf32>, vector<2x64xf32>, vector<2x64xf32>, vector<2x64xf32>, vector<2x64xf32> -> vector<2x1024xf32>
    %471 = arith.truncf %470 : vector<2x1024xf32> to vector<2x1024xbf16>
    %c0_153 = arith.constant 0 : index
    %c0_154 = arith.constant 0 : index
    %472 = vector.load %arg37[%c0_153, %c0_154] : memref<1024x128xbf16, #tpu.memory_space<vmem>>, vector<1024x128xbf16>
    %cst_155 = arith.constant dense<0.000000e+00> : vector<2x128xf32>
    %473 = tpu.matmul %471, %472, %cst_155 {dimension_numbers = #tpu.dot_dimension_numbers<[1], [0], [0], [1], [0, 0, 1, 1], [], []>} : vector<2x1024xbf16>, vector<1024x128xbf16>, vector<2x128xf32> -> vector<2x128xf32>
    %c0_156 = arith.constant 0 : index
    %c0_157 = arith.constant 0 : index
    %474 = vector.load %arg38[%c0_156, %c0_157] : memref<1x128xf32, #tpu.memory_space<vmem>>, vector<1x128xf32>
    %475 = vector.broadcast %474 : vector<1x128xf32> to vector<2x128xf32>
    %476 = arith.addf %473, %475 : vector<2x128xf32>
    %c0_158 = arith.constant 0 : index
    %c0_159 = arith.constant 0 : index
    %477 = vector.load %arg39[%c0_158, %c0_159] : memref<2x128xf32, #tpu.memory_space<vmem>>, vector<2x128xf32>
    tpu.vector_store %arg39[%c0_158, %c0_159], %476 {strides = array<i32>} : memref<2x128xf32, #tpu.memory_space<vmem>>, vector<2x128xf32>,
    return
  }
  func.func @transform_0(%arg0: i32) -> (i32, i32) {
    %c0_i32 = arith.constant 0 : i32
    %c0_i32_0 = arith.constant 0 : i32
    %c0_i32_1 = arith.constant 0 : i32
    return %c0_i32, %c0_i32_0 : i32, i32
  }
  func.func @transform_1(%arg0: i32) -> (i32, i32) {
    %c0_i32 = arith.constant 0 : i32
    %c0_i32_0 = arith.constant 0 : i32
    %c0_i32_1 = arith.constant 0 : i32
    return %c0_i32, %c0_i32_0 : i32, i32
  }
  func.func @transform_2(%arg0: i32) -> (i32, i32) {
    %c0_i32 = arith.constant 0 : i32
    %c0_i32_0 = arith.constant 0 : i32
    %c0_i32_1 = arith.constant 0 : i32
    return %c0_i32, %c0_i32_0 : i32, i32
  }
  func.func @transform_3(%arg0: i32) -> (i32, i32) {
    %c0_i32 = arith.constant 0 : i32
    %c0_i32_0 = arith.constant 0 : i32
    %c0_i32_1 = arith.constant 0 : i32
    return %c0_i32, %c0_i32_0 : i32, i32
  }
  func.func @transform_4(%arg0: i32) -> (i32, i32) {
    %c0_i32 = arith.constant 0 : i32
    %c0_i32_0 = arith.constant 0 : i32
    %c0_i32_1 = arith.constant 0 : i32
    return %c0_i32, %c0_i32_0 : i32, i32
  }
  func.func @transform_5(%arg0: i32) -> (i32, i32, i32) {
    %c0_i32 = arith.constant 0 : i32
    %c0_i32_0 = arith.constant 0 : i32
    %c0_i32_1 = arith.constant 0 : i32
    %c0_i32_2 = arith.constant 0 : i32
    return %c0_i32, %c0_i32_0, %c0_i32_1 : i32, i32, i32
  }
  func.func @transform_6(%arg0: i32) -> (i32, i32) {
    %c0_i32 = arith.constant 0 : i32
    %c0_i32_0 = arith.constant 0 : i32
    %c0_i32_1 = arith.constant 0 : i32
    return %c0_i32, %c0_i32_0 : i32, i32
  }
  func.func @transform_7(%arg0: i32) -> (i32, i32) {
    %c0_i32 = arith.constant 0 : i32
    %c0_i32_0 = arith.constant 0 : i32
    %c0_i32_1 = arith.constant 0 : i32
    return %c0_i32, %c0_i32_0 : i32, i32
  }
  func.func @transform_8(%arg0: i32) -> (i32, i32) {
    %c0_i32 = arith.constant 0 : i32
    %c0_i32_0 = arith.constant 0 : i32
    %c0_i32_1 = arith.constant 0 : i32
    return %c0_i32, %c0_i32_0 : i32, i32
  }
  func.func @transform_9(%arg0: i32) -> (i32, i32) {
    %c0_i32 = arith.constant 0 : i32
    %c0_i32_0 = arith.constant 0 : i32
    %c0_i32_1 = arith.constant 0 : i32
    return %c0_i32, %c0_i32_0 : i32, i32
  }
  func.func @transform_10(%arg0: i32) -> (i32, i32) {
    %c0_i32 = arith.constant 0 : i32
    %c0_i32_0 = arith.constant 0 : i32
    %c0_i32_1 = arith.constant 0 : i32
    return %c0_i32, %c0_i32_0 : i32, i32
  }
  func.func @transform_11(%arg0: i32) -> (i32, i32) {
    %c0_i32 = arith.constant 0 : i32
    %c0_i32_0 = arith.constant 0 : i32
    %c0_i32_1 = arith.constant 0 : i32
    return %c0_i32, %c0_i32_0 : i32, i32
  }
  func.func @transform_12(%arg0: i32) -> (i32, i32) {
    %c0_i32 = arith.constant 0 : i32
    %c0_i32_0 = arith.constant 0 : i32
    %c0_i32_1 = arith.constant 0 : i32
    return %c0_i32, %c0_i32_0 : i32, i32
  }
  func.func @transform_13(%arg0: i32) -> (i32, i32) {
    %c0_i32 = arith.constant 0 : i32
    %c0_i32_0 = arith.constant 0 : i32
    %c0_i32_1 = arith.constant 0 : i32
    return %c0_i32, %c0_i32_0 : i32, i32
  }
  func.func @transform_14(%arg0: i32) -> (i32, i32) {
    %c0_i32 = arith.constant 0 : i32
    %c0_i32_0 = arith.constant 0 : i32
    %c0_i32_1 = arith.constant 0 : i32
    return %c0_i32, %c0_i32_0 : i32, i32
  }
  func.func @transform_15(%arg0: i32) -> (i32, i32) {
    %c0_i32 = arith.constant 0 : i32
    %c0_i32_0 = arith.constant 0 : i32
    %c0_i32_1 = arith.constant 0 : i32
    return %c0_i32, %c0_i32_0 : i32, i32
  }
  func.func @transform_16(%arg0: i32) -> (i32, i32) {
    %c0_i32 = arith.constant 0 : i32
    %c0_i32_0 = arith.constant 0 : i32
    %c0_i32_1 = arith.constant 0 : i32
    return %c0_i32, %c0_i32_0 : i32, i32
  }
  func.func @transform_17(%arg0: i32) -> (i32, i32) {
    %c0_i32 = arith.constant 0 : i32
    %c0_i32_0 = arith.constant 0 : i32
    %c0_i32_1 = arith.constant 0 : i32
    return %c0_i32, %c0_i32_0 : i32, i32
  }
  func.func @transform_18(%arg0: i32) -> (i32, i32) {
    %c0_i32 = arith.constant 0 : i32
    %c0_i32_0 = arith.constant 0 : i32
    %c0_i32_1 = arith.constant 0 : i32
    return %c0_i32, %c0_i32_0 : i32, i32
  }
  func.func @transform_19(%arg0: i32) -> (i32, i32) {
    %c0_i32 = arith.constant 0 : i32
    %c0_i32_0 = arith.constant 0 : i32
    %c0_i32_1 = arith.constant 0 : i32
    return %c0_i32, %c0_i32_0 : i32, i32
  }
  func.func @transform_20(%arg0: i32) -> (i32, i32) {
    %c0_i32 = arith.constant 0 : i32
    %c0_i32_0 = arith.constant 0 : i32
    %c0_i32_1 = arith.constant 0 : i32
    return %c0_i32, %c0_i32_0 : i32, i32
  }
  func.func @transform_21(%arg0: i32) -> (i32, i32, i32) {
    %c0_i32 = arith.constant 0 : i32
    %c0_i32_0 = arith.constant 0 : i32
    %c0_i32_1 = arith.constant 0 : i32
    %c0_i32_2 = arith.constant 0 : i32
    return %c0_i32, %c0_i32_0, %c0_i32_1 : i32, i32, i32
  }
  func.func @transform_22(%arg0: i32) -> (i32, i32) {
    %c0_i32 = arith.constant 0 : i32
    %c0_i32_0 = arith.constant 0 : i32
    %c0_i32_1 = arith.constant 0 : i32
    return %c0_i32, %c0_i32_0 : i32, i32
  }
  func.func @transform_23(%arg0: i32) -> (i32, i32) {
    %c0_i32 = arith.constant 0 : i32
    %c0_i32_0 = arith.constant 0 : i32
    %c0_i32_1 = arith.constant 0 : i32
    return %c0_i32, %c0_i32_0 : i32, i32
  }
  func.func @transform_24(%arg0: i32) -> (i32, i32) {
    %c0_i32 = arith.constant 0 : i32
    %c0_i32_0 = arith.constant 0 : i32
    %c0_i32_1 = arith.constant 0 : i32
    return %c0_i32, %c0_i32_0 : i32, i32
  }
  func.func @transform_25(%arg0: i32) -> (i32, i32) {
    %c0_i32 = arith.constant 0 : i32
    %c0_i32_0 = arith.constant 0 : i32
    %c0_i32_1 = arith.constant 0 : i32
    return %c0_i32, %c0_i32_0 : i32, i32
  }
  func.func @transform_26(%arg0: i32) -> (i32, i32) {
    %c0_i32 = arith.constant 0 : i32
    %c0_i32_0 = arith.constant 0 : i32
    %c0_i32_1 = arith.constant 0 : i32
    return %c0_i32, %c0_i32_0 : i32, i32
  }
  func.func @transform_27(%arg0: i32) -> (i32, i32) {
    %c0_i32 = arith.constant 0 : i32
    %c0_i32_0 = arith.constant 0 : i32
    %c0_i32_1 = arith.constant 0 : i32
    return %c0_i32, %c0_i32_0 : i32, i32
  }
  func.func @transform_28(%arg0: i32) -> (i32, i32) {
    %c0_i32 = arith.constant 0 : i32
    %c0_i32_0 = arith.constant 0 : i32
    %c0_i32_1 = arith.constant 0 : i32
    return %c0_i32, %c0_i32_0 : i32, i32
  }
  func.func @transform_29(%arg0: i32) -> (i32, i32) {
    %c0_i32 = arith.constant 0 : i32
    %c0_i32_0 = arith.constant 0 : i32
    %c0_i32_1 = arith.constant 0 : i32
    return %c0_i32, %c0_i32_0 : i32, i32
  }
  func.func @transform_30(%arg0: i32) -> (i32, i32) {
    %c0_i32 = arith.constant 0 : i32
    %c0_i32_0 = arith.constant 0 : i32
    %c0_i32_1 = arith.constant 0 : i32
    return %c0_i32, %c0_i32_0 : i32, i32
  }
  func.func @transform_31(%arg0: i32) -> (i32, i32) {
    %c0_i32 = arith.constant 0 : i32
    %c0_i32_0 = arith.constant 0 : i32
    %c0_i32_1 = arith.constant 0 : i32
    return %c0_i32, %c0_i32_0 : i32, i32
  }
  func.func @transform_32(%arg0: i32) -> (i32, i32) {
    %c0_i32 = arith.constant 0 : i32
    %c0_i32_0 = arith.constant 0 : i32
    %c0_i32_1 = arith.constant 0 : i32
    return %c0_i32, %c0_i32_0 : i32, i32
  }
  func.func @transform_33(%arg0: i32) -> (i32, i32) {
    %c0_i32 = arith.constant 0 : i32
    %c0_i32_0 = arith.constant 0 : i32
    %c0_i32_1 = arith.constant 0 : i32
    return %c0_i32, %c0_i32_0 : i32, i32
  }
  func.func @transform_34(%arg0: i32) -> (i32, i32) {
    %c0_i32 = arith.constant 0 : i32
    %c0_i32_0 = arith.constant 0 : i32
    %c0_i32_1 = arith.constant 0 : i32
    return %c0_i32, %c0_i32_0 : i32, i32
  }
  func.func @transform_35(%arg0: i32) -> (i32, i32) {
    %c0_i32 = arith.constant 0 : i32
    %c0_i32_0 = arith.constant 0 : i32
    %c0_i32_1 = arith.constant 0 : i32
    return %c0_i32, %c0_i32_0 : i32, i32
  }
  func.func @transform_36(%arg0: i32) -> (i32, i32) {
    %c0_i32 = arith.constant 0 : i32
    %c0_i32_0 = arith.constant 0 : i32
    %c0_i32_1 = arith.constant 0 : i32
    return %c0_i32, %c0_i32_0 : i32, i32
  }
  func.func @transform_37(%arg0: i32) -> (i32, i32) {
    %c0_i32 = arith.constant 0 : i32
    %c0_i32_0 = arith.constant 0 : i32
    %c0_i32_1 = arith.constant 0 : i32
    return %c0_i32, %c0_i32_0 : i32, i32
  }
  func.func @transform_38(%arg0: i32) -> (i32, i32) {
    %c0_i32 = arith.constant 0 : i32
    %c0_i32_0 = arith.constant 0 : i32
    %c0_i32_1 = arith.constant 0 : i32
    return %c0_i32, %c0_i32_0 : i32, i32
  }
}

</mosaic_0001>

<bundles_post_ra>
// kernel: model_forward.1
= control target key start
LH: loop header
LB: loop body
LE: loop exit
PB: predicated region body
PF: predicated region fallthrough
CT: control target
= control target key end

     0   :  { %s7828_s6 = smov 1   ;;  %s7829_s10 = smov 2   ;;  %s10087_s0 = inlined_call_operand.smem [shape: u32[39], index: -1, kind: input, shape index: {}] }
   0x1   :  { %s7885_s5 = sld [smem:[%s10087_s0]]   ;;  %s7830_s14 = smov 3  }
   0x2   :  { %s7890_s9 = sld [smem:[%s10087_s0 + %s7828_s6]]   ;;  %s7831_s18 = smov 4  }
   0x3   :  { %s7895_s13 = sld [smem:[%s10087_s0 + %s7829_s10]]   ;;  %s7832_s22 = smov 5  }
   0x4   :  { %s7900_s17 = sld [smem:[%s10087_s0 + %s7830_s14]]   ;;  %s7833_s26 = smov 6  }
   0x5   :  { %s7905_s21 = sld [smem:[%s10087_s0 + %s7831_s18]]   ;;  %s7834_s30 = smov 7  }
   0x6   :  { %s7910_s25 = sld [smem:[%s10087_s0 + %s7832_s22]]   ;;  %s7835_s4 = smov 8  }
   0x7   :  { %s7915_s29 = sld [smem:[%s10087_s0 + %s7833_s26]]   ;;  %s7836_s10 = smov 9  }
   0x8   :  { %s7920_s3 = sld [smem:[%s10087_s0 + %s7834_s30]]   ;;  %s7837_s15 = smov 10  }
   0x9   :  { %s7925_s8 = sld [smem:[%s10087_s0 + %s7835_s4]]   ;;  %s7838_s20 = smov 11  }
   0xa   :  { %s7930_s14 = sld [smem:[%s10087_s0 + %s7836_s10]]   ;;  %s7839_s26 = smov 12  }
   0xb   :  { %s7935_s19 = sld [smem:[%s10087_s0 + %s7837_s15]]   ;;  %s7840_s1 = smov 13  }
   0xc   :  { %s7940_s24 = sld [smem:[%s10087_s0 + %s7838_s20]]   ;;  %s7841_s7 = smov 14  }
   0xd   :  { %s7945_s30 = sld [smem:[%s10087_s0 + %s7839_s26]]   ;;  %s7842_s15 = smov 15  }
   0xe   :  { %s7950_s6 = sld [smem:[%s10087_s0 + %s7840_s1]]   ;;  %s7843_s22 = smov 16  }
   0xf   :  { %s7955_s12 = sld [smem:[%s10087_s0 + %s7841_s7]]   ;;  %s7844_s28 = smov 17  }
  0x10   :  { %s7960_s20 = sld [smem:[%s10087_s0 + %s7842_s15]]   ;;  %s7845_s7 = smov 18  }
  0x11   :  { %s7965_s27 = sld [smem:[%s10087_s0 + %s7843_s22]]   ;;  %s7846_s15 = smov 19  }
  0x12   :  { %s7970_s4 = sld [smem:[%s10087_s0 + %s7844_s28]]   ;;  %s7847_s22 = smov 20  }
  0x13   :  { %s7848_s28 = smov 21  }
  0x14   :  { %10101 = sst [smem:[#allocation5_spill]] %s7950_s6 }
  0x15   :  { %s7975_s6 = sld [smem:[%s10087_s0 + %s7845_s7]]   ;;  %s7849_s7 = smov 22  }
  0x16   :  { %10102 = sst [smem:[#allocation6_spill]] %s7960_s20 }
  0x17   :  { %10103 = sst [smem:[#allocation7_spill]] %s7965_s27 }
  0x18   :  { %10104 = sst [smem:[#allocation8_spill]] %s7970_s4 }
  0x19   :  { %s7980_s20 = sld [smem:[%s10087_s0 + %s7846_s15]]   ;;  %s7850_s15 = smov 23  }
  0x1a   :  { %s7985_s27 = sld [smem:[%s10087_s0 + %s7847_s22]]   ;;  %s7851_s22 = smov 24  }
  0x1b   :  { %10105 = sst [smem:[#allocation9_spill]] %s7975_s6 }
  0x1c   :  { %s7990_s4 = sld [smem:[%s10087_s0 + %s7848_s28]]   ;;  %s7852_s28 = smov 25  }
  0x1d   :  { %s7995_s6 = sld [smem:[%s10087_s0 + %s7849_s7]]   ;;  %s7853_s7 = smov 26  }
  0x1f   :  { %10106 = sst [smem:[#allocation10_spill]] %s7980_s20 }
  0x20   :  { %10107 = sst [smem:[#allocation11_spill]] %s7985_s27 }
  0x21   :  { %s8000_s20 = sld [smem:[%s10087_s0 + %s7850_s15]]   ;;  %s7854_s15 = smov 27  }
  0x22   :  { %10108 = sst [smem:[#allocation12_spill]] %s7990_s4 }
  0x23   :  { %10109 = sst [smem:[#allocation13_spill]] %s7995_s6 }
  0x24   :  { %s8005_s27 = sld [smem:[%s10087_s0 + %s7851_s22]]   ;;  %s7855_s22 = smov 28  }
  0x25   :  { %s8010_s4 = sld [smem:[%s10087_s0 + %s7852_s28]]   ;;  %s7856_s28 = smov 29  }
  0x26   :  { %s8015_s6 = sld [smem:[%s10087_s0 + %s7853_s7]]   ;;  %s7857_s7 = smov 30  }
  0x27   :  { %10110 = sst [smem:[#allocation14_spill]] %s8000_s20 }
  0x28   :  { %s8020_s20 = sld [smem:[%s10087_s0 + %s7854_s15]]   ;;  %s7858_s15 = smov 31  }
  0x2a   :  { %10111 = sst [smem:[#allocation15_spill]] %s8005_s27 }
  0x2b   :  { %10112 = sst [smem:[#allocation16_spill]] %s8010_s4 }
  0x2c   :  { %10113 = sst [smem:[#allocation17_spill]] %s8015_s6 }
  0x2d   :  { %s8025_s27 = sld [smem:[%s10087_s0 + %s7855_s22]]   ;;  %s7859_s22 = smov 32  }
  0x2e   :  { %10114 = sst [smem:[#allocation18_spill]] %s8020_s20 }
  0x2f   :  { %s8030_s4 = sld [smem:[%s10087_s0 + %s7856_s28]]   ;;  %s7860_s28 = smov 33  }
  0x30   :  { %s8035_s6 = sld [smem:[%s10087_s0 + %s7857_s7]]   ;;  %s7861_s7 = smov 34  }
  0x31   :  { %s8040_s20 = sld [smem:[%s10087_s0 + %s7858_s15]]   ;;  %s7862_s15 = smov 35  }
  0x33   :  { %10115 = sst [smem:[#allocation19_spill]] %s8025_s27 }
  0x34   :  { %s8045_s27 = sld [smem:[%s10087_s0 + %s7859_s22]]   ;;  %s7863_s22 = smov 36  }
  0x35   :  { %10116 = sst [smem:[#allocation20_spill]] %s8030_s4 }
  0x36   :  { %10117 = sst [smem:[#allocation21_spill]] %s8035_s6 }
  0x37   :  { %10118 = sst [smem:[#allocation22_spill]] %s8040_s20 }
  0x38   :  { %s8050_s4 = sld [smem:[%s10087_s0 + %s7860_s28]]   ;;  %s7864_s28 = smov 37  }
  0x39   :  { %s8055_s6 = sld [smem:[%s10087_s0 + %s7861_s7]]   ;;  %s7865_s7 = smov 38  }
  0x3a   :  { %10119 = sst [smem:[#allocation23_spill]] %s8045_s27 }
  0x3b   :  { %s8060_s20 = sld [smem:[%s10087_s0 + %s7862_s15]]  }
  0x3c   :  { %s8065_s27 = sld [smem:[%s10087_s0 + %s7863_s22]]  }
  0x3e   :  { %10120 = sst [smem:[#allocation24_spill]] %s8050_s4 }
  0x3f   :  { %10121 = sst [smem:[#allocation25_spill]] %s8055_s6 }
  0x40   :  { %s8070_s4 = sld [smem:[%s10087_s0 + %s7864_s28]]  }
  0x41   :  { %s8075_s6 = sld [smem:[%s10087_s0 + %s7865_s7]]  }
  0x42   :  { %v7305_v0 = vld [vmem:[%s7890_s9 + $0x10] sm:$0xff]   ;;  %v7306_v1 = vld [vmem:[%s7890_s9 + $0x8] sm:$0xff]   ;;  %v160_v2 = vld [vmem:[%s7885_s5] sm:$0xff]  ;;  %vm215_vm0 = vcmask 392192  }
  0x43   :  { %6820 = vmatprep.subr.bf16.mxu0 %v7305_v0  ;;  %v161_v3 = vld [vmem:[%s7885_s5 + $0x8] sm:$0xff]  ;;  %v7307_v4 = vld [vmem:[%s7890_s9] sm:$0xff]   ;;  %v162_v6 = vld [vmem:[%s7885_s5 + $0x10] sm:$0xff] }
  0x44   :  { %6821 = vmatpush3.bf16.msra.mxu0 %v7305_v0  ;;  %v176_v5 = vpack.c.bf16 %v161_v3, %v160_v2  ;;  %v163_v7 = vld [vmem:[%s7885_s5 + $0x18] sm:$0xff]  ;;  %v164_v8 = vld [vmem:[%s7885_s5 + $0x20] sm:$0xff]  ;;  %v165_v9 = vld [vmem:[%s7885_s5 + $0x28] sm:$0xff] }
  0x45   :  { %6822 = vmatprep.subr.bf16.mxu0 %v7306_v1  ;;  %v177_v10 = vpack.c.bf16 %v163_v7, %v162_v6  ;;  %v178_v11 = vpack.c.bf16 %v165_v9, %v164_v8  ;;  %v166_v12 = vld [vmem:[%s7885_s5 + $0x30] sm:$0xff]  ;;  %v167_v13 = vld [vmem:[%s7885_s5 + $0x38] sm:$0xff]  ;;  %v168_v14 = vld [vmem:[%s7885_s5 + $0x40] sm:$0xff] }
  0x46   :  { %6826 = vmatprep.mubr.msk.bf16.mxu0 %vm215_vm0, %v176_v5  ;;  %v169_v15 = vld [vmem:[%s7885_s5 + $0x48] sm:$0xff]  ;;  %v179_v16 = vpack.c.bf16 %v167_v13, %v166_v12  ;;  %v170_v18 = vld [vmem:[%s7885_s5 + $0x50] sm:$0xff]  ;;  %v171_v19 = vld [vmem:[%s7885_s5 + $0x58] sm:$0xff] }
  0x47   :  { %v180_v17 = vpack.c.bf16 %v169_v15, %v168_v14  ;;  %v172_v20 = vld [vmem:[%s7885_s5 + $0x60] sm:$0xff]  ;;  %v173_v21 = vld [vmem:[%s7885_s5 + $0x68] sm:$0xff]  ;;  %v181_v22 = vpack.c.bf16 %v171_v19, %v170_v18  ;;  %v174_v24 = vld [vmem:[%s7885_s5 + $0x70] sm:$0xff] }
  0x48   :  { %6823 = vmatpush3.bf16.msra.mxu0 %v7306_v1  ;;  %v182_v23 = vpack.c.bf16 %v173_v21, %v172_v20  ;;  %v175_v25 = vld [vmem:[%s7885_s5 + $0x78] sm:$0xff] }
  0x49   :  { %6824 = vmatprep.subr.bf16.mxu0 %v7307_v4  ;;  %v183_v26 = vpack.c.bf16 %v175_v25, %v174_v24 }
  0x4c   :  { %6825 = vmatpush3.bf16.msra.mxu0 %v7307_v4 }
  0x4f   :  { %6827 = vmatmul.mubr.msk.bf16.vlgmr.msra.gmra.mxu0 %vm215_vm0, %v177_v10 }
  0x50   :  { %6830 = vmatprep.mubr.msk.bf16.mxu0 %vm215_vm0, %v178_v11 }
  0x57   :  { %6831 = vmatmul.mubr.msk.bf16.gmra.mxu0 %vm215_vm0, %v179_v16 }
  0x58   :  { %6834 = vmatprep.mubr.msk.bf16.mxu0 %vm215_vm0, %v180_v17 }
  0x5f   :  { %6835 = vmatmul.mubr.msk.bf16.gmra.mxu0 %vm215_vm0, %v181_v22 }
  0x60   :  { %6838 = vmatprep.mubr.msk.bf16.mxu0 %vm215_vm0, %v182_v23 }
  0x67   :  { %6839 = vmatmul.mubr.msk.bf16.gmra.mxu0 %vm215_vm0, %v183_v26 }
  0x68   :  { %82 = vsyncpa [#allocation3], 0  ;;  %v6274_v27 = vld [vmem:[%s7895_s13] ss:$0 sm:$0xff]  ;;  %vm339_vm1 = vcmask 261120   ;;  %vm1064_vm2 = vcmask 130048  }
  0x69   :  { %s7866_s0 = smov 96   ;;  %s7867_s5 = smov 64   ;;  %vm1255_vm3 = vcmask 523264   ;;  %vm3272_vm4 = vcmask 785408   ;;  %vm7874_vm5 = vmmov 0   ;;  %vm5448_vm6 = vcmask 1041409  }
  0x6a   :  { %s7868_s9 = smov 80   ;;  %s7869_s13 = smov 112  }
  0x6b   :  { %s10148_s15 = sld [smem:[#allocation14_spill]]  ;;  %s7875_s23 = smov 16  }
  0x6c   :  { %s10149_s16 = sld [smem:[#allocation16_spill]] }
  0x6d   :  { %s10150_s18 = sld [smem:[#allocation12_spill]] }
  0x6e   :  { %s10151_s22 = sld [smem:[#allocation17_spill]] }
  0x6f   :  { %s10152_s26 = sld [smem:[#allocation18_spill]] }
  0x70   :  { %s10153_s28 = sld [smem:[#allocation21_spill]] }
  0x71   :  { %s10154_s1 = sld [smem:[#allocation19_spill]] }
  0x72   :  { %s10155_s2 = sld [smem:[#allocation20_spill]] }
  0x73   :  { %s10156_s7 = sld [smem:[#allocation23_spill]] }
  0x74   :  { %s10157_s10 = sld [smem:[#allocation22_spill]] }
  0x75   :  { %s10158_s11 = sld [smem:[#allocation24_spill]] }
 0x10f   :  { %v6828_v28 = vpop.f32.mrf.mxu0 }
 0x110   :  { %v8105_v29 = vadd.f32 %v6828_v28, %v6274_v27 }
 0x111   :  { %v274_v30 = vpop.f32.mrf.mxu0 }
 0x112   :  { %v8107_v31 = vadd.f32 %v6274_v27, %v274_v30  ;;  %v346_v32 = vsel %vm339_vm1, %v8105_v29, 0.0 }
 0x113   :  { %347 = vadd.xlane.f32.xlu1 %v346_v32  ;;  %v6829_v33 = vpop.f32.mrf.mxu0 }
 0x114   :  { %v8111_v34 = vadd.f32 %v6829_v33, %v6274_v27  ;;  %v340_v35 = vsel %vm339_vm1, %v8107_v31, 0.0 }
 0x115   :  { %v277_v36 = vpop.f32.mrf.mxu0  ;;  %341 = vadd.xlane.f32.xlu0 %v340_v35 }
 0x116   :  { %v8115_v37 = vadd.f32 %v6274_v27, %v277_v36  ;;  %v349_v38 = vsel %vm339_vm1, %v8111_v34, 0.0 }
 0x117   :  { %350 = vadd.xlane.f32.xlu1 %v349_v38  ;;  %v6832_v39 = vpop.f32.mrf.mxu0 }
 0x118   :  { %v343_v40 = vsel %vm339_vm1, %v8115_v37, 0.0  ;;  %v8123_v44 = vadd.f32 %v6832_v39, %v6274_v27 }
 0x119   :  { %v290_v41 = vpop.f32.mrf.mxu0  ;;  %344 = vadd.xlane.f32.xlu0 %v343_v40 }
 0x11a   :  { %v8121_v42 = vadd.f32 %v6274_v27, %v290_v41  ;;  %v358_v51 = vsel %vm339_vm1, %v8123_v44, 0.0 }
 0x11b   :  { %v6833_v43 = vpop.f32.mrf.mxu0 }
 0x11c   :  { %v352_v45 = vsel %vm339_vm1, %v8121_v42, 0.0  ;;  %v8129_v49 = vadd.f32 %v6833_v43, %v6274_v27 }
 0x11d   :  { %v293_v46 = vpop.f32.mrf.mxu0  ;;  %353 = vadd.xlane.f32.xlu0 %v352_v45 }
 0x11e   :  { %v8127_v47 = vadd.f32 %v6274_v27, %v293_v46  ;;  %v361_v56 = vsel %vm339_vm1, %v8129_v49, 0.0 }
 0x11f   :  { %v6836_v48 = vpop.f32.mrf.mxu0 }
 0x120   :  { %v355_v50 = vsel %vm339_vm1, %v8127_v47, 0.0  ;;  %v8135_v53 = vadd.f32 %v6836_v48, %v6274_v27 }
 0x121   :  { %v306_v52 = vpop.f32.mrf.mxu0  ;;  %356 = vadd.xlane.f32.xlu1 %v355_v50  ;;  %359 = vadd.xlane.f32.xlu0 %v358_v51 }
 0x122   :  { %v8137_v54 = vadd.f32 %v6274_v27, %v306_v52  ;;  %v370_v61 = vsel %vm339_vm1, %v8135_v53, 0.0 }
 0x123   :  { %v6837_v55 = vpop.f32.mrf.mxu0 }
 0x124   :  { %v364_v57 = vsel %vm339_vm1, %v8137_v54, 0.0  ;;  %v8143_v59 = vadd.f32 %v6837_v55, %v6274_v27 }
 0x125   :  { %v309_v58 = vpop.f32.mrf.mxu0  ;;  %362 = vadd.xlane.f32.xlu1 %v361_v56  ;;  %365 = vadd.xlane.f32.xlu0 %v364_v57 }
 0x126   :  { %v8145_v60 = vadd.f32 %v6274_v27, %v309_v58  ;;  %v373_v3 = vsel %vm339_vm1, %v8143_v59, 0.0 }
 0x127   :  { %v6840_v62 = vpop.f32.mrf.mxu0 }
 0x128   :  { %v367_v63 = vsel %vm339_vm1, %v8145_v60, 0.0  ;;  %v8151_v1 = vadd.f32 %v6840_v62, %v6274_v27 }
 0x129   :  { %v322_v0 = vpop.f32.mrf.mxu0  ;;  %368 = vadd.xlane.f32.xlu1 %v367_v63  ;;  %371 = vadd.xlane.f32.xlu0 %v370_v61 }
 0x12a   :  { %v8153_v2 = vadd.f32 %v6274_v27, %v322_v0  ;;  %v382_v9 = vsel %vm339_vm1, %v8151_v1, 0.0 }
 0x12b   :  { %v6841_v4 = vpop.f32.mrf.mxu0 }
 0x12c   :  { %v376_v5 = vsel %vm339_vm1, %v8153_v2, 0.0  ;;  %v8159_v7 = vadd.f32 %v6841_v4, %v6274_v27 }
 0x12d   :  { %v325_v6 = vpop.f32.mrf.mxu0  ;;  %374 = vadd.xlane.f32.xlu1 %v373_v3  ;;  %377 = vadd.xlane.f32.xlu0 %v376_v5 }
 0x12e   :  { %v8161_v8 = vadd.f32 %v6274_v27, %v325_v6  ;;  %v385_v11 = vsel %vm339_vm1, %v8159_v7, 0.0 }
 0x130   :  { %v379_v10 = vsel %vm339_vm1, %v8161_v8, 0.0 }
 0x131   :  { %380 = vadd.xlane.f32.xlu1 %v379_v10  ;;  %383 = vadd.xlane.f32.xlu0 %v382_v9 }
 0x135   :  { %386 = vadd.xlane.f32.xlu1 %v385_v11 }
 0x19c   :  { %v348_v12 = vpop.xlane.xlu1 %347 }
 0x19d   :  { %v391_v13 = vmul.f32 0.03125, %v348_v12 }
 0x19e   :  { %v342_v14 = vpop.xlane.xlu0 %341 }
 0x19f   :  { %v389_v15 = vmul.f32 0.03125, %v342_v14  ;;  %v8170_v17 = vsub.f32 %v8105_v29, %v391_v13 }
 0x1a0   :  { %v351_v16 = vpop.xlane.xlu1 %350 }
 0x1a1   :  { %v8173_v18 = vsub.f32 %v8107_v31, %v389_v15  ;;  %v392_v19 = vmul.f32 0.03125, %v351_v16  ;;  %v423_v26 = vmul.f32 %v8170_v17, %v8170_v17 }
 0x1a2   :  { %v345_v20 = vpop.xlane.xlu0 %344 }
 0x1a3   :  { %v390_v21 = vmul.f32 0.03125, %v345_v20  ;;  %v421_v22 = vmul.f32 %v8173_v18, %v8173_v18  ;;  %v8178_v23 = vsub.f32 %v8111_v34, %v392_v19  ;;  %v443_v31 = vsel %vm339_vm1, %v423_v26, 0.0 }
 0x1a5   :  { %v8181_v24 = vsub.f32 %v8115_v37, %v390_v21  ;;  %v437_v25 = vsel %vm339_vm1, %v421_v22, 0.0  ;;  %v424_v33 = vmul.f32 %v8178_v23, %v8178_v23 }
 0x1a6   :  { %438 = vadd.xlane.f32.xlu0 %v437_v25  ;;  %v354_v27 = vpop.xlane.xlu0 %353 }
 0x1a7   :  { %v393_v28 = vmul.f32 0.03125, %v354_v27  ;;  %v422_v29 = vmul.f32 %v8181_v24, %v8181_v24  ;;  %v446_v41 = vsel %vm339_vm1, %v424_v33, 0.0 }
 0x1a9   :  { %v8189_v30 = vsub.f32 %v8121_v42, %v393_v28  ;;  %v440_v32 = vsel %vm339_vm1, %v422_v29, 0.0 }
 0x1aa   :  { %v357_v34 = vpop.xlane.xlu1 %356  ;;  %444 = vadd.xlane.f32.xlu0 %v443_v31  ;;  %441 = vadd.xlane.f32.xlu1 %v440_v32  ;;  %v360_v35 = vpop.xlane.xlu0 %359 }
 0x1ab   :  { %v394_v36 = vmul.f32 0.03125, %v357_v34  ;;  %v395_v37 = vmul.f32 0.03125, %v360_v35  ;;  %v425_v38 = vmul.f32 %v8189_v30, %v8189_v30 }
 0x1ad   :  { %v8198_v39 = vsub.f32 %v8127_v47, %v394_v36  ;;  %v8201_v40 = vsub.f32 %v8123_v44, %v395_v37  ;;  %v449_v42 = vsel %vm339_vm1, %v425_v38, 0.0 }
 0x1ae   :  { %v363_v43 = vpop.xlane.xlu1 %362  ;;  %447 = vadd.xlane.f32.xlu1 %v446_v41  ;;  %450 = vadd.xlane.f32.xlu0 %v449_v42  ;;  %v366_v45 = vpop.xlane.xlu0 %365 }
 0x1af   :  { %v396_v46 = vmul.f32 0.03125, %v363_v43  ;;  %v397_v48 = vmul.f32 0.03125, %v366_v45  ;;  %v426_v50 = vmul.f32 %v8198_v39, %v8198_v39  ;;  %v427_v47 = vmul.f32 %v8201_v40, %v8201_v40 }
 0x1b1   :  { %v8210_v51 = vsub.f32 %v8129_v49, %v396_v46  ;;  %v8213_v44 = vsub.f32 %v8137_v54, %v397_v48  ;;  %v452_v52 = vsel %vm339_vm1, %v426_v50, 0.0  ;;  %v455_v55 = vsel %vm339_vm1, %v427_v47, 0.0 }
 0x1b2   :  { %v369_v56 = vpop.xlane.xlu1 %368  ;;  %453 = vadd.xlane.f32.xlu1 %v452_v52  ;;  %456 = vadd.xlane.f32.xlu0 %v455_v55  ;;  %v372_v57 = vpop.xlane.xlu0 %371 }
 0x1b3   :  { %v398_v58 = vmul.f32 0.03125, %v369_v56  ;;  %v399_v61 = vmul.f32 0.03125, %v372_v57  ;;  %v428_v62 = vmul.f32 %v8210_v51, %v8210_v51  ;;  %v429_v49 = vmul.f32 %v8213_v44, %v8213_v44 }
 0x1b5   :  { %v8222_v63 = vsub.f32 %v8145_v60, %v398_v58  ;;  %v8225_v54 = vsub.f32 %v8135_v53, %v399_v61  ;;  %v458_v0 = vsel %vm339_vm1, %v428_v62, 0.0  ;;  %v461_v3 = vsel %vm339_vm1, %v429_v49, 0.0 }
 0x1b6   :  { %v375_v4 = vpop.xlane.xlu1 %374  ;;  %459 = vadd.xlane.f32.xlu1 %v458_v0  ;;  %462 = vadd.xlane.f32.xlu0 %v461_v3  ;;  %v378_v5 = vpop.xlane.xlu0 %377 }
 0x1b7   :  { %v400_v6 = vmul.f32 0.03125, %v375_v4  ;;  %v401_v9 = vmul.f32 0.03125, %v378_v5  ;;  %v430_v10 = vmul.f32 %v8222_v63, %v8222_v63  ;;  %v431_v60 = vmul.f32 %v8225_v54, %v8225_v54 }
 0x1b9   :  { %v8234_v11 = vsub.f32 %v8143_v59, %v400_v6  ;;  %v8237_v53 = vsub.f32 %v8153_v2, %v401_v9  ;;  %v464_v12 = vsel %vm339_vm1, %v430_v10, 0.0  ;;  %v467_v13 = vsel %vm339_vm1, %v431_v60, 0.0  ;;  %v8266_v6 = vld [vmem:[%s7900_s17] ss:$0 sm:$0xff]  ;;  %s7870_s17 = smov 48  }
 0x1ba   :  { %v381_v14 = vpop.xlane.xlu1 %380  ;;  %465 = vadd.xlane.f32.xlu1 %v464_v12  ;;  %468 = vadd.xlane.f32.xlu0 %v467_v13  ;;  %v384_v15 = vpop.xlane.xlu0 %383 }
 0x1bb   :  { %v402_v16 = vmul.f32 0.03125, %v381_v14  ;;  %v403_v19 = vmul.f32 0.03125, %v384_v15  ;;  %v432_v20 = vmul.f32 %v8234_v11, %v8234_v11  ;;  %v433_v59 = vmul.f32 %v8237_v53, %v8237_v53  ;;  %v8270_v14 = vld [vmem:[%s7905_s21] ss:$0 sm:$0xff]  ;;  %s10139_s21 = sld [smem:[#allocation5_spill]] }
 0x1bd   :  { %v8246_v21 = vsub.f32 %v8161_v8, %v402_v16  ;;  %v8249_v2 = vsub.f32 %v8151_v1, %v403_v19  ;;  %v470_v22 = vsel %vm339_vm1, %v432_v20, 0.0  ;;  %v473_v25 = vsel %vm339_vm1, %v433_v59, 0.0 }
 0x1be   :  { %v387_v26 = vpop.xlane.xlu1 %386  ;;  %471 = vadd.xlane.f32.xlu1 %v470_v22  ;;  %474 = vadd.xlane.f32.xlu0 %v473_v25 }
 0x1bf   :  { %v404_v27 = vmul.f32 0.03125, %v387_v26  ;;  %v434_v28 = vmul.f32 %v8246_v21, %v8246_v21  ;;  %v435_v29 = vmul.f32 %v8249_v2, %v8249_v2 }
 0x1c1   :  { %v8258_v8 = vsub.f32 %v8159_v7, %v404_v27  ;;  %v476_v1 = vsel %vm339_vm1, %v434_v28, 0.0  ;;  %v479_v31 = vsel %vm339_vm1, %v435_v29, 0.0 }
 0x1c2   :  { %477 = vadd.xlane.f32.xlu1 %v476_v1  ;;  %480 = vadd.xlane.f32.xlu0 %v479_v31 }
 0x1c3   :  { %v436_v32 = vmul.f32 %v8258_v8, %v8258_v8 }
 0x1c5   :  { %v482_v33 = vsel %vm339_vm1, %v436_v32, 0.0 }
 0x1c6   :  { %483 = vadd.xlane.f32.xlu1 %v482_v33 }
 0x22f   :  { %v439_v34 = vpop.xlane.xlu0 %438 }
 0x230   :  { %v485_v35 = vmul.f32 0.03125, %v439_v34 }
 0x232   :  { %v501_v36 = vadd.f32 1e-05, %v485_v35 }
 0x233   :  { %v442_v37 = vpop.xlane.xlu1 %441  ;;  %v445_v38 = vpop.xlane.xlu0 %444 }
 0x234   :  { %7438 = vrsqrt.f32 %v501_v36  ;;  %v486_v7 = vmul.f32 0.03125, %v442_v37  ;;  %v487_v41 = vmul.f32 0.03125, %v445_v38 }
 0x236   :  { %v502_v42 = vadd.f32 1e-05, %v486_v7  ;;  %v503_v43 = vadd.f32 1e-05, %v487_v41 }
 0x237   :  { %v448_v45 = vpop.xlane.xlu1 %447  ;;  %v451_v46 = vpop.xlane.xlu0 %450 }
 0x238   :  { %7440 = vrsqrt.f32 %v502_v42  ;;  %v488_v48 = vmul.f32 0.03125, %v448_v45  ;;  %v489_v50 = vmul.f32 0.03125, %v451_v46 }
 0x239   :  { %7442 = vrsqrt.f32 %v503_v43 }
 0x23a   :  { %v504_v47 = vadd.f32 1e-05, %v488_v48  ;;  %v505_v52 = vadd.f32 1e-05, %v489_v50 }
 0x23b   :  { %v454_v55 = vpop.xlane.xlu1 %453  ;;  %v457_v56 = vpop.xlane.xlu0 %456 }
 0x23c   :  { %7444 = vrsqrt.f32 %v504_v47  ;;  %v490_v57 = vmul.f32 0.03125, %v454_v55  ;;  %v491_v58 = vmul.f32 0.03125, %v457_v56 }
 0x23d   :  { %7446 = vrsqrt.f32 %v505_v52 }
 0x23e   :  { %v506_v61 = vadd.f32 1e-05, %v490_v57  ;;  %v507_v62 = vadd.f32 1e-05, %v491_v58 }
 0x23f   :  { %v460_v49 = vpop.xlane.xlu1 %459  ;;  %v463_v0 = vpop.xlane.xlu0 %462 }
 0x240   :  { %7448 = vrsqrt.f32 %v506_v61  ;;  %v492_v3 = vmul.f32 0.03125, %v460_v49  ;;  %v493_v4 = vmul.f32 0.03125, %v463_v0 }
 0x241   :  { %v7439_v5 = vpop.eup %7438  ;;  %7450 = vrsqrt.f32 %v507_v62 }
 0x242   :  { %v508_v9 = vadd.f32 1e-05, %v492_v3  ;;  %v509_v10 = vadd.f32 1e-05, %v493_v4  ;;  %v533_v60 = vmul.f32 %v7439_v5, %v8173_v18 }
 0x243   :  { %v466_v12 = vpop.xlane.xlu1 %465  ;;  %v469_v13 = vpop.xlane.xlu0 %468 }
 0x244   :  { %7452 = vrsqrt.f32 %v508_v9  ;;  %v494_v15 = vmul.f32 0.03125, %v466_v12  ;;  %v495_v16 = vmul.f32 0.03125, %v469_v13  ;;  %v555_v19 = vmul.f32 %v8266_v6, %v533_v60 }
 0x245   :  { %v7441_v20 = vpop.eup %7440  ;;  %7454 = vrsqrt.f32 %v509_v10 }
 0x246   :  { %v7443_v59 = vpop.eup %7442  ;;  %v510_v22 = vadd.f32 1e-05, %v494_v15  ;;  %v511_v25 = vadd.f32 1e-05, %v495_v16  ;;  %v8274_v26 = vadd.f32 %v8270_v14, %v555_v19  ;;  %v534_v27 = vmul.f32 %v7441_v20, %v8181_v24 }
 0x247   :  { %v472_v18 = vpop.xlane.xlu1 %471  ;;  %v475_v28 = vpop.xlane.xlu0 %474  ;;  %v535_v29 = vmul.f32 %v7443_v59, %v8170_v17 }
 0x248   :  { %7456 = vrsqrt.f32 %v510_v22  ;;  %v496_v1 = vmul.f32 0.03125, %v472_v18  ;;  %v497_v31 = vmul.f32 0.03125, %v475_v28  ;;  %v645_v32 = vsel %vm339_vm1, %v8274_v26, 0.0 }
 0x249   :  { %v7445_v33 = vpop.eup %7444  ;;  %7458 = vrsqrt.f32 %v511_v25  ;;  %646 = vadd.xlane.f32.xlu0 %v645_v32  ;;  %v556_v34 = vmul.f32 %v8266_v6, %v534_v27  ;;  %v557_v35 = vmul.f32 %v8266_v6, %v535_v29 }
 0x24a   :  { %v7447_v36 = vpop.eup %7446  ;;  %v512_v37 = vadd.f32 1e-05, %v496_v1  ;;  %v513_v24 = vadd.f32 1e-05, %v497_v31  ;;  %v536_v38 = vmul.f32 %v7445_v33, %v8178_v23 }
 0x24b   :  { %v478_v7 = vpop.xlane.xlu1 %477  ;;  %v481_v17 = vpop.xlane.xlu0 %480  ;;  %v8284_v41 = vadd.f32 %v8270_v14, %v556_v34  ;;  %v8287_v42 = vadd.f32 %v8270_v14, %v557_v35  ;;  %v537_v43 = vmul.f32 %v7447_v36, %v8189_v30 }
 0x24c   :  { %7460 = vrsqrt.f32 %v512_v37  ;;  %v498_v45 = vmul.f32 0.03125, %v478_v7  ;;  %v499_v46 = vmul.f32 0.03125, %v481_v17  ;;  %v558_v48 = vmul.f32 %v8266_v6, %v536_v38 }
 0x24d   :  { %v7449_v50 = vpop.eup %7448  ;;  %7462 = vrsqrt.f32 %v513_v24  ;;  %v648_v23 = vsel %vm339_vm1, %v8284_v41, 0.0  ;;  %v651_v47 = vsel %vm339_vm1, %v8287_v42, 0.0  ;;  %v559_v52 = vmul.f32 %v8266_v6, %v537_v43 }
 0x24e   :  { %v7451_v55 = vpop.eup %7450  ;;  %v514_v56 = vadd.f32 1e-05, %v498_v45  ;;  %v515_v57 = vadd.f32 1e-05, %v499_v46  ;;  %649 = vadd.xlane.f32.xlu1 %v648_v23  ;;  %652 = vadd.xlane.f32.xlu0 %v651_v47  ;;  %v8297_v30 = vadd.f32 %v8270_v14, %v558_v48  ;;  %v538_v58 = vmul.f32 %v7449_v50, %v8198_v39 }
 0x24f   :  { %v484_v61 = vpop.xlane.xlu1 %483  ;;  %v8301_v62 = vadd.f32 %v8270_v14, %v559_v52  ;;  %v539_v49 = vmul.f32 %v7451_v55, %v8201_v40 }
 0x250   :  { %7464 = vrsqrt.f32 %v514_v56  ;;  %v500_v0 = vmul.f32 0.03125, %v484_v61  ;;  %v654_v3 = vsel %vm339_vm1, %v8297_v30, 0.0  ;;  %v560_v4 = vmul.f32 %v8266_v6, %v538_v58 }
 0x251   :  { %v7453_v5 = vpop.eup %7452  ;;  %7466 = vrsqrt.f32 %v515_v57  ;;  %v657_v9 = vsel %vm339_vm1, %v8301_v62, 0.0  ;;  %v561_v39 = vmul.f32 %v8266_v6, %v539_v49 }
 0x252   :  { %v7455_v10 = vpop.eup %7454  ;;  %v516_v60 = vadd.f32 1e-05, %v500_v0  ;;  %655 = vadd.xlane.f32.xlu1 %v654_v3  ;;  %658 = vadd.xlane.f32.xlu0 %v657_v9  ;;  %v8311_v40 = vadd.f32 %v8270_v14, %v560_v4  ;;  %v540_v12 = vmul.f32 %v7453_v5, %v8210_v51 }
 0x253   :  { %v8315_v13 = vadd.f32 %v8270_v14, %v561_v39  ;;  %v541_v15 = vmul.f32 %v7455_v10, %v8213_v44 }
 0x254   :  { %7468 = vrsqrt.f32 %v516_v60  ;;  %v660_v16 = vsel %vm339_vm1, %v8311_v40, 0.0  ;;  %v562_v19 = vmul.f32 %v8266_v6, %v540_v12 }
 0x255   :  { %v7457_v20 = vpop.eup %7456  ;;  %v663_v59 = vsel %vm339_vm1, %v8315_v13, 0.0  ;;  %v563_v22 = vmul.f32 %v8266_v6, %v541_v15 }
 0x256   :  { %v7459_v25 = vpop.eup %7458  ;;  %661 = vadd.xlane.f32.xlu1 %v660_v16  ;;  %664 = vadd.xlane.f32.xlu0 %v663_v59  ;;  %v8325_v51 = vadd.f32 %v8270_v14, %v562_v19  ;;  %v542_v44 = vmul.f32 %v7457_v20, %v8222_v63 }
 0x257   :  { %v8329_v27 = vadd.f32 %v8270_v14, %v563_v22  ;;  %v543_v18 = vmul.f32 %v7459_v25, %v8225_v54 }
 0x258   :  { %v666_v28 = vsel %vm339_vm1, %v8325_v51, 0.0  ;;  %v564_v29 = vmul.f32 %v8266_v6, %v542_v44 }
 0x259   :  { %v7461_v1 = vpop.eup %7460  ;;  %v669_v31 = vsel %vm339_vm1, %v8329_v27, 0.0  ;;  %v565_v32 = vmul.f32 %v8266_v6, %v543_v18 }
 0x25a   :  { %v7463_v33 = vpop.eup %7462  ;;  %667 = vadd.xlane.f32.xlu1 %v666_v28  ;;  %670 = vadd.xlane.f32.xlu0 %v669_v31  ;;  %v8339_v63 = vadd.f32 %v8270_v14, %v564_v29  ;;  %v544_v34 = vmul.f32 %v7461_v1, %v8234_v11 }
 0x25b   :  { %v8343_v54 = vadd.f32 %v8270_v14, %v565_v32  ;;  %v545_v35 = vmul.f32 %v7463_v33, %v8237_v53 }
 0x25c   :  { %10122 = vst [vmem:[#allocation26_spill] sm:$0xff] %v8339_v63  ;;  %v672_v36 = vsel %vm339_vm1, %v8339_v63, 0.0  ;;  %v566_v37 = vmul.f32 %v8266_v6, %v544_v34 }
 0x25d   :  { %v7465_v24 = vpop.eup %7464  ;;  %v675_v38 = vsel %vm339_vm1, %v8343_v54, 0.0  ;;  %v567_v7 = vmul.f32 %v8266_v6, %v545_v35 }
 0x25e   :  { %v7467_v17 = vpop.eup %7466  ;;  %673 = vadd.xlane.f32.xlu1 %v672_v36  ;;  %676 = vadd.xlane.f32.xlu0 %v675_v38  ;;  %v8353_v11 = vadd.f32 %v8270_v14, %v566_v37  ;;  %v546_v43 = vmul.f32 %v7465_v24, %v8246_v21 }
 0x25f   :  { %v8357_v53 = vadd.f32 %v8270_v14, %v567_v7  ;;  %v547_v45 = vmul.f32 %v7467_v17, %v8249_v2 }
 0x260   :  { %10123 = vst [vmem:[#allocation27_spill] sm:$0xff] %v8353_v11  ;;  %v678_v46 = vsel %vm339_vm1, %v8353_v11, 0.0  ;;  %v568_v48 = vmul.f32 %v8266_v6, %v546_v43 }
 0x261   :  { %10124 = vst [vmem:[#allocation28_spill] sm:$0xff] %v8357_v53  ;;  %v7469_v50 = vpop.eup %7468  ;;  %v681_v23 = vsel %vm339_vm1, %v8357_v53, 0.0  ;;  %v569_v47 = vmul.f32 %v8266_v6, %v547_v45 }
 0x262   :  { %679 = vadd.xlane.f32.xlu1 %v678_v46  ;;  %682 = vadd.xlane.f32.xlu0 %v681_v23  ;;  %v8367_v21 = vadd.f32 %v8270_v14, %v568_v48  ;;  %v548_v52 = vmul.f32 %v7469_v50, %v8258_v8 }
 0x263   :  { %v8371_v2 = vadd.f32 %v8270_v14, %v569_v47 }
 0x264   :  { %10125 = vst [vmem:[#allocation29_spill] sm:$0xff] %v8367_v21  ;;  %v684_v55 = vsel %vm339_vm1, %v8367_v21, 0.0  ;;  %v570_v56 = vmul.f32 %v8266_v6, %v548_v52 }
 0x265   :  { %10126 = vst [vmem:[#allocation30_spill] sm:$0xff] %v8371_v2  ;;  %v687_v57 = vsel %vm339_vm1, %v8371_v2, 0.0 }
 0x266   :  { %685 = vadd.xlane.f32.xlu1 %v684_v55  ;;  %688 = vadd.xlane.f32.xlu0 %v687_v57  ;;  %v8379_v58 = vadd.f32 %v8270_v14, %v570_v56 }
 0x268   :  { %10127 = vst [vmem:[#allocation31_spill] sm:$0xff] %v8379_v58  ;;  %v690_v61 = vsel %vm339_vm1, %v8379_v58, 0.0 }
 0x26a   :  { %691 = vadd.xlane.f32.xlu1 %v690_v61 }
 0x2d2   :  { %v647_v8 = vpop.xlane.xlu0 %646 }
 0x2d3   :  { %v693_v49 = vmul.f32 0.03125, %v647_v8 }
 0x2d5   :  { %v8384_v0 = vsub.f32 %v8274_v26, %v693_v49 }
 0x2d7   :  { %v650_v3 = vpop.xlane.xlu1 %649  ;;  %v653_v4 = vpop.xlane.xlu0 %652  ;;  %v725_v6 = vmul.f32 %v8384_v0, %v8384_v0 }
 0x2d8   :  { %v694_v5 = vmul.f32 0.03125, %v650_v3  ;;  %v695_v9 = vmul.f32 0.03125, %v653_v4 }
 0x2d9   :  { %v741_v39 = vsel %vm339_vm1, %v725_v6, 0.0 }
 0x2da   :  { %v8390_v14 = vsub.f32 %v8284_v41, %v694_v5  ;;  %v8393_v10 = vsub.f32 %v8287_v42, %v695_v9  ;;  %742 = vadd.xlane.f32.xlu0 %v741_v39 }
 0x2db   :  { %v656_v60 = vpop.xlane.xlu1 %655  ;;  %v659_v12 = vpop.xlane.xlu0 %658 }
 0x2dc   :  { %v696_v15 = vmul.f32 0.03125, %v656_v60  ;;  %v697_v16 = vmul.f32 0.03125, %v659_v12  ;;  %v726_v19 = vmul.f32 %v8390_v14, %v8390_v14  ;;  %v727_v20 = vmul.f32 %v8393_v10, %v8393_v10 }
 0x2de   :  { %v8400_v59 = vsub.f32 %v8297_v30, %v696_v15  ;;  %v8403_v22 = vsub.f32 %v8301_v62, %v697_v16  ;;  %v744_v25 = vsel %vm339_vm1, %v726_v19, 0.0  ;;  %v747_v44 = vsel %vm339_vm1, %v727_v20, 0.0 }
 0x2df   :  { %745 = vadd.xlane.f32.xlu1 %v744_v25  ;;  %v662_v18 = vpop.xlane.xlu1 %661  ;;  %748 = vadd.xlane.f32.xlu0 %v747_v44  ;;  %v665_v28 = vpop.xlane.xlu0 %664 }
 0x2e0   :  { %v698_v29 = vmul.f32 0.03125, %v662_v18  ;;  %v699_v1 = vmul.f32 0.03125, %v665_v28  ;;  %v728_v31 = vmul.f32 %v8400_v59, %v8400_v59  ;;  %v729_v32 = vmul.f32 %v8403_v22, %v8403_v22 }
 0x2e2   :  { %v8412_v33 = vsub.f32 %v8311_v40, %v698_v29  ;;  %v8415_v34 = vsub.f32 %v8315_v13, %v699_v1  ;;  %v750_v35 = vsel %vm339_vm1, %v728_v31, 0.0  ;;  %v753_v36 = vsel %vm339_vm1, %v729_v32, 0.0 }
 0x2e3   :  { %751 = vadd.xlane.f32.xlu1 %v750_v35  ;;  %v668_v37 = vpop.xlane.xlu1 %667  ;;  %754 = vadd.xlane.f32.xlu0 %v753_v36  ;;  %v671_v24 = vpop.xlane.xlu0 %670 }
 0x2e4   :  { %v700_v38 = vmul.f32 0.03125, %v668_v37  ;;  %v701_v7 = vmul.f32 0.03125, %v671_v24  ;;  %v730_v17 = vmul.f32 %v8412_v33, %v8412_v33  ;;  %v731_v43 = vmul.f32 %v8415_v34, %v8415_v34 }
 0x2e6   :  { %v8424_v45 = vsub.f32 %v8325_v51, %v700_v38  ;;  %v8427_v46 = vsub.f32 %v8329_v27, %v701_v7  ;;  %v756_v48 = vsel %vm339_vm1, %v730_v17, 0.0  ;;  %v759_v50 = vsel %vm339_vm1, %v731_v43, 0.0 }
 0x2e7   :  { %757 = vadd.xlane.f32.xlu1 %v756_v48  ;;  %v674_v23 = vpop.xlane.xlu1 %673  ;;  %760 = vadd.xlane.f32.xlu0 %v759_v50  ;;  %v677_v47 = vpop.xlane.xlu0 %676 }
 0x2e8   :  { %v702_v52 = vmul.f32 0.03125, %v674_v23  ;;  %v703_v55 = vmul.f32 0.03125, %v677_v47  ;;  %v732_v56 = vmul.f32 %v8424_v45, %v8424_v45  ;;  %v733_v57 = vmul.f32 %v8427_v46, %v8427_v46  ;;  %v7308_v23 = vld [vmem:[%s7925_s8 + $0x8] sm:$0xff]   ;;  %v7309_v47 = vld [vmem:[%s7925_s8] sm:$0xff]   ;;  %s7871_s8 = smov 32  }
 0x2e9   :  { %6842 = vmatprep.subr.bf16.mxu1 %v7308_v23 }
 0x2ea   :  { %v8436_v61 = vsub.f32 %v8339_v63, %v702_v52  ;;  %v8439_v8 = vsub.f32 %v8343_v54, %v703_v55  ;;  %v762_v49 = vsel %vm339_vm1, %v732_v56, 0.0  ;;  %v765_v3 = vsel %vm339_vm1, %v733_v57, 0.0  ;;  %6843 = vmatpush3.bf16.msra.mxu1 %v7308_v23 }
 0x2eb   :  { %763 = vadd.xlane.f32.xlu1 %v762_v49  ;;  %v680_v4 = vpop.xlane.xlu1 %679  ;;  %766 = vadd.xlane.f32.xlu0 %v765_v3  ;;  %v683_v6 = vpop.xlane.xlu0 %682 }
 0x2ec   :  { %v704_v5 = vmul.f32 0.03125, %v680_v4  ;;  %v705_v9 = vmul.f32 0.03125, %v683_v6  ;;  %v734_v39 = vmul.f32 %v8436_v61, %v8436_v61  ;;  %v735_v60 = vmul.f32 %v8439_v8, %v8439_v8  ;;  %6844 = vmatprep.subr.bf16.mxu1 %v7309_v47 }
 0x2ee   :  { %v8448_v12 = vsub.f32 %v8353_v11, %v704_v5  ;;  %v8451_v15 = vsub.f32 %v8357_v53, %v705_v9  ;;  %v768_v16 = vsel %vm339_vm1, %v734_v39, 0.0  ;;  %v771_v19 = vsel %vm339_vm1, %v735_v60, 0.0  ;;  %6845 = vmatpush3.bf16.msra.mxu1 %v7309_v47 }
 0x2ef   :  { %769 = vadd.xlane.f32.xlu1 %v768_v16  ;;  %v686_v20 = vpop.xlane.xlu1 %685  ;;  %772 = vadd.xlane.f32.xlu0 %v771_v19  ;;  %v689_v25 = vpop.xlane.xlu0 %688 }
 0x2f0   :  { %v706_v44 = vmul.f32 0.03125, %v686_v20  ;;  %v707_v18 = vmul.f32 0.03125, %v689_v25  ;;  %v736_v28 = vmul.f32 %v8448_v12, %v8448_v12  ;;  %v737_v29 = vmul.f32 %v8451_v15, %v8451_v15 }
 0x2f2   :  { %v8460_v1 = vsub.f32 %v8367_v21, %v706_v44  ;;  %v8463_v31 = vsub.f32 %v8371_v2, %v707_v18  ;;  %v774_v32 = vsel %vm339_vm1, %v736_v28, 0.0  ;;  %v777_v35 = vsel %vm339_vm1, %v737_v29, 0.0 }
 0x2f3   :  { %775 = vadd.xlane.f32.xlu1 %v774_v32  ;;  %v692_v36 = vpop.xlane.xlu1 %691  ;;  %778 = vadd.xlane.f32.xlu0 %v777_v35 }
 0x2f4   :  { %v708_v37 = vmul.f32 0.03125, %v692_v36  ;;  %v738_v24 = vmul.f32 %v8460_v1, %v8460_v1  ;;  %v739_v38 = vmul.f32 %v8463_v31, %v8463_v31 }
 0x2f6   :  { %v8472_v7 = vsub.f32 %v8379_v58, %v708_v37  ;;  %v780_v17 = vsel %vm339_vm1, %v738_v24, 0.0  ;;  %v783_v43 = vsel %vm339_vm1, %v739_v38, 0.0 }
 0x2f7   :  { %781 = vadd.xlane.f32.xlu1 %v780_v17  ;;  %784 = vadd.xlane.f32.xlu0 %v783_v43 }
 0x2f8   :  { %v740_v48 = vmul.f32 %v8472_v7, %v8472_v7 }
 0x2fa   :  { %v786_v50 = vsel %vm339_vm1, %v740_v48, 0.0 }
 0x2fb   :  { %787 = vadd.xlane.f32.xlu1 %v786_v50  ;;  %v8483_v50 = vld [vmem:[%s7915_s29] ss:$0 sm:$0xff]  ;;  %s10141_s29 = sld [smem:[#allocation6_spill]] }
 0x363   :  { %v743_v52 = vpop.xlane.xlu0 %742 }
 0x364   :  { %v789_v55 = vmul.f32 0.03125, %v743_v52 }
 0x366   :  { %v805_v56 = vadd.f32 1e-05, %v789_v55 }
 0x368   :  { %7470 = vrsqrt.f32 %v805_v56  ;;  %v746_v57 = vpop.xlane.xlu1 %745  ;;  %v749_v49 = vpop.xlane.xlu0 %748 }
 0x369   :  { %v790_v3 = vmul.f32 0.03125, %v746_v57  ;;  %v791_v4 = vmul.f32 0.03125, %v749_v49 }
 0x36b   :  { %v806_v6 = vadd.f32 1e-05, %v790_v3  ;;  %v807_v5 = vadd.f32 1e-05, %v791_v4 }
 0x36c   :  { %v752_v9 = vpop.xlane.xlu1 %751  ;;  %v755_v39 = vpop.xlane.xlu0 %754 }
 0x36d   :  { %7472 = vrsqrt.f32 %v806_v6  ;;  %v792_v60 = vmul.f32 0.03125, %v752_v9  ;;  %v793_v16 = vmul.f32 0.03125, %v755_v39  ;;  %v8487_v6 = vld [vmem:[%s7920_s3] ss:$0 sm:$0xff]  ;;  %s10142_s3 = sld [smem:[#allocation8_spill]] }
 0x36e   :  { %7474 = vrsqrt.f32 %v807_v5 }
 0x36f   :  { %v808_v19 = vadd.f32 1e-05, %v792_v60  ;;  %v809_v20 = vadd.f32 1e-05, %v793_v16 }
 0x370   :  { %v758_v25 = vpop.xlane.xlu1 %757  ;;  %v761_v44 = vpop.xlane.xlu0 %760 }
 0x371   :  { %7476 = vrsqrt.f32 %v808_v19  ;;  %v794_v18 = vmul.f32 0.03125, %v758_v25  ;;  %v795_v28 = vmul.f32 0.03125, %v761_v44 }
 0x372   :  { %7478 = vrsqrt.f32 %v809_v20 }
 0x373   :  { %v810_v29 = vadd.f32 1e-05, %v794_v18  ;;  %v811_v32 = vadd.f32 1e-05, %v795_v28 }
 0x374   :  { %v764_v35 = vpop.xlane.xlu1 %763  ;;  %v767_v36 = vpop.xlane.xlu0 %766 }
 0x375   :  { %v7471_v37 = vpop.eup %7470  ;;  %7480 = vrsqrt.f32 %v810_v29  ;;  %v796_v24 = vmul.f32 0.03125, %v764_v35  ;;  %v797_v38 = vmul.f32 0.03125, %v767_v36 }
 0x376   :  { %7482 = vrsqrt.f32 %v811_v32  ;;  %v837_v17 = vmul.f32 %v7471_v37, %v8384_v0 }
 0x377   :  { %v812_v43 = vadd.f32 1e-05, %v796_v24  ;;  %v813_v48 = vadd.f32 1e-05, %v797_v38 }
 0x378   :  { %v770_v23 = vpop.xlane.xlu1 %769  ;;  %v773_v47 = vpop.xlane.xlu0 %772  ;;  %v859_v57 = vmul.f32 %v8483_v50, %v837_v17 }
 0x379   :  { %7484 = vrsqrt.f32 %v812_v43  ;;  %v798_v52 = vmul.f32 0.03125, %v770_v23  ;;  %v799_v55 = vmul.f32 0.03125, %v773_v47 }
 0x37a   :  { %v7473_v56 = vpop.eup %7472  ;;  %7486 = vrsqrt.f32 %v813_v48  ;;  %v881_v25 = vadd.f32 %v8487_v6, %v859_v57 }
 0x37b   :  { %v7475_v49 = vpop.eup %7474  ;;  %v814_v3 = vadd.f32 1e-05, %v798_v52  ;;  %v815_v4 = vadd.f32 1e-05, %v799_v55  ;;  %v838_v0 = vmul.f32 %v7473_v56, %v8390_v14 }
 0x37c   :  { %v776_v5 = vpop.xlane.xlu1 %775  ;;  %v779_v9 = vpop.xlane.xlu0 %778  ;;  %v839_v39 = vmul.f32 %v7475_v49, %v8393_v10 }
 0x37d   :  { %7488 = vrsqrt.f32 %v814_v3  ;;  %v800_v60 = vmul.f32 0.03125, %v776_v5  ;;  %v801_v16 = vmul.f32 0.03125, %v779_v9  ;;  %v860_v19 = vmul.f32 %v8483_v50, %v838_v0 }
 0x37e   :  { %v7477_v20 = vpop.eup %7476  ;;  %7490 = vrsqrt.f32 %v815_v4  ;;  %v861_v10 = vmul.f32 %v8483_v50, %v839_v39 }
 0x37f   :  { %v7479_v44 = vpop.eup %7478  ;;  %v816_v18 = vadd.f32 1e-05, %v800_v60  ;;  %v817_v28 = vadd.f32 1e-05, %v801_v16  ;;  %v882_v29 = vadd.f32 %v8487_v6, %v860_v19  ;;  %v840_v14 = vmul.f32 %v7477_v20, %v8400_v59 }
 0x380   :  { %v782_v32 = vpop.xlane.xlu1 %781  ;;  %v785_v35 = vpop.xlane.xlu0 %784  ;;  %v841_v36 = vmul.f32 %v7479_v44, %v8403_v22  ;;  %v883_v22 = vadd.f32 %v8487_v6, %v861_v10 }
 0x381   :  { %7492 = vrsqrt.f32 %v816_v18  ;;  %v802_v37 = vmul.f32 0.03125, %v782_v32  ;;  %v803_v24 = vmul.f32 0.03125, %v785_v35  ;;  %v897_v38 = vpack.c.bf16 %v882_v29, %v881_v25 }
 0x382   :  { %v7481_v17 = vpop.eup %7480  ;;  %7494 = vrsqrt.f32 %v817_v28  ;;  %v862_v43 = vmul.f32 %v8483_v50, %v840_v14  ;;  %v863_v48 = vmul.f32 %v8483_v50, %v841_v36 }
 0x383   :  { %v7483_v23 = vpop.eup %7482  ;;  %v818_v47 = vadd.f32 1e-05, %v802_v37  ;;  %v819_v52 = vadd.f32 1e-05, %v803_v24  ;;  %6846 = vmatprep.mubr.msk.bf16.mxu1 %vm339_vm1, %v897_v38  ;;  %v842_v59 = vmul.f32 %v7481_v17, %v8412_v33 }
 0x384   :  { %v788_v55 = vpop.xlane.xlu1 %787  ;;  %v884_v56 = vadd.f32 %v8487_v6, %v862_v43  ;;  %v843_v57 = vmul.f32 %v7483_v23, %v8415_v34  ;;  %v885_v5 = vadd.f32 %v8487_v6, %v863_v48 }
 0x385   :  { %7496 = vrsqrt.f32 %v818_v47  ;;  %v804_v49 = vmul.f32 0.03125, %v788_v55  ;;  %v864_v3 = vmul.f32 %v8483_v50, %v842_v59 }
 0x386   :  { %v7485_v4 = vpop.eup %7484  ;;  %7498 = vrsqrt.f32 %v819_v52  ;;  %v898_v0 = vpack.c.bf16 %v884_v56, %v883_v22  ;;  %v865_v16 = vmul.f32 %v8483_v50, %v843_v57 }
 0x387   :  { %v7487_v9 = vpop.eup %7486  ;;  %v820_v39 = vadd.f32 1e-05, %v804_v49  ;;  %v886_v33 = vadd.f32 %v8487_v6, %v864_v3  ;;  %v844_v60 = vmul.f32 %v7485_v4, %v8424_v45 }
 0x388   :  { %6847 = vmatmul.mubr.msk.bf16.vlgmr.msra.gmra.mxu1 %vm339_vm1, %v898_v0  ;;  %v845_v34 = vmul.f32 %v7487_v9, %v8427_v46  ;;  %v887_v18 = vadd.f32 %v8487_v6, %v865_v16 }
 0x389   :  { %7500 = vrsqrt.f32 %v820_v39  ;;  %v899_v19 = vpack.c.bf16 %v886_v33, %v885_v5  ;;  %v866_v20 = vmul.f32 %v8483_v50, %v844_v60 }
 0x38a   :  { %v7489_v25 = vpop.eup %7488  ;;  %v867_v29 = vmul.f32 %v8483_v50, %v845_v34 }
 0x38b   :  { %v7491_v44 = vpop.eup %7490  ;;  %6850 = vmatprep.mubr.msk.bf16.mxu1 %vm339_vm1, %v899_v19  ;;  %v888_v28 = vadd.f32 %v8487_v6, %v866_v20  ;;  %v846_v45 = vmul.f32 %v7489_v25, %v8436_v61 }
 0x38c   :  { %v847_v14 = vmul.f32 %v7491_v44, %v8439_v8  ;;  %v889_v36 = vadd.f32 %v8487_v6, %v867_v29 }
 0x38d   :  { %v900_v32 = vpack.c.bf16 %v888_v28, %v887_v18  ;;  %v868_v46 = vmul.f32 %v8483_v50, %v846_v45 }
 0x38e   :  { %v7493_v35 = vpop.eup %7492  ;;  %v869_v38 = vmul.f32 %v8483_v50, %v847_v14 }
 0x38f   :  { %v7495_v10 = vpop.eup %7494  ;;  %v890_v37 = vadd.f32 %v8487_v6, %v868_v46  ;;  %v848_v24 = vmul.f32 %v7493_v35, %v8448_v12 }
 0x390   :  { %6851 = vmatmul.mubr.msk.bf16.gmra.mxu1 %vm339_vm1, %v900_v32  ;;  %v849_v61 = vmul.f32 %v7495_v10, %v8451_v15  ;;  %v891_v23 = vadd.f32 %v8487_v6, %v869_v38 }
 0x391   :  { %v901_v17 = vpack.c.bf16 %v890_v37, %v889_v36  ;;  %v870_v8 = vmul.f32 %v8483_v50, %v848_v24 }
 0x392   :  { %v7497_v43 = vpop.eup %7496  ;;  %v871_v12 = vmul.f32 %v8483_v50, %v849_v61 }
 0x393   :  { %v7499_v48 = vpop.eup %7498  ;;  %6854 = vmatprep.mubr.msk.bf16.mxu1 %vm339_vm1, %v901_v17  ;;  %v892_v47 = vadd.f32 %v8487_v6, %v870_v8  ;;  %v850_v52 = vmul.f32 %v7497_v43, %v8460_v1 }
 0x394   :  { %v851_v59 = vmul.f32 %v7499_v48, %v8463_v31  ;;  %v893_v56 = vadd.f32 %v8487_v6, %v871_v12 }
 0x395   :  { %v902_v55 = vpack.c.bf16 %v892_v47, %v891_v23  ;;  %v872_v15 = vmul.f32 %v8483_v50, %v850_v52 }
 0x396   :  { %v7501_v22 = vpop.eup %7500  ;;  %v873_v3 = vmul.f32 %v8483_v50, %v851_v59 }
 0x397   :  { %v894_v57 = vadd.f32 %v8487_v6, %v872_v15  ;;  %v852_v49 = vmul.f32 %v7501_v22, %v8472_v7  ;;  %v6290_v7 = vld [vmem:[%s7930_s14] ss:$0 sm:$0xff]  ;;  %s10143_s14 = sld [smem:[#allocation11_spill]] }
 0x398   :  { %6855 = vmatmul.mubr.msk.bf16.gmra.mxu1 %vm339_vm1, %v902_v55  ;;  %v895_v31 = vadd.f32 %v8487_v6, %v873_v3 }
 0x399   :  { %v903_v1 = vpack.c.bf16 %v894_v57, %v893_v56  ;;  %v874_v4 = vmul.f32 %v8483_v50, %v852_v49 }
 0x39b   :  { %6858 = vmatprep.mubr.msk.bf16.mxu1 %vm339_vm1, %v903_v1  ;;  %v896_v0 = vadd.f32 %v8487_v6, %v874_v4 }
 0x39d   :  { %v904_v5 = vpack.c.bf16 %v896_v0, %v895_v31 }
 0x3a0   :  { %6859 = vmatmul.mubr.msk.bf16.gmra.mxu1 %vm339_vm1, %v904_v5 }
 0x448   :  { %v6848_v9 = vpop.f32.mrf.mxu1 }
 0x449   :  { %v990_v10 = vadd.f32 %v6848_v9, %v6290_v7 }
 0x44a   :  { %v981_v39 = vpop.f32.mrf.mxu1 }
 0x44b   :  { %v982_v16 = vadd.f32 %v6290_v7, %v981_v39 }
 0x44c   :  { %v6849_v33 = vpop.f32.mrf.mxu1 }
 0x44d   :  { %v993_v32 = vadd.f32 %v6849_v33, %v6290_v7 }
 0x44e   :  { %v984_v60 = vpop.f32.mrf.mxu1 }
 0x44f   :  { %v985_v34 = vadd.f32 %v6290_v7, %v984_v60  ;;  %v8556_v37 = vpack.c.bf16 %v993_v32, %v990_v10 }
 0x450   :  { %v6852_v19 = vpop.f32.mrf.mxu1 }
 0x451   :  { %v8544_v20 = vpack.c.bf16 %v985_v34, %v982_v16  ;;  %v1006_v6 = vadd.f32 %v6852_v19, %v6290_v7 }
 0x452   :  { %v997_v50 = vpop.f32.mrf.mxu1 }
 0x453   :  { %6870 = vmatprep.mubr.msk.bf16.mxu1 %vm1064_vm2, %v8544_v20  ;;  %v998_v28 = vadd.f32 %v6290_v7, %v997_v50 }
 0x454   :  { %v6853_v25 = vpop.f32.mrf.mxu1 }
 0x455   :  { %v1009_v44 = vadd.f32 %v6853_v25, %v6290_v7 }
 0x456   :  { %v1000_v18 = vpop.f32.mrf.mxu1 }
 0x457   :  { %v8548_v45 = vpack.c.bf16 %v1009_v44, %v1006_v6  ;;  %v1001_v29 = vadd.f32 %v6290_v7, %v1000_v18 }
 0x458   :  { %v6856_v14 = vpop.f32.mrf.mxu1 }
 0x459   :  { %v8550_v46 = vpack.c.bf16 %v1001_v29, %v998_v28  ;;  %1062 = vrot.lane.b32.xlu0 %v8548_v45, %s7866_s0  ;;  %v1022_v22 = vadd.f32 %v6856_v14, %v6290_v7 }
 0x45a   :  { %v1013_v35 = vpop.f32.mrf.mxu1 }
 0x45b   :  { %1060 = vrot.lane.b32.xlu1 %v8550_v46, %s7866_s0  ;;  %v1014_v38 = vadd.f32 %v6290_v7, %v1013_v35 }
 0x45c   :  { %v6857_v36 = vpop.f32.mrf.mxu1 }
 0x45d   :  { %v1025_v12 = vadd.f32 %v6857_v36, %v6290_v7 }
 0x45e   :  { %v1016_v24 = vpop.f32.mrf.mxu1 }
 0x45f   :  { %v1017_v61 = vadd.f32 %v6290_v7, %v1016_v24  ;;  %1058 = vrot.lane.b32.xlu1 %v8556_v37, %s7866_s0  ;;  %v8572_v57 = vpack.c.bf16 %v1025_v12, %v1022_v22  ;;  %v594_v22 = vld [vmem:[%s7910_s25 + $0x8] sm:$0xff] }
 0x460   :  { %v6860_v17 = vpop.f32.mrf.mxu1 }
 0x461   :  { %v8560_v8 = vpack.c.bf16 %v1017_v61, %v1014_v38  ;;  %v1038_v23 = vadd.f32 %v6860_v17, %v6290_v7  ;;  %v595_v17 = vld [vmem:[%s7910_s25 + $0x10] sm:$0xff] }
 0x462   :  { %v1029_v43 = vpop.f32.mrf.mxu1 }
 0x463   :  { %1056 = vrot.lane.b32.xlu1 %v8544_v20, %s7866_s0  ;;  %6886 = vmatprep.mubr.msk.bf16.mxu0 %vm1064_vm2, %v8560_v8  ;;  %v1030_v59 = vadd.f32 %v6290_v7, %v1029_v43 }
 0x464   :  { %v6861_v48 = vpop.f32.mrf.mxu1 }
 0x465   :  { %v1041_v47 = vadd.f32 %v6861_v48, %v6290_v7  ;;  %v593_v48 = vld [vmem:[%s7910_s25] sm:$0xff] }
 0x466   :  { %v1032_v52 = vpop.f32.mrf.mxu1 }
 0x467   :  { %v8566_v55 = vpack.c.bf16 %v1041_v47, %v1038_v23  ;;  %v1033_v15 = vadd.f32 %v6290_v7, %v1032_v52 }
 0x469   :  { %v8568_v56 = vpack.c.bf16 %v1033_v15, %v1030_v59  ;;  %1164 = vrot.lane.b32.xlu0 %v8566_v55, %s7866_s0  ;;  %v596_v59 = vld [vmem:[%s7910_s25 + $0x18] sm:$0xff] }
 0x46b   :  { %1162 = vrot.lane.b32.xlu1 %v8568_v56, %s7866_s0 }
 0x46d   :  { %1160 = vrot.lane.b32.xlu0 %v8572_v57, %s7866_s0 }
 0x46f   :  { %1158 = vrot.lane.b32.xlu1 %v8560_v8, %s7866_s0 }
 0x471   :  { %1446 = vrot.lane.b32.xlu0 %v8548_v45, %s7867_s5 }
 0x473   :  { %1444 = vrot.lane.b32.xlu1 %v8550_v46, %s7867_s5 }
 0x475   :  { %1640 = vrot.lane.b32.xlu0 %v8548_v45, %s7868_s9 }
 0x477   :  { %1442 = vrot.lane.b32.xlu1 %v8556_v37, %s7867_s5 }
 0x479   :  { %1531 = vrot.lane.b32.xlu0 %v8572_v57, %s7867_s5 }
 0x47b   :  { %1440 = vrot.lane.b32.xlu1 %v8544_v20, %s7867_s5 }
 0x47d   :  { %1529 = vrot.lane.b32.xlu0 %v8560_v8, %s7867_s5 }
 0x47f   :  { %1535 = vrot.lane.b32.xlu1 %v8566_v55, %s7867_s5 }
 0x483   :  { %1638 = vrot.lane.b32.xlu1 %v8550_v46, %s7868_s9 }
 0x487   :  { %1636 = vrot.lane.b32.xlu1 %v8556_v37, %s7868_s9 }
 0x48b   :  { %1634 = vrot.lane.b32.xlu1 %v8544_v20, %s7868_s9 }
 0x48f   :  { %1745 = vrot.lane.b32.xlu1 %v8566_v55, %s7868_s9 }
 0x493   :  { %1626 = vrot.lane.b32.xlu1 %v8544_v20, %s7869_s13 }
 0x497   :  { %1533 = vrot.lane.b32.xlu1 %v8568_v56, %s7867_s5 }
 0x4cb   :  { %v1063_v49 = vpop.permute.xlu0 %1062 }
 0x4cc   :  { %7220 = vmatprep.subr.msk.bf16.mxu1 %vm1064_vm2, %v1063_v49  ;;  %v1087_v3 = vsel %vm1064_vm2, %v1063_v49, 0 }
 0x4cd   :  { %v1061_v1 = vpop.permute.xlu1 %1060  ;;  %6863 = vmatpush3.bf16.xpose.msra.mxu1 %v1087_v3 }
 0x4ce   :  { %7221 = vmatprep.subr.msk.bf16.mxu1 %vm1064_vm2, %v1061_v1  ;;  %v1084_v31 = vsel %vm1064_vm2, %v1061_v1, 0 }
 0x4d1   :  { %v1059_v4 = vpop.permute.xlu1 %1058 }
 0x4d2   :  { %v1081_v9 = vsel %vm1064_vm2, %v1059_v4, 0 }
 0x4d5   :  { %6865 = vmatpush3.bf16.xpose.msra.mxu1 %v1084_v31  ;;  %v1057_v0 = vpop.permute.xlu1 %1056  ;;  %v599_v31 = vld [vmem:[%s7910_s25 + $0x30] sm:$0xff] }
 0x4d6   :  { %7222 = vmatprep.subr.msk.bf16.mxu1 %vm1064_vm2, %v1059_v4  ;;  %v1078_v16 = vsel %vm1064_vm2, %v1057_v0, 0 }
 0x4db   :  { %v1165_v5 = vpop.permute.xlu0 %1164 }
 0x4dc   :  { %7224 = vmatprep.subr.msk.bf16.mxu0 %vm1064_vm2, %v1165_v5  ;;  %v1188_v39 = vsel %vm1064_vm2, %v1165_v5, 0 }
 0x4dd   :  { %v1163_v33 = vpop.permute.xlu1 %1162  ;;  %6867 = vmatpush3.bf16.xpose.msra.mxu1 %v1081_v9  ;;  %6879 = vmatpush3.bf16.xpose.msra.mxu0 %v1188_v39  ;;  %v600_v39 = vld [vmem:[%s7910_s25 + $0x38] sm:$0xff] }
 0x4de   :  { %7223 = vmatprep.subr.msk.bf16.mxu1 %vm1064_vm2, %v1057_v0  ;;  %7225 = vmatprep.subr.msk.bf16.mxu0 %vm1064_vm2, %v1163_v33  ;;  %v1185_v34 = vsel %vm1064_vm2, %v1163_v33, 0 }
 0x4df   :  { %v1161_v7 = vpop.permute.xlu0 %1160 }
 0x4e0   :  { %v1182_v6 = vsel %vm1064_vm2, %v1161_v7, 0 }
 0x4e1   :  { %v1159_v60 = vpop.permute.xlu1 %1158 }
 0x4e2   :  { %v1179_v28 = vsel %vm1064_vm2, %v1159_v60, 0 }
 0x4e3   :  { %v1447_v19 = vpop.permute.xlu0 %1446 }
 0x4e5   :  { %v1445_v50 = vpop.permute.xlu1 %1444  ;;  %6869 = vmatpush3.bf16.xpose.msra.mxu1 %v1078_v16  ;;  %6881 = vmatpush3.bf16.xpose.msra.mxu0 %v1185_v34  ;;  %v598_v34 = vld [vmem:[%s7910_s25 + $0x28] sm:$0xff] }
 0x4e6   :  { %7226 = vmatprep.subr.msk.bf16.mxu0 %vm1064_vm2, %v1161_v7  ;;  %6894 = vmatprep.subr.bf16.mxu1 %v1447_v19 }
 0x4e7   :  { %v8634_v32 = vpop.permute.xlu0 %1640 }
 0x4e9   :  { %v1443_v25 = vpop.permute.xlu1 %1442 }
 0x4eb   :  { %v1532_v24 = vpop.permute.xlu0 %1531 }
 0x4ec   :  { %6871 = vmatmul.mubr.msk.bf16.vlgmr.msra.gmra.mxu1 %vm1064_vm2, %v8556_v37 }
 0x4ed   :  { %v1441_v44 = vpop.permute.xlu1 %1440  ;;  %6874 = vmatprep.mubr.msk.bf16.mxu1 %vm1064_vm2, %v8550_v46  ;;  %6883 = vmatpush3.bf16.xpose.msra.mxu0 %v1182_v6 }
 0x4ee   :  { %6895 = vmatpush3.bf16.msra.mxu1 %v1447_v19  ;;  %7227 = vmatprep.subr.msk.bf16.mxu0 %vm1064_vm2, %v1159_v60  ;;  %v597_v60 = vld [vmem:[%s7910_s25 + $0x20] sm:$0xff] }
 0x4ef   :  { %6896 = vmatprep.subr.bf16.mxu1 %v1445_v50  ;;  %v1530_v61 = vpop.permute.xlu0 %1529 }
 0x4f1   :  { %v1536_v18 = vpop.permute.xlu1 %1535 }
 0x4f2   :  { %6897 = vmatpush3.bf16.msra.mxu1 %v1445_v50 }
 0x4f3   :  { %6898 = vmatprep.subr.bf16.mxu1 %v1443_v25 }
 0x4f4   :  { %6875 = vmatmul.mubr.msk.bf16.gmra.mxu1 %vm1064_vm2, %v8548_v45 }
 0x4f5   :  { %v8630_v29 = vpop.permute.xlu1 %1638  ;;  %6885 = vmatpush3.bf16.xpose.msra.mxu0 %v1179_v28 }
 0x4f6   :  { %6899 = vmatpush3.bf16.msra.mxu1 %v1443_v25  ;;  %6910 = vmatprep.subr.bf16.mxu0 %v1536_v18 }
 0x4f7   :  { %6900 = vmatprep.subr.bf16.mxu1 %v1441_v44 }
 0x4f9   :  { %v8632_v14 = vpop.permute.xlu1 %1636 }
 0x4fa   :  { %6901 = vmatpush3.bf16.msra.mxu1 %v1441_v44 }
 0x4fb   :  { %7228 = vmatprep.subr.msk.bf16.mxu1 %vm1064_vm2, %v8634_v32 }
 0x4fc   :  { %6887 = vmatmul.mubr.msk.bf16.vlgmr.msra.gmra.mxu0 %vm1064_vm2, %v8572_v57 }
 0x4fd   :  { %v8640_v35 = vpop.permute.xlu1 %1634  ;;  %6890 = vmatprep.mubr.msk.bf16.mxu0 %vm1064_vm2, %v8568_v56  ;;  %6911 = vmatpush3.bf16.msra.mxu0 %v1536_v18 }
 0x501   :  { %v8644_v10 = vpop.permute.xlu1 %1745 }
 0x504   :  { %6891 = vmatmul.mubr.msk.bf16.gmra.mxu0 %vm1064_vm2, %v8566_v55 }
 0x505   :  { %v8648_v36 = vpop.permute.xlu1 %1626 }
 0x509   :  { %v1534_v38 = vpop.permute.xlu1 %1533 }
 0x50a   :  { %6912 = vmatprep.subr.bf16.mxu0 %v1534_v38 }
 0x50b   :  { %6913 = vmatpush3.bf16.msra.mxu0 %v1534_v38 }
 0x50c   :  { %6914 = vmatprep.subr.bf16.mxu0 %v1532_v24 }
 0x50f   :  { %6915 = vmatpush3.bf16.msra.mxu0 %v1532_v24 }
 0x510   :  { %6916 = vmatprep.subr.bf16.mxu0 %v1530_v61 }
 0x513   :  { %6917 = vmatpush3.bf16.msra.mxu0 %v1530_v61 }
 0x514   :  { %7232 = vmatprep.subr.msk.bf16.mxu0 %vm1064_vm2, %v8644_v10 }
 0x5ac   :  { %v6872_v43 = vpop.f32.mrf.mxu1 }
 0x5ad   :  { %v8654_v23 = vadd.f32 %v6872_v43, %v595_v17 }
 0x5ae   :  { %v1123_v47 = vpop.f32.mrf.mxu1 }
 0x5af   :  { %v8656_v52 = vadd.f32 %v1123_v47, %v593_v48  ;;  %v1262_v12 = vsel %vm1255_vm3, %v8654_v23, -inf }
 0x5b0   :  { %1263 = vmax.xlane.f32.xlu0 %v1262_v12  ;;  %v6873_v15 = vpop.f32.mrf.mxu1 }
 0x5b1   :  { %v8662_v3 = vadd.f32 %v6873_v15, %v596_v59  ;;  %v1256_v4 = vsel %vm1255_vm3, %v8656_v52, -inf }
 0x5b2   :  { %v1126_v49 = vpop.f32.mrf.mxu1 }
 0x5b3   :  { %v8664_v1 = vadd.f32 %v1126_v49, %v594_v22  ;;  %v1265_v7 = vsel %vm1255_vm3, %v8662_v3, -inf }
 0x5b4   :  { %v6876_v0 = vpop.f32.mrf.mxu1  ;;  %1257 = vmax.xlane.f32.xlu0 %v1256_v4 }
 0x5b5   :  { %v1259_v5 = vsel %vm1255_vm3, %v8664_v1, -inf  ;;  %v8672_v33 = vadd.f32 %v6876_v0, %v599_v31 }
 0x5b6   :  { %v1139_v9 = vpop.f32.mrf.mxu1  ;;  %1260 = vmax.xlane.f32.xlu1 %v1259_v5 }
 0x5b7   :  { %v8680_v25 = vadd.f32 %v1139_v9, %v597_v60  ;;  %v1274_v18 = vsel %vm1255_vm3, %v8672_v33, -inf }
 0x5b8   :  { %v6877_v16 = vpop.f32.mrf.mxu1  ;;  %1266 = vmax.xlane.f32.xlu0 %v1265_v7 }
 0x5b9   :  { %v8678_v19 = vadd.f32 %v6877_v16, %v600_v39  ;;  %v1268_v43 = vsel %vm1255_vm3, %v8680_v25, -inf }
 0x5ba   :  { %v1142_v50 = vpop.f32.mrf.mxu1 }
 0x5bb   :  { %v8682_v6 = vadd.f32 %v1142_v50, %v598_v34  ;;  %v1277_v44 = vsel %vm1255_vm3, %v8678_v19, -inf }
 0x5bc   :  { %1278 = vmax.xlane.f32.xlu1 %v1277_v44  ;;  %1275 = vmax.xlane.f32.xlu0 %v1274_v18  ;;  %v6888_v28 = vpop.f32.mrf.mxu0 }
 0x5bd   :  { %v8688_v38 = vadd.f32 %v6888_v28, %v595_v17  ;;  %v1271_v61 = vsel %vm1255_vm3, %v8682_v6, -inf }
 0x5be   :  { %v1224_v24 = vpop.f32.mrf.mxu0 }
 0x5bf   :  { %v8696_v49 = vadd.f32 %v1224_v24, %v593_v48  ;;  %v1286_v17 = vsel %vm1255_vm3, %v8688_v38, -inf }
 0x5c0   :  { %1272 = vmax.xlane.f32.xlu1 %v1271_v61  ;;  %1269 = vmax.xlane.f32.xlu0 %v1268_v43  ;;  %v6889_v47 = vpop.f32.mrf.mxu0 }
 0x5c1   :  { %v8694_v12 = vadd.f32 %v6889_v47, %v596_v59  ;;  %v1280_v59 = vsel %vm1255_vm3, %v8696_v49, -inf }
 0x5c2   :  { %v1227_v15 = vpop.f32.mrf.mxu0 }
 0x5c3   :  { %v8698_v4 = vadd.f32 %v1227_v15, %v594_v22  ;;  %v1289_v0 = vsel %vm1255_vm3, %v8694_v12, -inf }
 0x5c4   :  { %1287 = vmax.xlane.f32.xlu0 %v1286_v17  ;;  %1290 = vmax.xlane.f32.xlu1 %v1289_v0  ;;  %v6892_v5 = vpop.f32.mrf.mxu0 }
 0x5c5   :  { %v1283_v7 = vsel %vm1255_vm3, %v8698_v4, -inf  ;;  %v8720_v28 = vadd.f32 %v6892_v5, %v599_v31 }
 0x5c6   :  { %v1240_v9 = vpop.f32.mrf.mxu0 }
 0x5c8   :  { %v6893_v48 = vpop.f32.mrf.mxu0  ;;  %1284 = vmax.xlane.f32.xlu1 %v1283_v7  ;;  %1281 = vmax.xlane.f32.xlu0 %v1280_v59 }
 0x5c9   :  { %v8708_v22 = vadd.f32 %v6893_v48, %v600_v39  ;;  %v8722_v39 = vadd.f32 %v1240_v9, %v597_v60 }
 0x5ca   :  { %v1243_v16 = vpop.f32.mrf.mxu0 }
 0x5cb   :  { %v8710_v50 = vadd.f32 %v1243_v16, %v598_v34  ;;  %v1301_v44 = vsel %vm1255_vm3, %v8708_v22, -inf  ;;  %v1298_v34 = vsel %vm1255_vm3, %v8720_v28, -inf  ;;  %v1292_v24 = vsel %vm1255_vm3, %v8722_v39, -inf }
 0x5cc   :  { %1302 = vmax.xlane.f32.xlu1 %v1301_v44 }
 0x5cd   :  { %v1295_v18 = vsel %vm1255_vm3, %v8710_v50, -inf }
 0x5d0   :  { %1296 = vmax.xlane.f32.xlu1 %v1295_v18 }
 0x5de   :  { %1628 = vrot.lane.b32.xlu0 %v8556_v37, %s7869_s13 }
 0x5e1   :  { %1743 = vrot.lane.b32.xlu1 %v8568_v56, %s7868_s9 }
 0x5fd   :  { %1299 = vmax.xlane.f32.xlu0 %v1298_v34 }
 0x601   :  { %1293 = vmax.xlane.f32.xlu0 %v1292_v24 }
 0x639   :  { %v1264_v61 = vpop.xlane.xlu0 %1263 }
 0x63a   :  { %v1306_v43 = vsub.f32 %v8654_v23, %v1264_v61 }
 0x63c   :  { %v1324_v47 = vmul.f32 1.442695, %v1306_v43 }
 0x63d   :  { %v1258_v15 = vpop.xlane.xlu0 %1257 }
 0x63e   :  { %7502 = vpow2.f32 %v1324_v47  ;;  %v1304_v17 = vsub.f32 %v8656_v52, %v1258_v15 }
 0x63f   :  { %v1261_v31 = vpop.xlane.xlu1 %1260 }
 0x640   :  { %v1320_v0 = vmul.f32 1.442695, %v1304_v17  ;;  %v1305_v60 = vsub.f32 %v8664_v1, %v1261_v31 }
 0x641   :  { %v1267_v5 = vpop.xlane.xlu0 %1266 }
 0x642   :  { %7504 = vpow2.f32 %v1320_v0  ;;  %v1307_v9 = vsub.f32 %v8662_v3, %v1267_v5  ;;  %v1322_v7 = vmul.f32 1.442695, %v1305_v60 }
 0x644   :  { %v1326_v59 = vmul.f32 1.442695, %v1307_v9 }
 0x645   :  { %v1279_v48 = vpop.xlane.xlu1 %1278  ;;  %v1276_v16 = vpop.xlane.xlu0 %1275 }
 0x646   :  { %7506 = vpow2.f32 %v1326_v59  ;;  %v1311_v23 = vsub.f32 %v8678_v19, %v1279_v48  ;;  %v1310_v44 = vsub.f32 %v8672_v33, %v1276_v16 }
 0x647   :  { %7508 = vpow2.f32 %v1322_v7 }
 0x648   :  { %v1332_v18 = vmul.f32 1.442695, %v1310_v44  ;;  %v1334_v52 = vmul.f32 1.442695, %v1311_v23 }
 0x649   :  { %v1273_v34 = vpop.xlane.xlu1 %1272  ;;  %v1270_v24 = vpop.xlane.xlu0 %1269 }
 0x64a   :  { %v1309_v1 = vsub.f32 %v8682_v6, %v1273_v34  ;;  %v1308_v61 = vsub.f32 %v8680_v25, %v1270_v24  ;;  %7510 = vpow2.f32 %v1332_v18 }
 0x64b   :  { %v8736_v43 = vpop.eup %7502  ;;  %7512 = vpow2.f32 %v1334_v52 }
 0x64c   :  { %v1328_v3 = vmul.f32 1.442695, %v1308_v61  ;;  %v1358_v47 = vsel %vm1255_vm3, %v8736_v43, 0.0  ;;  %v1330_v19 = vmul.f32 1.442695, %v1309_v1 }
 0x64d   :  { %v1291_v15 = vpop.xlane.xlu1 %1290  ;;  %1359 = vadd.xlane.f32.xlu0 %v1358_v47  ;;  %v1288_v33 = vpop.xlane.xlu0 %1287 }
 0x64e   :  { %v1315_v17 = vsub.f32 %v8694_v12, %v1291_v15  ;;  %v1314_v31 = vsub.f32 %v8688_v38, %v1288_v33  ;;  %7514 = vpow2.f32 %v1328_v3 }
 0x64f   :  { %v8742_v0 = vpop.eup %7504  ;;  %7516 = vpow2.f32 %v1330_v19 }
 0x650   :  { %v1340_v25 = vmul.f32 1.442695, %v1314_v31  ;;  %v1352_v6 = vsel %vm1255_vm3, %v8742_v0, 0.0  ;;  %v1342_v60 = vmul.f32 1.442695, %v1315_v17 }
 0x651   :  { %v1285_v5 = vpop.xlane.xlu1 %1284  ;;  %1353 = vadd.xlane.f32.xlu0 %v1352_v6  ;;  %v1282_v9 = vpop.xlane.xlu0 %1281 }
 0x652   :  { %v1313_v7 = vsub.f32 %v8698_v4, %v1285_v5  ;;  %v1312_v59 = vsub.f32 %v8696_v49, %v1282_v9  ;;  %7518 = vpow2.f32 %v1340_v25 }
 0x653   :  { %v8748_v48 = vpop.eup %7506  ;;  %7520 = vpow2.f32 %v1342_v60 }
 0x654   :  { %v1336_v38 = vmul.f32 1.442695, %v1312_v59  ;;  %v1361_v12 = vsel %vm1255_vm3, %v8748_v48, 0.0  ;;  %v8752_v16 = vpop.eup %7508  ;;  %v1338_v23 = vmul.f32 1.442695, %v1313_v7 }
 0x655   :  { %1362 = vadd.xlane.f32.xlu1 %v1361_v12  ;;  %v1355_v4 = vsel %vm1255_vm3, %v8752_v16, 0.0  ;;  %v1303_v6 = vpop.xlane.xlu1 %1302  ;;  %v8792_v5 = vpop.permute.xlu0 %1628 }
 0x656   :  { %7522 = vpow2.f32 %v1336_v38 }
 0x657   :  { %v8754_v44 = vpop.eup %7510  ;;  %7524 = vpow2.f32 %v1338_v23 }
 0x658   :  { %v1370_v49 = vsel %vm1255_vm3, %v8754_v44, 0.0  ;;  %v8760_v18 = vpop.eup %7512 }
 0x659   :  { %1356 = vadd.xlane.f32.xlu1 %v1355_v4  ;;  %1371 = vadd.xlane.f32.xlu0 %v1370_v49  ;;  %v1373_v34 = vsel %vm1255_vm3, %v8760_v18, 0.0  ;;  %v1297_v60 = vpop.xlane.xlu1 %1296  ;;  %v1319_v49 = vsub.f32 %v8708_v22, %v1303_v6 }
 0x65a   :  { %v1317_v9 = vsub.f32 %v8710_v50, %v1297_v60 }
 0x65b   :  { %v8762_v52 = vpop.eup %7514 }
 0x65c   :  { %v1364_v24 = vsel %vm1255_vm3, %v8762_v52, 0.0  ;;  %v8768_v1 = vpop.eup %7516  ;;  %v1346_v7 = vmul.f32 1.442695, %v1317_v9 }
 0x65d   :  { %1374 = vadd.xlane.f32.xlu0 %v1373_v34  ;;  %1365 = vadd.xlane.f32.xlu1 %v1364_v24  ;;  %v1367_v3 = vsel %vm1255_vm3, %v8768_v1, 0.0  ;;  %v1350_v24 = vmul.f32 1.442695, %v1319_v49  ;;  %v8826_v6 = vpop.permute.xlu1 %1743 }
 0x65e   :  { %7526 = vpow2.f32 %v1346_v7 }
 0x65f   :  { %v8770_v61 = vpop.eup %7518 }
 0x660   :  { %v1382_v47 = vsel %vm1255_vm3, %v8770_v61, 0.0  ;;  %v8776_v19 = vpop.eup %7520 }
 0x661   :  { %1368 = vadd.xlane.f32.xlu0 %v1367_v3  ;;  %1383 = vadd.xlane.f32.xlu1 %v1382_v47  ;;  %v1385_v33 = vsel %vm1255_vm3, %v8776_v19, 0.0 }
 0x663   :  { %v8778_v15 = vpop.eup %7522 }
 0x664   :  { %v1376_v17 = vsel %vm1255_vm3, %v8778_v15, 0.0  ;;  %v8784_v31 = vpop.eup %7524 }
 0x665   :  { %1386 = vadd.xlane.f32.xlu0 %v1385_v33  ;;  %1377 = vadd.xlane.f32.xlu1 %v1376_v17  ;;  %v1379_v25 = vsel %vm1255_vm3, %v8784_v31, 0.0 }
 0x669   :  { %1380 = vadd.xlane.f32.xlu0 %v1379_v25 }
 0x66b   :  { %v8798_v3 = vpop.eup %7526 }
 0x66c   :  { %v1391_v50 = vsel %vm1255_vm3, %v8798_v3, 0.0 }
 0x676   :  { %1630 = vrot.lane.b32.xlu1 %v8550_v46, %s7869_s13 }
 0x67f   :  { %1741 = vrot.lane.b32.xlu0 %v8572_v57, %s7868_s9 }
 0x686   :  { %v1300_v59 = vpop.xlane.xlu0 %1299 }
 0x687   :  { %v1318_v38 = vsub.f32 %v8720_v28, %v1300_v59 }
 0x689   :  { %v1348_v12 = vmul.f32 1.442695, %v1318_v38 }
 0x68a   :  { %v1294_v23 = vpop.xlane.xlu0 %1293 }
 0x68b   :  { %v1316_v4 = vsub.f32 %v8722_v39, %v1294_v23  ;;  %7528 = vpow2.f32 %v1348_v12 }
 0x68d   :  { %v1344_v34 = vmul.f32 1.442695, %v1316_v4 }
 0x68f   :  { %7530 = vpow2.f32 %v1344_v34 }
 0x690   :  { %7532 = vpow2.f32 %v1350_v24 }
 0x698   :  { %v8802_v47 = vpop.eup %7528 }
 0x699   :  { %v1394_v28 = vsel %vm1255_vm3, %v8802_v47, 0.0 }
 0x69a   :  { %1392 = vadd.xlane.f32.xlu1 %v1391_v50 }
 0x69c   :  { %v8806_v33 = vpop.eup %7530 }
 0x69d   :  { %v1388_v22 = vsel %vm1255_vm3, %v8806_v33, 0.0  ;;  %v8810_v39 = vpop.eup %7532 }
 0x69e   :  { %1395 = vadd.xlane.f32.xlu0 %v1394_v28  ;;  %v1397_v17 = vsel %vm1255_vm3, %v8810_v39, 0.0 }
 0x6a2   :  { %1389 = vadd.xlane.f32.xlu0 %v1388_v22 }
 0x6a6   :  { %1398 = vadd.xlane.f32.xlu0 %v1397_v17 }
 0x6ab   :  { %1739 = vrot.lane.b32.xlu1 %v8560_v8, %s7868_s9 }
 0x6af   :  { %1733 = vrot.lane.b32.xlu1 %v8572_v57, %s7869_s13 }
 0x6b3   :  { %1737 = vrot.lane.b32.xlu1 %v8566_v55, %s7869_s13 }
 0x6bc   :  { %1632 = vrot.lane.b32.xlu0 %v8548_v45, %s7869_s13 }
 0x6c0   :  { %1731 = vrot.lane.b32.xlu0 %v8560_v8, %s7869_s13 }
 0x6c4   :  { %1735 = vrot.lane.b32.xlu0 %v8568_v56, %s7869_s13 }
 0x6d6   :  { %v1360_v25 = vpop.xlane.xlu0 %1359 }
 0x6da   :  { %v1354_v60 = vpop.xlane.xlu0 %1353 }
 0x6de   :  { %v1363_v9 = vpop.xlane.xlu1 %1362 }
 0x6df   :  { %7534 = vrcp.f32 %v1363_v9 }
 0x6e0   :  { %7536 = vrcp.f32 %v1354_v60 }
 0x6e1   :  { %7538 = vrcp.f32 %v1360_v25 }
 0x6e2   :  { %v1357_v7 = vpop.xlane.xlu1 %1356  ;;  %v1372_v59 = vpop.xlane.xlu0 %1371 }
 0x6e3   :  { %7540 = vrcp.f32 %v1357_v7 }
 0x6e6   :  { %v1366_v38 = vpop.xlane.xlu1 %1365  ;;  %v1375_v12 = vpop.xlane.xlu0 %1374 }
 0x6e7   :  { %7542 = vrcp.f32 %v1375_v12 }
 0x6e8   :  { %7544 = vrcp.f32 %v1366_v38 }
 0x6e9   :  { %7546 = vrcp.f32 %v1372_v59 }
 0x6ea   :  { %v1384_v23 = vpop.xlane.xlu1 %1383  ;;  %v1369_v4 = vpop.xlane.xlu0 %1368 }
 0x6eb   :  { %7548 = vrcp.f32 %v1369_v4 }
 0x6ec   :  { %v7535_v49 = vpop.eup %7534 }
 0x6ed   :  { %v7537_v34 = vpop.eup %7536  ;;  %v1419_v17 = vmul.f32 %v7535_v49, %v8748_v48  ;;  %v1664_v48 = vsel %vm1064_vm2, %v8634_v32, 0  ;;  %v1661_v32 = vsel %vm1064_vm2, %v8630_v29, 0 }
 0x6ee   :  { %v7539_v24 = vpop.eup %7538  ;;  %v1378_v50 = vpop.xlane.xlu1 %1377  ;;  %v1416_v25 = vmul.f32 %v7537_v34, %v8742_v0 }
 0x6ef   :  { %v1387_v28 = vpop.xlane.xlu0 %1386  ;;  %v1418_v9 = vmul.f32 %v7539_v24, %v8736_v43 }
 0x6f0   :  { %v7541_v22 = vpop.eup %7540  ;;  %7550 = vrcp.f32 %v1387_v28 }
 0x6f1   :  { %v1417_v60 = vmul.f32 %v7541_v22, %v8752_v16  ;;  %7552 = vrcp.f32 %v1378_v50  ;;  %v1433_v38 = vpack.c.bf16 %v1419_v17, %v1418_v9  ;;  %v1658_v9 = vsel %vm1064_vm2, %v8632_v14, 0 }
 0x6f2   :  { %7554 = vrcp.f32 %v1384_v23 }
 0x6f3   :  { %v1381_v7 = vpop.xlane.xlu0 %1380  ;;  %v1432_v59 = vpack.c.bf16 %v1417_v60, %v1416_v25 }
 0x6f4   :  { %7556 = vrcp.f32 %v1381_v7  ;;  %v7543_v12 = vpop.eup %7542 }
 0x6f5   :  { %6902 = vmatprep.mubr.msk.bf16.mxu1 %vm1255_vm3, %v1432_v59  ;;  %v7545_v0 = vpop.eup %7544  ;;  %v1423_v23 = vmul.f32 %v7543_v12, %v8760_v18 }
 0x6f6   :  { %6903 = vmatmul.mubr.msk.bf16.vlgmr.msra.gmra.mxu1 %vm1255_vm3, %v1433_v38  ;;  %v7547_v43 = vpop.eup %7546  ;;  %v1420_v4 = vmul.f32 %v7545_v0, %v8762_v52 }
 0x6f7   :  { %6927 = vmatpush3.bf16.xpose.msra.mxu1 %v1664_v48  ;;  %v1422_v34 = vmul.f32 %v7547_v43, %v8754_v44 }
 0x6f8   :  { %7229 = vmatprep.subr.msk.bf16.mxu1 %vm1064_vm2, %v8630_v29  ;;  %v7549_v16 = vpop.eup %7548 }
 0x6f9   :  { %v1421_v49 = vmul.f32 %v7549_v16, %v8768_v1  ;;  %v1435_v28 = vpack.c.bf16 %v1423_v23, %v1422_v34 }
 0x6fb   :  { %v1434_v24 = vpack.c.bf16 %v1421_v49, %v1420_v4 }
 0x6fd   :  { %v7551_v50 = vpop.eup %7550  ;;  %6906 = vmatprep.mubr.msk.bf16.mxu1 %vm1255_vm3, %v1434_v24 }
 0x6fe   :  { %v7553_v22 = vpop.eup %7552  ;;  %6907 = vmatmul.mubr.msk.bf16.gmra.mxu1 %vm1255_vm3, %v1435_v28  ;;  %v1427_v52 = vmul.f32 %v7551_v50, %v8776_v19  ;;  %v1769_v19 = vsel %vm1064_vm2, %v8644_v10, 0 }
 0x6ff   :  { %6929 = vmatpush3.bf16.xpose.msra.mxu1 %v1661_v32  ;;  %v7555_v17 = vpop.eup %7554  ;;  %6934 = vmatprep.mubr.msk.bf16.mxu1 %vm1064_vm2, %v8648_v36  ;;  %v1424_v44 = vmul.f32 %v7553_v22, %v8778_v15  ;;  %v1655_v36 = vsel %vm1064_vm2, %v8640_v35, 0  ;;  %v1631_v15 = vpop.permute.xlu1 %1630  ;;  %v605_v22 = vld [vmem:[%s7910_s25 + $0x60] sm:$0xff] }
 0x700   :  { %7230 = vmatprep.subr.msk.bf16.mxu1 %vm1064_vm2, %v8632_v14  ;;  %v1426_v1 = vmul.f32 %v7555_v17, %v8770_v61  ;;  %v1766_v14 = vsel %vm1064_vm2, %v8826_v6, 0  ;;  %v1742_v61 = vpop.permute.xlu0 %1741 }
 0x701   :  { %v7557_v18 = vpop.eup %7556  ;;  %v1763_v10 = vsel %vm1064_vm2, %v1742_v61, 0 }
 0x702   :  { %v1425_v29 = vmul.f32 %v7557_v18, %v8784_v31  ;;  %v1437_v60 = vpack.c.bf16 %v1427_v52, %v1426_v1 }
 0x704   :  { %v1436_v25 = vpack.c.bf16 %v1425_v29, %v1424_v44 }
 0x706   :  { %6918 = vmatprep.mubr.msk.bf16.mxu0 %vm1255_vm3, %v1436_v25 }
 0x707   :  { %6919 = vmatmul.mubr.msk.bf16.vlgmr.msra.gmra.mxu0 %vm1255_vm3, %v1437_v60  ;;  %6931 = vmatpush3.bf16.xpose.msra.mxu1 %v1658_v9 }
 0x708   :  { %6943 = vmatpush3.bf16.xpose.msra.mxu0 %v1769_v19  ;;  %7231 = vmatprep.subr.msk.bf16.mxu1 %vm1064_vm2, %v8640_v35 }
 0x709   :  { %7233 = vmatprep.subr.msk.bf16.mxu0 %vm1064_vm2, %v8826_v6 }
 0x70f   :  { %6933 = vmatpush3.bf16.xpose.msra.mxu1 %v1655_v36 }
 0x710   :  { %6945 = vmatpush3.bf16.xpose.msra.mxu0 %v1766_v14  ;;  %v603_v14 = vld [vmem:[%s7910_s25 + $0x50] sm:$0xff] }
 0x711   :  { %7234 = vmatprep.subr.msk.bf16.mxu0 %vm1064_vm2, %v1742_v61 }
 0x716   :  { %6935 = vmatmul.mubr.msk.bf16.vlgmr.msra.gmra.mxu1 %vm1064_vm2, %v8792_v5 }
 0x717   :  { %6938 = vmatprep.mubr.msk.bf16.mxu1 %vm1064_vm2, %v1631_v15  ;;  %v8918_v15 = vld [vmem:[%s7910_s25 + $0x40] sm:$0xff] }
 0x718   :  { %6947 = vmatpush3.bf16.xpose.msra.mxu0 %v1763_v10 }
 0x723   :  { %v1393_v31 = vpop.xlane.xlu1 %1392 }
 0x724   :  { %7558 = vrcp.f32 %v1393_v31 }
 0x727   :  { %v1740_v7 = vpop.permute.xlu1 %1739  ;;  %v1396_v35 = vpop.xlane.xlu0 %1395 }
 0x728   :  { %7235 = vmatprep.subr.msk.bf16.mxu0 %vm1064_vm2, %v1740_v7  ;;  %v1760_v6 = vsel %vm1064_vm2, %v1740_v7, 0 }
 0x729   :  { %6949 = vmatpush3.bf16.xpose.msra.mxu0 %v1760_v6  ;;  %v604_v6 = vld [vmem:[%s7910_s25 + $0x58] sm:$0xff] }
 0x72b   :  { %v1390_v59 = vpop.xlane.xlu0 %1389  ;;  %v1734_v28 = vpop.permute.xlu1 %1733 }
 0x72c   :  { %7560 = vrcp.f32 %v1390_v59 }
 0x72d   :  { %7562 = vrcp.f32 %v1396_v35 }
 0x72f   :  { %v1399_v38 = vpop.xlane.xlu0 %1398 }
 0x730   :  { %7564 = vrcp.f32 %v1399_v38  ;;  %v602_v38 = vld [vmem:[%s7910_s25 + $0x48] sm:$0xff] }
 0x731   :  { %v7559_v48 = vpop.eup %7558 }
 0x732   :  { %v1429_v43 = vmul.f32 %v7559_v48, %v8798_v3  ;;  %v1738_v3 = vpop.permute.xlu1 %1737 }
 0x733   :  { %v1633_v5 = vpop.permute.xlu0 %1632 }
 0x734   :  { %6939 = vmatmul.mubr.msk.bf16.gmra.mxu1 %vm1064_vm2, %v1633_v5 }
 0x737   :  { %v1732_v50 = vpop.permute.xlu0 %1731 }
 0x739   :  { %v7561_v12 = vpop.eup %7560 }
 0x73a   :  { %v1428_v0 = vmul.f32 %v7561_v12, %v8806_v33  ;;  %v7563_v16 = vpop.eup %7562 }
 0x73b   :  { %v1430_v49 = vmul.f32 %v7563_v16, %v8802_v47  ;;  %v1736_v32 = vpop.permute.xlu0 %1735 }
 0x73c   :  { %v1438_v23 = vpack.c.bf16 %v1429_v43, %v1428_v0 }
 0x73d   :  { %v7565_v4 = vpop.eup %7564 }
 0x73e   :  { %6922 = vmatprep.mubr.msk.bf16.mxu0 %vm1255_vm3, %v1438_v23  ;;  %v1431_v34 = vmul.f32 %v7565_v4, %v8810_v39 }
 0x740   :  { %v1439_v24 = vpack.c.bf16 %v1431_v34, %v1430_v49  ;;  %v608_v49 = vld [vmem:[%s7910_s25 + $0x78] sm:$0xff] }
 0x742   :  { %6923 = vmatmul.mubr.msk.bf16.gmra.mxu0 %vm1255_vm3, %v1439_v24  ;;  %v606_v24 = vld [vmem:[%s7910_s25 + $0x68] sm:$0xff] }
 0x743   :  { %6950 = vmatprep.mubr.msk.bf16.mxu0 %vm1064_vm2, %v1732_v50 }
 0x74a   :  { %6951 = vmatmul.mubr.msk.bf16.vlgmr.msra.gmra.mxu0 %vm1064_vm2, %v1734_v28 }
 0x74b   :  { %6954 = vmatprep.mubr.msk.bf16.mxu0 %vm1064_vm2, %v1736_v32 }
 0x752   :  { %6955 = vmatmul.mubr.msk.bf16.gmra.mxu0 %vm1064_vm2, %v1738_v3 }
 0x7b6   :  { %v8886_v33 = vpop.f32.mrf.mxu1 }
 0x7b8   :  { %v8888_v47 = vpop.f32.mrf.mxu1 }
 0x7ba   :  { %v8890_v39 = vpop.f32.mrf.mxu1 }
 0x7bc   :  { %v8894_v17 = vpop.f32.mrf.mxu1 }
 0x7be   :  { %v8896_v18 = vpop.f32.mrf.mxu1 }
 0x7c0   :  { %v8898_v52 = vpop.f32.mrf.mxu1 }
 0x7c2   :  { %v8900_v44 = vpop.f32.mrf.mxu1 }
 0x7c4   :  { %v8904_v1 = vpop.f32.mrf.mxu1 }
 0x7c7   :  { %v8908_v60 = vpop.f32.mrf.mxu0 }
 0x7c9   :  { %v8910_v9 = vpop.f32.mrf.mxu0 }
 0x7cb   :  { %v8912_v19 = vpop.f32.mrf.mxu0 }
 0x7d6   :  { %v6936_v61 = vpop.f32.mrf.mxu1 }
 0x7d7   :  { %v8920_v10 = vadd.f32 %v6936_v61, %v603_v14 }
 0x7d8   :  { %v1700_v31 = vpop.f32.mrf.mxu1 }
 0x7d9   :  { %v8923_v7 = vadd.f32 %v1700_v31, %v8918_v15  ;;  %v1842_v35 = vsel %vm1255_vm3, %v8920_v10, -inf  ;;  %v8951_v31 = vpop.f32.mrf.mxu0 }
 0x7da   :  { %1843 = vmax.xlane.f32.xlu0 %v1842_v35  ;;  %v6937_v59 = vpop.f32.mrf.mxu1 }
 0x7db   :  { %v8929_v48 = vadd.f32 %v6937_v59, %v604_v6  ;;  %v1836_v0 = vsel %vm1255_vm3, %v8923_v7, -inf }
 0x7dc   :  { %v1703_v5 = vpop.f32.mrf.mxu1 }
 0x7dd   :  { %v8931_v12 = vadd.f32 %v1703_v5, %v602_v38  ;;  %v1845_v16 = vsel %vm1255_vm3, %v8929_v48, -inf }
 0x7de   :  { %1837 = vmax.xlane.f32.xlu0 %v1836_v0 }
 0x7df   :  { %v1839_v43 = vsel %vm1255_vm3, %v8931_v12, -inf }
 0x7e0   :  { %1840 = vmax.xlane.f32.xlu1 %v1839_v43 }
 0x7e2   :  { %1846 = vmax.xlane.f32.xlu0 %v1845_v16 }
 0x7f4   :  { %v6940_v23 = vpop.f32.mrf.mxu1 }
 0x7f6   :  { %v1716_v4 = vpop.f32.mrf.mxu1 }
 0x7f7   :  { %v8973_v58 = vadd.f32 %v1716_v4, %v605_v22 }
 0x7f8   :  { %2026 = vrot.lane.b32.xlu0 %v8548_v45, %s7870_s17  ;;  %v6941_v34 = vpop.f32.mrf.mxu1 }
 0x7f9   :  { %v8943_v50 = vadd.f32 %v6941_v34, %v608_v49  ;;  %v607_v34 = vld [vmem:[%s7910_s25 + $0x70] sm:$0xff]  ;;  %s10140_s25 = sld [smem:[#allocation7_spill]] }
 0x7fa   :  { %v1719_v28 = vpop.f32.mrf.mxu1  ;;  %v8966_v29 = vadd.f32 %v6940_v23, %v607_v34 }
 0x7fb   :  { %v8945_v32 = vadd.f32 %v1719_v28, %v606_v24  ;;  %v1857_v3 = vsel %vm1255_vm3, %v8943_v50, -inf }
 0x7fc   :  { %1858 = vmax.xlane.f32.xlu1 %v1857_v3  ;;  %v1854_v53 = vsel %vm1255_vm3, %v8966_v29, -inf }
 0x7fd   :  { %v1851_v61 = vsel %vm1255_vm3, %v8945_v32, -inf }
 0x800   :  { %1852 = vmax.xlane.f32.xlu1 %v1851_v61 }
 0x802   :  { %v8953_v45 = vpop.f32.mrf.mxu0 }
 0x804   :  { %v8955_v35 = vpop.f32.mrf.mxu0 }
 0x806   :  { %v8957_v59 = vpop.f32.mrf.mxu0 }
 0x808   :  { %v8961_v0 = vpop.f32.mrf.mxu0 }
 0x80a   :  { %v6952_v43 = vpop.f32.mrf.mxu0 }
 0x80c   :  { %v1805_v16 = vpop.f32.mrf.mxu0 }
 0x80d   :  { %v8990_v63 = vadd.f32 %v1805_v16, %v8918_v15 }
 0x80e   :  { %v6953_v28 = vpop.f32.mrf.mxu0 }
 0x80f   :  { %v8964_v3 = vadd.f32 %v6953_v28, %v604_v6  ;;  %v8981_v28 = vadd.f32 %v6952_v43, %v603_v14 }
 0x810   :  { %v1808_v36 = vpop.f32.mrf.mxu0 }
 0x811   :  { %v8968_v61 = vadd.f32 %v1808_v36, %v602_v38  ;;  %v1869_v25 = vsel %vm1255_vm3, %v8964_v3, -inf }
 0x812   :  { %1870 = vmax.xlane.f32.xlu1 %v1869_v25  ;;  %v6956_v21 = vpop.f32.mrf.mxu0  ;;  %v1848_v25 = vsel %vm1255_vm3, %v8973_v58, -inf }
 0x813   :  { %v1863_v6 = vsel %vm1255_vm3, %v8968_v61, -inf }
 0x814   :  { %v1821_v5 = vpop.f32.mrf.mxu0 }
 0x815   :  { %v9000_v43 = vadd.f32 %v1821_v5, %v605_v22 }
 0x816   :  { %1864 = vmax.xlane.f32.xlu1 %v1863_v6  ;;  %v6957_v23 = vpop.f32.mrf.mxu0 }
 0x817   :  { %1855 = vmax.xlane.f32.xlu0 %v1854_v53  ;;  %v8979_v36 = vadd.f32 %v6957_v23, %v608_v49  ;;  %v1866_v53 = vsel %vm1255_vm3, %v8981_v28, -inf  ;;  %v8996_v49 = vadd.f32 %v6956_v21, %v607_v34  ;;  %v1872_v16 = vsel %vm1255_vm3, %v9000_v43, -inf }
 0x818   :  { %v1824_v38 = vpop.f32.mrf.mxu0 }
 0x819   :  { %v8983_v2 = vadd.f32 %v1824_v38, %v606_v24  ;;  %v1881_v4 = vsel %vm1255_vm3, %v8979_v36, -inf  ;;  %v1860_v24 = vsel %vm1255_vm3, %v8990_v63, -inf  ;;  %v1878_v15 = vsel %vm1255_vm3, %v8996_v49, -inf }
 0x81a   :  { %1882 = vmax.xlane.f32.xlu1 %v1881_v4 }
 0x81b   :  { %1849 = vmax.xlane.f32.xlu0 %v1848_v25  ;;  %v1875_v14 = vsel %vm1255_vm3, %v8983_v2, -inf }
 0x81e   :  { %1876 = vmax.xlane.f32.xlu1 %v1875_v14 }
 0x81f   :  { %1867 = vmax.xlane.f32.xlu0 %v1866_v53 }
 0x823   :  { %1861 = vmax.xlane.f32.xlu0 %v1860_v24 }
 0x827   :  { %1879 = vmax.xlane.f32.xlu0 %v1878_v15 }
 0x82b   :  { %1873 = vmax.xlane.f32.xlu0 %v1872_v16 }
 0x82f   :  { %2024 = vrot.lane.b32.xlu1 %v8550_v46, %s7870_s17 }
 0x841   :  { %2022 = vrot.lane.b32.xlu0 %v8556_v37, %s7870_s17 }
 0x845   :  { %2020 = vrot.lane.b32.xlu0 %v8544_v20, %s7870_s17 }
 0x863   :  { %v1844_v21 = vpop.xlane.xlu0 %1843 }
 0x864   :  { %v1886_v22 = vsub.f32 %v8920_v10, %v1844_v21 }
 0x866   :  { %v1904_v5 = vmul.f32 1.442695, %v1886_v22 }
 0x867   :  { %v1838_v34 = vpop.xlane.xlu0 %1837 }
 0x868   :  { %7566 = vpow2.f32 %v1904_v5  ;;  %v1884_v6 = vsub.f32 %v8923_v7, %v1838_v34 }
 0x869   :  { %v1841_v23 = vpop.xlane.xlu1 %1840 }
 0x86a   :  { %v1900_v38 = vmul.f32 1.442695, %v1884_v6  ;;  %v1885_v25 = vsub.f32 %v8931_v12, %v1841_v23 }
 0x86b   :  { %v1847_v4 = vpop.xlane.xlu0 %1846 }
 0x86c   :  { %7568 = vpow2.f32 %v1900_v38  ;;  %v1887_v46 = vsub.f32 %v8929_v48, %v1847_v4  ;;  %v1902_v37 = vmul.f32 1.442695, %v1885_v25 }
 0x86e   :  { %v1906_v53 = vmul.f32 1.442695, %v1887_v46 }
 0x86f   :  { %v2027_v14 = vpop.permute.xlu0 %2026 }
 0x870   :  { %7570 = vpow2.f32 %v1906_v53  ;;  %6958 = vmatprep.subr.bf16.mxu1 %v2027_v14 }
 0x871   :  { %6959 = vmatpush3.bf16.msra.mxu1 %v2027_v14  ;;  %7572 = vpow2.f32 %v1902_v37 }
 0x875   :  { %v9016_v20 = vpop.eup %7566 }
 0x876   :  { %v1938_v10 = vsel %vm1255_vm3, %v9016_v20, 0.0 }
 0x877   :  { %1939 = vadd.xlane.f32.xlu0 %v1938_v10 }
 0x879   :  { %v9020_v7 = vpop.eup %7568 }
 0x87a   :  { %v1932_v12 = vsel %vm1255_vm3, %v9020_v7, 0.0 }
 0x87b   :  { %1933 = vadd.xlane.f32.xlu0 %v1932_v12 }
 0x87d   :  { %v9024_v48 = vpop.eup %7570 }
 0x87e   :  { %v1941_v24 = vsel %vm1255_vm3, %v9024_v48, 0.0  ;;  %v9028_v15 = vpop.eup %7572 }
 0x87f   :  { %1942 = vadd.xlane.f32.xlu1 %v1941_v24  ;;  %v1935_v16 = vsel %vm1255_vm3, %v9028_v15, 0.0 }
 0x883   :  { %1936 = vadd.xlane.f32.xlu1 %v1935_v16 }
 0x885   :  { %v1859_v21 = vpop.xlane.xlu1 %1858 }
 0x886   :  { %v1891_v38 = vsub.f32 %v8943_v50, %v1859_v21 }
 0x888   :  { %v1914_v53 = vmul.f32 1.442695, %v1891_v38 }
 0x889   :  { %v1853_v22 = vpop.xlane.xlu1 %1852 }
 0x88a   :  { %v1889_v10 = vsub.f32 %v8945_v32, %v1853_v22 }
 0x88c   :  { %v1910_v50 = vmul.f32 1.442695, %v1889_v10 }
 0x89b   :  { %v1871_v5 = vpop.xlane.xlu1 %1870 }
 0x89f   :  { %v1865_v34 = vpop.xlane.xlu1 %1864 }
 0x8a0   :  { %v1856_v6 = vpop.xlane.xlu0 %1855  ;;  %v1893_v21 = vsub.f32 %v8968_v61, %v1865_v34 }
 0x8a1   :  { %v1890_v23 = vsub.f32 %v8966_v29, %v1856_v6  ;;  %v1895_v29 = vsub.f32 %v8964_v3, %v1871_v5 }
 0x8a2   :  { %v1918_v38 = vmul.f32 1.442695, %v1893_v21 }
 0x8a3   :  { %v1912_v25 = vmul.f32 1.442695, %v1890_v23  ;;  %v1883_v4 = vpop.xlane.xlu1 %1882  ;;  %v1922_v32 = vmul.f32 1.442695, %v1895_v29 }
 0x8a4   :  { %v1850_v46 = vpop.xlane.xlu0 %1849 }
 0x8a5   :  { %v1888_v37 = vsub.f32 %v8973_v58, %v1850_v46  ;;  %7574 = vpow2.f32 %v1912_v25 }
 0x8a7   :  { %v1908_v14 = vmul.f32 1.442695, %v1888_v37  ;;  %v1877_v12 = vpop.xlane.xlu1 %1876  ;;  %v1899_v37 = vsub.f32 %v8979_v36, %v1883_v4 }
 0x8a8   :  { %v1868_v24 = vpop.xlane.xlu0 %1867 }
 0x8a9   :  { %v1894_v16 = vsub.f32 %v8981_v28, %v1868_v24  ;;  %7576 = vpow2.f32 %v1908_v14  ;;  %v1930_v24 = vmul.f32 1.442695, %v1899_v37 }
 0x8aa   :  { %7578 = vpow2.f32 %v1914_v53 }
 0x8ab   :  { %v1920_v6 = vmul.f32 1.442695, %v1894_v16  ;;  %v2025_v23 = vpop.permute.xlu1 %2024  ;;  %v1897_v16 = vsub.f32 %v8983_v2, %v1877_v12 }
 0x8ac   :  { %v1862_v11 = vpop.xlane.xlu0 %1861  ;;  %6960 = vmatprep.subr.bf16.mxu1 %v2025_v23 }
 0x8ad   :  { %v1892_v58 = vsub.f32 %v8990_v63, %v1862_v11  ;;  %7580 = vpow2.f32 %v1920_v6  ;;  %6961 = vmatpush3.bf16.msra.mxu1 %v2025_v23  ;;  %v1926_v2 = vmul.f32 1.442695, %v1897_v16 }
 0x8ae   :  { %7582 = vpow2.f32 %v1910_v50 }
 0x8af   :  { %v1916_v22 = vmul.f32 1.442695, %v1892_v58 }
 0x8b0   :  { %v1880_v28 = vpop.xlane.xlu0 %1879 }
 0x8b1   :  { %7584 = vpow2.f32 %v1916_v22  ;;  %v1898_v25 = vsub.f32 %v8996_v49, %v1880_v28 }
 0x8b2   :  { %v9041_v3 = vpop.eup %7574  ;;  %7586 = vpow2.f32 %v1922_v32 }
 0x8b3   :  { %7588 = vpow2.f32 %v1918_v38  ;;  %v1928_v61 = vmul.f32 1.442695, %v1898_v25  ;;  %v1950_v5 = vsel %vm1255_vm3, %v9041_v3, 0.0 }
 0x8b4   :  { %v1874_v63 = vpop.xlane.xlu0 %1873  ;;  %1951 = vadd.xlane.f32.xlu1 %v1950_v5 }
 0x8b5   :  { %v1896_v11 = vsub.f32 %v9000_v43, %v1874_v63  ;;  %7590 = vpow2.f32 %v1928_v61 }
 0x8b6   :  { %v9046_v34 = vpop.eup %7576 }
 0x8b7   :  { %v9048_v46 = vpop.eup %7578  ;;  %v1924_v49 = vmul.f32 1.442695, %v1896_v11  ;;  %v1944_v53 = vsel %vm1255_vm3, %v9046_v34, 0.0 }
 0x8b8   :  { %v2023_v14 = vpop.permute.xlu0 %2022  ;;  %1945 = vadd.xlane.f32.xlu1 %v1944_v53  ;;  %v1953_v43 = vsel %vm1255_vm3, %v9048_v46, 0.0 }
 0x8b9   :  { %6962 = vmatprep.subr.bf16.mxu1 %v2023_v14  ;;  %7592 = vpow2.f32 %v1924_v49 }
 0x8ba   :  { %6963 = vmatpush3.bf16.msra.mxu1 %v2023_v14  ;;  %v9053_v10 = vpop.eup %7580  ;;  %7594 = vpow2.f32 %v1930_v24 }
 0x8bb   :  { %v1962_v36 = vsel %vm1255_vm3, %v9053_v10, 0.0  ;;  %v9060_v29 = vpop.eup %7582  ;;  %7596 = vpow2.f32 %v1926_v2 }
 0x8bc   :  { %v2021_v4 = vpop.permute.xlu0 %2020  ;;  %1954 = vadd.xlane.f32.xlu1 %v1953_v43  ;;  %1963 = vadd.xlane.f32.xlu0 %v1962_v36  ;;  %v1947_v12 = vsel %vm1255_vm3, %v9060_v29, 0.0 }
 0x8bd   :  { %6964 = vmatprep.subr.bf16.mxu1 %v2021_v4 }
 0x8be   :  { %v9062_v6 = vpop.eup %7584  ;;  %6965 = vmatpush3.bf16.msra.mxu1 %v2021_v4 }
 0x8bf   :  { %v1956_v50 = vsel %vm1255_vm3, %v9062_v6, 0.0  ;;  %v9066_v21 = vpop.eup %7586 }
 0x8c0   :  { %v9070_v23 = vpop.eup %7588  ;;  %1948 = vadd.xlane.f32.xlu1 %v1947_v12  ;;  %1957 = vadd.xlane.f32.xlu0 %v1956_v50  ;;  %v1965_v32 = vsel %vm1255_vm3, %v9066_v21, 0.0 }
 0x8c1   :  { %v1959_v58 = vsel %vm1255_vm3, %v9070_v23, 0.0 }
 0x8c2   :  { %v9076_v22 = vpop.eup %7590 }
 0x8c3   :  { %v1974_v38 = vsel %vm1255_vm3, %v9076_v22, 0.0 }
 0x8c4   :  { %1960 = vadd.xlane.f32.xlu1 %v1959_v58  ;;  %1966 = vadd.xlane.f32.xlu0 %v1965_v32 }
 0x8c6   :  { %v9080_v28 = vpop.eup %7592 }
 0x8c7   :  { %v1968_v25 = vsel %vm1255_vm3, %v9080_v28, 0.0  ;;  %v9084_v61 = vpop.eup %7594 }
 0x8c8   :  { %1975 = vadd.xlane.f32.xlu1 %v1974_v38  ;;  %v1977_v5 = vsel %vm1255_vm3, %v9084_v61, 0.0  ;;  %v9088_v63 = vpop.eup %7596 }
 0x8c9   :  { %v1971_v11 = vsel %vm1255_vm3, %v9088_v63, 0.0 }
 0x8cc   :  { %1969 = vadd.xlane.f32.xlu1 %v1968_v25 }
 0x8d0   :  { %1978 = vadd.xlane.f32.xlu1 %v1977_v5 }
 0x8d4   :  { %1972 = vadd.xlane.f32.xlu1 %v1971_v11 }
 0x8da   :  { %2113 = vrot.lane.b32.xlu0 %v8568_v56, %s7870_s17 }
 0x8de   :  { %2111 = vrot.lane.b32.xlu0 %v8572_v57, %s7870_s17 }
 0x8e2   :  { %2109 = vrot.lane.b32.xlu0 %v8560_v8, %s7870_s17 }
 0x8e5   :  { %2115 = vrot.lane.b32.xlu1 %v8566_v55, %s7870_s17 }
 0x900   :  { %v1940_v37 = vpop.xlane.xlu0 %1939 }
 0x904   :  { %v1934_v49 = vpop.xlane.xlu0 %1933 }
 0x908   :  { %v1943_v53 = vpop.xlane.xlu1 %1942 }
 0x909   :  { %7598 = vrcp.f32 %v1943_v53 }
 0x90a   :  { %7600 = vrcp.f32 %v1934_v49 }
 0x90b   :  { %7602 = vrcp.f32 %v1940_v37 }
 0x90c   :  { %v1937_v14 = vpop.xlane.xlu1 %1936 }
 0x90d   :  { %7604 = vrcp.f32 %v1937_v14 }
 0x916   :  { %v7599_v43 = vpop.eup %7598 }
 0x917   :  { %v7601_v24 = vpop.eup %7600  ;;  %v1999_v57 = vmul.f32 %v7599_v43, %v9024_v48 }
 0x918   :  { %v7603_v56 = vpop.eup %7602  ;;  %v1996_v36 = vmul.f32 %v7601_v24, %v9020_v7 }
 0x919   :  { %v1998_v55 = vmul.f32 %v7603_v56, %v9016_v20 }
 0x91a   :  { %v7605_v16 = vpop.eup %7604 }
 0x91b   :  { %v1997_v8 = vmul.f32 %v7605_v16, %v9028_v15  ;;  %v2013_v50 = vpack.c.bf16 %v1999_v57, %v1998_v55 }
 0x91d   :  { %v2012_v4 = vpack.c.bf16 %v1997_v8, %v1996_v36 }
 0x91f   :  { %6966 = vmatprep.mubr.msk.bf16.mxu1 %vm1255_vm3, %v2012_v4 }
 0x920   :  { %6967 = vmatmul.mubr.msk.bf16.vlgmr.msra.gmra.mxu1 %vm1255_vm3, %v2013_v50 }
 0x93d   :  { %v1952_v2 = vpop.xlane.xlu1 %1951 }
 0x941   :  { %v1946_v12 = vpop.xlane.xlu1 %1945 }
 0x945   :  { %v1955_v58 = vpop.xlane.xlu1 %1954  ;;  %v1964_v32 = vpop.xlane.xlu0 %1963 }
 0x946   :  { %7606 = vrcp.f32 %v1955_v58 }
 0x947   :  { %7608 = vrcp.f32 %v1946_v12 }
 0x948   :  { %7610 = vrcp.f32 %v1952_v2 }
 0x949   :  { %v1949_v48 = vpop.xlane.xlu1 %1948  ;;  %v1958_v38 = vpop.xlane.xlu0 %1957 }
 0x94a   :  { %7612 = vrcp.f32 %v1949_v48 }
 0x94b   :  { %7614 = vrcp.f32 %v1958_v38 }
 0x94d   :  { %v1961_v7 = vpop.xlane.xlu1 %1960  ;;  %v1967_v24 = vpop.xlane.xlu0 %1966 }
 0x94e   :  { %7616 = vrcp.f32 %v1961_v7 }
 0x94f   :  { %7618 = vrcp.f32 %v1967_v24 }
 0x950   :  { %7620 = vrcp.f32 %v1964_v32 }
 0x951   :  { %v1976_v20 = vpop.xlane.xlu1 %1975  ;;  %v2114_v4 = vpop.permute.xlu0 %2113 }
 0x953   :  { %v7607_v15 = vpop.eup %7606 }
 0x954   :  { %v7609_v25 = vpop.eup %7608  ;;  %v2003_v49 = vmul.f32 %v7607_v15, %v9048_v46 }
 0x955   :  { %v1970_v5 = vpop.xlane.xlu1 %1969  ;;  %v7611_v11 = vpop.eup %7610  ;;  %v2000_v53 = vmul.f32 %v7609_v25, %v9046_v34  ;;  %v7311_v25 = vld [vmem:[%s7935_s19] sm:$0xff]  }
 0x956   :  { %v2002_v16 = vmul.f32 %v7611_v11, %v9041_v3  ;;  %v2112_v50 = vpop.permute.xlu0 %2111 }
 0x957   :  { %v7613_v37 = vpop.eup %7612 }
 0x958   :  { %v2001_v14 = vmul.f32 %v7613_v37, %v9060_v29  ;;  %v7615_v43 = vpop.eup %7614  ;;  %v2015_v8 = vpack.c.bf16 %v2003_v49, %v2002_v16 }
 0x959   :  { %v1979_v56 = vpop.xlane.xlu1 %1978  ;;  %v2004_v55 = vmul.f32 %v7615_v43, %v9062_v6  ;;  %v7310_v6 = vld [vmem:[%s7935_s19 + $0x8] sm:$0xff]   ;;  %s10144_s19 = sld [smem:[#allocation9_spill]] }
 0x95a   :  { %v2014_v57 = vpack.c.bf16 %v2001_v14, %v2000_v53  ;;  %7218 = vmatprep.subr.bf16.mxu1 %v7310_v6  ;;  %v2110_v58 = vpop.permute.xlu0 %2109 }
 0x95b   :  { %v7617_v36 = vpop.eup %7616  ;;  %7219 = vmatpush3.bf16.msra.mxu1 %v7310_v6 }
 0x95c   :  { %6970 = vmatprep.mubr.msk.bf16.mxu1 %vm1255_vm3, %v2014_v57  ;;  %v2005_v46 = vmul.f32 %v7617_v36, %v9070_v23  ;;  %v7619_v23 = vpop.eup %7618 }
 0x95d   :  { %v1973_v34 = vpop.xlane.xlu1 %1972  ;;  %6971 = vmatmul.mubr.msk.bf16.gmra.mxu1 %vm1255_vm3, %v2015_v8  ;;  %v7621_v2 = vpop.eup %7620  ;;  %v2007_v48 = vmul.f32 %v7619_v23, %v9066_v21 }
 0x95e   :  { %7622 = vrcp.f32 %v1973_v34  ;;  %v2016_v29 = vpack.c.bf16 %v2005_v46, %v2004_v55  ;;  %v2006_v7 = vmul.f32 %v7621_v2, %v9053_v10 }
 0x95f   :  { %7624 = vrcp.f32 %v1970_v5 }
 0x960   :  { %6982 = vmatprep.mubr.msk.bf16.mxu0 %vm1255_vm3, %v2016_v29  ;;  %7626 = vrcp.f32 %v1979_v56  ;;  %v2017_v15 = vpack.c.bf16 %v2007_v48, %v2006_v7  ;;  %v1618_v56 = vpack.c.bf16 %v8894_v17, %v8888_v47  ;;  %v1622_v47 = vpack.c.bf16 %v8951_v31, %v8910_v9  ;;  %v9166_v7 = vld [vmem:[%s7940_s24] ss:$0 sm:$0xff]  ;;  %s10145_s24 = sld [smem:[#allocation10_spill]] }
 0x961   :  { %v2116_v3 = vpop.permute.xlu1 %2115  ;;  %7628 = vrcp.f32 %v1976_v20  ;;  %v10130_v17 = vpack.c.bf16 %v8900_v44, %v8896_v18 }
 0x962   :  { %6974 = vmatprep.subr.bf16.mxu0 %v2116_v3 }
 0x963   :  { %6975 = vmatpush3.bf16.msra.mxu0 %v2116_v3 }
 0x964   :  { %6976 = vmatprep.subr.bf16.mxu0 %v2114_v4 }
 0x967   :  { %6977 = vmatpush3.bf16.msra.mxu0 %v2114_v4 }
 0x968   :  { %6978 = vmatprep.subr.bf16.mxu0 %v2112_v50 }
 0x96b   :  { %v7623_v12 = vpop.eup %7622  ;;  %6979 = vmatpush3.bf16.msra.mxu0 %v2112_v50 }
 0x96c   :  { %v7625_v32 = vpop.eup %7624  ;;  %6980 = vmatprep.subr.bf16.mxu0 %v2110_v58  ;;  %v2009_v38 = vmul.f32 %v7623_v12, %v9088_v63 }
 0x96d   :  { %v2008_v20 = vmul.f32 %v7625_v32, %v9080_v28  ;;  %v7627_v5 = vpop.eup %7626 }
 0x96e   :  { %v7629_v37 = vpop.eup %7628  ;;  %v2011_v21 = vmul.f32 %v7627_v5, %v9084_v61  ;;  %v10129_v61 = vpack.c.bf16 %v8904_v1, %v8898_v52  ;;  %v10132_v52 = vpack.c.bf16 %v8957_v59, %v8953_v45 }
 0x96f   :  { %6981 = vmatpush3.bf16.msra.mxu0 %v2110_v58  ;;  %v2018_v11 = vpack.c.bf16 %v2009_v38, %v2008_v20  ;;  %v2010_v63 = vmul.f32 %v7629_v37, %v9076_v22  ;;  %v10128_v22 = vpack.c.bf16 %v8890_v39, %v8886_v33  ;;  %v1624_v33 = vpack.c.bf16 %v8961_v0, %v8955_v35 }
 0x970   :  { %6990 = vmatprep.subr.bf16.mxu0 %v7310_v6  ;;  %v10131_v39 = vpack.c.bf16 %v8912_v19, %v8908_v60 }
 0x971   :  { %v2019_v10 = vpack.c.bf16 %v2011_v21, %v2010_v63 }
 0x972   :  { %6983 = vmatmul.mubr.msk.bf16.vlgmr.msra.gmra.mxu0 %vm1255_vm3, %v2017_v15 }
 0x973   :  { %6986 = vmatprep.mubr.msk.bf16.mxu0 %vm1255_vm3, %v2018_v11  ;;  %6991 = vmatpush3.bf16.msra.mxu0 %v7310_v6 }
 0x974   :  { %7008 = vmatprep.subr.bf16.mxu0 %v7311_v25 }
 0x97a   :  { %6987 = vmatmul.mubr.msk.bf16.gmra.mxu0 %vm1255_vm3, %v2019_v10 }
 0x9e0   :  { %v6968_v28 = vpop.f32.mrf.mxu1 }
 0x9e2   :  { %v2078_v49 = vpop.f32.mrf.mxu1 }
 0x9e4   :  { %v6969_v53 = vpop.f32.mrf.mxu1 }
 0x9e5   :  { %v2199_v24 = vpack.c.bf16 %v6969_v53, %v6968_v28 }
 0x9e6   :  { %v2081_v14 = vpop.f32.mrf.mxu1 }
 0x9e7   :  { %v2198_v43 = vpack.c.bf16 %v2081_v14, %v2078_v49 }
 0x9e9   :  { %6992 = vmatprep.mubr.msk.bf16.mxu0 %vm1064_vm2, %v2198_v43 }
 0x9ea   :  { %6993 = vmatmul.mubr.msk.bf16.vlgmr.msra.gmra.mxu0 %vm1064_vm2, %v2199_v24 }
 0x9eb   :  { %7010 = vmatprep.mubr.msk.bf16.mxu0 %vm1064_vm2, %v1618_v56  ;;  %7009 = vmatpush3.bf16.msra.mxu0 %v7311_v25 }
 0x9f2   :  { %7011 = vmatmul.mubr.msk.bf16.vlgmr.msra.gmra.mxu0 %vm1064_vm2, %v10128_v22 }
 0x9f3   :  { %7014 = vmatprep.mubr.msk.bf16.mxu0 %vm1064_vm2, %v10129_v61 }
 0x9fa   :  { %7015 = vmatmul.mubr.msk.bf16.gmra.mxu0 %vm1064_vm2, %v10130_v17 }
 0x9fb   :  { %7018 = vmatprep.mubr.msk.bf16.mxu0 %vm1064_vm2, %v1622_v47 }
 0xa02   :  { %7019 = vmatmul.mubr.msk.bf16.gmra.mxu0 %vm1064_vm2, %v10131_v39 }
 0xa03   :  { %7022 = vmatprep.mubr.msk.bf16.mxu0 %vm1064_vm2, %v1624_v33 }
 0xa0a   :  { %7023 = vmatmul.mubr.msk.bf16.gmra.mxu0 %vm1064_vm2, %v10132_v52 }
 0xa1d   :  { %v6972_v18 = vpop.f32.mrf.mxu1 }
 0xa1f   :  { %v2094_v44 = vpop.f32.mrf.mxu1 }
 0xa21   :  { %v6973_v1 = vpop.f32.mrf.mxu1 }
 0xa22   :  { %v2201_v16 = vpack.c.bf16 %v6973_v1, %v6972_v18 }
 0xa23   :  { %v2097_v9 = vpop.f32.mrf.mxu1 }
 0xa24   :  { %v2200_v31 = vpack.c.bf16 %v2097_v9, %v2094_v44 }
 0xa26   :  { %6996 = vmatprep.mubr.msk.bf16.mxu1 %vm1064_vm2, %v2200_v31 }
 0xa27   :  { %6997 = vmatmul.mubr.msk.bf16.vlgmr.msra.gmra.mxu1 %vm1064_vm2, %v2201_v16 }
 0xa32   :  { %v6984_v60 = vpop.f32.mrf.mxu0 }
 0xa34   :  { %v2167_v19 = vpop.f32.mrf.mxu0 }
 0xa36   :  { %v6985_v35 = vpop.f32.mrf.mxu0 }
 0xa37   :  { %v2203_v36 = vpack.c.bf16 %v6985_v35, %v6984_v60 }
 0xa38   :  { %v2170_v0 = vpop.f32.mrf.mxu0 }
 0xa39   :  { %v2202_v57 = vpack.c.bf16 %v2170_v0, %v2167_v19 }
 0xa3a   :  { %v6988_v8 = vpop.f32.mrf.mxu0 }
 0xa3b   :  { %7000 = vmatprep.mubr.msk.bf16.mxu1 %vm1064_vm2, %v2202_v57 }
 0xa3c   :  { %v2183_v45 = vpop.f32.mrf.mxu0  ;;  %7001 = vmatmul.mubr.msk.bf16.gmra.mxu1 %vm1064_vm2, %v2203_v36 }
 0xa3e   :  { %v6989_v59 = vpop.f32.mrf.mxu0 }
 0xa3f   :  { %v2205_v34 = vpack.c.bf16 %v6989_v59, %v6988_v8 }
 0xa40   :  { %v2186_v55 = vpop.f32.mrf.mxu0 }
 0xa41   :  { %v2204_v46 = vpack.c.bf16 %v2186_v55, %v2183_v45 }
 0xa43   :  { %7004 = vmatprep.mubr.msk.bf16.mxu1 %vm1064_vm2, %v2204_v46 }
 0xa44   :  { %7005 = vmatmul.mubr.msk.bf16.gmra.mxu1 %vm1064_vm2, %v2205_v34 }
 0xaaa   :  { %v6994_v29 = vpop.f32.mrf.mxu0 }
 0xaac   :  { %v2270_v4 = vpop.f32.mrf.mxu0 }
 0xaae   :  { %v6995_v3 = vpop.f32.mrf.mxu0 }
 0xab0   :  { %v2273_v50 = vpop.f32.mrf.mxu0 }
 0xab2   :  { %v7012_v6 = vpop.f32.mrf.mxu0 }
 0xab3   :  { %v2406_v23 = vadd.f32 %v7012_v6, %v6994_v29 }
 0xab4   :  { %v2397_v2 = vpop.f32.mrf.mxu0 }
 0xab5   :  { %v2398_v12 = vadd.f32 %v2397_v2, %v2270_v4  ;;  %v2462_v32 = vadd.f32 %v2406_v23, %v8287_v42  ;;  %v10133_v23 = vld [vmem:[#allocation27_spill] sm:$0xff] }
 0xab6   :  { %v7013_v58 = vpop.f32.mrf.mxu0 }
 0xab7   :  { %v2460_v48 = vadd.f32 %v2398_v12, %v8274_v26  ;;  %v2409_v38 = vadd.f32 %v7013_v58, %v6995_v3  ;;  %v9172_v5 = vadd.f32 %v9166_v7, %v2462_v32  ;;  %v10134_v58 = vld [vmem:[#allocation26_spill] sm:$0xff] }
 0xab8   :  { %v2400_v20 = vpop.f32.mrf.mxu0 }
 0xab9   :  { %v9169_v15 = vadd.f32 %v9166_v7, %v2460_v48  ;;  %v2401_v25 = vadd.f32 %v2400_v20, %v2273_v50  ;;  %v2463_v11 = vadd.f32 %v2409_v38, %v8297_v30  ;;  %v2504_v10 = vsel %vm339_vm1, %v9172_v5, 0.0 }
 0xaba   :  { %v7016_v30 = vpop.f32.mrf.mxu0 }
 0xabb   :  { %v2461_v37 = vadd.f32 %v2401_v25, %v8284_v41  ;;  %v2498_v42 = vsel %vm339_vm1, %v9169_v15, 0.0  ;;  %v9182_v21 = vadd.f32 %v9166_v7, %v2463_v11 }
 0xabc   :  { %2499 = vadd.xlane.f32.xlu0 %v2498_v42  ;;  %v2413_v28 = vpop.f32.mrf.mxu0 }
 0xabd   :  { %v9179_v26 = vadd.f32 %v9166_v7, %v2461_v37  ;;  %v2507_v41 = vsel %vm339_vm1, %v9182_v21, 0.0 }
 0xabe   :  { %v7017_v49 = vpop.f32.mrf.mxu0 }
 0xabf   :  { %v2501_v63 = vsel %vm339_vm1, %v9179_v26, 0.0 }
 0xac0   :  { %2502 = vadd.xlane.f32.xlu1 %v2501_v63  ;;  %2505 = vadd.xlane.f32.xlu0 %v2504_v10  ;;  %v2416_v24 = vpop.f32.mrf.mxu0  ;;  %v10135_v63 = vld [vmem:[#allocation30_spill] sm:$0xff] }
 0xac2   :  { %v7020_v39 = vpop.f32.mrf.mxu0 }
 0xac4   :  { %2508 = vadd.xlane.f32.xlu0 %v2507_v41  ;;  %v10136_v41 = vld [vmem:[#allocation28_spill] sm:$0xff] }
 0xae7   :  { %v6998_v53 = vpop.f32.mrf.mxu1 }
 0xae8   :  { %v2422_v14 = vadd.f32 %v7016_v30, %v6998_v53 }
 0xae9   :  { %v2286_v43 = vpop.f32.mrf.mxu1 }
 0xaea   :  { %v2414_v56 = vadd.f32 %v2413_v28, %v2286_v43  ;;  %v2466_v61 = vadd.f32 %v2422_v14, %v8315_v13  ;;  %v2429_v13 = vpop.f32.mrf.mxu0 }
 0xaeb   :  { %v6999_v22 = vpop.f32.mrf.mxu1 }
 0xaec   :  { %v2464_v47 = vadd.f32 %v2414_v56, %v8301_v62  ;;  %v2425_v17 = vadd.f32 %v7017_v49, %v6999_v22  ;;  %v9196_v44 = vadd.f32 %v9166_v7, %v2466_v61  ;;  %v10137_v61 = vld [vmem:[#allocation31_spill] sm:$0xff] }
 0xaed   :  { %v2289_v33 = vpop.f32.mrf.mxu1 }
 0xaee   :  { %v9193_v52 = vadd.f32 %v9166_v7, %v2464_v47  ;;  %v2417_v18 = vadd.f32 %v2416_v24, %v2289_v33  ;;  %v2467_v1 = vadd.f32 %v2425_v17, %v8325_v51  ;;  %v2516_v19 = vsel %vm339_vm1, %v9196_v44, 0.0  ;;  %v10138_v17 = vld [vmem:[#allocation29_spill] sm:$0xff] }
 0xaf0   :  { %v2465_v9 = vadd.f32 %v2417_v18, %v8311_v40  ;;  %v2510_v31 = vsel %vm339_vm1, %v9193_v52, 0.0  ;;  %v9206_v16 = vadd.f32 %v9166_v7, %v2467_v1  ;;  %v7021_v40 = vpop.f32.mrf.mxu0 }
 0xaf1   :  { %2511 = vadd.xlane.f32.xlu0 %v2510_v31 }
 0xaf2   :  { %v9203_v62 = vadd.f32 %v9166_v7, %v2465_v9  ;;  %v2519_v51 = vsel %vm339_vm1, %v9206_v16, 0.0  ;;  %v2432_v35 = vpop.f32.mrf.mxu0 }
 0xaf4   :  { %v2513_v60 = vsel %vm339_vm1, %v9203_v62, 0.0  ;;  %v7024_v36 = vpop.f32.mrf.mxu0 }
 0xaf5   :  { %2514 = vadd.xlane.f32.xlu1 %v2513_v60  ;;  %2517 = vadd.xlane.f32.xlu0 %v2516_v19 }
 0xaf6   :  { %v2445_v29 = vpop.f32.mrf.mxu0 }
 0xaf9   :  { %2520 = vadd.xlane.f32.xlu1 %v2519_v51 }
 0xafc   :  { %v7002_v0 = vpop.f32.mrf.mxu1 }
 0xafd   :  { %v2438_v57 = vadd.f32 %v7020_v39, %v7002_v0 }
 0xafe   :  { %v2302_v8 = vpop.f32.mrf.mxu1 }
 0xaff   :  { %v2430_v45 = vadd.f32 %v2429_v13, %v2302_v8  ;;  %v2470_v59 = vadd.f32 %v2438_v57, %v8343_v54 }
 0xb00   :  { %v7003_v55 = vpop.f32.mrf.mxu1 }
 0xb01   :  { %v2468_v46 = vadd.f32 %v2430_v45, %v8329_v27  ;;  %v2441_v34 = vadd.f32 %v7021_v40, %v7003_v55  ;;  %v9220_v6 = vadd.f32 %v9166_v7, %v2470_v59  ;;  %v7025_v27 = vpop.f32.mrf.mxu0 }
 0xb02   :  { %v2305_v4 = vpop.f32.mrf.mxu1 }
 0xb03   :  { %v9217_v3 = vadd.f32 %v9166_v7, %v2468_v46  ;;  %v2433_v50 = vadd.f32 %v2432_v35, %v2305_v4  ;;  %v2471_v2 = vadd.f32 %v2441_v34, %v10133_v23  ;;  %v2528_v42 = vsel %vm339_vm1, %v9220_v6, 0.0  ;;  %v2448_v53 = vpop.f32.mrf.mxu0 }
 0xb04   :  { %v7006_v12 = vpop.f32.mrf.mxu1 }
 0xb05   :  { %v2469_v32 = vadd.f32 %v2433_v50, %v10134_v58  ;;  %v2454_v48 = vadd.f32 %v7024_v36, %v7006_v12  ;;  %v2522_v54 = vsel %vm339_vm1, %v9217_v3, 0.0  ;;  %v9230_v11 = vadd.f32 %v9166_v7, %v2471_v2  ;;  %v7312_v12 = vld [vmem:[%s7955_s12 + $0x8] sm:$0xff]   ;;  %v7313_v58 = vld [vmem:[%s7955_s12] sm:$0xff]   ;;  %s10147_s12 = sld [smem:[#allocation13_spill]] }
 0xb06   :  { %2523 = vadd.xlane.f32.xlu0 %v2522_v54  ;;  %v2318_v38 = vpop.f32.mrf.mxu1  ;;  %7026 = vmatprep.subr.bf16.mxu1 %v7312_v12 }
 0xb07   :  { %v9227_v20 = vadd.f32 %v9166_v7, %v2469_v32  ;;  %v2446_v25 = vadd.f32 %v2445_v29, %v2318_v38  ;;  %v2474_v10 = vadd.f32 %v2454_v48, %v10135_v63  ;;  %v2531_v56 = vsel %vm339_vm1, %v9230_v11, 0.0  ;;  %7027 = vmatpush3.bf16.msra.mxu1 %v7312_v12 }
 0xb08   :  { %v7007_v37 = vpop.f32.mrf.mxu1  ;;  %7028 = vmatprep.subr.bf16.mxu1 %v7313_v58 }
 0xb09   :  { %v2472_v30 = vadd.f32 %v2446_v25, %v10136_v41  ;;  %v2457_v28 = vadd.f32 %v7025_v27, %v7007_v37  ;;  %v2525_v49 = vsel %vm339_vm1, %v9227_v20, 0.0  ;;  %v9244_v22 = vadd.f32 %v9166_v7, %v2474_v10 }
 0xb0a   :  { %2526 = vadd.xlane.f32.xlu1 %v2525_v49  ;;  %2529 = vadd.xlane.f32.xlu0 %v2528_v42  ;;  %v2321_v14 = vpop.f32.mrf.mxu1 }
 0xb0b   :  { %v9239_v43 = vadd.f32 %v9166_v7, %v2472_v30  ;;  %v2449_v24 = vadd.f32 %v2448_v53, %v2321_v14  ;;  %v2475_v47 = vadd.f32 %v2457_v28, %v10137_v61  ;;  %v2540_v9 = vsel %vm339_vm1, %v9244_v22, 0.0  ;;  %7029 = vmatpush3.bf16.msra.mxu1 %v7313_v58 }
 0xb0d   :  { %v2473_v33 = vadd.f32 %v2449_v24, %v10138_v17  ;;  %v2534_v39 = vsel %vm339_vm1, %v9239_v43, 0.0  ;;  %v9254_v1 = vadd.f32 %v9166_v7, %v2475_v47 }
 0xb0e   :  { %2532 = vadd.xlane.f32.xlu1 %v2531_v56  ;;  %2535 = vadd.xlane.f32.xlu0 %v2534_v39 }
 0xb0f   :  { %v9251_v18 = vadd.f32 %v9166_v7, %v2473_v33  ;;  %v2543_v13 = vsel %vm339_vm1, %v9254_v1, 0.0 }
 0xb11   :  { %v2537_v31 = vsel %vm339_vm1, %v9251_v18, 0.0 }
 0xb12   :  { %2541 = vadd.xlane.f32.xlu0 %v2540_v9  ;;  %2538 = vadd.xlane.f32.xlu1 %v2537_v31 }
 0xb16   :  { %2544 = vadd.xlane.f32.xlu1 %v2543_v13 }
 0xb45   :  { %v2500_v60 = vpop.xlane.xlu0 %2499 }
 0xb46   :  { %v2546_v19 = vmul.f32 0.03125, %v2500_v60 }
 0xb48   :  { %v9263_v40 = vsub.f32 %v9169_v15, %v2546_v19 }
 0xb49   :  { %v2503_v51 = vpop.xlane.xlu1 %2502  ;;  %v2506_v7 = vpop.xlane.xlu0 %2505 }
 0xb4a   :  { %v2547_v35 = vmul.f32 0.03125, %v2503_v51  ;;  %v2548_v0 = vmul.f32 0.03125, %v2506_v7  ;;  %v2578_v57 = vmul.f32 %v9263_v40, %v9263_v40 }
 0xb4c   :  { %v9268_v36 = vsub.f32 %v9179_v26, %v2547_v35  ;;  %v9271_v8 = vsub.f32 %v9172_v5, %v2548_v0  ;;  %v2594_v45 = vsel %vm339_vm1, %v2578_v57, 0.0 }
 0xb4d   :  { %v2509_v59 = vpop.xlane.xlu0 %2508  ;;  %2595 = vadd.xlane.f32.xlu0 %v2594_v45 }
 0xb4e   :  { %v2549_v55 = vmul.f32 0.03125, %v2509_v59  ;;  %v2580_v46 = vmul.f32 %v9271_v8, %v9271_v8  ;;  %v2579_v34 = vmul.f32 %v9268_v36, %v9268_v36 }
 0xb50   :  { %v9279_v29 = vsub.f32 %v9182_v21, %v2549_v55  ;;  %v2600_v4 = vsel %vm339_vm1, %v2580_v46, 0.0  ;;  %v2597_v50 = vsel %vm339_vm1, %v2579_v34, 0.0 }
 0xb51   :  { %2601 = vadd.xlane.f32.xlu0 %v2600_v4  ;;  %2598 = vadd.xlane.f32.xlu1 %v2597_v50 }
 0xb52   :  { %v2581_v23 = vmul.f32 %v9279_v29, %v9279_v29 }
 0xb54   :  { %v2603_v2 = vsel %vm339_vm1, %v2581_v23, 0.0 }
 0xb55   :  { %2604 = vadd.xlane.f32.xlu1 %v2603_v2 }
 0xb7a   :  { %v2512_v32 = vpop.xlane.xlu0 %2511 }
 0xb7b   :  { %v2550_v48 = vmul.f32 0.03125, %v2512_v32 }
 0xb7d   :  { %v9289_v54 = vsub.f32 %v9193_v52, %v2550_v48 }
 0xb7e   :  { %v2515_v27 = vpop.xlane.xlu1 %2514  ;;  %v2518_v38 = vpop.xlane.xlu0 %2517 }
 0xb7f   :  { %v2551_v25 = vmul.f32 0.03125, %v2515_v27  ;;  %v2552_v37 = vmul.f32 0.03125, %v2518_v38  ;;  %v2582_v42 = vmul.f32 %v9289_v54, %v9289_v54 }
 0xb81   :  { %v9294_v63 = vsub.f32 %v9203_v62, %v2551_v25  ;;  %v9297_v10 = vsub.f32 %v9196_v44, %v2552_v37  ;;  %v2606_v41 = vsel %vm339_vm1, %v2582_v42, 0.0 }
 0xb82   :  { %v2521_v30 = vpop.xlane.xlu1 %2520  ;;  %2607 = vadd.xlane.f32.xlu0 %v2606_v41 }
 0xb83   :  { %v2553_v28 = vmul.f32 0.03125, %v2521_v30  ;;  %v2584_v49 = vmul.f32 %v9297_v10, %v9297_v10  ;;  %v2583_v53 = vmul.f32 %v9294_v63, %v9294_v63 }
 0xb85   :  { %v9305_v14 = vsub.f32 %v9206_v16, %v2553_v28  ;;  %v2612_v24 = vsel %vm339_vm1, %v2584_v49, 0.0  ;;  %v2609_v56 = vsel %vm339_vm1, %v2583_v53, 0.0 }
 0xb86   :  { %2613 = vadd.xlane.f32.xlu0 %v2612_v24  ;;  %2610 = vadd.xlane.f32.xlu1 %v2609_v56 }
 0xb87   :  { %v2585_v61 = vmul.f32 %v9305_v14, %v9305_v14 }
 0xb89   :  { %v2615_v47 = vsel %vm339_vm1, %v2585_v61, 0.0 }
 0xb8a   :  { %2616 = vadd.xlane.f32.xlu1 %v2615_v47 }
 0xb8f   :  { %v2524_v17 = vpop.xlane.xlu0 %2523 }
 0xb90   :  { %v2554_v33 = vmul.f32 0.03125, %v2524_v17 }
 0xb92   :  { %v9313_v39 = vsub.f32 %v9217_v3, %v2554_v33 }
 0xb93   :  { %v2527_v9 = vpop.xlane.xlu1 %2526  ;;  %v2530_v31 = vpop.xlane.xlu0 %2529 }
 0xb94   :  { %v2555_v13 = vmul.f32 0.03125, %v2527_v9  ;;  %v2556_v60 = vmul.f32 0.03125, %v2530_v31  ;;  %v2586_v19 = vmul.f32 %v9313_v39, %v9313_v39 }
 0xb96   :  { %v9318_v51 = vsub.f32 %v9227_v20, %v2555_v13  ;;  %v9321_v7 = vsub.f32 %v9220_v6, %v2556_v60  ;;  %v2618_v35 = vsel %vm339_vm1, %v2586_v19, 0.0 }
 0xb97   :  { %v2533_v0 = vpop.xlane.xlu1 %2532  ;;  %2619 = vadd.xlane.f32.xlu0 %v2618_v35  ;;  %v2536_v57 = vpop.xlane.xlu0 %2535 }
 0xb98   :  { %v2557_v45 = vmul.f32 0.03125, %v2533_v0  ;;  %v2558_v59 = vmul.f32 0.03125, %v2536_v57  ;;  %v2588_v55 = vmul.f32 %v9321_v7, %v9321_v7  ;;  %v2587_v46 = vmul.f32 %v9318_v51, %v9318_v51 }
 0xb9a   :  { %v9329_v34 = vsub.f32 %v9230_v11, %v2557_v45  ;;  %v9332_v4 = vsub.f32 %v9239_v43, %v2558_v59  ;;  %v2624_v50 = vsel %vm339_vm1, %v2588_v55, 0.0  ;;  %v2621_v23 = vsel %vm339_vm1, %v2587_v46, 0.0 }
 0xb9b   :  { %2625 = vadd.xlane.f32.xlu0 %v2624_v50  ;;  %v2542_v2 = vpop.xlane.xlu0 %2541  ;;  %2622 = vadd.xlane.f32.xlu1 %v2621_v23  ;;  %v2539_v12 = vpop.xlane.xlu1 %2538  ;;  %v9362_v50 = vld [vmem:[%s7945_s30] ss:$0 sm:$0xff]  ;;  %s10146_s30 = sld [smem:[#allocation15_spill]] }
 0xb9c   :  { %v2560_v58 = vmul.f32 0.03125, %v2542_v2  ;;  %v2559_v32 = vmul.f32 0.03125, %v2539_v12  ;;  %v2590_v48 = vmul.f32 %v9332_v4, %v9332_v4  ;;  %v2589_v27 = vmul.f32 %v9329_v34, %v9329_v34 }
 0xb9e   :  { %v9341_v38 = vsub.f32 %v9244_v22, %v2560_v58  ;;  %v9344_v25 = vsub.f32 %v9251_v18, %v2559_v32  ;;  %v2630_v37 = vsel %vm339_vm1, %v2590_v48, 0.0  ;;  %v2627_v42 = vsel %vm339_vm1, %v2589_v27, 0.0  ;;  %v9368_v48 = vld [vmem:[%s10139_s21] ss:$0 sm:$0xff] }
 0xb9f   :  { %2631 = vadd.xlane.f32.xlu0 %v2630_v37  ;;  %2628 = vadd.xlane.f32.xlu1 %v2627_v42  ;;  %v2545_v41 = vpop.xlane.xlu1 %2544 }
 0xba0   :  { %v2561_v30 = vmul.f32 0.03125, %v2545_v41  ;;  %v2592_v28 = vmul.f32 %v9341_v38, %v9341_v38  ;;  %v2591_v49 = vmul.f32 %v9344_v25, %v9344_v25 }
 0xba2   :  { %v9353_v53 = vsub.f32 %v9254_v1, %v2561_v30  ;;  %v2636_v24 = vsel %vm339_vm1, %v2592_v28, 0.0  ;;  %v2633_v56 = vsel %vm339_vm1, %v2591_v49, 0.0 }
 0xba3   :  { %2637 = vadd.xlane.f32.xlu0 %v2636_v24  ;;  %2634 = vadd.xlane.f32.xlu1 %v2633_v56 }
 0xba4   :  { %v2593_v61 = vmul.f32 %v9353_v53, %v9353_v53 }
 0xba6   :  { %v2639_v47 = vsel %vm339_vm1, %v2593_v61, 0.0 }
 0xba7   :  { %2640 = vadd.xlane.f32.xlu1 %v2639_v47 }
 0xbd6   :  { %v2596_v17 = vpop.xlane.xlu0 %2595 }
 0xbd7   :  { %v2642_v33 = vmul.f32 0.03125, %v2596_v17 }
 0xbd9   :  { %v2658_v9 = vadd.f32 1e-05, %v2642_v33 }
 0xbda   :  { %v2602_v31 = vpop.xlane.xlu0 %2601  ;;  %v2599_v13 = vpop.xlane.xlu1 %2598 }
 0xbdb   :  { %7630 = vrsqrt.f32 %v2658_v9  ;;  %v2644_v60 = vmul.f32 0.03125, %v2602_v31  ;;  %v2643_v19 = vmul.f32 0.03125, %v2599_v13 }
 0xbdd   :  { %v2660_v35 = vadd.f32 1e-05, %v2644_v60  ;;  %v2659_v0 = vadd.f32 1e-05, %v2643_v19 }
 0xbde   :  { %v2605_v57 = vpop.xlane.xlu1 %2604 }
 0xbdf   :  { %7632 = vrsqrt.f32 %v2660_v35  ;;  %v2645_v45 = vmul.f32 0.03125, %v2605_v57 }
 0xbe0   :  { %7634 = vrsqrt.f32 %v2659_v0 }
 0xbe1   :  { %v2661_v59 = vadd.f32 1e-05, %v2645_v45 }
 0xbe3   :  { %7636 = vrsqrt.f32 %v2661_v59 }
 0xbe8   :  { %v7631_v55 = vpop.eup %7630 }
 0xbe9   :  { %v2690_v46 = vmul.f32 %v7631_v55, %v9263_v40 }
 0xbeb   :  { %v2712_v32 = vmul.f32 %v9362_v50, %v2690_v46 }
 0xbec   :  { %v7633_v23 = vpop.eup %7632 }
 0xbed   :  { %v7635_v2 = vpop.eup %7634  ;;  %v2692_v12 = vmul.f32 %v7633_v23, %v9271_v8  ;;  %v2734_v40 = vadd.f32 %v9368_v48, %v2712_v32 }
 0xbee   :  { %v2691_v58 = vmul.f32 %v7635_v2, %v9268_v36 }
 0xbef   :  { %v2714_v42 = vmul.f32 %v9362_v50, %v2692_v12 }
 0xbf0   :  { %v7637_v27 = vpop.eup %7636  ;;  %v2713_v37 = vmul.f32 %v9362_v50, %v2691_v58 }
 0xbf1   :  { %v2693_v41 = vmul.f32 %v7637_v27, %v9279_v29  ;;  %v2736_v36 = vadd.f32 %v9368_v48, %v2714_v42 }
 0xbf2   :  { %v2735_v30 = vadd.f32 %v9368_v48, %v2713_v37 }
 0xbf3   :  { %v2715_v28 = vmul.f32 %v9362_v50, %v2693_v41 }
 0xbf4   :  { %v2750_v8 = vpack.c.bf16 %v2735_v30, %v2734_v40 }
 0xbf5   :  { %v2737_v49 = vadd.f32 %v9368_v48, %v2715_v28 }
 0xbf6   :  { %7030 = vmatprep.mubr.msk.bf16.mxu1 %vm339_vm1, %v2750_v8 }
 0xbf7   :  { %v2751_v24 = vpack.c.bf16 %v2737_v49, %v2736_v36 }
 0xbf9   :  { %7031 = vmatmul.mubr.msk.bf16.vlgmr.msra.gmra.mxu1 %vm339_vm1, %v2751_v24 }
 0xc0b   :  { %v2608_v56 = vpop.xlane.xlu0 %2607 }
 0xc0c   :  { %v2646_v61 = vmul.f32 0.03125, %v2608_v56 }
 0xc0e   :  { %v2662_v47 = vadd.f32 1e-05, %v2646_v61 }
 0xc0f   :  { %v2614_v29 = vpop.xlane.xlu0 %2613  ;;  %v2611_v17 = vpop.xlane.xlu1 %2610 }
 0xc10   :  { %7638 = vrsqrt.f32 %v2662_v47  ;;  %v2648_v33 = vmul.f32 0.03125, %v2614_v29  ;;  %v2647_v9 = vmul.f32 0.03125, %v2611_v17 }
 0xc12   :  { %v2664_v31 = vadd.f32 1e-05, %v2648_v33  ;;  %v2663_v13 = vadd.f32 1e-05, %v2647_v9 }
 0xc13   :  { %v2617_v60 = vpop.xlane.xlu1 %2616 }
 0xc14   :  { %7640 = vrsqrt.f32 %v2664_v31  ;;  %v2649_v19 = vmul.f32 0.03125, %v2617_v60 }
 0xc15   :  { %7642 = vrsqrt.f32 %v2663_v13 }
 0xc16   :  { %v2665_v35 = vadd.f32 1e-05, %v2649_v19 }
 0xc18   :  { %7644 = vrsqrt.f32 %v2665_v35 }
 0xc1d   :  { %v7639_v0 = vpop.eup %7638 }
 0xc1e   :  { %v2694_v57 = vmul.f32 %v7639_v0, %v9289_v54 }
 0xc20   :  { %v2620_v45 = vpop.xlane.xlu0 %2619  ;;  %v2716_v58 = vmul.f32 %v9362_v50, %v2694_v57 }
 0xc21   :  { %v7641_v59 = vpop.eup %7640  ;;  %v2650_v55 = vmul.f32 0.03125, %v2620_v45 }
 0xc22   :  { %v7643_v46 = vpop.eup %7642  ;;  %v2696_v23 = vmul.f32 %v7641_v59, %v9297_v10  ;;  %v2738_v10 = vadd.f32 %v9368_v48, %v2716_v58 }
 0xc23   :  { %v2666_v2 = vadd.f32 1e-05, %v2650_v55  ;;  %v2695_v12 = vmul.f32 %v7643_v46, %v9294_v63 }
 0xc24   :  { %v2626_v32 = vpop.xlane.xlu0 %2625  ;;  %v2623_v27 = vpop.xlane.xlu1 %2622  ;;  %v2718_v30 = vmul.f32 %v9362_v50, %v2696_v23 }
 0xc25   :  { %v7645_v37 = vpop.eup %7644  ;;  %7646 = vrsqrt.f32 %v2666_v2  ;;  %v2652_v42 = vmul.f32 0.03125, %v2626_v32  ;;  %v2651_v41 = vmul.f32 0.03125, %v2623_v27  ;;  %v2717_v40 = vmul.f32 %v9362_v50, %v2695_v12 }
 0xc26   :  { %v2697_v54 = vmul.f32 %v7645_v37, %v9305_v14  ;;  %v2740_v29 = vadd.f32 %v9368_v48, %v2718_v30 }
 0xc27   :  { %v2668_v28 = vadd.f32 1e-05, %v2652_v42  ;;  %v2667_v8 = vadd.f32 1e-05, %v2651_v41  ;;  %v2739_v63 = vadd.f32 %v9368_v48, %v2717_v40 }
 0xc28   :  { %v2632_v36 = vpop.xlane.xlu0 %2631  ;;  %v2629_v49 = vpop.xlane.xlu1 %2628  ;;  %v2719_v24 = vmul.f32 %v9362_v50, %v2697_v54 }
 0xc29   :  { %7648 = vrsqrt.f32 %v2668_v28  ;;  %v2654_v56 = vmul.f32 0.03125, %v2632_v36  ;;  %v2653_v61 = vmul.f32 0.03125, %v2629_v49  ;;  %v2752_v47 = vpack.c.bf16 %v2739_v63, %v2738_v10 }
 0xc2a   :  { %7650 = vrsqrt.f32 %v2667_v8  ;;  %v2741_v14 = vadd.f32 %v9368_v48, %v2719_v24  ;;  %v7314_v24 = vld [vmem:[%s10140_s25 + $0x38] sm:$0xff]  }
 0xc2b   :  { %v2670_v17 = vadd.f32 1e-05, %v2654_v56  ;;  %v2669_v33 = vadd.f32 1e-05, %v2653_v61  ;;  %7034 = vmatprep.mubr.msk.bf16.mxu1 %vm339_vm1, %v2752_v47  ;;  %7046 = vmatprep.subr.bf16.mxu0 %v7314_v24 }
 0xc2c   :  { %v2638_v9 = vpop.xlane.xlu0 %2637  ;;  %v2635_v31 = vpop.xlane.xlu1 %2634  ;;  %v2753_v13 = vpack.c.bf16 %v2741_v14, %v2740_v29  ;;  %7047 = vmatpush3.bf16.msra.mxu0 %v7314_v24  ;;  %v7315_v14 = vld [vmem:[%s10140_s25 + $0x30] sm:$0xff]  }
 0xc2d   :  { %7652 = vrsqrt.f32 %v2670_v17  ;;  %v2656_v60 = vmul.f32 0.03125, %v2638_v9  ;;  %v2655_v19 = vmul.f32 0.03125, %v2635_v31  ;;  %7048 = vmatprep.subr.bf16.mxu0 %v7315_v14  ;;  %v7316_v31 = vld [vmem:[%s10140_s25 + $0x28] sm:$0xff]  }
 0xc2e   :  { %7654 = vrsqrt.f32 %v2669_v33  ;;  %7035 = vmatmul.mubr.msk.bf16.gmra.mxu1 %vm339_vm1, %v2753_v13 }
 0xc2f   :  { %v2672_v35 = vadd.f32 1e-05, %v2656_v60  ;;  %v2671_v0 = vadd.f32 1e-05, %v2655_v19  ;;  %v7317_v60 = vld [vmem:[%s10140_s25 + $0x20] sm:$0xff]   ;;  %v7319_v19 = vld [vmem:[%s10140_s25 + $0x10] sm:$0xff]  }
 0xc30   :  { %v2641_v57 = vpop.xlane.xlu1 %2640  ;;  %7049 = vmatpush3.bf16.msra.mxu0 %v7315_v14 }
 0xc31   :  { %7656 = vrsqrt.f32 %v2672_v35  ;;  %v2657_v45 = vmul.f32 0.03125, %v2641_v57  ;;  %7050 = vmatprep.subr.bf16.mxu0 %v7316_v31  ;;  %v7321_v35 = vld [vmem:[%s10140_s25] sm:$0xff]  }
 0xc32   :  { %v7647_v59 = vpop.eup %7646  ;;  %7658 = vrsqrt.f32 %v2671_v0  ;;  %v9431_v0 = vld [vmem:[%s10141_s29] ss:$0 sm:$0xff] }
 0xc33   :  { %v2673_v55 = vadd.f32 1e-05, %v2657_v45  ;;  %v2698_v46 = vmul.f32 %v7647_v59, %v9313_v39 }
 0xc34   :  { %7051 = vmatpush3.bf16.msra.mxu0 %v7316_v31 }
 0xc35   :  { %7660 = vrsqrt.f32 %v2673_v55  ;;  %v2720_v12 = vmul.f32 %v9362_v50, %v2698_v46  ;;  %7052 = vmatprep.subr.bf16.mxu0 %v7317_v60 }
 0xc36   :  { %v7649_v23 = vpop.eup %7648 }
 0xc37   :  { %v7651_v2 = vpop.eup %7650  ;;  %v2700_v32 = vmul.f32 %v7649_v23, %v9321_v7  ;;  %v2742_v41 = vadd.f32 %v9368_v48, %v2720_v12 }
 0xc38   :  { %v2699_v58 = vmul.f32 %v7651_v2, %v9318_v51  ;;  %7053 = vmatpush3.bf16.msra.mxu0 %v7317_v60 }
 0xc39   :  { %v2722_v54 = vmul.f32 %v9362_v50, %v2700_v32 }
 0xc3a   :  { %v7653_v27 = vpop.eup %7652  ;;  %v2721_v37 = vmul.f32 %v9362_v50, %v2699_v58 }
 0xc3b   :  { %v7655_v42 = vpop.eup %7654  ;;  %v2702_v30 = vmul.f32 %v7653_v27, %v9332_v4  ;;  %v2744_v63 = vadd.f32 %v9368_v48, %v2722_v54 }
 0xc3c   :  { %v2743_v40 = vadd.f32 %v9368_v48, %v2721_v37  ;;  %v2701_v39 = vmul.f32 %v7655_v42, %v9329_v34 }
 0xc3d   :  { %v2724_v49 = vmul.f32 %v9362_v50, %v2702_v30 }
 0xc3e   :  { %v7657_v28 = vpop.eup %7656  ;;  %v2754_v8 = vpack.c.bf16 %v2743_v40, %v2742_v41  ;;  %v2723_v51 = vmul.f32 %v9362_v50, %v2701_v39 }
 0xc3f   :  { %v7659_v7 = vpop.eup %7658  ;;  %v2704_v10 = vmul.f32 %v7657_v28, %v9341_v38  ;;  %v2746_v29 = vadd.f32 %v9368_v48, %v2724_v49 }
 0xc40   :  { %7038 = vmatprep.mubr.msk.bf16.mxu1 %vm339_vm1, %v2754_v8  ;;  %v2745_v36 = vadd.f32 %v9368_v48, %v2723_v51  ;;  %v2703_v34 = vmul.f32 %v7659_v7, %v9344_v25 }
 0xc41   :  { %v2726_v47 = vmul.f32 %v9362_v50, %v2704_v10 }
 0xc42   :  { %v7661_v4 = vpop.eup %7660  ;;  %v2755_v56 = vpack.c.bf16 %v2745_v36, %v2744_v63  ;;  %v2725_v61 = vmul.f32 %v9362_v50, %v2703_v34 }
 0xc43   :  { %v2705_v38 = vmul.f32 %v7661_v4, %v9353_v53  ;;  %v2748_v9 = vadd.f32 %v9368_v48, %v2726_v47 }
 0xc44   :  { %7039 = vmatmul.mubr.msk.bf16.gmra.mxu1 %vm339_vm1, %v2755_v56  ;;  %v2747_v25 = vadd.f32 %v9368_v48, %v2725_v61 }
 0xc45   :  { %v2727_v17 = vmul.f32 %v9362_v50, %v2705_v38  ;;  %v7318_v50 = vld [vmem:[%s10140_s25 + $0x18] sm:$0xff]  }
 0xc46   :  { %v2756_v33 = vpack.c.bf16 %v2747_v25, %v2746_v29  ;;  %7054 = vmatprep.subr.bf16.mxu0 %v7318_v50 }
 0xc47   :  { %v2749_v53 = vadd.f32 %v9368_v48, %v2727_v17  ;;  %7055 = vmatpush3.bf16.msra.mxu0 %v7318_v50  ;;  %v7320_v48 = vld [vmem:[%s10140_s25 + $0x8] sm:$0xff]  }
 0xc48   :  { %7042 = vmatprep.mubr.msk.bf16.mxu1 %vm339_vm1, %v2756_v33  ;;  %7056 = vmatprep.subr.bf16.mxu0 %v7319_v19 }
 0xc49   :  { %v2757_v13 = vpack.c.bf16 %v2749_v53, %v2748_v9 }
 0xc4b   :  { %7057 = vmatpush3.bf16.msra.mxu0 %v7319_v19 }
 0xc4c   :  { %7043 = vmatmul.mubr.msk.bf16.gmra.mxu1 %vm339_vm1, %v2757_v13  ;;  %7058 = vmatprep.subr.bf16.mxu0 %v7320_v48 }
 0xc4f   :  { %7059 = vmatpush3.bf16.msra.mxu0 %v7320_v48 }
 0xc50   :  { %7060 = vmatprep.subr.bf16.mxu0 %v7321_v35 }
 0xc53   :  { %7061 = vmatpush3.bf16.msra.mxu0 %v7321_v35 }
 0xcb9   :  { %v7032_v57 = vpop.f32.mrf.mxu1 }
 0xcba   :  { %v2843_v45 = vadd.f32 %v7032_v57, %v9431_v0 }
 0xcbb   :  { %v2834_v59 = vpop.f32.mrf.mxu1 }
 0xcbc   :  { %v2915_v55 = vmul.f32 0.044715, %v2843_v45  ;;  %v2835_v46 = vadd.f32 %v9431_v0, %v2834_v59  ;;  %v2899_v53 = vmul.f32 0.5, %v2843_v45 }
 0xcbd   :  { %v7033_v23 = vpop.f32.mrf.mxu1 }
 0xcbe   :  { %v2931_v2 = vmul.f32 %v2915_v55, %v2843_v45  ;;  %v2913_v12 = vmul.f32 0.044715, %v2835_v46  ;;  %v2846_v58 = vadd.f32 %v7033_v23, %v9431_v0  ;;  %v2897_v17 = vmul.f32 0.5, %v2835_v46 }
 0xcbf   :  { %v2837_v32 = vpop.f32.mrf.mxu1 }
 0xcc0   :  { %v2947_v27 = vmul.f32 %v2931_v2, %v2843_v45  ;;  %v2929_v37 = vmul.f32 %v2913_v12, %v2835_v46  ;;  %v2916_v42 = vmul.f32 0.044715, %v2846_v58  ;;  %v2838_v41 = vadd.f32 %v9431_v0, %v2837_v32 }
 0xcc1   :  { %v2900_v25 = vmul.f32 0.5, %v2846_v58 }
 0xcc2   :  { %v2963_v40 = vadd.f32 %v2947_v27, %v2843_v45  ;;  %v2945_v39 = vmul.f32 %v2929_v37, %v2835_v46  ;;  %v2932_v54 = vmul.f32 %v2916_v42, %v2846_v58  ;;  %v2914_v30 = vmul.f32 0.044715, %v2838_v41 }
 0xcc3   :  { %v2898_v33 = vmul.f32 0.5, %v2838_v41 }
 0xcc4   :  { %v2979_v28 = vmul.f32 0.7978846, %v2963_v40  ;;  %v2948_v8 = vmul.f32 %v2932_v54, %v2846_v58  ;;  %v2961_v51 = vadd.f32 %v2945_v39, %v2835_v46  ;;  %v2930_v7 = vmul.f32 %v2914_v30, %v2838_v41 }
 0xcc6   :  { %v2964_v10 = vadd.f32 %v2948_v8, %v2846_v58  ;;  %v2977_v63 = vmul.f32 0.7978846, %v2961_v51  ;;  %v2946_v36 = vmul.f32 %v2930_v7, %v2838_v41  ;;  %7662 = vtanh.f32 %v2979_v28 }
 0xcc8   :  { %v2980_v34 = vmul.f32 0.7978846, %v2964_v10  ;;  %v2962_v49 = vadd.f32 %v2946_v36, %v2838_v41  ;;  %7664 = vtanh.f32 %v2977_v63 }
 0xcca   :  { %7666 = vtanh.f32 %v2980_v34  ;;  %v2978_v24 = vmul.f32 0.7978846, %v2962_v49 }
 0xccc   :  { %7668 = vtanh.f32 %v2978_v24 }
 0xcd3   :  { %v7663_v4 = vpop.eup %7662 }
 0xcd4   :  { %v3011_v14 = vadd.f32 1.0, %v7663_v4 }
 0xcd5   :  { %v7665_v56 = vpop.eup %7664 }
 0xcd6   :  { %v3009_v47 = vadd.f32 1.0, %v7665_v56  ;;  %v3027_v50 = vmul.f32 %v3011_v14, %v2899_v53 }
 0xcd7   :  { %v7667_v61 = vpop.eup %7666 }
 0xcd8   :  { %v3012_v38 = vadd.f32 1.0, %v7667_v61  ;;  %v3025_v13 = vmul.f32 %v3009_v47, %v2897_v17 }
 0xcd9   :  { %v7669_v29 = vpop.eup %7668 }
 0xcda   :  { %v3010_v9 = vadd.f32 1.0, %v7669_v29  ;;  %v3028_v31 = vmul.f32 %v3012_v38, %v2900_v25 }
 0xcdc   :  { %v3026_v60 = vmul.f32 %v3010_v9, %v2898_v33  ;;  %v3042_v48 = vpack.c.bf16 %v3028_v31, %v3027_v50 }
 0xcde   :  { %v3041_v19 = vpack.c.bf16 %v3026_v60, %v3025_v13 }
 0xce0   :  { %7062 = vmatprep.mubr.bf16.mxu0 %v3041_v19 }
 0xce1   :  { %7063 = vmatmul.mubr.bf16.vlgmr.msra.gmra.mxu0 %v3042_v48 }
 0xcee   :  { %v7036_v35 = vpop.f32.mrf.mxu1 }
 0xcef   :  { %v2859_v57 = vadd.f32 %v7036_v35, %v9431_v0 }
 0xcf0   :  { %v2850_v59 = vpop.f32.mrf.mxu1 }
 0xcf1   :  { %v2919_v55 = vmul.f32 0.044715, %v2859_v57  ;;  %v2851_v23 = vadd.f32 %v9431_v0, %v2850_v59  ;;  %v2903_v53 = vmul.f32 0.5, %v2859_v57 }
 0xcf2   :  { %v7037_v2 = vpop.f32.mrf.mxu1 }
 0xcf3   :  { %v2935_v46 = vmul.f32 %v2919_v55, %v2859_v57  ;;  %v2917_v12 = vmul.f32 0.044715, %v2851_v23  ;;  %v2862_v45 = vadd.f32 %v7037_v2, %v9431_v0  ;;  %v2901_v59 = vmul.f32 0.5, %v2851_v23 }
 0xcf4   :  { %v2853_v58 = vpop.f32.mrf.mxu1 }
 0xcf5   :  { %v2951_v32 = vmul.f32 %v2935_v46, %v2859_v57  ;;  %v2933_v27 = vmul.f32 %v2917_v12, %v2851_v23  ;;  %v2920_v37 = vmul.f32 0.044715, %v2862_v45  ;;  %v2854_v42 = vadd.f32 %v9431_v0, %v2853_v58 }
 0xcf6   :  { %v2904_v46 = vmul.f32 0.5, %v2862_v45 }
 0xcf7   :  { %v2949_v41 = vmul.f32 %v2933_v27, %v2851_v23  ;;  %v2936_v40 = vmul.f32 %v2920_v37, %v2862_v45  ;;  %v2918_v39 = vmul.f32 0.044715, %v2854_v42  ;;  %v2967_v54 = vadd.f32 %v2951_v32, %v2859_v57 }
 0xcf8   :  { %v2902_v55 = vmul.f32 0.5, %v2854_v42 }
 0xcf9   :  { %v2952_v30 = vmul.f32 %v2936_v40, %v2862_v45  ;;  %v2934_v28 = vmul.f32 %v2918_v39, %v2854_v42  ;;  %v2965_v8 = vadd.f32 %v2949_v41, %v2851_v23  ;;  %v2983_v51 = vmul.f32 0.7978846, %v2967_v54 }
 0xcfb   :  { %v2950_v7 = vmul.f32 %v2934_v28, %v2854_v42  ;;  %v2981_v10 = vmul.f32 0.7978846, %v2965_v8  ;;  %v2968_v63 = vadd.f32 %v2952_v30, %v2862_v45  ;;  %7670 = vtanh.f32 %v2983_v51 }
 0xcfd   :  { %v2966_v36 = vadd.f32 %v2950_v7, %v2854_v42  ;;  %7672 = vtanh.f32 %v2981_v10  ;;  %v2984_v34 = vmul.f32 0.7978846, %v2968_v63 }
 0xcff   :  { %v2982_v49 = vmul.f32 0.7978846, %v2966_v36  ;;  %7674 = vtanh.f32 %v2984_v34 }
 0xd01   :  { %7676 = vtanh.f32 %v2982_v49 }
 0xd04   :  { %v7040_v24 = vpop.f32.mrf.mxu1 }
 0xd05   :  { %v9442_v4 = vadd.f32 %v7040_v24, %v9431_v0 }
 0xd06   :  { %v2866_v56 = vpop.f32.mrf.mxu1 }
 0xd07   :  { %v2923_v61 = vmul.f32 0.044715, %v9442_v4  ;;  %v9446_v38 = vadd.f32 %v9431_v0, %v2866_v56 }
 0xd08   :  { %v7041_v47 = vpop.f32.mrf.mxu1  ;;  %v7671_v29 = vpop.eup %7670 }
 0xd09   :  { %v2939_v25 = vmul.f32 %v2923_v61, %v9442_v4  ;;  %v2921_v14 = vmul.f32 0.044715, %v9446_v38  ;;  %v9451_v17 = vadd.f32 %v7041_v47, %v9431_v0  ;;  %v3015_v31 = vadd.f32 1.0, %v7671_v29 }
 0xd0a   :  { %v7673_v33 = vpop.eup %7672  ;;  %v2869_v9 = vpop.f32.mrf.mxu1 }
 0xd0b   :  { %v2955_v13 = vmul.f32 %v2939_v25, %v9442_v4  ;;  %v2937_v60 = vmul.f32 %v2921_v14, %v9446_v38  ;;  %v2924_v50 = vmul.f32 0.044715, %v9451_v17  ;;  %v9457_v19 = vadd.f32 %v9431_v0, %v2869_v9 }
 0xd0c   :  { %v7675_v48 = vpop.eup %7674  ;;  %v7044_v35 = vpop.f32.mrf.mxu1  ;;  %v3013_v2 = vadd.f32 1.0, %v7673_v33  ;;  %v3031_v39 = vmul.f32 %v3015_v31, %v2903_v53 }
 0xd0d   :  { %v2953_v12 = vmul.f32 %v2937_v60, %v9446_v38  ;;  %v2940_v57 = vmul.f32 %v2924_v50, %v9451_v17  ;;  %v2922_v58 = vmul.f32 0.044715, %v9457_v19  ;;  %v9463_v32 = vadd.f32 %v7044_v35, %v9431_v0 }
 0xd0e   :  { %v7677_v27 = vpop.eup %7676  ;;  %v2882_v37 = vpop.f32.mrf.mxu1  ;;  %v3029_v41 = vmul.f32 %v3013_v2, %v2901_v59  ;;  %v3016_v40 = vadd.f32 1.0, %v7675_v48  ;;  %v2971_v54 = vadd.f32 %v2955_v13, %v9442_v4 }
 0xd0f   :  { %v2956_v23 = vmul.f32 %v2940_v57, %v9451_v17  ;;  %v2938_v45 = vmul.f32 %v2922_v58, %v9457_v19  ;;  %v2927_v42 = vmul.f32 0.044715, %v9463_v32  ;;  %v9470_v30 = vadd.f32 %v9431_v0, %v2882_v37 }
 0xd10   :  { %v7045_v28 = vpop.f32.mrf.mxu1  ;;  %v3014_v8 = vadd.f32 1.0, %v7677_v27  ;;  %v3032_v51 = vmul.f32 %v3016_v40, %v2904_v46  ;;  %v2969_v7 = vadd.f32 %v2953_v12, %v9446_v38  ;;  %v2987_v10 = vmul.f32 0.7978846, %v2971_v54 }
 0xd11   :  { %v2954_v63 = vmul.f32 %v2938_v45, %v9457_v19  ;;  %v2943_v36 = vmul.f32 %v2927_v42, %v9463_v32  ;;  %v2925_v34 = vmul.f32 0.044715, %v9470_v30  ;;  %v9477_v49 = vadd.f32 %v7045_v28, %v9431_v0 }
 0xd12   :  { %v2885_v24 = vpop.f32.mrf.mxu1  ;;  %v3030_v56 = vmul.f32 %v3014_v8, %v2902_v55  ;;  %v3044_v61 = vpack.c.bf16 %v3032_v51, %v3031_v39  ;;  %v2985_v47 = vmul.f32 0.7978846, %v2969_v7  ;;  %v2972_v29 = vadd.f32 %v2956_v23, %v9451_v17 }
 0xd13   :  { %v2959_v25 = vmul.f32 %v2943_v36, %v9463_v32  ;;  %v2941_v14 = vmul.f32 %v2925_v34, %v9470_v30  ;;  %v2928_v33 = vmul.f32 0.044715, %v9477_v49  ;;  %v2886_v9 = vadd.f32 %v9431_v0, %v2885_v24 }
 0xd14   :  { %v3043_v53 = vpack.c.bf16 %v3030_v56, %v3029_v41  ;;  %v2970_v31 = vadd.f32 %v2954_v63, %v9457_v19  ;;  %7678 = vtanh.f32 %v2985_v47  ;;  %v2988_v13 = vmul.f32 0.7978846, %v2972_v29 }
 0xd15   :  { %v2957_v60 = vmul.f32 %v2941_v14, %v9470_v30  ;;  %v2944_v50 = vmul.f32 %v2928_v33, %v9477_v49  ;;  %v2926_v48 = vmul.f32 0.044715, %v2886_v9  ;;  %7680 = vtanh.f32 %v2987_v10 }
 0xd16   :  { %7066 = vmatprep.mubr.bf16.mxu0 %v3043_v53  ;;  %v2986_v35 = vmul.f32 0.7978846, %v2970_v31  ;;  %7682 = vtanh.f32 %v2988_v13  ;;  %v2975_v2 = vadd.f32 %v2959_v25, %v9463_v32  ;;  %v2908_v28 = vmul.f32 0.5, %v9451_v17 }
 0xd17   :  { %v2960_v59 = vmul.f32 %v2944_v50, %v9477_v49  ;;  %v2942_v55 = vmul.f32 %v2926_v48, %v2886_v9  ;;  %7067 = vmatmul.mubr.bf16.gmra.mxu0 %v3044_v61  ;;  %v2973_v0 = vadd.f32 %v2957_v60, %v9470_v30  ;;  %v2905_v51 = vmul.f32 0.5, %v9446_v38 }
 0xd18   :  { %7684 = vtanh.f32 %v2986_v35  ;;  %v2991_v58 = vmul.f32 0.7978846, %v2975_v2  ;;  %v2906_v7 = vmul.f32 0.5, %v9457_v19  ;;  %v2907_v63 = vmul.f32 0.5, %v9442_v4  ;;  %v9499_v2 = vld [vmem:[%s10142_s3] ss:$0 sm:$0xff] }
 0xd19   :  { %v2958_v46 = vmul.f32 %v2942_v55, %v2886_v9  ;;  %v2989_v12 = vmul.f32 0.7978846, %v2973_v0  ;;  %v2976_v57 = vadd.f32 %v2960_v59, %v9477_v49  ;;  %v2909_v38 = vmul.f32 0.5, %v9470_v30 }
 0xd1a   :  { %v2910_v19 = vmul.f32 0.5, %v2886_v9  ;;  %v2912_v4 = vmul.f32 0.5, %v9477_v49  ;;  %v2911_v48 = vmul.f32 0.5, %v9463_v32 }
 0xd1b   :  { %v2974_v27 = vadd.f32 %v2958_v46, %v2886_v9  ;;  %7686 = vtanh.f32 %v2989_v12  ;;  %v2992_v37 = vmul.f32 0.7978846, %v2976_v57 }
 0xd1c   :  { %7688 = vtanh.f32 %v2991_v58 }
 0xd1d   :  { %v2990_v41 = vmul.f32 0.7978846, %v2974_v27  ;;  %7690 = vtanh.f32 %v2992_v37 }
 0xd1f   :  { %7692 = vtanh.f32 %v2990_v41 }
 0xd21   :  { %v7679_v40 = vpop.eup %7678 }
 0xd22   :  { %v7681_v39 = vpop.eup %7680  ;;  %v3017_v23 = vadd.f32 1.0, %v7679_v40 }
 0xd23   :  { %v7683_v54 = vpop.eup %7682  ;;  %v3019_v8 = vadd.f32 1.0, %v7681_v39 }
 0xd24   :  { %v3020_v45 = vadd.f32 1.0, %v7683_v54  ;;  %v3033_v24 = vmul.f32 %v3017_v23, %v2905_v51 }
 0xd25   :  { %v7685_v42 = vpop.eup %7684  ;;  %v3035_v47 = vmul.f32 %v3019_v8, %v2907_v63 }
 0xd26   :  { %v3018_v10 = vadd.f32 1.0, %v7685_v42  ;;  %v3036_v36 = vmul.f32 %v3020_v45, %v2908_v28 }
 0xd28   :  { %v7687_v34 = vpop.eup %7686  ;;  %v3034_v56 = vmul.f32 %v3018_v10, %v2906_v7  ;;  %v3046_v14 = vpack.c.bf16 %v3036_v36, %v3035_v47 }
 0xd29   :  { %v7689_v61 = vpop.eup %7688  ;;  %v3021_v33 = vadd.f32 1.0, %v7687_v34 }
 0xd2a   :  { %v7691_v29 = vpop.eup %7690  ;;  %v3045_v25 = vpack.c.bf16 %v3034_v56, %v3033_v24  ;;  %v3023_v13 = vadd.f32 1.0, %v7689_v61 }
 0xd2b   :  { %v3024_v53 = vadd.f32 1.0, %v7691_v29  ;;  %v3037_v60 = vmul.f32 %v3021_v33, %v2909_v38 }
 0xd2c   :  { %v7693_v17 = vpop.eup %7692  ;;  %7070 = vmatprep.mubr.bf16.mxu0 %v3045_v25  ;;  %v3039_v55 = vmul.f32 %v3023_v13, %v2911_v48 }
 0xd2d   :  { %7071 = vmatmul.mubr.bf16.gmra.mxu0 %v3046_v14  ;;  %v3022_v31 = vadd.f32 1.0, %v7693_v17  ;;  %v3040_v35 = vmul.f32 %v3024_v53, %v2912_v4 }
 0xd2f   :  { %v3038_v50 = vmul.f32 %v3022_v31, %v2910_v19  ;;  %v3048_v0 = vpack.c.bf16 %v3040_v35, %v3039_v55 }
 0xd31   :  { %v3047_v59 = vpack.c.bf16 %v3038_v50, %v3037_v60 }
 0xd33   :  { %7074 = vmatprep.mubr.bf16.mxu0 %v3047_v59 }
 0xd35   :  { %7075 = vmatmul.mubr.bf16.gmra.mxu0 %v3048_v0 }
 0xda1   :  { %v7064_v46 = vpop.f32.mrf.mxu0 }
 0xda2   :  { %v3146_v30 = vadd.f32 %v7064_v46, %v9499_v2 }
 0xda3   :  { %v3137_v9 = vpop.f32.mrf.mxu0 }
 0xda4   :  { %v3202_v12 = vadd.f32 %v3146_v30, %v9172_v5  ;;  %v3138_v33 = vadd.f32 %v9499_v2, %v3137_v9 }
 0xda5   :  { %v7065_v49 = vpop.f32.mrf.mxu0 }
 0xda6   :  { %v3149_v57 = vadd.f32 %v7065_v49, %v9499_v2  ;;  %3220 = vrot.lane.b32.xlu0 %v3202_v12, %s7871_s8  ;;  %v3200_v38 = vadd.f32 %v3138_v33, %v9169_v15 }
 0xda7   :  { %v3140_v58 = vpop.f32.mrf.mxu0 }
 0xda8   :  { %v3203_v32 = vadd.f32 %v3149_v57, %v9182_v21 }
 0xdaa   :  { %3222 = vrot.lane.b32.xlu1 %v3203_v32, %s7871_s8 }
 0xdd7   :  { %v7068_v27 = vpop.f32.mrf.mxu0 }
 0xdd8   :  { %v3162_v37 = vadd.f32 %v7068_v27, %v9499_v2 }
 0xdd9   :  { %v3153_v41 = vpop.f32.mrf.mxu0 }
 0xdda   :  { %v3206_v40 = vadd.f32 %v3162_v37, %v9196_v44  ;;  %v3154_v39 = vadd.f32 %v9499_v2, %v3153_v41 }
 0xddb   :  { %v7069_v5 = vpop.f32.mrf.mxu0 }
 0xddc   :  { %v3165_v54 = vadd.f32 %v7069_v5, %v9499_v2  ;;  %3252 = vrot.lane.b32.xlu0 %v3206_v40, %s7866_s0  ;;  %v3204_v45 = vadd.f32 %v3154_v39, %v9193_v52 }
 0xddd   :  { %v3156_v23 = vpop.f32.mrf.mxu0 }
 0xdde   :  { %v3207_v21 = vadd.f32 %v3165_v54, %v9206_v16  ;;  %v3157_v42 = vadd.f32 %v9499_v2, %v3156_v23 }
 0xde0   :  { %3254 = vrot.lane.b32.xlu1 %v3207_v21, %s7866_s0  ;;  %3236 = vrot.lane.b32.xlu0 %v3204_v45, %s7867_s5  ;;  %v3205_v44 = vadd.f32 %v3157_v42, %v9203_v62  ;;  %v7322_v45 = vld [vmem:[%s10143_s14 + $0x38] sm:$0xff]  }
 0xde1   :  { %7078 = vmatprep.subr.bf16.mxu1 %v7322_v45 }
 0xde2   :  { %7079 = vmatpush3.bf16.msra.mxu1 %v7322_v45 }
 0xde4   :  { %3238 = vrot.lane.b32.xlu1 %v3205_v44, %s7867_s5 }
 0xded   :  { %v7072_v28 = vpop.f32.mrf.mxu0 }
 0xdee   :  { %v3178_v8 = vadd.f32 %v7072_v28, %v9499_v2 }
 0xdef   :  { %v3169_v51 = vpop.f32.mrf.mxu0 }
 0xdf0   :  { %v3210_v7 = vadd.f32 %v3178_v8, %v9220_v6  ;;  %v3170_v59 = vadd.f32 %v9499_v2, %v3169_v51 }
 0xdf1   :  { %v7073_v10 = vpop.f32.mrf.mxu0 }
 0xdf2   :  { %v3181_v52 = vadd.f32 %v7073_v10, %v9499_v2  ;;  %3224 = vrot.lane.b32.xlu1 %v3210_v7, %s7871_s8  ;;  %v3208_v46 = vadd.f32 %v3170_v59, %v9217_v3 }
 0xdf3   :  { %v3172_v16 = vpop.f32.mrf.mxu0 }
 0xdf4   :  { %v3211_v63 = vadd.f32 %v3181_v52, %v9230_v11  ;;  %v7323_v52 = vld [vmem:[%s10143_s14 + $0x30] sm:$0xff]  }
 0xdf5   :  { %v7076_v36 = vpop.f32.mrf.mxu0  ;;  %7080 = vmatprep.subr.bf16.mxu1 %v7323_v52 }
 0xdf6   :  { %3226 = vrot.lane.b32.xlu1 %v3211_v63, %s7871_s8  ;;  %v3194_v56 = vadd.f32 %v7076_v36, %v9499_v2  ;;  %7081 = vmatpush3.bf16.msra.mxu1 %v7323_v52  ;;  %v7325_v63 = vld [vmem:[%s10143_s14 + $0x20] sm:$0xff]   ;;  %v7326_v36 = vld [vmem:[%s10143_s14 + $0x18] sm:$0xff]  }
 0xdf7   :  { %v3185_v62 = vpop.f32.mrf.mxu0 }
 0xdf8   :  { %v3186_v34 = vadd.f32 %v9499_v2, %v3185_v62  ;;  %v3214_v29 = vadd.f32 %v3194_v56, %v9244_v22  ;;  %v3141_v22 = vadd.f32 %v9499_v2, %v3140_v58  ;;  %v7327_v62 = vld [vmem:[%s10143_s14 + $0x10] sm:$0xff]  }
 0xdf9   :  { %v7077_v24 = vpop.f32.mrf.mxu0 }
 0xdfa   :  { %v3212_v61 = vadd.f32 %v3186_v34, %v9239_v43  ;;  %v3197_v11 = vadd.f32 %v7077_v24, %v9499_v2  ;;  %v7328_v34 = vld [vmem:[%s10143_s14 + $0x8] sm:$0xff]   ;;  %v7329_v24 = vld [vmem:[%s10143_s14] sm:$0xff]  }
 0xdfb   :  { %v3188_v6 = vpop.f32.mrf.mxu0 }
 0xdfc   :  { %v3189_v47 = vadd.f32 %v9499_v2, %v3188_v6  ;;  %3240 = vrot.lane.b32.xlu0 %v3212_v61, %s7867_s5  ;;  %v3215_v14 = vadd.f32 %v3197_v11, %v9254_v1  ;;  %v3201_v1 = vadd.f32 %v3141_v22, %v9179_v26  ;;  %v3173_v26 = vadd.f32 %v9499_v2, %v3172_v16  ;;  %v7324_v16 = vld [vmem:[%s10143_s14 + $0x28] sm:$0xff]  }
 0xdfd   :  { %7082 = vmatprep.subr.bf16.mxu1 %v7324_v16 }
 0xdfe   :  { %v3213_v25 = vadd.f32 %v3189_v47, %v9251_v18  ;;  %v3209_v57 = vadd.f32 %v3173_v26, %v9227_v20  ;;  %7083 = vmatpush3.bf16.msra.mxu1 %v7324_v16 }
 0xdff   :  { %7084 = vmatprep.subr.bf16.mxu1 %v7325_v63 }
 0xe00   :  { %3242 = vrot.lane.b32.xlu1 %v3213_v25, %s7867_s5  ;;  %3256 = vrot.lane.b32.xlu0 %v3214_v29, %s7866_s0 }
 0xe02   :  { %7085 = vmatpush3.bf16.msra.mxu1 %v7325_v63 }
 0xe03   :  { %7086 = vmatprep.subr.bf16.mxu1 %v7326_v36 }
 0xe04   :  { %3258 = vrot.lane.b32.xlu1 %v3215_v14, %s7866_s0 }
 0xe06   :  { %7087 = vmatpush3.bf16.msra.mxu1 %v7326_v36 }
 0xe07   :  { %7088 = vmatprep.subr.bf16.mxu1 %v7327_v62 }
 0xe0a   :  { %7089 = vmatpush3.bf16.msra.mxu1 %v7327_v62 }
 0xe0b   :  { %7090 = vmatprep.subr.bf16.mxu1 %v7328_v34 }
 0xe0e   :  { %7091 = vmatpush3.bf16.msra.mxu1 %v7328_v34  ;;  %v7335_v34 = vld [vmem:[%s10146_s30 + $0x24] ss:$8 sps:$4 sm:$0xff]  }
 0xe0f   :  { %7092 = vmatprep.subr.bf16.mxu1 %v7329_v24 }
 0xe12   :  { %7093 = vmatpush3.bf16.msra.mxu1 %v7329_v24  ;;  %v7333_v24 = vld [vmem:[%s10146_s30 + $0x20] ss:$8 sps:$4 sm:$0xff]  }
 0xe18   :  { %v3221_v43 = vpop.permute.xlu0 %3220 }
 0xe19   :  { %v3264_v18 = vsel %vm339_vm1, %v3200_v38, %v3221_v43  ;;  %v6374_v43 = vld [vmem:[%s10144_s19] ss:$0 sm:$0xff] }
 0xe1a   :  { %v6375_v38 = vld [vmem:[%s10145_s24] ss:$0 sm:$0xff] }
 0xe1c   :  { %v3223_v53 = vpop.permute.xlu1 %3222 }
 0xe1d   :  { %v3265_v60 = vsel %vm339_vm1, %v3201_v1, %v3223_v53 }
 0xe4e   :  { %v3253_v17 = vpop.permute.xlu0 %3252 }
 0xe52   :  { %v3237_v19 = vpop.permute.xlu0 %3236  ;;  %v3255_v31 = vpop.permute.xlu1 %3254 }
 0xe53   :  { %v3268_v4 = vsel %vm1255_vm3, %v3264_v18, %v3237_v19 }
 0xe54   :  { %v3273_v13 = vsel %vm3272_vm4, %v3268_v4, %v3253_v17 }
 0xe55   :  { %3279 = vadd.xlane.f32.xlu0 %v3273_v13 }
 0xe56   :  { %v3239_v50 = vpop.permute.xlu1 %3238 }
 0xe57   :  { %v3269_v48 = vsel %vm1255_vm3, %v3265_v60, %v3239_v50 }
 0xe58   :  { %v3274_v15 = vsel %vm3272_vm4, %v3269_v48, %v3255_v31 }
 0xe59   :  { %3281 = vadd.xlane.f32.xlu1 %v3274_v15 }
 0xe64   :  { %v3225_v35 = vpop.permute.xlu1 %3224 }
 0xe65   :  { %v3266_v30 = vsel %vm339_vm1, %v3208_v46, %v3225_v35 }
 0xe68   :  { %v3227_v55 = vpop.permute.xlu1 %3226 }
 0xe69   :  { %v3267_v58 = vsel %vm339_vm1, %v3209_v57, %v3227_v55 }
 0xe6e   :  { %v3241_v0 = vpop.permute.xlu0 %3240 }
 0xe6f   :  { %v3270_v9 = vsel %vm1255_vm3, %v3266_v30, %v3241_v0 }
 0xe72   :  { %v3257_v12 = vpop.permute.xlu0 %3256  ;;  %v3243_v49 = vpop.permute.xlu1 %3242 }
 0xe73   :  { %v3275_v32 = vsel %vm3272_vm4, %v3270_v9, %v3257_v12  ;;  %v3271_v27 = vsel %vm1255_vm3, %v3267_v58, %v3243_v49 }
 0xe74   :  { %3283 = vadd.xlane.f32.xlu0 %v3275_v32 }
 0xe76   :  { %v3259_v37 = vpop.permute.xlu1 %3258 }
 0xe77   :  { %v3276_v3 = vsel %vm3272_vm4, %v3271_v27, %v3259_v37 }
 0xe78   :  { %3285 = vadd.xlane.f32.xlu0 %v3276_v3 }
 0xede   :  { %v3280_v2 = vpop.xlane.xlu0 %3279 }
 0xedf   :  { %v3288_v41 = vmul.f32 0.0078125, %v3280_v2  ;;  %v7330_v2 = vld [vmem:[%s10146_s30 + $0x30] ss:$8 sps:$4 sm:$0xff]  }
 0xee1   :  { %v3292_v40 = vsub.f32 %v3273_v13, %v3288_v41  ;;  %v7332_v41 = vld [vmem:[%s10146_s30 + $0x34] ss:$8 sps:$4 sm:$0xff]  }
 0xee2   :  { %v3282_v39 = vpop.xlane.xlu1 %3281  ;;  %3671 = vmatprep.subr.bf16.mxu0 %v7332_v41  ;;  %v7873_v41 = vmov 0.0  }
 0xee3   :  { %v3289_v5 = vmul.f32 0.0078125, %v3282_v39  ;;  %v3296_v54 = vmul.f32 %v3292_v40, %v3292_v40  ;;  %3672 = vmatpush1.bf16.msra.mxu0 %v7330_v2  ;;  %7098 = vmatprep.subr.bf16.mxu1 %v7873_v41 }
 0xee4   :  { %3673 = vmatprep.subr.bf16.mxu0 %v7335_v34 }
 0xee5   :  { %v3293_v23 = vsub.f32 %v3274_v15, %v3289_v5  ;;  %3300 = vadd.xlane.f32.xlu0 %v3296_v54 }
 0xee7   :  { %v3297_v20 = vmul.f32 %v3293_v23, %v3293_v23  ;;  %3674 = vmatpush1.bf16.msra.mxu0 %v7333_v24 }
 0xee9   :  { %3302 = vadd.xlane.f32.xlu1 %v3297_v20 }
 0xefd   :  { %v3284_v21 = vpop.xlane.xlu0 %3283 }
 0xefe   :  { %v3290_v42 = vmul.f32 0.0078125, %v3284_v21 }
 0xf00   :  { %v3294_v44 = vsub.f32 %v3275_v32, %v3290_v42 }
 0xf01   :  { %v3286_v28 = vpop.xlane.xlu0 %3285 }
 0xf02   :  { %v3291_v8 = vmul.f32 0.0078125, %v3286_v28  ;;  %v3298_v51 = vmul.f32 %v3294_v44, %v3294_v44 }
 0xf04   :  { %v3295_v7 = vsub.f32 %v3276_v3, %v3291_v8  ;;  %3304 = vadd.xlane.f32.xlu0 %v3298_v51 }
 0xf06   :  { %v3299_v10 = vmul.f32 %v3295_v7, %v3295_v7 }
 0xf08   :  { %3306 = vadd.xlane.f32.xlu1 %v3299_v10 }
 0xf6e   :  { %v3301_v56 = vpop.xlane.xlu0 %3300 }
 0xf6f   :  { %v3308_v61 = vmul.f32 0.0078125, %v3301_v56  ;;  %v7338_v56 = vld [vmem:[%s10146_s30 + $0x14] ss:$8 sps:$4 sm:$0xff]  }
 0xf70   :  { %3675 = vmatprep.subr.bf16.mxu0 %v7338_v56 }
 0xf71   :  { %v3312_v6 = vadd.f32 1e-05, %v3308_v61  ;;  %v7336_v61 = vld [vmem:[%s10146_s30 + $0x10] ss:$8 sps:$4 sm:$0xff]  }
 0xf72   :  { %v3303_v47 = vpop.xlane.xlu1 %3302  ;;  %3676 = vmatpush1.bf16.msra.mxu0 %v7336_v61 }
 0xf73   :  { %7694 = vrsqrt.f32 %v3312_v6  ;;  %v3309_v29 = vmul.f32 0.0078125, %v3303_v47  ;;  %v7341_v6 = vld [vmem:[%s10146_s30 + $0x4] ss:$8 sps:$4 sm:$0xff]   ;;  %v7872_v47 = vmov 0  }
 0xf74   :  { %3695 = vmatprep.mubr.bf16.mxu0 %v7872_v47  ;;  %3677 = vmatprep.subr.bf16.mxu0 %v7341_v6 }
 0xf75   :  { %v3313_v11 = vadd.f32 1e-05, %v3309_v29  ;;  %v7339_v29 = vld [vmem:[%s10146_s30] ss:$8 sps:$4 sm:$0xff]  }
 0xf76   :  { %3678 = vmatpush1.bf16.msra.mxu0 %v7339_v29 }
 0xf77   :  { %7696 = vrsqrt.f32 %v3313_v11  ;;  %7110 = vmatprep.subr.bf16.mxu0 %v7873_v41 }
 0xf80   :  { %v7695_v25 = vpop.eup %7694 }
 0xf81   :  { %v3320_v14 = vmul.f32 %v7695_v25, %v3292_v40 }
 0xf83   :  { %v3330_v17 = vmul.f32 %v6374_v43, %v3320_v14 }
 0xf84   :  { %v7697_v33 = vpop.eup %7696 }
 0xf85   :  { %v3321_v53 = vmul.f32 %v7697_v33, %v3293_v23  ;;  %v3340_v18 = vadd.f32 %v6375_v38, %v3330_v17 }
 0xf87   :  { %v3331_v22 = vmul.f32 %v6374_v43, %v3321_v53 }
 0xf89   :  { %v3341_v19 = vadd.f32 %v6375_v38, %v3331_v22 }
 0xf8b   :  { %v3344_v31 = vpack.c.bf16 %v3341_v19, %v3340_v18 }
 0xf8d   :  { %v3305_v4 = vpop.xlane.xlu0 %3304  ;;  %7094 = vmatprep.mubr.bf16.mxu1 %v3344_v31 }
 0xf8e   :  { %v3310_v1 = vmul.f32 0.0078125, %v3305_v4 }
 0xf90   :  { %v3314_v13 = vadd.f32 1e-05, %v3310_v1 }
 0xf91   :  { %v3307_v60 = vpop.xlane.xlu1 %3306 }
 0xf92   :  { %7698 = vrsqrt.f32 %v3314_v13  ;;  %v3311_v50 = vmul.f32 0.0078125, %v3307_v60  ;;  %v6384_v13 = vld [vmem:[%s10147_s12] ss:$0 sm:$0xff] }
 0xf94   :  { %v3315_v48 = vadd.f32 1e-05, %v3311_v50 }
 0xf96   :  { %7700 = vrsqrt.f32 %v3315_v48 }
 0xf9f   :  { %v7699_v15 = vpop.eup %7698 }
 0xfa0   :  { %v3322_v35 = vmul.f32 %v7699_v15, %v3294_v44 }
 0xfa2   :  { %v3332_v0 = vmul.f32 %v6374_v43, %v3322_v35  ;;  %v6385_v35 = vld [vmem:[%s10148_s15] ss:$0 sm:$0xff] }
 0xfa3   :  { %v7701_v59 = vpop.eup %7700 }
 0xfa4   :  { %v3323_v55 = vmul.f32 %v7701_v59, %v3295_v7  ;;  %v3342_v26 = vadd.f32 %v6375_v38, %v3332_v0 }
 0xfa6   :  { %v3333_v46 = vmul.f32 %v6374_v43, %v3323_v55 }
 0xfa8   :  { %v3343_v30 = vadd.f32 %v6375_v38, %v3333_v46 }
 0xfaa   :  { %v3345_v9 = vpack.c.bf16 %v3343_v30, %v3342_v26 }
 0xfac   :  { %7095 = vmatmul.mubr.bf16.vlgmr.msra.gmra.mxu1 %v3345_v9 }
 0xfad   :  { %7100 = vmatprep.mubr.msk.bf16.mxu1 %vm7874_vm5, %v7873_v41 }
0x106c   :  { %v9567_v12 = vpop.f32.mrf.mxu1 }
0x106d   :  { %v3537_v27 = vsel %vm1255_vm3, %v9567_v12, 0.0 }
0x106e   :  { %v9569_v49 = vpop.f32.mrf.mxu1 }
0x106f   :  { %v3531_v57 = vsel %vm1255_vm3, %v9569_v49, 0.0 }
0x1070   :  { %3532 = vadd.xlane.f32.xlu0 %v3531_v57  ;;  %v9573_v32 = vpop.f32.mrf.mxu1 }
0x1071   :  { %v3540_v3 = vsel %vm1255_vm3, %v9573_v32, 0.0 }
0x1072   :  { %v9575_v58 = vpop.f32.mrf.mxu1 }
0x1073   :  { %v3534_v37 = vsel %vm1255_vm3, %v9575_v58, 0.0 }
0x1074   :  { %3538 = vadd.xlane.f32.xlu0 %v3537_v27  ;;  %3535 = vadd.xlane.f32.xlu1 %v3534_v37 }
0x1078   :  { %3541 = vadd.xlane.f32.xlu1 %v3540_v3 }
0x10f9   :  { %v3533_v40 = vpop.xlane.xlu0 %3532 }
0x10fa   :  { %v3544_v39 = vmul.f32 0.015625, %v3533_v40  ;;  %v3607_v40 = vlaneseq }
0x10fc   :  { %v3548_v5 = vsub.f32 %v9569_v49, %v3544_v39  ;;  %v9607_v39 = vshrl.u32 %v3607_v40, 7 }
0x10fd   :  { %v3539_v54 = vpop.xlane.xlu0 %3538  ;;  %v3536_v23 = vpop.xlane.xlu1 %3535 }
0x10fe   :  { %v3546_v20 = vmul.f32 0.015625, %v3539_v54  ;;  %v3545_v45 = vmul.f32 0.015625, %v3536_v23  ;;  %v3552_v21 = vmul.f32 %v3548_v5, %v3548_v5  ;;  %v3477_v54 = vld [vmem:[%s10149_s16] sm:$0x3]  ;;  %v3613_v23 = vsub.s32 1, %v9607_v39 }
0x1100   :  { %v3550_v42 = vsub.f32 %v9567_v12, %v3546_v20  ;;  %v3549_v44 = vsub.f32 %v9575_v58, %v3545_v45  ;;  %v3556_v28 = vsel %vm1255_vm3, %v3552_v21, 0.0 }
0x1101   :  { %3557 = vadd.xlane.f32.xlu0 %v3556_v28  ;;  %v3542_v8 = vpop.xlane.xlu1 %3541 }
0x1102   :  { %v3547_v51 = vmul.f32 0.015625, %v3542_v8  ;;  %v3554_v7 = vmul.f32 %v3550_v42, %v3550_v42  ;;  %v3553_v10 = vmul.f32 %v3549_v44, %v3549_v44 }
0x1104   :  { %v3551_v52 = vsub.f32 %v9573_v32, %v3547_v51  ;;  %v3562_v16 = vsel %vm1255_vm3, %v3554_v7, 0.0  ;;  %v3559_v63 = vsel %vm1255_vm3, %v3553_v10, 0.0 }
0x1105   :  { %3563 = vadd.xlane.f32.xlu0 %v3562_v16  ;;  %3560 = vadd.xlane.f32.xlu1 %v3559_v63 }
0x1106   :  { %v3555_v36 = vmul.f32 %v3551_v52, %v3551_v52 }
0x1108   :  { %v3565_v62 = vsel %vm1255_vm3, %v3555_v36, 0.0 }
0x1109   :  { %3566 = vadd.xlane.f32.xlu1 %v3565_v62 }
0x118a   :  { %v3558_v11 = vpop.xlane.xlu0 %3557 }
0x118b   :  { %v3568_v25 = vmul.f32 0.015625, %v3558_v11 }
0x118d   :  { %v3572_v14 = vadd.f32 1e-05, %v3568_v25 }
0x118e   :  { %v3564_v43 = vpop.xlane.xlu0 %3563  ;;  %v3561_v33 = vpop.xlane.xlu1 %3560 }
0x118f   :  { %7702 = vrsqrt.f32 %v3572_v14  ;;  %v3570_v53 = vmul.f32 0.015625, %v3564_v43  ;;  %v3569_v17 = vmul.f32 0.015625, %v3561_v33 }
0x1191   :  { %v3573_v38 = vadd.f32 1e-05, %v3569_v17  ;;  %v3574_v22 = vadd.f32 1e-05, %v3570_v53  ;;  %v3459_v53 = vld [vmem:[%s10150_s18] sm:$0xff] }
0x1192   :  { %v3567_v18 = vpop.xlane.xlu1 %3566 }
0x1193   :  { %v3571_v19 = vmul.f32 0.015625, %v3567_v18  ;;  %7704 = vrsqrt.f32 %v3573_v38  ;;  %v3460_v18 = vld [vmem:[%s10150_s18 + $0x8] sm:$0xff] }
0x1194   :  { %7706 = vrsqrt.f32 %v3574_v22 }
0x1195   :  { %v3575_v31 = vadd.f32 1e-05, %v3571_v19 }
0x1197   :  { %7708 = vrsqrt.f32 %v3575_v31 }
0x119c   :  { %v7703_v4 = vpop.eup %7702 }
0x119d   :  { %v3580_v1 = vmul.f32 %v7703_v4, %v3548_v5  ;;  %v3609_v5 = vsub.s32 0, %v9607_v39 }
0x119f   :  { %v3590_v50 = vmul.f32 %v6384_v13, %v3580_v1  ;;  %v3610_v45 = vrot.slane %v3477_v54, %v3609_v5 }
0x11a0   :  { %v7705_v60 = vpop.eup %7704 }
0x11a1   :  { %v3581_v48 = vmul.f32 %v7705_v60, %v3549_v44  ;;  %v7707_v15 = vpop.eup %7706  ;;  %v3600_v46 = vadd.f32 %v6385_v35, %v3590_v50 }
0x11a2   :  { %v3582_v30 = vmul.f32 %v7707_v15, %v3550_v42  ;;  %v3614_v42 = vrot.slane %v3477_v54, %v3613_v23 }
0x11a3   :  { %v3591_v55 = vmul.f32 %v6384_v13, %v3581_v48 }
0x11a4   :  { %v7709_v59 = vpop.eup %7708  ;;  %v3592_v27 = vmul.f32 %v6384_v13, %v3582_v30 }
0x11a5   :  { %v3583_v0 = vmul.f32 %v7709_v59, %v3551_v52  ;;  %v3601_v26 = vadd.f32 %v6385_v35, %v3591_v55 }
0x11a6   :  { %v3602_v3 = vadd.f32 %v6385_v35, %v3592_v27 }
0x11a7   :  { %v3604_v9 = vpack.c.bf16 %v3601_v26, %v3600_v46  ;;  %v3593_v57 = vmul.f32 %v6384_v13, %v3583_v0 }
0x11a9   :  { %6394 = vmatmul.mubr.msk.bf16.vlgmr.msra.gmra.mxu0 %vm1255_vm3, %v3604_v9  ;;  %v3603_v37 = vadd.f32 %v6385_v35, %v3593_v57 }
0x11aa   :  { %3705 = vmatprep.mubr.bf16.mxu0 %v7872_v47 }
0x11ab   :  { %v3605_v2 = vpack.c.bf16 %v3603_v37, %v3602_v3 }
0x11b1   :  { %6395 = vmatmul.mubr.msk.bf16.gmra.mxu0 %vm1255_vm3, %v3605_v2 }
0x11b2   :  { %7112 = vmatprep.mubr.msk.bf16.mxu0 %vm7874_vm5, %v7873_v41 }
0x1269   :  { %v3697_v20 = vpop.f32.mrf.mxu0 }
0x126a   :  { %v3698_v28 = vadd.f32 %v3697_v20, %v3610_v45 }
0x126b   :  { %v3699_v21 = vpop.f32.mrf.mxu0 }
0x126c   :  { %v3700_v7 = vadd.f32 %v3699_v21, %v3614_v42 }
0x126d   :  { %v3701_v44 = vpop.f32.mrf.mxu0 }
0x126e   :  { %v3702_v8 = vadd.f32 %v3701_v44, %v3610_v45 }
0x126f   :  { %v3703_v51 = vpop.f32.mrf.mxu0 }
0x1270   :  { %v9620_v10 = vpack.c.bf16 %v3702_v8, %v3698_v28  ;;  %v3704_v52 = vadd.f32 %v3703_v51, %v3614_v42 }
0x1271   :  { %v3707_v16 = vpop.f32.mrf.mxu0 }
0x1272   :  { %v9622_v63 = vpack.c.bf16 %v3704_v52, %v3700_v7  ;;  %3721 = vrot.lane.b32.xlu0 %v9620_v10, %s7867_s5  ;;  %v3708_v24 = vadd.f32 %v3707_v16, %v3610_v45 }
0x1273   :  { %v3709_v36 = vpop.f32.mrf.mxu0 }
0x1274   :  { %v3710_v62 = vadd.f32 %v3709_v36, %v3614_v42  ;;  %7111 = vmatpush3.bf16.msra.mxu0 %v9622_v63 }
0x1275   :  { %v3711_v34 = vpop.f32.mrf.mxu0  ;;  %7122 = vmatprep.subr.bf16.mxu0 %v7873_v41 }
0x1276   :  { %v3712_v56 = vadd.f32 %v3711_v34, %v3610_v45 }
0x1277   :  { %v3713_v61 = vpop.f32.mrf.mxu0 }
0x1278   :  { %v9628_v6 = vpack.c.bf16 %v3712_v56, %v3708_v24  ;;  %v3714_v29 = vadd.f32 %v3713_v61, %v3614_v42 }
0x127a   :  { %v9630_v11 = vpack.c.bf16 %v3714_v29, %v3710_v62  ;;  %3771 = vrot.lane.b32.xlu1 %v9628_v6, %s7867_s5 }
0x12e4   :  { %v3722_v25 = vpop.permute.xlu0 %3721 }
0x12e5   :  { %v3727_v14 = vsel %vm1064_vm2, %v3722_v25, 0 }
0x12e6   :  { %7099 = vmatpush3.bf16.xpose.msra.mxu1 %v3727_v14 }
0x12e7   :  { %7104 = vmatprep.subr.bf16.mxu1 %v7873_v41 }
0x12ec   :  { %v3772_v43 = vpop.permute.xlu1 %3771 }
0x12ed   :  { %v3777_v33 = vsel %vm1064_vm2, %v3772_v43, 0  ;;  %7101 = vmatmul.mubr.msk.bf16.vlgmr.msra.gmra.mxu1 %vm1064_vm2, %v9620_v10 }
0x12ee   :  { %7105 = vmatpush3.bf16.xpose.msra.mxu1 %v3777_v33  ;;  %7106 = vmatprep.mubr.msk.bf16.mxu1 %vm7874_vm5, %v7873_v41 }
0x12ef   :  { %7116 = vmatprep.subr.bf16.mxu1 %v7873_v41 }
0x12f5   :  { %7107 = vmatmul.mubr.msk.bf16.vlgmr.msra.gmra.mxu1 %vm1064_vm2, %v9628_v6 }
0x12f6   :  { %7117 = vmatpush3.bf16.msra.mxu1 %v9630_v11  ;;  %7118 = vmatprep.mubr.msk.bf16.mxu1 %vm7874_vm5, %v7873_v41 }
0x12f7   :  { %7128 = vmatprep.subr.bf16.mxu1 %v7873_v41 }
0x13ad   :  { %v3763_v17 = vpop.f32.mrf.mxu1 }
0x13ae   :  { %v3764_v38 = vadd.f32 %v3763_v17, %v3459_v53 }
0x13af   :  { %v7102_v22 = vpop.f32.mrf.mxu1 }
0x13b0   :  { %v3820_v19 = vsel %vm1064_vm2, %v3764_v38, -inf }
0x13b1   :  { %v3766_v31 = vpop.f32.mrf.mxu1  ;;  %3821 = vmax.xlane.f32.xlu1 %v3820_v19 }
0x13b2   :  { %v3767_v4 = vadd.f32 %v3766_v31, %v3460_v18 }
0x13b3   :  { %v7103_v1 = vpop.f32.mrf.mxu1 }
0x13b4   :  { %v3823_v13 = vsel %vm1064_vm2, %v3767_v4, -inf }
0x13b5   :  { %3824 = vmax.xlane.f32.xlu0 %v3823_v13  ;;  %v3813_v60 = vpop.f32.mrf.mxu1 }
0x13b6   :  { %v3814_v50 = vadd.f32 %v3813_v60, %v3459_v53 }
0x13b7   :  { %v7108_v48 = vpop.f32.mrf.mxu1 }
0x13b8   :  { %v3826_v15 = vsel %vm1064_vm2, %v3814_v50, -inf  ;;  %v3461_v48 = vld [vmem:[%s10150_s18 + $0x10] sm:$0xff] }
0x13b9   :  { %3827 = vmax.xlane.f32.xlu0 %v3826_v15  ;;  %v3816_v35 = vpop.f32.mrf.mxu1 }
0x13ba   :  { %v3817_v59 = vadd.f32 %v3816_v35, %v3460_v18 }
0x13bb   :  { %v7109_v55 = vpop.f32.mrf.mxu1 }
0x13bc   :  { %v3829_v0 = vsel %vm1064_vm2, %v3817_v59, -inf  ;;  %v3462_v55 = vld [vmem:[%s10150_s18 + $0x18] sm:$0xff] }
0x13bd   :  { %3830 = vmax.xlane.f32.xlu1 %v3829_v0 }
0x143a   :  { %v3822_v46 = vpop.xlane.xlu1 %3821 }
0x143b   :  { %v3832_v26 = vsub.f32 %v3764_v38, %v3822_v46 }
0x143d   :  { %v3836_v30 = vmul.f32 1.442695, %v3832_v26 }
0x143e   :  { %v3825_v9 = vpop.xlane.xlu0 %3824 }
0x143f   :  { %7710 = vpow2.f32 %v3836_v30  ;;  %v3833_v57 = vsub.f32 %v3767_v4, %v3825_v9 }
0x1441   :  { %v3838_v27 = vmul.f32 1.442695, %v3833_v57 }
0x1442   :  { %v3828_v37 = vpop.xlane.xlu0 %3827 }
0x1443   :  { %7712 = vpow2.f32 %v3838_v27  ;;  %v3834_v3 = vsub.f32 %v3814_v50, %v3828_v37 }
0x1445   :  { %v3840_v2 = vmul.f32 1.442695, %v3834_v3 }
0x1446   :  { %v3831_v44 = vpop.xlane.xlu1 %3830 }
0x1447   :  { %7714 = vpow2.f32 %v3840_v2  ;;  %v3835_v28 = vsub.f32 %v3817_v59, %v3831_v44 }
0x1449   :  { %v3842_v8 = vmul.f32 1.442695, %v3835_v28 }
0x144b   :  { %7716 = vpow2.f32 %v3842_v8 }
0x144c   :  { %v7711_v40 = vpop.eup %7710 }
0x144d   :  { %v3844_v54 = vsel %vm1064_vm2, %v7711_v40, 0.0 }
0x144e   :  { %3845 = vadd.xlane.f32.xlu0 %v3844_v54 }
0x1450   :  { %v7713_v20 = vpop.eup %7712 }
0x1451   :  { %v3847_v45 = vsel %vm1064_vm2, %v7713_v20, 0.0 }
0x1452   :  { %3848 = vadd.xlane.f32.xlu1 %v3847_v45 }
0x1454   :  { %v7715_v21 = vpop.eup %7714 }
0x1455   :  { %v3850_v42 = vsel %vm1064_vm2, %v7715_v21, 0.0 }
0x1456   :  { %3851 = vadd.xlane.f32.xlu0 %v3850_v42 }
0x1458   :  { %v7717_v51 = vpop.eup %7716 }
0x1459   :  { %v3853_v7 = vsel %vm1064_vm2, %v7717_v51, 0.0 }
0x1463   :  { %4009 = vrot.lane.b32.xlu1 %v9628_v6, %s7870_s17 }
0x146c   :  { %3958 = vrot.lane.b32.xlu0 %v9620_v10, %s7870_s17 }
0x1487   :  { %3854 = vadd.xlane.f32.xlu1 %v3853_v7 }
0x1498   :  { %3956 = vrot.lane.b32.xlu1 %v9620_v10, %s7869_s13 }
0x149c   :  { %4007 = vrot.lane.b32.xlu1 %v9628_v6, %s7869_s13 }
0x14d7   :  { %v3846_v52 = vpop.xlane.xlu0 %3845 }
0x14d8   :  { %7718 = vrcp.f32 %v3846_v52 }
0x14db   :  { %v3849_v16 = vpop.xlane.xlu1 %3848 }
0x14dc   :  { %7720 = vrcp.f32 %v3849_v16 }
0x14df   :  { %v3852_v36 = vpop.xlane.xlu0 %3851  ;;  %v4010_v14 = vpop.permute.xlu1 %4009 }
0x14e0   :  { %7722 = vrcp.f32 %v3852_v36  ;;  %v4015_v19 = vsel %vm1064_vm2, %v4010_v14, 0 }
0x14e3   :  { %v3959_v61 = vpop.permute.xlu0 %3958 }
0x14e4   :  { %v3964_v25 = vsel %vm1064_vm2, %v3959_v61, 0 }
0x14e5   :  { %v7719_v62 = vpop.eup %7718 }
0x14e6   :  { %v3860_v24 = vmul.f32 %v7719_v62, %v7711_v40 }
0x14e9   :  { %v7721_v34 = vpop.eup %7720 }
0x14ea   :  { %v3861_v56 = vmul.f32 %v7721_v34, %v7713_v20 }
0x14ec   :  { %v3864_v29 = vpack.c.bf16 %v3861_v56, %v3860_v24 }
0x14ed   :  { %v7723_v53 = vpop.eup %7722 }
0x14ee   :  { %7113 = vmatmul.mubr.msk.bf16.vlgmr.msra.gmra.mxu0 %vm1064_vm2, %v3864_v29  ;;  %v3862_v38 = vmul.f32 %v7723_v53, %v7715_v21 }
0x14ef   :  { %7123 = vmatpush3.bf16.xpose.msra.mxu0 %v3964_v25  ;;  %7124 = vmatprep.mubr.msk.bf16.mxu0 %vm7874_vm5, %v7873_v41 }
0x14f0   :  { %7134 = vmatprep.subr.bf16.mxu0 %v7873_v41 }
0x1510   :  { %v3855_v43 = vpop.xlane.xlu1 %3854 }
0x1511   :  { %7724 = vrcp.f32 %v3855_v43 }
0x1514   :  { %v3957_v33 = vpop.permute.xlu1 %3956 }
0x1515   :  { %7125 = vmatmul.mubr.msk.bf16.vlgmr.msra.gmra.mxu0 %vm1064_vm2, %v3957_v33 }
0x1516   :  { %7136 = vmatprep.mubr.msk.bf16.mxu0 %vm7874_vm5, %v7873_v41 }
0x1518   :  { %v4008_v31 = vpop.permute.xlu1 %4007 }
0x151e   :  { %v7725_v17 = vpop.eup %7724 }
0x151f   :  { %v3863_v22 = vmul.f32 %v7725_v17, %v7717_v51 }
0x1521   :  { %v3865_v18 = vpack.c.bf16 %v3863_v22, %v3862_v38 }
0x1523   :  { %7119 = vmatmul.mubr.msk.bf16.vlgmr.msra.gmra.mxu1 %vm1064_vm2, %v3865_v18 }
0x1524   :  { %7129 = vmatpush3.bf16.xpose.msra.mxu1 %v4015_v19  ;;  %7130 = vmatprep.mubr.msk.bf16.mxu1 %vm7874_vm5, %v7873_v41 }
0x1525   :  { %7140 = vmatprep.subr.bf16.mxu1 %v7873_v41 }
0x152b   :  { %7131 = vmatmul.mubr.msk.bf16.vlgmr.msra.gmra.mxu1 %vm1064_vm2, %v4008_v31 }
0x152c   :  { %7142 = vmatprep.mubr.msk.bf16.mxu1 %vm7874_vm5, %v7873_v41 }
0x15ae   :  { %v9682_v4 = vpop.f32.mrf.mxu0 }
0x15b0   :  { %v7114_v1 = vpop.f32.mrf.mxu0 }
0x15b2   :  { %v9684_v13 = vpop.f32.mrf.mxu0 }
0x15b3   :  { %v3954_v60 = vpack.c.bf16 %v9684_v13, %v9682_v4  ;;  %v7343_v13 = vld [vmem:[%s10151_s22 + $0x8] sm:$0xff]  }
0x15b4   :  { %v7115_v50 = vpop.f32.mrf.mxu0 }
0x15d5   :  { %v4000_v15 = vpop.f32.mrf.mxu0 }
0x15d6   :  { %v4001_v35 = vadd.f32 %v4000_v15, %v3461_v48 }
0x15d7   :  { %v7126_v59 = vpop.f32.mrf.mxu0 }
0x15d8   :  { %v4058_v0 = vsel %vm1064_vm2, %v4001_v35, -inf }
0x15d9   :  { %4059 = vmax.xlane.f32.xlu0 %v4058_v0  ;;  %v4003_v46 = vpop.f32.mrf.mxu0  ;;  %v7342_v0 = vld [vmem:[%s10151_s22] sm:$0xff]  }
0x15da   :  { %v4004_v26 = vadd.f32 %v4003_v46, %v3462_v55 }
0x15db   :  { %v7127_v30 = vpop.f32.mrf.mxu0 }
0x15dc   :  { %v4061_v9 = vsel %vm1064_vm2, %v4004_v26, -inf }
0x15dd   :  { %4062 = vmax.xlane.f32.xlu1 %v4061_v9 }
0x15e3   :  { %v9692_v57 = vpop.f32.mrf.mxu1 }
0x15e5   :  { %v7120_v27 = vpop.f32.mrf.mxu1 }
0x15e7   :  { %v9694_v37 = vpop.f32.mrf.mxu1 }
0x15e8   :  { %v3955_v3 = vpack.c.bf16 %v9694_v37, %v9692_v57 }
0x15e9   :  { %v7121_v2 = vpop.f32.mrf.mxu1 }
0x15eb   :  { %v4051_v40 = vpop.f32.mrf.mxu1 }
0x15ec   :  { %v4052_v54 = vadd.f32 %v4051_v40, %v3461_v48 }
0x15ed   :  { %v7132_v20 = vpop.f32.mrf.mxu1 }
0x15ee   :  { %v4064_v45 = vsel %vm1064_vm2, %v4052_v54, -inf }
0x15ef   :  { %4065 = vmax.xlane.f32.xlu0 %v4064_v45  ;;  %v4054_v21 = vpop.f32.mrf.mxu1 }
0x15f0   :  { %v4055_v42 = vadd.f32 %v4054_v21, %v3462_v55 }
0x15f1   :  { %v7133_v44 = vpop.f32.mrf.mxu1 }
0x15f2   :  { %v4067_v28 = vsel %vm1064_vm2, %v4055_v42, -inf }
0x15f3   :  { %4068 = vmax.xlane.f32.xlu0 %v4067_v28 }
0x1662   :  { %v4060_v8 = vpop.xlane.xlu0 %4059 }
0x1663   :  { %v4070_v51 = vsub.f32 %v4001_v35, %v4060_v8 }
0x1665   :  { %v4074_v7 = vmul.f32 1.442695, %v4070_v51 }
0x1666   :  { %v4063_v52 = vpop.xlane.xlu1 %4062 }
0x1667   :  { %7726 = vpow2.f32 %v4074_v7  ;;  %v4071_v16 = vsub.f32 %v4004_v26, %v4063_v52 }
0x1669   :  { %v4076_v36 = vmul.f32 1.442695, %v4071_v16 }
0x166b   :  { %7728 = vpow2.f32 %v4076_v36 }
0x1674   :  { %v7727_v62 = vpop.eup %7726 }
0x1675   :  { %v4082_v34 = vsel %vm1064_vm2, %v7727_v62, 0.0 }
0x1676   :  { %4083 = vadd.xlane.f32.xlu0 %v4082_v34 }
0x1678   :  { %v7729_v24 = vpop.eup %7728  ;;  %v4066_v56 = vpop.xlane.xlu0 %4065 }
0x1679   :  { %v4072_v61 = vsub.f32 %v4052_v54, %v4066_v56  ;;  %v4085_v29 = vsel %vm1064_vm2, %v7729_v24, 0.0 }
0x167a   :  { %4086 = vadd.xlane.f32.xlu1 %v4085_v29 }
0x167b   :  { %v4078_v25 = vmul.f32 1.442695, %v4072_v61 }
0x167c   :  { %v4069_v14 = vpop.xlane.xlu0 %4068 }
0x167d   :  { %7730 = vpow2.f32 %v4078_v25  ;;  %v4073_v43 = vsub.f32 %v4055_v42, %v4069_v14 }
0x167f   :  { %v4080_v33 = vmul.f32 1.442695, %v4073_v43 }
0x1681   :  { %7732 = vpow2.f32 %v4080_v33  ;;  %v3463_v33 = vld [vmem:[%s10150_s18 + $0x20] sm:$0xff] }
0x168a   :  { %v7731_v53 = vpop.eup %7730 }
0x168b   :  { %v4088_v17 = vsel %vm1064_vm2, %v7731_v53, 0.0 }
0x168c   :  { %4089 = vadd.xlane.f32.xlu0 %v4088_v17 }
0x168e   :  { %v7733_v38 = vpop.eup %7732 }
0x168f   :  { %v4091_v22 = vsel %vm1064_vm2, %v7733_v38, 0.0 }
0x1690   :  { %4092 = vadd.xlane.f32.xlu1 %v4091_v22 }
0x16a1   :  { %4153 = vrot.lane.b32.xlu1 %v9630_v11, %s7869_s13 }
0x16a2   :  { %4105 = vrot.lane.b32.xlu0 %v9622_v63, %s7869_s13 }
0x16a5   :  { %4326 = vrot.lane.b32.xlu1 %v9620_v10, %s7871_s8 }
0x16a6   :  { %4324 = vrot.lane.b32.xlu0 %v9620_v10, %s7866_s0 }
0x16a9   :  { %4377 = vrot.lane.b32.xlu1 %v9628_v6, %s7871_s8 }
0x16ad   :  { %4375 = vrot.lane.b32.xlu1 %v9628_v6, %s7866_s0 }
0x16ff   :  { %v4084_v19 = vpop.xlane.xlu0 %4083 }
0x1703   :  { %v4087_v18 = vpop.xlane.xlu1 %4086 }
0x1704   :  { %7734 = vrcp.f32 %v4087_v18 }
0x1705   :  { %7736 = vrcp.f32 %v4084_v19  ;;  %v3464_v19 = vld [vmem:[%s10150_s18 + $0x28] sm:$0xff] }
0x1711   :  { %v7735_v31 = vpop.eup %7734 }
0x1712   :  { %v7737_v50 = vpop.eup %7736  ;;  %v4099_v48 = vmul.f32 %v7735_v31, %v7729_v24 }
0x1713   :  { %v4098_v59 = vmul.f32 %v7737_v50, %v7727_v62 }
0x1715   :  { %v4090_v1 = vpop.xlane.xlu0 %4089  ;;  %v4102_v55 = vpack.c.bf16 %v4099_v48, %v4098_v59 }
0x1716   :  { %7738 = vrcp.f32 %v4090_v1 }
0x1719   :  { %v4106_v15 = vpop.permute.xlu0 %4105  ;;  %v4093_v35 = vpop.xlane.xlu1 %4092 }
0x171a   :  { %7740 = vrcp.f32 %v4093_v35  ;;  %7135 = vmatpush3.bf16.msra.mxu0 %v4106_v15 }
0x171b   :  { %7146 = vmatprep.subr.bf16.mxu0 %v7343_v13 }
0x171d   :  { %7137 = vmatmul.mubr.msk.bf16.vlgmr.msra.gmra.mxu0 %vm1064_vm2, %v4102_v55  ;;  %v4154_v46 = vpop.permute.xlu1 %4153  ;;  %v4325_v36 = vpop.permute.xlu0 %4324 }
0x171e   :  { %7141 = vmatpush3.bf16.msra.mxu1 %v4154_v46  ;;  %7147 = vmatpush3.bf16.msra.mxu0 %v7343_v13 }
0x171f   :  { %7152 = vmatprep.subr.bf16.mxu1 %v7342_v0  ;;  %7158 = vmatprep.subr.bf16.mxu0 %v7873_v41 }
0x1721   :  { %v4327_v40 = vpop.permute.xlu1 %4326 }
0x1722   :  { %v4332_v51 = vsel %vm1064_vm2, %v4327_v40, 0 }
0x1723   :  { %v7739_v26 = vpop.eup %7738 }
0x1724   :  { %v4100_v9 = vmul.f32 %v7739_v26, %v7731_v53 }
0x1725   :  { %v4378_v54 = vpop.permute.xlu1 %4377 }
0x1726   :  { %v4383_v20 = vsel %vm1064_vm2, %v4378_v54, 0 }
0x1727   :  { %v7741_v30 = vpop.eup %7740 }
0x1728   :  { %v4101_v27 = vmul.f32 %v7741_v30, %v7733_v38 }
0x1729   :  { %v4376_v4 = vpop.permute.xlu1 %4375 }
0x172a   :  { %v4103_v2 = vpack.c.bf16 %v4101_v27, %v4100_v9 }
0x172c   :  { %7143 = vmatmul.mubr.msk.bf16.vlgmr.msra.gmra.mxu1 %vm1064_vm2, %v4103_v2 }
0x172d   :  { %7154 = vmatprep.mubr.msk.bf16.mxu1 %vm1064_vm2, %v3954_v60  ;;  %7153 = vmatpush3.bf16.msra.mxu1 %v7342_v0 }
0x172e   :  { %7164 = vmatprep.subr.bf16.mxu1 %v7873_v41 }
0x1734   :  { %7155 = vmatmul.mubr.msk.bf16.vlgmr.msra.gmra.mxu1 %vm1064_vm2, %v3955_v3 }
0x1735   :  { %7165 = vmatpush3.bf16.xpose.msra.mxu1 %v4383_v20  ;;  %7166 = vmatprep.mubr.msk.bf16.mxu1 %vm7874_vm5, %v7873_v41 }
0x1736   :  { %7176 = vmatprep.subr.bf16.mxu1 %v7873_v41 }
0x173c   :  { %7167 = vmatmul.mubr.msk.bf16.vlgmr.msra.gmra.mxu1 %vm1064_vm2, %v4376_v4 }
0x173d   :  { %7178 = vmatprep.mubr.msk.bf16.mxu1 %vm7874_vm5, %v7873_v41 }
0x17dd   :  { %v4145_v60 = vpop.f32.mrf.mxu0 }
0x17df   :  { %v7138_v57 = vpop.f32.mrf.mxu0 }
0x17e1   :  { %v4148_v37 = vpop.f32.mrf.mxu0 }
0x17e2   :  { %v4200_v3 = vpack.c.bf16 %v4148_v37, %v4145_v60 }
0x17e3   :  { %v7139_v45 = vpop.f32.mrf.mxu0 }
0x17e4   :  { %7148 = vmatprep.mubr.msk.bf16.mxu0 %vm1064_vm2, %v4200_v3 }
0x17ec   :  { %v4193_v21 = vpop.f32.mrf.mxu1 }
0x17ee   :  { %v7144_v42 = vpop.f32.mrf.mxu1 }
0x17f0   :  { %v4196_v44 = vpop.f32.mrf.mxu1 }
0x17f1   :  { %v4201_v28 = vpack.c.bf16 %v4196_v44, %v4193_v21 }
0x17f2   :  { %v7145_v8 = vpop.f32.mrf.mxu1 }
0x17f3   :  { %7149 = vmatmul.mubr.msk.bf16.vlgmr.msra.gmra.mxu0 %vm1064_vm2, %v4201_v28 }
0x17f4   :  { %7159 = vmatpush3.bf16.xpose.msra.mxu0 %v4332_v51  ;;  %v9740_v7 = vpop.f32.mrf.mxu1  ;;  %7160 = vmatprep.mubr.msk.bf16.mxu0 %vm7874_vm5, %v7873_v41 }
0x17f5   :  { %7170 = vmatprep.subr.bf16.mxu0 %v7873_v41 }
0x17f6   :  { %v9745_v52 = vpop.f32.mrf.mxu1 }
0x17f8   :  { %v9747_v16 = vpop.f32.mrf.mxu1 }
0x17fa   :  { %v9749_v62 = vpop.f32.mrf.mxu1 }
0x17fb   :  { %7161 = vmatmul.mubr.msk.bf16.vlgmr.msra.gmra.mxu0 %vm1064_vm2, %v4325_v36 }
0x17fc   :  { %v4419_v34 = vpop.f32.mrf.mxu1  ;;  %7172 = vmatprep.mubr.msk.bf16.mxu0 %vm7874_vm5, %v7873_v41 }
0x17fd   :  { %v4420_v22 = vadd.f32 %v4419_v34, %v3463_v33 }
0x17fe   :  { %v7168_v24 = vpop.f32.mrf.mxu1 }
0x17ff   :  { %v4432_v35 = vsel %vm1064_vm2, %v4420_v22, -inf }
0x1800   :  { %v4422_v56 = vpop.f32.mrf.mxu1 }
0x1801   :  { %v4423_v48 = vadd.f32 %v4422_v56, %v3464_v19 }
0x1802   :  { %v7169_v61 = vpop.f32.mrf.mxu1 }
0x1803   :  { %v4435_v59 = vsel %vm1064_vm2, %v4423_v48, -inf }
0x18b3   :  { %v9754_v29 = vpop.f32.mrf.mxu0 }
0x18b5   :  { %v9756_v25 = vpop.f32.mrf.mxu0 }
0x18b7   :  { %v9758_v14 = vpop.f32.mrf.mxu0 }
0x18b9   :  { %v9760_v43 = vpop.f32.mrf.mxu0 }
0x18bb   :  { %v4368_v53 = vpop.f32.mrf.mxu0 }
0x18bc   :  { %v4369_v17 = vadd.f32 %v4368_v53, %v3463_v33 }
0x18bd   :  { %v7162_v38 = vpop.f32.mrf.mxu0 }
0x18be   :  { %v4426_v18 = vsel %vm1064_vm2, %v4369_v17, -inf }
0x18bf   :  { %4427 = vmax.xlane.f32.xlu0 %v4426_v18  ;;  %v4371_v31 = vpop.f32.mrf.mxu0 }
0x18c0   :  { %v4372_v1 = vadd.f32 %v4371_v31, %v3464_v19 }
0x18c1   :  { %v7163_v50 = vpop.f32.mrf.mxu0 }
0x18c2   :  { %v4429_v15 = vsel %vm1064_vm2, %v4372_v1, -inf }
0x18c3   :  { %4430 = vmax.xlane.f32.xlu1 %v4429_v15  ;;  %4433 = vmax.xlane.f32.xlu0 %v4432_v35 }
0x18c7   :  { %4436 = vmax.xlane.f32.xlu0 %v4435_v59 }
0x1948   :  { %v4428_v55 = vpop.xlane.xlu0 %4427 }
0x1949   :  { %v4438_v0 = vsub.f32 %v4369_v17, %v4428_v55 }
0x194b   :  { %v4442_v9 = vmul.f32 1.442695, %v4438_v0  ;;  %v3465_v0 = vld [vmem:[%s10150_s18 + $0x30] sm:$0xff] }
0x194c   :  { %v4434_v46 = vpop.xlane.xlu0 %4433  ;;  %v4431_v26 = vpop.xlane.xlu1 %4430 }
0x194d   :  { %v4440_v30 = vsub.f32 %v4420_v22, %v4434_v46  ;;  %v4439_v2 = vsub.f32 %v4372_v1, %v4431_v26  ;;  %v7344_v1 = vld [vmem:[%s10151_s22 + $0x10] sm:$0xff]  }
0x194f   :  { %v4446_v27 = vmul.f32 1.442695, %v4440_v30  ;;  %v4444_v20 = vmul.f32 1.442695, %v4439_v2 }
0x1950   :  { %v4437_v40 = vpop.xlane.xlu0 %4436 }
0x1951   :  { %7742 = vpow2.f32 %v4446_v27  ;;  %v4441_v54 = vsub.f32 %v4423_v48, %v4437_v40 }
0x1952   :  { %7744 = vpow2.f32 %v4442_v9 }
0x1953   :  { %v4448_v4 = vmul.f32 1.442695, %v4441_v54 }
0x1955   :  { %7746 = vpow2.f32 %v4448_v4 }
0x1956   :  { %7748 = vpow2.f32 %v4444_v20  ;;  %v3466_v20 = vld [vmem:[%s10150_s18 + $0x38] sm:$0xff] }
0x195e   :  { %v7743_v13 = vpop.eup %7742 }
0x195f   :  { %v4456_v60 = vsel %vm1064_vm2, %v7743_v13, 0.0  ;;  %v7745_v57 = vpop.eup %7744 }
0x1960   :  { %4457 = vadd.xlane.f32.xlu0 %v4456_v60  ;;  %v4450_v3 = vsel %vm1064_vm2, %v7745_v57, 0.0 }
0x1962   :  { %v7747_v37 = vpop.eup %7746 }
0x1963   :  { %v4459_v45 = vsel %vm1064_vm2, %v7747_v37, 0.0  ;;  %v7749_v21 = vpop.eup %7748 }
0x1964   :  { %4451 = vadd.xlane.f32.xlu0 %v4450_v3  ;;  %4460 = vadd.xlane.f32.xlu1 %v4459_v45  ;;  %v4453_v42 = vsel %vm1064_vm2, %v7749_v21, 0.0 }
0x1968   :  { %4454 = vadd.xlane.f32.xlu1 %v4453_v42 }
0x1979   :  { %4519 = vrot.lane.b32.xlu1 %v9630_v11, %s7866_s0 }
0x197a   :  { %4472 = vrot.lane.b32.xlu0 %v9622_v63, %s7866_s0  ;;  %s10159_s0 = sld [smem:[#allocation25_spill]] }
0x197d   :  { %4635 = vrot.lane.b32.xlu1 %v9620_v10, %s7875_s23 }
0x197e   :  { %4633 = vrot.lane.b32.xlu0 %v9620_v10, %s7868_s9 }
0x1981   :  { %4686 = vrot.lane.b32.xlu1 %v9628_v6, %s7875_s23 }
0x1985   :  { %4684 = vrot.lane.b32.xlu1 %v9628_v6, %s7868_s9 }
0x19e9   :  { %v4458_v44 = vpop.xlane.xlu0 %4457 }
0x19ea   :  { %7750 = vrcp.f32 %v4458_v44 }
0x19ed   :  { %v4452_v28 = vpop.xlane.xlu0 %4451  ;;  %v4461_v8 = vpop.xlane.xlu1 %4460 }
0x19ee   :  { %7752 = vrcp.f32 %v4461_v8 }
0x19ef   :  { %7754 = vrcp.f32 %v4452_v28 }
0x19f1   :  { %v4473_v51 = vpop.permute.xlu0 %4472  ;;  %v4455_v36 = vpop.xlane.xlu1 %4454 }
0x19f2   :  { %7756 = vrcp.f32 %v4455_v36  ;;  %7171 = vmatpush3.bf16.msra.mxu0 %v4473_v51 }
0x19f3   :  { %7182 = vmatprep.subr.bf16.mxu0 %v7344_v1 }
0x19f5   :  { %v4520_v34 = vpop.permute.xlu1 %4519  ;;  %v4634_v31 = vpop.permute.xlu0 %4633 }
0x19f6   :  { %7177 = vmatpush3.bf16.msra.mxu1 %v4520_v34  ;;  %v4318_v34 = vadd.f32 %v9740_v7, %v9754_v29 }
0x19f7   :  { %7188 = vmatprep.subr.bf16.mxu1 %v7873_v41  ;;  %v7751_v10 = vpop.eup %7750 }
0x19f8   :  { %v4468_v61 = vmul.f32 %v7751_v10, %v7743_v13 }
0x19f9   :  { %v4636_v6 = vpop.permute.xlu1 %4635 }
0x19fa   :  { %v4641_v18 = vsel %vm1064_vm2, %v4636_v6, 0 }
0x19fb   :  { %v7753_v24 = vpop.eup %7752 }
0x19fc   :  { %v7755_v56 = vpop.eup %7754  ;;  %v4469_v33 = vmul.f32 %v7753_v24, %v7747_v37 }
0x19fd   :  { %v4466_v38 = vmul.f32 %v7755_v56, %v7745_v57  ;;  %v4687_v26 = vpop.permute.xlu1 %4686  ;;  %v4310_v56 = vadd.f32 %v9745_v52, %v9756_v25 }
0x19fe   :  { %v4471_v17 = vpack.c.bf16 %v4469_v33, %v4468_v61  ;;  %v4692_v4 = vsel %vm1064_vm2, %v4687_v26, 0  ;;  %v4321_v33 = vadd.f32 %v9747_v16, %v9758_v14 }
0x19ff   :  { %v7757_v53 = vpop.eup %7756 }
0x1a00   :  { %v4467_v22 = vmul.f32 %v7757_v53, %v7749_v21  ;;  %7179 = vmatmul.mubr.msk.bf16.vlgmr.msra.gmra.mxu1 %vm1064_vm2, %v4471_v17  ;;  %v4313_v17 = vadd.f32 %v9749_v62, %v9760_v43 }
0x1a01   :  { %7189 = vmatpush3.bf16.xpose.msra.mxu1 %v4641_v18  ;;  %7190 = vmatprep.mubr.msk.bf16.mxu1 %vm7874_vm5, %v7873_v41  ;;  %v4685_v45 = vpop.permute.xlu1 %4684 }
0x1a02   :  { %v4470_v19 = vpack.c.bf16 %v4467_v22, %v4466_v38  ;;  %7200 = vmatprep.subr.bf16.mxu1 %v7873_v41 }
0x1a04   :  { %7173 = vmatmul.mubr.msk.bf16.vlgmr.msra.gmra.mxu0 %vm1064_vm2, %v4470_v19 }
0x1a05   :  { %7183 = vmatpush3.bf16.msra.mxu0 %v7344_v1 }
0x1a06   :  { %7194 = vmatprep.subr.bf16.mxu0 %v7873_v41 }
0x1a08   :  { %7191 = vmatmul.mubr.msk.bf16.vlgmr.msra.gmra.mxu1 %vm1064_vm2, %v4634_v31 }
0x1a09   :  { %7202 = vmatprep.mubr.msk.bf16.mxu1 %vm7874_vm5, %v7873_v41 }
0x1ac0   :  { %v4559_v50 = vpop.f32.mrf.mxu1 }
0x1ac2   :  { %v7180_v48 = vpop.f32.mrf.mxu1 }
0x1ac4   :  { %v4512_v15 = vpop.f32.mrf.mxu0  ;;  %v4562_v35 = vpop.f32.mrf.mxu1 }
0x1ac5   :  { %v4567_v27 = vpack.c.bf16 %v4562_v35, %v4559_v50 }
0x1ac6   :  { %v7174_v59 = vpop.f32.mrf.mxu0  ;;  %v7181_v55 = vpop.f32.mrf.mxu1 }
0x1ac8   :  { %v4515_v46 = vpop.f32.mrf.mxu0  ;;  %v4677_v9 = vpop.f32.mrf.mxu1 }
0x1ac9   :  { %v4566_v30 = vpack.c.bf16 %v4515_v46, %v4512_v15  ;;  %v4678_v2 = vadd.f32 %v4677_v9, %v3465_v0 }
0x1aca   :  { %v7175_v40 = vpop.f32.mrf.mxu0  ;;  %v7192_v54 = vpop.f32.mrf.mxu1 }
0x1acb   :  { %7184 = vmatprep.mubr.msk.bf16.mxu0 %vm1064_vm2, %v4566_v30  ;;  %v4735_v13 = vsel %vm1064_vm2, %v4678_v2, -inf }
0x1acc   :  { %7185 = vmatmul.mubr.msk.bf16.vlgmr.msra.gmra.mxu0 %vm1064_vm2, %v4567_v27  ;;  %4736 = vmax.xlane.f32.xlu0 %v4735_v13  ;;  %v4680_v60 = vpop.f32.mrf.mxu1 }
0x1acd   :  { %7195 = vmatpush3.bf16.xpose.msra.mxu0 %v4692_v4  ;;  %v4681_v57 = vadd.f32 %v4680_v60, %v3466_v20  ;;  %7196 = vmatprep.mubr.msk.bf16.mxu0 %vm7874_vm5, %v7873_v41 }
0x1ace   :  { %7206 = vmatprep.subr.bf16.mxu0 %v7873_v41  ;;  %v7193_v37 = vpop.f32.mrf.mxu1 }
0x1acf   :  { %v4738_v3 = vsel %vm1064_vm2, %v4681_v57, -inf }
0x1ad0   :  { %4739 = vmax.xlane.f32.xlu1 %v4738_v3 }
0x1ad4   :  { %7197 = vmatmul.mubr.msk.bf16.vlgmr.msra.gmra.mxu0 %vm1064_vm2, %v4685_v45 }
0x1ad5   :  { %7208 = vmatprep.mubr.msk.bf16.mxu0 %vm7874_vm5, %v7873_v41 }
0x1b55   :  { %v4737_v51 = vpop.xlane.xlu0 %4736 }
0x1b56   :  { %v4747_v36 = vsub.f32 %v4678_v2, %v4737_v51 }
0x1b58   :  { %v4751_v10 = vmul.f32 1.442695, %v4747_v36 }
0x1b59   :  { %v4740_v21 = vpop.xlane.xlu1 %4739 }
0x1b5a   :  { %v4748_v42 = vsub.f32 %v4681_v57, %v4740_v21  ;;  %v7345_v21 = vld [vmem:[%s10151_s22 + $0x18] sm:$0xff]  }
0x1b5c   :  { %v4753_v44 = vmul.f32 1.442695, %v4748_v42 }
0x1b5e   :  { %7758 = vpow2.f32 %v4753_v44 }
0x1b5f   :  { %7760 = vpow2.f32 %v4751_v10 }
0x1b6b   :  { %v7759_v28 = vpop.eup %7758 }
0x1b6c   :  { %v4762_v8 = vsel %vm1064_vm2, %v7759_v28, 0.0  ;;  %v7761_v1 = vpop.eup %7760 }
0x1b6d   :  { %4763 = vadd.xlane.f32.xlu1 %v4762_v8  ;;  %v4759_v62 = vsel %vm1064_vm2, %v7761_v1, 0.0 }
0x1b8c   :  { %v7186_v24 = vpop.f32.mrf.mxu0 }
0x1b8d   :  { %v9812_v61 = vadd.f32 %v7186_v24, %v4318_v34 }
0x1b8e   :  { %v4614_v41 = vpop.f32.mrf.mxu0 }
0x1b8f   :  { %v9816_v6 = vadd.f32 %v4614_v41, %v4310_v56 }
0x1b90   :  { %v7187_v53 = vpop.f32.mrf.mxu0 }
0x1b91   :  { %v9820_v38 = vadd.f32 %v7187_v53, %v4321_v33 }
0x1b92   :  { %v4617_v7 = vpop.f32.mrf.mxu0 }
0x1b93   :  { %v9822_v29 = vadd.f32 %v4617_v7, %v4313_v17 }
0x1b94   :  { %v4728_v22 = vpop.f32.mrf.mxu0 }
0x1b95   :  { %v4729_v52 = vadd.f32 %v4728_v22, %v3465_v0 }
0x1b96   :  { %v7198_v25 = vpop.f32.mrf.mxu0 }
0x1b97   :  { %v4741_v18 = vsel %vm1064_vm2, %v4729_v52, -inf  ;;  %v6424_v25 = vld [vmem:[%s10152_s26] ss:$0 sm:$0xff] }
0x1b98   :  { %4742 = vmax.xlane.f32.xlu0 %v4741_v18  ;;  %v4731_v19 = vpop.f32.mrf.mxu0 }
0x1b99   :  { %v4732_v16 = vadd.f32 %v4731_v19, %v3466_v20 }
0x1b9a   :  { %v7199_v14 = vpop.f32.mrf.mxu0 }
0x1b9b   :  { %v4744_v31 = vsel %vm1064_vm2, %v4732_v16, -inf }
0x1b9c   :  { %4745 = vmax.xlane.f32.xlu0 %v4744_v31 }
0x1ba0   :  { %4760 = vadd.xlane.f32.xlu0 %v4759_v62 }
0x1bf6   :  { %v4764_v9 = vpop.xlane.xlu1 %4763 }
0x1c21   :  { %v4743_v43 = vpop.xlane.xlu0 %4742 }
0x1c22   :  { %v4749_v50 = vsub.f32 %v4729_v52, %v4743_v43 }
0x1c24   :  { %v4755_v48 = vmul.f32 1.442695, %v4749_v50 }
0x1c25   :  { %v4746_v15 = vpop.xlane.xlu0 %4745 }
0x1c26   :  { %7762 = vpow2.f32 %v4755_v48  ;;  %v4750_v35 = vsub.f32 %v4732_v16, %v4746_v15 }
0x1c28   :  { %v4757_v59 = vmul.f32 1.442695, %v4750_v35 }
0x1c29   :  { %v4761_v30 = vpop.xlane.xlu0 %4760 }
0x1c2a   :  { %7764 = vpow2.f32 %v4757_v59 }
0x1c2b   :  { %7766 = vrcp.f32 %v4761_v30 }
0x1c2c   :  { %7768 = vrcp.f32 %v4764_v9 }
0x1c33   :  { %v7763_v55 = vpop.eup %7762 }
0x1c34   :  { %v4765_v0 = vsel %vm1064_vm2, %v7763_v55, 0.0 }
0x1c35   :  { %4766 = vadd.xlane.f32.xlu0 %v4765_v0 }
0x1c37   :  { %v7765_v46 = vpop.eup %7764 }
0x1c38   :  { %v4768_v26 = vsel %vm1064_vm2, %v7765_v46, 0.0  ;;  %v7767_v27 = vpop.eup %7766 }
0x1c39   :  { %4769 = vadd.xlane.f32.xlu1 %v4768_v26  ;;  %v7769_v40 = vpop.eup %7768  ;;  %v4775_v54 = vmul.f32 %v7767_v27, %v7761_v1 }
0x1c3a   :  { %v4776_v20 = vmul.f32 %v7769_v40, %v7759_v28 }
0x1c3c   :  { %v4779_v60 = vpack.c.bf16 %v4776_v20, %v4775_v54 }
0x1c4a   :  { %4828 = vrot.lane.b32.xlu1 %v9630_v11, %s7868_s9 }
0x1c4b   :  { %4781 = vrot.lane.b32.xlu0 %v9622_v63, %s7868_s9 }
0x1cbe   :  { %v4767_v2 = vpop.xlane.xlu0 %4766 }
0x1cbf   :  { %7770 = vrcp.f32 %v4767_v2 }
0x1cc2   :  { %v4782_v4 = vpop.permute.xlu0 %4781  ;;  %v4770_v13 = vpop.xlane.xlu1 %4769 }
0x1cc3   :  { %7772 = vrcp.f32 %v4770_v13  ;;  %7201 = vmatpush3.bf16.msra.mxu1 %v4782_v4  ;;  %v7348_v13 = vld [vmem:[%s10153_s28 + $0x34] ss:$8 sps:$4 sm:$0xff]  }
0x1cc4   :  { %7212 = vmatprep.subr.bf16.mxu1 %v7345_v21 }
0x1cc6   :  { %7203 = vmatmul.mubr.msk.bf16.vlgmr.msra.gmra.mxu1 %vm1064_vm2, %v4779_v60  ;;  %v4829_v11 = vpop.permute.xlu1 %4828  ;;  %v7346_v60 = vld [vmem:[%s10153_s28 + $0x30] ss:$8 sps:$4 sm:$0xff]  }
0x1cc7   :  { %7207 = vmatpush3.bf16.msra.mxu0 %v4829_v11  ;;  %7213 = vmatpush3.bf16.msra.mxu1 %v7345_v21  ;;  %v7351_v11 = vld [vmem:[%s10153_s28 + $0x24] ss:$8 sps:$4 sm:$0xff]  }
0x1cc8   :  { %5095 = vmatprep.subr.bf16.mxu0 %v7348_v13 }
0x1ccc   :  { %v7771_v63 = vpop.eup %7770 }
0x1ccd   :  { %v4777_v37 = vmul.f32 %v7771_v63, %v7763_v55  ;;  %v7349_v63 = vld [vmem:[%s10153_s28 + $0x20] ss:$8 sps:$4 sm:$0xff]  }
0x1cd0   :  { %v7773_v57 = vpop.eup %7772 }
0x1cd1   :  { %v4778_v3 = vmul.f32 %v7773_v57, %v7765_v46  ;;  %v7354_v57 = vld [vmem:[%s10153_s28 + $0x14] ss:$8 sps:$4 sm:$0xff]  }
0x1cd3   :  { %v4780_v45 = vpack.c.bf16 %v4778_v3, %v4777_v37  ;;  %v7352_v37 = vld [vmem:[%s10153_s28 + $0x10] ss:$8 sps:$4 sm:$0xff]   ;;  %v7357_v3 = vld [vmem:[%s10153_s28 + $0x4] ss:$8 sps:$4 sm:$0xff]  }
0x1cd5   :  { %7209 = vmatmul.mubr.msk.bf16.vlgmr.msra.gmra.mxu0 %vm1064_vm2, %v4780_v45  ;;  %v7355_v45 = vld [vmem:[%s10153_s28] ss:$8 sps:$4 sm:$0xff]  }
0x1cd6   :  { %5119 = vmatprep.mubr.bf16.mxu0 %v7872_v47  ;;  %5096 = vmatpush1.bf16.msra.mxu0 %v7346_v60 }
0x1cd7   :  { %5097 = vmatprep.subr.bf16.mxu0 %v7351_v11 }
0x1cda   :  { %5098 = vmatpush1.bf16.msra.mxu0 %v7349_v63 }
0x1cdb   :  { %5099 = vmatprep.subr.bf16.mxu0 %v7354_v57 }
0x1cde   :  { %5100 = vmatpush1.bf16.msra.mxu0 %v7352_v37 }
0x1cdf   :  { %5101 = vmatprep.subr.bf16.mxu0 %v7357_v3 }
0x1ce2   :  { %5102 = vmatpush1.bf16.msra.mxu0 %v7355_v45 }
0x1d86   :  { %v4821_v42 = vpop.f32.mrf.mxu1 }
0x1d88   :  { %v7204_v44 = vpop.f32.mrf.mxu1 }
0x1d8a   :  { %v4824_v28 = vpop.f32.mrf.mxu1 }
0x1d8b   :  { %v4875_v8 = vpack.c.bf16 %v4824_v28, %v4821_v42 }
0x1d8c   :  { %v7205_v51 = vpop.f32.mrf.mxu1 }
0x1d8d   :  { %7214 = vmatprep.mubr.msk.bf16.mxu1 %vm1064_vm2, %v4875_v8 }
0x1d95   :  { %v4868_v36 = vpop.f32.mrf.mxu0 }
0x1d97   :  { %v7210_v34 = vpop.f32.mrf.mxu0 }
0x1d99   :  { %v4871_v10 = vpop.f32.mrf.mxu0 }
0x1d9a   :  { %v4876_v24 = vpack.c.bf16 %v4871_v10, %v4868_v36 }
0x1d9b   :  { %v7211_v56 = vpop.f32.mrf.mxu0 }
0x1d9c   :  { %7215 = vmatmul.mubr.msk.bf16.vlgmr.msra.gmra.mxu1 %vm1064_vm2, %v4876_v24 }
0x1e5c   :  { %v7216_v41 = vpop.f32.mrf.mxu1 }
0x1e5d   :  { %v4940_v7 = vadd.f32 %v7216_v41, %v9812_v61 }
0x1e5e   :  { %v4923_v33 = vpop.f32.mrf.mxu1 }
0x1e5f   :  { %v4938_v53 = vadd.f32 %v4923_v33, %v9816_v6  ;;  %v4944_v31 = vadd.f32 %v9567_v12, %v4940_v7 }
0x1e60   :  { %v7217_v17 = vpop.f32.mrf.mxu1 }
0x1e61   :  { %v4942_v22 = vadd.f32 %v4938_v53, %v9569_v49  ;;  %v4941_v52 = vadd.f32 %v7217_v17, %v9820_v38  ;;  %v9856_v38 = vadd.f32 %v6424_v25, %v4944_v31  ;;  %v6425_v17 = vld [vmem:[%s10154_s1] ss:$0 sm:$0xff] }
0x1e62   :  { %v4926_v18 = vpop.f32.mrf.mxu1 }
0x1e63   :  { %v9844_v19 = vadd.f32 %v6424_v25, %v4942_v22  ;;  %v4945_v16 = vadd.f32 %v9573_v32, %v4941_v52  ;;  %v4939_v14 = vadd.f32 %v4926_v18, %v9822_v29  ;;  %v4962_v12 = vsel %vm1255_vm3, %v9856_v38, 0.0 }
0x1e65   :  { %v9849_v1 = vadd.f32 %v6424_v25, %v4945_v16  ;;  %v4943_v6 = vadd.f32 %v4939_v14, %v9575_v58  ;;  %v4956_v61 = vsel %vm1255_vm3, %v9844_v19, 0.0 }
0x1e66   :  { %4957 = vadd.xlane.f32.xlu1 %v4956_v61 }
0x1e67   :  { %v9854_v49 = vadd.f32 %v6424_v25, %v4943_v6  ;;  %v4965_v62 = vsel %vm1255_vm3, %v9849_v1, 0.0  ;;  %v6426_v25 = vld [vmem:[%s10155_s2] ss:$0 sm:$0xff] }
0x1e69   :  { %v4959_v32 = vsel %vm1255_vm3, %v9854_v49, 0.0 }
0x1e6a   :  { %4966 = vadd.xlane.f32.xlu1 %v4965_v62  ;;  %4960 = vadd.xlane.f32.xlu0 %v4959_v32 }
0x1e6e   :  { %4963 = vadd.xlane.f32.xlu0 %v4962_v12 }
0x1eef   :  { %v4958_v58 = vpop.xlane.xlu1 %4957 }
0x1ef0   :  { %v4968_v29 = vmul.f32 0.015625, %v4958_v58 }
0x1ef2   :  { %v4972_v43 = vsub.f32 %v9844_v19, %v4968_v29 }
0x1ef3   :  { %v4967_v50 = vpop.xlane.xlu1 %4966  ;;  %v4961_v48 = vpop.xlane.xlu0 %4960 }
0x1ef4   :  { %v4971_v15 = vmul.f32 0.015625, %v4967_v50  ;;  %v4969_v35 = vmul.f32 0.015625, %v4961_v48  ;;  %v4976_v59 = vmul.f32 %v4972_v43, %v4972_v43  ;;  %v7358_v48 = vld [vmem:[%s10156_s7 + $0x78] sm:$0xff]  }
0x1ef5   :  { %6704 = vmatprep.subr.bf16.mxu1 %v7358_v48 }
0x1ef6   :  { %v4975_v55 = vsub.f32 %v9849_v1, %v4971_v15  ;;  %v4973_v0 = vsub.f32 %v9854_v49, %v4969_v35  ;;  %v4980_v46 = vsel %vm1255_vm3, %v4976_v59, 0.0  ;;  %v7359_v15 = vld [vmem:[%s10156_s7 + $0x38] sm:$0xff]   ;;  %v7360_v35 = vld [vmem:[%s10156_s7 + $0x70] sm:$0xff]  }
0x1ef7   :  { %4981 = vadd.xlane.f32.xlu0 %v4980_v46  ;;  %v4964_v26 = vpop.xlane.xlu0 %4963  ;;  %6705 = vmatpush3.bf16.msra.mxu1 %v7359_v15  ;;  %v7361_v59 = vld [vmem:[%s10156_s7 + $0x30] sm:$0xff]   ;;  %v7365_v46 = vld [vmem:[%s10156_s7 + $0x20] sm:$0xff]  }
0x1ef8   :  { %v4970_v30 = vmul.f32 0.015625, %v4964_v26  ;;  %v4977_v9 = vmul.f32 %v4973_v0, %v4973_v0  ;;  %v4979_v40 = vmul.f32 %v4975_v55, %v4975_v55  ;;  %6706 = vmatprep.subr.bf16.mxu1 %v7360_v35  ;;  %v7366_v26 = vld [vmem:[%s10156_s7 + $0x58] sm:$0xff]  }
0x1efa   :  { %v4974_v27 = vsub.f32 %v9856_v38, %v4970_v30  ;;  %v4983_v2 = vsel %vm1255_vm3, %v4977_v9, 0.0  ;;  %v4989_v20 = vsel %vm1255_vm3, %v4979_v40, 0.0  ;;  %v7367_v30 = vld [vmem:[%s10156_s7 + $0x18] sm:$0xff]   ;;  %v7368_v9 = vld [vmem:[%s10156_s7 + $0x50] sm:$0xff]   ;;  %v7371_v40 = vld [vmem:[%s10156_s7 + $0x8] sm:$0xff]  }
0x1efb   :  { %4984 = vadd.xlane.f32.xlu1 %v4983_v2  ;;  %6707 = vmatpush3.bf16.msra.mxu1 %v7361_v59  ;;  %v7370_v2 = vld [vmem:[%s10156_s7 + $0x48] sm:$0xff]  }
0x1efc   :  { %v4978_v54 = vmul.f32 %v4974_v27, %v4974_v27 }
0x1efe   :  { %v4986_v4 = vsel %vm1255_vm3, %v4978_v54, 0.0  ;;  %v7372_v54 = vld [vmem:[%s10156_s7 + $0x40] sm:$0xff]  }
0x1eff   :  { %4990 = vadd.xlane.f32.xlu1 %v4989_v20  ;;  %4987 = vadd.xlane.f32.xlu0 %v4986_v4  ;;  %v7373_v20 = vld [vmem:[%s10156_s7] sm:$0xff]  }
0x1f00   :  { %v3497_v4 = vld [vmem:[%s10157_s10] sm:$0x3] }
0x1f01   :  { %v5034_v13 = vrot.slane %v3497_v4, %v3609_v5  ;;  %v5038_v60 = vrot.slane %v3497_v4, %v3613_v23 }
0x1f80   :  { %v4982_v21 = vpop.xlane.xlu0 %4981 }
0x1f81   :  { %v4992_v42 = vmul.f32 0.015625, %v4982_v21 }
0x1f83   :  { %v4996_v44 = vadd.f32 1e-05, %v4992_v42 }
0x1f84   :  { %v4985_v28 = vpop.xlane.xlu1 %4984 }
0x1f85   :  { %7774 = vrsqrt.f32 %v4996_v44  ;;  %v4993_v8 = vmul.f32 0.015625, %v4985_v28 }
0x1f87   :  { %v4997_v51 = vadd.f32 1e-05, %v4993_v8 }
0x1f88   :  { %v4991_v36 = vpop.xlane.xlu1 %4990  ;;  %v4988_v34 = vpop.xlane.xlu0 %4987 }
0x1f89   :  { %7776 = vrsqrt.f32 %v4997_v51  ;;  %v4995_v10 = vmul.f32 0.015625, %v4991_v36  ;;  %v4994_v24 = vmul.f32 0.015625, %v4988_v34 }
0x1f8b   :  { %v4999_v56 = vadd.f32 1e-05, %v4995_v10  ;;  %v4998_v41 = vadd.f32 1e-05, %v4994_v24 }
0x1f8d   :  { %7778 = vrsqrt.f32 %v4999_v56 }
0x1f8e   :  { %7780 = vrsqrt.f32 %v4998_v41 }
0x1f92   :  { %v7775_v33 = vpop.eup %7774 }
0x1f93   :  { %v5004_v53 = vmul.f32 %v7775_v33, %v4972_v43 }
0x1f95   :  { %v5014_v22 = vmul.f32 %v6425_v17, %v5004_v53 }
0x1f96   :  { %v7777_v7 = vpop.eup %7776 }
0x1f97   :  { %v5005_v52 = vmul.f32 %v7777_v7, %v4973_v0  ;;  %v5024_v6 = vadd.f32 %v6426_v25, %v5014_v22  ;;  %v7364_v0 = vld [vmem:[%s10156_s7 + $0x60] sm:$0xff]  }
0x1f99   :  { %v5015_v18 = vmul.f32 %v6425_v17, %v5005_v52 }
0x1f9a   :  { %v7779_v16 = vpop.eup %7778 }
0x1f9b   :  { %v7781_v14 = vpop.eup %7780  ;;  %v5007_v31 = vmul.f32 %v7779_v16, %v4975_v55  ;;  %v5025_v61 = vadd.f32 %v6426_v25, %v5015_v18  ;;  %v7363_v55 = vld [vmem:[%s10156_s7 + $0x28] sm:$0xff]  }
0x1f9c   :  { %v5006_v62 = vmul.f32 %v7781_v14, %v4974_v27  ;;  %v7369_v27 = vld [vmem:[%s10156_s7 + $0x10] sm:$0xff]  }
0x1f9d   :  { %v5028_v32 = vpack.c.bf16 %v5025_v61, %v5024_v6  ;;  %v5017_v12 = vmul.f32 %v6425_v17, %v5007_v31 }
0x1f9e   :  { %v5016_v58 = vmul.f32 %v6425_v17, %v5006_v62 }
0x1f9f   :  { %6435 = vmatmul.mubr.msk.bf16.vlgmr.msra.gmra.mxu0 %vm1255_vm3, %v5028_v32  ;;  %v5027_v43 = vadd.f32 %v6426_v25, %v5017_v12 }
0x1fa0   :  { %5129 = vmatprep.mubr.bf16.mxu0 %v7872_v47  ;;  %v5026_v29 = vadd.f32 %v6426_v25, %v5016_v58  ;;  %v7362_v47 = vld [vmem:[%s10156_s7 + $0x68] sm:$0xff]  }
0x1fa1   :  { %6708 = vmatprep.subr.bf16.mxu1 %v7362_v47 }
0x1fa2   :  { %v5029_v50 = vpack.c.bf16 %v5027_v43, %v5026_v29  ;;  %6709 = vmatpush3.bf16.msra.mxu1 %v7363_v55 }
0x1fa3   :  { %6710 = vmatprep.subr.bf16.mxu1 %v7364_v0 }
0x1fa6   :  { %6711 = vmatpush3.bf16.msra.mxu1 %v7365_v46 }
0x1fa7   :  { %6436 = vmatmul.mubr.msk.bf16.gmra.mxu0 %vm1255_vm3, %v5029_v50  ;;  %6712 = vmatprep.subr.bf16.mxu1 %v7366_v26 }
0x1faa   :  { %6713 = vmatpush3.bf16.msra.mxu1 %v7367_v30 }
0x1fab   :  { %6714 = vmatprep.subr.bf16.mxu1 %v7368_v9 }
0x1fae   :  { %6715 = vmatpush3.bf16.msra.mxu1 %v7369_v27 }
0x1faf   :  { %6716 = vmatprep.subr.bf16.mxu1 %v7370_v2 }
0x1fb2   :  { %6717 = vmatpush3.bf16.msra.mxu1 %v7371_v40 }
0x1fb3   :  { %6718 = vmatprep.subr.bf16.mxu1 %v7372_v54 }
0x1fb6   :  { %6719 = vmatpush3.bf16.msra.mxu1 %v7373_v20 }
0x205f   :  { %v5121_v11 = vpop.f32.mrf.mxu0 }
0x2060   :  { %v9906_v63 = vadd.f32 %v5121_v11, %v5034_v13 }
0x2061   :  { %v5123_v57 = vpop.f32.mrf.mxu0 }
0x2062   :  { %v5148_v37 = vmul.f32 0.044715, %v9906_v63  ;;  %v9909_v3 = vadd.f32 %v5123_v57, %v5038_v60 }
0x2063   :  { %v5125_v45 = vpop.f32.mrf.mxu0 }
0x2064   :  { %v5156_v21 = vmul.f32 %v5148_v37, %v9906_v63  ;;  %v5149_v42 = vmul.f32 0.044715, %v9909_v3  ;;  %v5126_v44 = vadd.f32 %v5125_v45, %v5034_v13 }
0x2065   :  { %v5127_v28 = vpop.f32.mrf.mxu0 }
0x2066   :  { %v5164_v5 = vmul.f32 %v5156_v21, %v9906_v63  ;;  %v5157_v39 = vmul.f32 %v5149_v42, %v9909_v3  ;;  %v5150_v23 = vmul.f32 0.044715, %v5126_v44  ;;  %v5128_v8 = vadd.f32 %v5127_v28, %v5038_v60 }
0x2067   :  { %v5131_v51 = vpop.f32.mrf.mxu0  ;;  %v5142_v37 = vmul.f32 0.5, %v5126_v44  ;;  %v5141_v21 = vmul.f32 0.5, %v9909_v3 }
0x2068   :  { %v5172_v36 = vadd.f32 %v5164_v5, %v9906_v63  ;;  %v5165_v34 = vmul.f32 %v5157_v39, %v9909_v3  ;;  %v5158_v10 = vmul.f32 %v5150_v23, %v5126_v44  ;;  %v9917_v24 = vadd.f32 %v5131_v51, %v5034_v13 }
0x2069   :  { %v5151_v56 = vmul.f32 0.044715, %v5128_v8  ;;  %v5133_v41 = vpop.f32.mrf.mxu0  ;;  %v5143_v42 = vmul.f32 0.5, %v5128_v8  ;;  %v5140_v5 = vmul.f32 0.5, %v9906_v63 }
0x206a   :  { %v5180_v33 = vmul.f32 0.7978846, %v5172_v36  ;;  %v5166_v53 = vmul.f32 %v5158_v10, %v5126_v44  ;;  %v5152_v17 = vmul.f32 0.044715, %v9917_v24  ;;  %v9920_v7 = vadd.f32 %v5133_v41, %v5038_v60 }
0x206b   :  { %v5159_v22 = vmul.f32 %v5151_v56, %v5128_v8  ;;  %v5135_v52 = vpop.f32.mrf.mxu0  ;;  %v5173_v25 = vadd.f32 %v5165_v34, %v9909_v3 }
0x206c   :  { %v5174_v18 = vadd.f32 %v5166_v53, %v5126_v44  ;;  %v5160_v16 = vmul.f32 %v5152_v17, %v9917_v24  ;;  %v5153_v14 = vmul.f32 0.044715, %v9920_v7  ;;  %7782 = vtanh.f32 %v5180_v33 }
0x206d   :  { %v5167_v31 = vmul.f32 %v5159_v22, %v5128_v8  ;;  %v5136_v6 = vadd.f32 %v5135_v52, %v5034_v13  ;;  %v5137_v61 = vpop.f32.mrf.mxu0  ;;  %v5181_v62 = vmul.f32 0.7978846, %v5173_v25  ;;  %v5145_v44 = vmul.f32 0.5, %v9920_v7 }
0x206e   :  { %v5182_v32 = vmul.f32 0.7978846, %v5174_v18  ;;  %v5168_v12 = vmul.f32 %v5160_v16, %v9917_v24  ;;  %v5161_v58 = vmul.f32 %v5153_v14, %v9920_v7  ;;  %v5138_v29 = vadd.f32 %v5137_v61, %v5038_v60 }
0x206f   :  { %v5154_v43 = vmul.f32 0.044715, %v5136_v6  ;;  %v5175_v50 = vadd.f32 %v5167_v31, %v5128_v8  ;;  %7784 = vtanh.f32 %v5181_v62  ;;  %v5146_v63 = vmul.f32 0.5, %v5136_v6 }
0x2070   :  { %7786 = vtanh.f32 %v5182_v32  ;;  %v5176_v48 = vadd.f32 %v5168_v12, %v9917_v24  ;;  %v5169_v15 = vmul.f32 %v5161_v58, %v9920_v7  ;;  %v5155_v35 = vmul.f32 0.044715, %v5138_v29  ;;  %v6437_v12 = vld [vmem:[%s10158_s11] ss:$0 sm:$0xff] }
0x2071   :  { %v5162_v59 = vmul.f32 %v5154_v43, %v5136_v6  ;;  %v5183_v47 = vmul.f32 0.7978846, %v5175_v50  ;;  %v5147_v3 = vmul.f32 0.5, %v5138_v29  ;;  %v5144_v16 = vmul.f32 0.5, %v9917_v24 }
0x2072   :  { %v5163_v55 = vmul.f32 %v5155_v35, %v5138_v29  ;;  %v5177_v0 = vadd.f32 %v5169_v15, %v9920_v7  ;;  %v5184_v26 = vmul.f32 0.7978846, %v5176_v48 }
0x2073   :  { %v5170_v46 = vmul.f32 %v5162_v59, %v5136_v6  ;;  %7788 = vtanh.f32 %v5183_v47 }
0x2074   :  { %v5171_v30 = vmul.f32 %v5163_v55, %v5138_v29  ;;  %v5185_v9 = vmul.f32 0.7978846, %v5177_v0 }
0x2075   :  { %v5178_v27 = vadd.f32 %v5170_v46, %v5136_v6 }
0x2076   :  { %v5179_v2 = vadd.f32 %v5171_v30, %v5138_v29  ;;  %7790 = vtanh.f32 %v5185_v9 }
0x2077   :  { %v5186_v40 = vmul.f32 0.7978846, %v5178_v27  ;;  %7792 = vtanh.f32 %v5184_v26 }
0x2078   :  { %v5187_v54 = vmul.f32 0.7978846, %v5179_v2 }
0x2079   :  { %7794 = vtanh.f32 %v5186_v40  ;;  %v7783_v20 = vpop.eup %7782 }
0x207a   :  { %7796 = vtanh.f32 %v5187_v54  ;;  %v5196_v45 = vadd.f32 1.0, %v7783_v20 }
0x207c   :  { %v7785_v4 = vpop.eup %7784  ;;  %v5204_v34 = vmul.f32 %v5196_v45, %v5140_v5 }
0x207d   :  { %v7787_v13 = vpop.eup %7786  ;;  %v5197_v11 = vadd.f32 1.0, %v7785_v4 }
0x207e   :  { %v5198_v60 = vadd.f32 1.0, %v7787_v13 }
0x207f   :  { %v5205_v51 = vmul.f32 %v5197_v11, %v5141_v21 }
0x2080   :  { %v7789_v57 = vpop.eup %7788  ;;  %v5206_v39 = vmul.f32 %v5198_v60, %v5142_v37 }
0x2081   :  { %v5199_v28 = vadd.f32 1.0, %v7789_v57 }
0x2082   :  { %v5212_v33 = vpack.c.bf16 %v5206_v39, %v5204_v34 }
0x2083   :  { %v7791_v23 = vpop.eup %7790  ;;  %v5207_v36 = vmul.f32 %v5199_v28, %v5143_v42 }
0x2084   :  { %v7793_v10 = vpop.eup %7792  ;;  %v5201_v53 = vadd.f32 1.0, %v7791_v23 }
0x2085   :  { %v5213_v56 = vpack.c.bf16 %v5207_v36, %v5205_v51  ;;  %v5200_v52 = vadd.f32 1.0, %v7793_v10  ;;  %v7374_v10 = vld [vmem:[%s8065_s27 + $0x78] sm:$0xff]  }
0x2086   :  { %v7795_v41 = vpop.eup %7794  ;;  %v5209_v25 = vmul.f32 %v5201_v53, %v5145_v44  ;;  %v7378_v53 = vld [vmem:[%s8065_s27 + $0x70] sm:$0xff]   ;;  %6732 = vmatprep.subr.bf16.mxu0 %v7374_v10  ;;  %v7405_v10 = vld [vmem:[%s8065_s27 + $0x80] sm:$0xff]  }
0x2087   :  { %v7797_v17 = vpop.eup %7796  ;;  %5350 = vmatprep.mubr.bf16.mxu1 %v5213_v56  ;;  %v5202_v22 = vadd.f32 1.0, %v7795_v41  ;;  %v5208_v61 = vmul.f32 %v5200_v52, %v5144_v16  ;;  %v7375_v56 = vld [vmem:[%s8065_s27 + $0xf8] sm:$0xff]   ;;  %v7380_v44 = vld [vmem:[%s8065_s27 + $0x30] sm:$0xff]   ;;  %v7385_v52 = vld [vmem:[%s8065_s27 + $0xa8] sm:$0xff]  }
0x2088   :  { %5351 = vmatmul.mubr.bf16.vlgmr.msra.gmra.mxu1 %v5212_v33  ;;  %v5203_v8 = vadd.f32 1.0, %v7797_v17  ;;  %v7376_v41 = vld [vmem:[%s8065_s27 + $0x38] sm:$0xff]   ;;  %v7379_v17 = vld [vmem:[%s8065_s27 + $0xf0] sm:$0xff]   ;;  %6754 = vmatprep.subr.bf16.mxu1 %v7375_v56  ;;  %v7388_v16 = vld [vmem:[%s8065_s27 + $0x20] sm:$0xff]  }
0x2089   :  { %v5210_v14 = vmul.f32 %v5202_v22, %v5146_v63  ;;  %v7377_v33 = vld [vmem:[%s8065_s27 + $0xb8] sm:$0xff]   ;;  %6733 = vmatpush3.bf16.msra.mxu0 %v7376_v41  ;;  %v7381_v22 = vld [vmem:[%s8065_s27 + $0xb0] sm:$0xff]   ;;  %v7384_v63 = vld [vmem:[%s8065_s27 + $0x28] sm:$0xff]  }
0x208a   :  { %v5211_v18 = vmul.f32 %v5203_v8, %v5147_v3  ;;  %6755 = vmatpush3.bf16.msra.mxu1 %v7377_v33  ;;  %6734 = vmatprep.subr.bf16.mxu0 %v7378_v53  ;;  %v7382_v3 = vld [vmem:[%s8065_s27 + $0x68] sm:$0xff]  }
0x208b   :  { %v5214_v62 = vpack.c.bf16 %v5210_v14, %v5208_v61  ;;  %6756 = vmatprep.subr.bf16.mxu1 %v7379_v17  ;;  %v7383_v8 = vld [vmem:[%s8065_s27 + $0xe8] sm:$0xff]   ;;  %v7389_v14 = vld [vmem:[%s8065_s27 + $0xa0] sm:$0xff]   ;;  %v7391_v61 = vld [vmem:[%s8065_s27 + $0xd8] sm:$0xff]  }
0x208c   :  { %v5215_v31 = vpack.c.bf16 %v5211_v18, %v5209_v25  ;;  %v7386_v25 = vld [vmem:[%s8065_s27 + $0x60] sm:$0xff]  }
0x208d   :  { %6735 = vmatpush3.bf16.msra.mxu0 %v7380_v44  ;;  %v7387_v18 = vld [vmem:[%s8065_s27 + $0xe0] sm:$0xff]  }
0x208e   :  { %5358 = vmatprep.mubr.bf16.mxu1 %v5215_v31  ;;  %6757 = vmatpush3.bf16.msra.mxu1 %v7381_v22  ;;  %v7390_v31 = vld [vmem:[%s8065_s27 + $0x58] sm:$0xff]  }
0x208f   :  { %6736 = vmatprep.subr.bf16.mxu0 %v7382_v3  ;;  %6758 = vmatprep.subr.bf16.mxu1 %v7383_v8  ;;  %v7406_v3 = vld [vmem:[%s8065_s27 + $0x178] sm:$0xff]  }
0x2090   :  { %5359 = vmatmul.mubr.bf16.gmra.mxu1 %v5214_v62  ;;  %v7392_v62 = vld [vmem:[%s8065_s27 + $0x18] sm:$0xff]  }
0x2091   :  { %6737 = vmatpush3.bf16.msra.mxu0 %v7384_v63  ;;  %v7407_v8 = vld [vmem:[%s8065_s27 + $0x1f8] sm:$0xff]  }
0x2092   :  { %6759 = vmatpush3.bf16.msra.mxu1 %v7385_v52  ;;  %6738 = vmatprep.subr.bf16.mxu0 %v7386_v25 }
0x2093   :  { %6760 = vmatprep.subr.bf16.mxu1 %v7387_v18 }
0x2095   :  { %6739 = vmatpush3.bf16.msra.mxu0 %v7388_v16 }
0x2096   :  { %6761 = vmatpush3.bf16.msra.mxu1 %v7389_v14  ;;  %6740 = vmatprep.subr.bf16.mxu0 %v7390_v31 }
0x2097   :  { %6762 = vmatprep.subr.bf16.mxu1 %v7391_v61 }
0x2099   :  { %6741 = vmatpush3.bf16.msra.mxu0 %v7392_v62 }
0x2148   :  { %v6720_v32 = vpop.f32.mrf.mxu1 }
0x214a   :  { %v6721_v7 = vpop.f32.mrf.mxu1 }
0x214b   :  { %v6722_v58 = vadd.f32 %v6721_v7, %v6720_v32  ;;  %v7393_v32 = vld [vmem:[%s8065_s27 + $0x98] sm:$0xff]   ;;  %v7395_v7 = vld [vmem:[%s8065_s27 + $0xd0] sm:$0xff]  }
0x214c   :  { %v6723_v43 = vpop.f32.mrf.mxu1  ;;  %6763 = vmatpush3.bf16.msra.mxu1 %v7393_v32 }
0x214d   :  { %v5353_v50 = vadd.f32 %v6722_v58, %v6437_v12  ;;  %v7396_v58 = vld [vmem:[%s8065_s27 + $0x10] sm:$0xff]   ;;  %6764 = vmatprep.subr.bf16.mxu1 %v7395_v7 }
0x214e   :  { %v6724_v29 = vpop.f32.mrf.mxu1 }
0x214f   :  { %v6725_v48 = vadd.f32 %v6724_v29, %v6723_v43  ;;  %v5367_v6 = vadd.f32 %v5353_v50, %v9844_v19  ;;  %v7397_v43 = vld [vmem:[%s8065_s27 + $0x90] sm:$0xff]   ;;  %v7398_v50 = vld [vmem:[%s8065_s27 + $0x48] sm:$0xff]  }
0x2150   :  { %v6726_v15 = vpop.f32.mrf.mxu1  ;;  %v7399_v29 = vld [vmem:[%s8065_s27 + $0xc8] sm:$0xff]   ;;  %6765 = vmatpush3.bf16.msra.mxu1 %v7397_v43 }
0x2151   :  { %v5356_v35 = vadd.f32 %v6725_v48, %v6437_v12  ;;  %v5373_v24 = vsel %vm1255_vm3, %v5367_v6, 0.0  ;;  %v7400_v48 = vld [vmem:[%s8065_s27 + $0x8] sm:$0xff]   ;;  %6766 = vmatprep.subr.bf16.mxu1 %v7399_v29 }
0x2152   :  { %v6727_v59 = vpop.f32.mrf.mxu1  ;;  %5374 = vadd.xlane.f32.xlu0 %v5373_v24 }
0x2153   :  { %v6728_v47 = vadd.f32 %v6727_v59, %v6726_v15  ;;  %v5368_v55 = vadd.f32 %v5356_v35, %v9854_v49 }
0x2154   :  { %v6729_v0 = vpop.f32.mrf.mxu1 }
0x2155   :  { %v5361_v46 = vadd.f32 %v6728_v47, %v6437_v12  ;;  %v5376_v26 = vsel %vm1255_vm3, %v5368_v55, 0.0 }
0x2156   :  { %v6730_v30 = vpop.f32.mrf.mxu1  ;;  %5377 = vadd.xlane.f32.xlu0 %v5376_v26 }
0x2157   :  { %v6731_v9 = vadd.f32 %v6730_v30, %v6729_v0  ;;  %v5369_v27 = vadd.f32 %v5361_v46, %v9856_v38 }
0x2159   :  { %v5364_v2 = vadd.f32 %v6731_v9, %v6437_v12  ;;  %v5379_v19 = vsel %vm1255_vm3, %v5369_v27, 0.0  ;;  %v7394_v12 = vld [vmem:[%s8065_s27 + $0x50] sm:$0xff]  }
0x215a   :  { %5380 = vadd.xlane.f32.xlu1 %v5379_v19  ;;  %6742 = vmatprep.subr.bf16.mxu0 %v7394_v12  ;;  %v6454_v19 = vld [vmem:[%s10159_s0] ss:$0 sm:$0xff] }
0x215b   :  { %v5370_v40 = vadd.f32 %v5364_v2, %v9849_v1  ;;  %6743 = vmatpush3.bf16.msra.mxu0 %v7396_v58 }
0x215c   :  { %6744 = vmatprep.subr.bf16.mxu0 %v7398_v50 }
0x215d   :  { %v5382_v54 = vsel %vm1255_vm3, %v5370_v40, 0.0 }
0x215e   :  { %5383 = vadd.xlane.f32.xlu1 %v5382_v54 }
0x215f   :  { %6745 = vmatpush3.bf16.msra.mxu0 %v7400_v48 }
0x21db   :  { %v5375_v20 = vpop.xlane.xlu0 %5374 }
0x21dc   :  { %v5385_v49 = vmul.f32 0.015625, %v5375_v20 }
0x21de   :  { %v9943_v4 = vsub.f32 %v5367_v6, %v5385_v49  ;;  %v7401_v6 = vld [vmem:[%s8065_s27 + $0x88] sm:$0xff]   ;;  %v6455_v49 = vld [vmem:[%s8060_s20] ss:$0 sm:$0xff]  ;;  %s7876_s20 = smov [#allocation2]  }
0x21df   :  { %v5378_v13 = vpop.xlane.xlu0 %5377  ;;  %6767 = vmatpush3.bf16.msra.mxu1 %v7401_v6 }
0x21e0   :  { %v5386_v60 = vmul.f32 0.015625, %v5378_v13  ;;  %v5393_v11 = vmul.f32 %v9943_v4, %v9943_v4 }
0x21e2   :  { %v9947_v57 = vsub.f32 %v5368_v55, %v5386_v60  ;;  %v5397_v38 = vsel %vm1255_vm3, %v5393_v11, 0.0 }
0x21e3   :  { %v5381_v37 = vpop.xlane.xlu1 %5380  ;;  %5398 = vadd.xlane.f32.xlu0 %v5397_v38 }
0x21e4   :  { %v5387_v1 = vmul.f32 0.015625, %v5381_v37  ;;  %v5394_v45 = vmul.f32 %v9947_v57, %v9947_v57 }
0x21e6   :  { %v9952_v21 = vsub.f32 %v5369_v27, %v5387_v1  ;;  %v5400_v42 = vsel %vm1255_vm3, %v5394_v45, 0.0 }
0x21e7   :  { %v5384_v28 = vpop.xlane.xlu1 %5383  ;;  %5401 = vadd.xlane.f32.xlu0 %v5400_v42 }
0x21e8   :  { %v5388_v5 = vmul.f32 0.015625, %v5384_v28  ;;  %v5395_v39 = vmul.f32 %v9952_v21, %v9952_v21 }
0x21ea   :  { %v9957_v23 = vsub.f32 %v5370_v40, %v5388_v5  ;;  %v5403_v51 = vsel %vm1255_vm3, %v5395_v39, 0.0  ;;  %v7402_v5 = vld [vmem:[%s8065_s27 + $0x40] sm:$0xff]  }
0x21eb   :  { %5404 = vadd.xlane.f32.xlu1 %v5403_v51  ;;  %v7404_v39 = vld [vmem:[%s8065_s27] sm:$0xff]   ;;  %6746 = vmatprep.subr.bf16.mxu0 %v7402_v5 }
0x21ec   :  { %v5396_v36 = vmul.f32 %v9957_v23, %v9957_v23  ;;  %6747 = vmatpush3.bf16.msra.mxu0 %v7404_v39 }
0x21ed   :  { %6776 = vmatprep.subr.bf16.mxu0 %v7406_v3  ;;  %v7413_v3 = vld [vmem:[%s8065_s27 + $0x1b0] sm:$0xff]  }
0x21ee   :  { %v5406_v34 = vsel %vm1255_vm3, %v5396_v36, 0.0 }
0x21ef   :  { %5407 = vadd.xlane.f32.xlu1 %v5406_v34 }
0x226c   :  { %v5399_v15 = vpop.xlane.xlu0 %5398 }
0x226d   :  { %v5409_v35 = vmul.f32 0.015625, %v5399_v15 }
0x226f   :  { %v5413_v24 = vadd.f32 1e-05, %v5409_v35 }
0x2270   :  { %v5402_v59 = vpop.xlane.xlu0 %5401 }
0x2271   :  { %7798 = vrsqrt.f32 %v5413_v24  ;;  %v5410_v47 = vmul.f32 0.015625, %v5402_v59 }
0x2273   :  { %v5414_v55 = vadd.f32 1e-05, %v5410_v47 }
0x2274   :  { %v5405_v0 = vpop.xlane.xlu1 %5404 }
0x2275   :  { %7800 = vrsqrt.f32 %v5414_v55  ;;  %v5411_v46 = vmul.f32 0.015625, %v5405_v0 }
0x2277   :  { %v5415_v26 = vadd.f32 1e-05, %v5411_v46 }
0x2278   :  { %v5408_v30 = vpop.xlane.xlu1 %5407 }
0x2279   :  { %7802 = vrsqrt.f32 %v5415_v26  ;;  %v5412_v9 = vmul.f32 0.015625, %v5408_v30 }
0x227b   :  { %v5416_v27 = vadd.f32 1e-05, %v5412_v9 }
0x227d   :  { %7804 = vrsqrt.f32 %v5416_v27 }
0x227e   :  { %v7799_v2 = vpop.eup %7798 }
0x227f   :  { %v5421_v40 = vmul.f32 %v7799_v2, %v9943_v4  ;;  %v7403_v4 = vld [vmem:[%s8065_s27 + $0xc0] sm:$0xff]  }
0x2280   :  { %6768 = vmatprep.subr.bf16.mxu1 %v7403_v4 }
0x2281   :  { %v5431_v54 = vmul.f32 %v6454_v19, %v5421_v40  ;;  %6769 = vmatpush3.bf16.msra.mxu1 %v7405_v10 }
0x2282   :  { %v7801_v20 = vpop.eup %7800  ;;  %6798 = vmatprep.subr.bf16.mxu1 %v7407_v8 }
0x2283   :  { %v5422_v13 = vmul.f32 %v7801_v20, %v9947_v57  ;;  %v5441_v60 = vadd.f32 %v6455_v49, %v5431_v54 }
0x2285   :  { %v5432_v11 = vmul.f32 %v6454_v19, %v5422_v13  ;;  %v5470_v42 = vrot.slane %v5441_v60, 5  ;;  %v5480_v28 = vrot.slane %v5441_v60, 7  ;;  %v5451_v36 = vrot.slane %v5441_v60, 1 }
0x2286   :  { %v7803_v38 = vpop.eup %7802  ;;  %v5460_v34 = vrot.slane %v5441_v60, 3  ;;  %v5466_v57 = vrot.slane %v5441_v60, 4  ;;  %v5456_v56 = vrot.slane %v5441_v60, 2  ;;  %v5476_v53 = vrot.slane %v5441_v60, 6 }
0x2287   :  { %v9995_v37 = vadd.f32 %v6455_v49, %v5432_v11  ;;  %v5423_v1 = vmul.f32 %v7803_v38, %v9952_v21 }
0x2289   :  { %v5433_v45 = vmul.f32 %v6454_v19, %v5423_v1  ;;  %v5491_v21 = vrot.slane %v9995_v37, 1  ;;  %v5500_v17 = vrot.slane %v9995_v37, 3  ;;  %v5510_v44 = vrot.slane %v9995_v37, 5 }
0x228a   :  { %v7805_v51 = vpop.eup %7804  ;;  %v5520_v22 = vrot.slane %v9995_v37, 7  ;;  %v5506_v63 = vrot.slane %v9995_v37, 4  ;;  %v5496_v35 = vrot.slane %v9995_v37, 2  ;;  %v5516_v2 = vrot.slane %v9995_v37, 6 }
0x228b   :  { %v5443_v41 = vadd.f32 %v6455_v49, %v5433_v45  ;;  %v5424_v33 = vmul.f32 %v7805_v51, %v9957_v23 }
0x228d   :  { %v5434_v52 = vmul.f32 %v6454_v19, %v5424_v33  ;;  %v5471_v25 = vrot.slane %v5443_v41, 4  ;;  %v5481_v23 = vrot.slane %v5443_v41, 6  ;;  %v5452_v18 = vsel %vm5448_vm6, %v5443_v41, %v5451_v36  ;;  %v7408_v33 = vld [vmem:[%s8065_s27 + $0x138] sm:$0xff]  }
0x228e   :  { %v5461_v16 = vrot.slane %v5443_v41, 2  ;;  %v5467_v14 = vrot.slane %v5443_v41, 3  ;;  %v5447_v31 = vrot.slane %v5443_v41, 7  ;;  %v5457_v61 = vrot.slane %v5443_v41, 1 }
0x228f   :  { %v5444_v62 = vadd.f32 %v6455_v49, %v5434_v52  ;;  %v5472_v32 = vsel %vm5448_vm6, %v5471_v25, %v5470_v42  ;;  %v5482_v12 = vsel %vm5448_vm6, %v5481_v23, %v5480_v28  ;;  %v5477_v7 = vrot.slane %v5443_v41, 5  ;;  %v7415_v52 = vld [vmem:[%s8065_s27 + $0x1e8] sm:$0xff]  }
0x2290   :  { %v7290_v58 = vpack.i.bf16 %v5472_v32, %v5482_v12  ;;  %v5462_v43 = vsel %vm5448_vm6, %v5461_v16, %v5460_v34  ;;  %v5468_v50 = vsel %vm5448_vm6, %v5467_v14, %v5466_v57  ;;  %v5449_v29 = vsel %vm5448_vm6, %v5447_v31, %v5441_v60  ;;  %v7409_v57 = vld [vmem:[%s8065_s27 + $0x1b8] sm:$0xff]   ;;  %v7414_v25 = vld [vmem:[%s8065_s27 + $0x168] sm:$0xff]   ;;  %v7419_v31 = vld [vmem:[%s8065_s27 + $0x1e0] sm:$0xff]  }
0x2291   :  { %v7285_v48 = vpack.i.bf16 %v5452_v18, %v5462_v43  ;;  %v5501_v6 = vrot.slane %v5444_v62, 2  ;;  %v5511_v15 = vrot.slane %v5444_v62, 4  ;;  %v5521_v24 = vrot.slane %v5444_v62, 6  ;;  %v7417_v16 = vld [vmem:[%s8065_s27 + $0x1a8] sm:$0xff]   ;;  %v7420_v32 = vld [vmem:[%s8065_s27 + $0x120] sm:$0xff]   ;;  %v7423_v12 = vld [vmem:[%s8065_s27 + $0x1d8] sm:$0xff]  }
0x2292   :  { %7291 = vrot.lane.b32.xlu1 %v7290_v58, %s7867_s5  ;;  %v5488_v59 = vrot.slane %v5444_v62, 7  ;;  %v5458_v47 = vsel %vm5448_vm6, %v5457_v61, %v5456_v56  ;;  %v5478_v55 = vsel %vm5448_vm6, %v5477_v7, %v5476_v53  ;;  %v5492_v0 = vsel %vm5448_vm6, %v5444_v62, %v5491_v21  ;;  %v7411_v21 = vld [vmem:[%s8065_s27 + $0x1f0] sm:$0xff]   ;;  %v7416_v14 = vld [vmem:[%s8065_s27 + $0x128] sm:$0xff]   ;;  %v7418_v61 = vld [vmem:[%s8065_s27 + $0x160] sm:$0xff]  }
0x2293   :  { %7286 = vrot.lane.b32.xlu0 %v7285_v48, %s7867_s5  ;;  %v5502_v46 = vsel %vm5448_vm6, %v5501_v6, %v5500_v17  ;;  %v5507_v26 = vrot.slane %v5444_v62, 3  ;;  %v5497_v30 = vrot.slane %v5444_v62, 1  ;;  %v5517_v19 = vrot.slane %v5444_v62, 5  ;;  %v7410_v53 = vld [vmem:[%s8065_s27 + $0x170] sm:$0xff]   ;;  %v7421_v62 = vld [vmem:[%s8065_s27 + $0x1a0] sm:$0xff]   ;;  %v7422_v7 = vld [vmem:[%s8065_s27 + $0x158] sm:$0xff]  }
0x2294   :  { %v7295_v9 = vpack.i.bf16 %v5492_v0, %v5502_v46  ;;  %v10025_v27 = vsel %vm5448_vm6, %v5488_v59, %v9995_v37  ;;  %v5512_v40 = vsel %vm5448_vm6, %v5511_v15, %v5510_v44  ;;  %v5522_v54 = vsel %vm5448_vm6, %v5521_v24, %v5520_v22  ;;  %v7425_v58 = vld [vmem:[%s8065_s27 + $0x198] sm:$0xff]   ;;  %v7429_v48 = vld [vmem:[%s8065_s27 + $0x190] sm:$0xff]   ;;  %v7431_v15 = vld [vmem:[%s8065_s27 + $0x1c8] sm:$0xff]  }
0x2295   :  { %v10031_v20 = vsel %vm5448_vm6, %v5507_v26, %v5506_v63  ;;  %v5498_v49 = vsel %vm5448_vm6, %v5497_v30, %v5496_v35  ;;  %v5518_v13 = vsel %vm5448_vm6, %v5517_v19, %v5516_v2  ;;  %v7300_v60 = vpack.i.bf16 %v5512_v40, %v5522_v54  ;;  %v7412_v63 = vld [vmem:[%s8065_s27 + $0x130] sm:$0xff]   ;;  %v7424_v43 = vld [vmem:[%s8065_s27 + $0x118] sm:$0xff]   ;;  %v7430_v35 = vld [vmem:[%s8065_s27 + $0x148] sm:$0xff]  }
0x2296   :  { %7296 = vrot.lane.b32.xlu1 %v7295_v9, %s7867_s5  ;;  %v7428_v6 = vld [vmem:[%s8065_s27 + $0x110] sm:$0xff]   ;;  %v7433_v24 = vld [vmem:[%s8065_s27 + $0x188] sm:$0xff]   ;;  %v7434_v0 = vld [vmem:[%s8065_s27 + $0x140] sm:$0xff]  }
0x2297   :  { %v7432_v59 = vld [vmem:[%s8065_s27 + $0x108] sm:$0xff]   ;;  %v7437_v26 = vld [vmem:[%s8065_s27 + $0x180] sm:$0xff]  }
0x2298   :  { %v7436_v30 = vld [vmem:[%s8065_s27 + $0x100] sm:$0xff]  }
0x229a   :  { %7301 = vrot.lane.b32.xlu1 %v7300_v60, %s7867_s5 }
0x2304   :  { %v7292_v11 = vpop.permute.xlu1 %7291 }
0x2305   :  { %v7294_v38 = vunpack.i.h.bf16 %v7292_v11  ;;  %v7293_v37 = vunpack.i.l.bf16 %v7292_v11  ;;  %v7287_v1 = vpop.permute.xlu0 %7286 }
0x2306   :  { %v7289_v45 = vunpack.i.h.bf16 %v7287_v1  ;;  %v7288_v42 = vunpack.i.l.bf16 %v7287_v1 }
0x2307   :  { %v5528_v28 = vsel %vm1255_vm3, %v5468_v50, %v7294_v38  ;;  %v5529_v5 = vsel %vm1255_vm3, %v5478_v55, %v7293_v37  ;;  %v7427_v50 = vld [vmem:[%s8065_s27 + $0x1d0] sm:$0xff]  }
0x2308   :  { %v5536_v4 = vpack.c.bf16 %v5528_v28, %v5528_v28  ;;  %v5526_v39 = vsel %vm1255_vm3, %v5449_v29, %v7289_v45  ;;  %v10040_v51 = vpop.permute.xlu1 %7296  ;;  %v5527_v36 = vsel %vm1255_vm3, %v5458_v47, %v7288_v42  ;;  %v5537_v34 = vpack.c.bf16 %v5529_v5, %v5529_v5  ;;  %v7426_v29 = vld [vmem:[%s8065_s27 + $0x150] sm:$0xff]   ;;  %v7435_v47 = vld [vmem:[%s8065_s27 + $0x1c0] sm:$0xff]   ;;  %s6228_s27 = sshll.u32 %s7876_s20, 4  ;;  %s6229_s27 = int_to_ptr.vmem [resolvable:$true] %s6228_s27 }
0x2309   :  { %v5534_v10 = vpack.c.bf16 %v5526_v39, %v5526_v39  ;;  %v7298_v56 = vunpack.i.l.bf16 %v10040_v51  ;;  %v5535_v41 = vpack.c.bf16 %v5527_v36, %v5527_v36  ;;  %v7299_v46 = vunpack.i.h.bf16 %v10040_v51  ;;  %v6456_v45 = vld [vmem:[%s8070_s4] ss:$0 sm:$0xff]  ;;  %s7806_s4 = scalar_lea.vmem %s6229_s27, 32  ;;  %p7811_p1 = scmp.lt.s32.totalorder %s6229_s27, %s6229_s27 }
0x230a   :  { %6133 = vmatprep.mubr.bf16.mxu1 %v5537_v34  ;;  %p7807_p0 = scmp.ne.s32.totalorder %s6229_s27, %s7806_s4  ;;  %p7812_p2 = scmp.lt.s32.totalorder %s7806_s4, %s7806_s4 }
0x230b   :  { %6093 = vmatprep.mubr.bf16.mxu0 %v5535_v41  ;;  %6134 = vmatmul.mubr.bf16.vlgmr.msra.gmra.mxu1 %v5536_v4  ;;  %v5531_v17 = vsel %vm1255_vm3, %v5498_v49, %v7298_v56  ;;  %v5530_v2 = vsel %vm1255_vm3, %v10025_v27, %v7299_v46 }
0x230c   :  { %6094 = vmatmul.mubr.bf16.vlgmr.msra.gmra.mxu0 %v5534_v10  ;;  %6799 = vmatpush3.bf16.msra.mxu1 %v7409_v57  ;;  %v10049_v44 = vpop.permute.xlu1 %7301  ;;  %v5539_v22 = vpack.c.bf16 %v5531_v17, %v5531_v17  ;;  %v5538_v40 = vpack.c.bf16 %v5530_v2, %v5530_v2  ;;  %p7813_p3 = por %p7812_p2, %p7811_p1 }
0x230d   :  { %6777 = vmatpush3.bf16.msra.mxu0 %v7408_v33  ;;  %v7303_v8 = vunpack.i.l.bf16 %v10049_v44  ;;  %6800 = vmatprep.subr.bf16.mxu1 %v7411_v21  ;;  %v7304_v55 = vunpack.i.h.bf16 %v10049_v44 }
0x230e   :  { %6778 = vmatprep.subr.bf16.mxu0 %v7410_v53  ;;  %6173 = vmatprep.mubr.bf16.mxu0 %v5539_v22  ;;  %p7814_p4 = pnand %p7813_p3, %p7807_p0 }
0x230f   :  { %v5533_v23 = vsel %vm1255_vm3, %v5518_v13, %v7303_v8  ;;  %v5532_v9 = vsel %vm1255_vm3, %v10031_v20, %v7304_v55 }
0x2310   :  { %6801 = vmatpush3.bf16.msra.mxu1 %v7413_v3  ;;  %v5541_v18 = vpack.c.bf16 %v5533_v23, %v5533_v23  ;;  %v5540_v19 = vpack.c.bf16 %v5532_v9, %v5532_v9 }
0x2311   :  { %6779 = vmatpush3.bf16.msra.mxu0 %v7412_v63  ;;  %6802 = vmatprep.subr.bf16.mxu1 %v7415_v52 }
0x2312   :  { %6780 = vmatprep.subr.bf16.mxu0 %v7414_v25  ;;  %6213 = vmatprep.mubr.bf16.mxu1 %v5541_v18 }
0x2314   :  { %6803 = vmatpush3.bf16.msra.mxu1 %v7417_v16 }
0x2315   :  { %6781 = vmatpush3.bf16.msra.mxu0 %v7416_v14  ;;  %6804 = vmatprep.subr.bf16.mxu1 %v7419_v31 }
0x2316   :  { %6782 = vmatprep.subr.bf16.mxu0 %v7418_v61 }
0x2318   :  { %6805 = vmatpush3.bf16.msra.mxu1 %v7421_v62 }
0x2319   :  { %6783 = vmatpush3.bf16.msra.mxu0 %v7420_v32  ;;  %6806 = vmatprep.subr.bf16.mxu1 %v7423_v12 }
0x231a   :  { %6784 = vmatprep.subr.bf16.mxu0 %v7422_v7 }
0x231c   :  { %6807 = vmatpush3.bf16.msra.mxu1 %v7425_v58 }
0x231d   :  { %6785 = vmatpush3.bf16.msra.mxu0 %v7424_v43  ;;  %6808 = vmatprep.subr.bf16.mxu1 %v7427_v50 }
0x231e   :  { %6786 = vmatprep.subr.bf16.mxu0 %v7426_v29 }
0x2320   :  { %6809 = vmatpush3.bf16.msra.mxu1 %v7429_v48 }
0x2321   :  { %6787 = vmatpush3.bf16.msra.mxu0 %v7428_v6  ;;  %6810 = vmatprep.subr.bf16.mxu1 %v7431_v15 }
0x2322   :  { %6788 = vmatprep.subr.bf16.mxu0 %v7430_v35 }
0x2324   :  { %6811 = vmatpush3.bf16.msra.mxu1 %v7433_v24 }
0x2325   :  { %6789 = vmatpush3.bf16.msra.mxu0 %v7432_v59  ;;  %6812 = vmatprep.subr.bf16.mxu1 %v7435_v47 }
0x2326   :  { %6790 = vmatprep.subr.bf16.mxu0 %v7434_v0 }
0x2328   :  { %6813 = vmatpush3.bf16.msra.mxu1 %v7437_v26 }
0x2329   :  { %6791 = vmatpush3.bf16.msra.mxu0 %v7436_v30 }
0x232b   :  { %6214 = vmatmul.mubr.bf16.vlgmr.msra.gmra.mxu1 %v5540_v19 }
0x232c   :  { %6174 = vmatmul.mubr.bf16.vlgmr.msra.gmra.mxu0 %v5538_v40 }
0x23cb   :  { %v6770_v54 = vpop.f32.mrf.mxu1 }
0x23cc   :  { %v6748_v49 = vpop.f32.mrf.mxu0 }
0x23cd   :  { %v6771_v13 = vpop.f32.mrf.mxu1 }
0x23ce   :  { %v6749_v60 = vpop.f32.mrf.mxu0  ;;  %v6772_v5 = vadd.f32 %v6771_v13, %v6770_v54 }
0x23cf   :  { %v6773_v11 = vpop.f32.mrf.mxu1  ;;  %v6750_v20 = vadd.f32 %v6749_v60, %v6748_v49 }
0x23d0   :  { %v6751_v38 = vpop.f32.mrf.mxu0 }
0x23d1   :  { %v6774_v37 = vpop.f32.mrf.mxu1  ;;  %v6096_v42 = vadd.f32 %v6750_v20, %v6456_v45 }
0x23d2   :  { %v6752_v1 = vpop.f32.mrf.mxu0 }
0x23d3   :  { %v6136_v51 = vadd.f32 %v6772_v5, %v6096_v42 }
0x23eb   :  { %v6814_v28 = vpop.f32.mrf.mxu1 }
0x23ec   :  { %v6792_v27 = vpop.f32.mrf.mxu0 }
0x23ed   :  { %v6815_v4 = vpop.f32.mrf.mxu1 }
0x23ee   :  { %v6793_v39 = vpop.f32.mrf.mxu0  ;;  %v6816_v56 = vadd.f32 %v6815_v4, %v6814_v28 }
0x23ef   :  { %v6794_v36 = vadd.f32 %v6793_v39, %v6792_v27  ;;  %v6817_v34 = vpop.f32.mrf.mxu1 }
0x23f0   :  { %v6795_v57 = vpop.f32.mrf.mxu0 }
0x23f1   :  { %v6176_v10 = vadd.f32 %v6794_v36, %v6136_v51  ;;  %v6818_v41 = vpop.f32.mrf.mxu1 }
0x23f2   :  { %v6796_v33 = vpop.f32.mrf.mxu0 }
0x23f3   :  { %v6216_v21 = vadd.f32 %v6816_v56, %v6176_v10 }
0x23f5   :  { %6221 = vst [vmem:[#allocation2] sm:$0x3] %v6216_v21 }
0x23f6   :  { %7817 = shalt.err (!%p7814_p4)
}
0x23f7   :  { %6231 = dma.vmem_to_hbm [thread:$0]  %s6229_s27, 32, %s8075_s6, [#allocation3]  }
0x23f8   :  { %7826 = dma.done.wait [#allocation3], 32  }
0x23f9   :  { %7827 = vsyncadd [#allocation3], 4294967264 }
0x23fa   :  { %6235 = vsyncpa [#allocation3], 1 }

</bundles_post_ra>
